<compile_context>
chip_gen: v7x
topology: tpu7x:2x2x1
jax: 0.10.0
libtpu: 0.0.40
codegen_flags: <defaults>
</compile_context>

<pallas_src>
import functools

import jax
import jax.numpy as jnp
import numpy as np
from jax.experimental import pallas as pl
from jax.experimental.pallas import tpu as pltpu


# ------------------------------------------------------------------ kernels

def _conv_bn_act_kernel(a_ref, w_ref, b_ref, g_ref, be_ref, o_ref, *,
                        activation: str, eps: float):
    """Fused Conv(as matmul) + bias + train-mode BatchNorm + activation.

    a_ref  : (Kp, M)     bf16  transposed, K-padded im2col of this branch's input
    w_ref  : (C_out, Kp) bf16  flattened conv weights (zero-padded along K)
    b_ref, g_ref, be_ref : (C_out, 1) f32  conv bias / BN gamma / BN beta
    o_ref  : (C_out, M)  f32   activated, normalized conv output (lane-dense M)
    """
    # Conv as a single MXU matmul, f32 accumulation.
    y = jnp.dot(w_ref[...], a_ref[...], preferred_element_type=jnp.float32)
    y = y + b_ref[...]                                   # bias broadcast over lanes

    # Train-mode BatchNorm statistics over (N, H, W) = the lane axis.
    # Two-pass (centered) variance avoids E[y^2]-E[y]^2 cancellation.
    mean = jnp.mean(y, axis=1, keepdims=True)            # (C_out, 1)
    centered = y - mean
    var = jnp.mean(centered * centered, axis=1, keepdims=True)
    inv_std = jax.lax.rsqrt(var + eps)                   # EUP slot, ~free
    yn = centered * (inv_std * g_ref[...]) + be_ref[...]

    if activation == "leaky_relu":
        out = jnp.where(yn >= 0.0, yn, 0.01 * yn)
    elif activation == "sigmoid":
        out = 1.0 / (1.0 + jnp.exp(-yn))
    else:
        out = yn
    o_ref[...] = out


def _fusion_add_kernel(x_ref, o_ref):
    # x_ref: (2, C, M) stacked branches; o_ref: (C, M)
    o_ref[...] = x_ref[0] + x_ref[1]


# ------------------------------------------------------------------ wrappers

def conv_bn_act(x_cf, weight, bias, gamma, beta, *, activation, eps=1e-5):
    """One DeepFuse ConvLayer applied to B independent branches (shared weights).

    x_cf   : (B, C_in, N, H, W) float32   channel-first, branch-stacked
    weight : (C_out, C_in, kh, kw)        PyTorch OIHW
    returns: (B, C_out, N, H_out, W_out) float32
    """
    B, C_in, N, H, W = x_cf.shape
    C_out, C_in_w, kh, kw = weight.shape
    assert C_in_w == C_in
    pad = {5: 2, 7: 3}.get(kh, 0)                 # padding rule from the PyTorch module
    H_out = H + 2 * pad - kh + 1
    W_out = W + 2 * pad - kw + 1
    M = N * H_out * W_out
    K = C_in * kh * kw
    Kp = ((K + 127) // 128) * 128                 # align contraction dim to 128 lanes

    # --- glue: transposed im2col A_T (B, K, M); row order (c, di, dj) matches OIHW ---
    xp = jnp.pad(x_cf, ((0, 0), (0, 0), (0, 0), (pad, pad), (pad, pad)))
    slabs = [xp[:, :, :, di:di + H_out, dj:dj + W_out]    # each (B, C_in, N, H_out, W_out)
             for di in range(kh) for dj in range(kw)]
    a_t = jnp.stack(slabs, axis=2).reshape(B, K, M)
    a_t = jnp.pad(a_t, ((0, 0), (0, Kp - K), (0, 0))).astype(jnp.bfloat16)

    w_mat = jnp.pad(weight.reshape(C_out, K),
                    ((0, 0), (0, Kp - K))).astype(jnp.bfloat16)
    b2 = bias.reshape(C_out, 1).astype(jnp.float32)
    g2 = gamma.reshape(C_out, 1).astype(jnp.float32)
    be2 = beta.reshape(C_out, 1).astype(jnp.float32)

    kernel = functools.partial(_conv_bn_act_kernel, activation=activation, eps=eps)

    # grid=(B,): one step per branch.  Weights / BN params keep block index (0,0)
    # so they are fetched once and stay VMEM-resident; BN stats are per-branch.
    y_t = pl.pallas_call(
        kernel,
        out_shape=jax.ShapeDtypeStruct((B, C_out, M), jnp.float32),
        grid_spec=pltpu.PrefetchScalarGridSpec(
            num_scalar_prefetch=0,
            grid=(B,),
            in_specs=[pl.BlockSpec((None, Kp, M), lambda b: (b, 0, 0)),
                      pl.BlockSpec((C_out, Kp), lambda b: (0, 0)),
                      pl.BlockSpec((C_out, 1), lambda b: (0, 0)),
                      pl.BlockSpec((C_out, 1), lambda b: (0, 0)),
                      pl.BlockSpec((C_out, 1), lambda b: (0, 0))],
            out_specs=pl.BlockSpec((None, C_out, M), lambda b: (b, 0, 0))),
        compiler_params=pltpu.CompilerParams(
            dimension_semantics=("parallel",)),
    )(a_t, w_mat, b2, g2, be2)

    return y_t.reshape(B, C_out, N, H_out, W_out)


def fusion_add(xy_cf):
    """FusionLayer: add the two stacked branches, lane-dense over N*H*W."""
    B, C, N, H, W = xy_cf.shape
    assert B == 2
    M = N * H * W
    out = pl.pallas_call(
        _fusion_add_kernel,
        out_shape=jax.ShapeDtypeStruct((C, M), xy_cf.dtype),
        grid_spec=pltpu.PrefetchScalarGridSpec(
            num_scalar_prefetch=0,
            grid=(1,),
            in_specs=[pl.BlockSpec((B, C, M), lambda i: (0, 0, 0))],
            out_specs=pl.BlockSpec((C, M), lambda i: (0, 0))),
        compiler_params=pltpu.CompilerParams(dimension_semantics=("arbitrary",)),
    )(xy_cf.reshape(B, C, M))
    return out.reshape(C, N, H, W)


def deepfuse_forward(params, x1, x2):
    """DeepFuse.forward(x1, x2): (N, C, H, W) x2 -> (N, 1, H, W)."""
    # glue: channel select + switch to channel-first, stack the two branches
    a = jnp.stack([jnp.transpose(x1[:, 0:1], (1, 0, 2, 3)),
                   jnp.transpose(x2[:, 0:1], (1, 0, 2, 3))], axis=0)  # (2,1,N,H,W)

    c1 = conv_bn_act(a, *params["layer1"], activation="leaky_relu")   # (2,16,N,H,W)
    c2 = conv_bn_act(c1, *params["layer2"], activation="leaky_relu")  # (2,32,N,H,W)
    f_m = fusion_add(c2)                                              # (32,N,H,W)
    c3 = conv_bn_act(f_m[None], *params["layer4"], activation="leaky_relu")[0]
    c4 = conv_bn_act(c3[None], *params["layer5"], activation="leaky_relu")[0]
    c5 = conv_bn_act(c4[None], *params["layer6"], activation="sigmoid")[0]   # (1,N,H,W)

    return jnp.transpose(c5, (1, 0, 2, 3))        # back to (N, 1, H, W)


# ------------------------------------------------------------------ reference

def _ref_conv_layer(x, weight, bias, gamma, beta, activation, eps=1e-5):
    k = weight.shape[-1]
    p = {5: 2, 7: 3}.get(k, 0)
    y = jax.lax.conv_general_dilated(
        x, weight, window_strides=(1, 1), padding=[(p, p), (p, p)],
        dimension_numbers=('NCHW', 'OIHW', 'NCHW'),
        precision=jax.lax.Precision.HIGHEST)
    y = y + bias.reshape(1, -1, 1, 1)
    mean = y.mean(axis=(0, 2, 3), keepdims=True)
    var = ((y - mean) ** 2).mean(axis=(0, 2, 3), keepdims=True)   # biased (BN train)
    yn = (y - mean) / jnp.sqrt(var + eps) * gamma.reshape(1, -1, 1, 1) \
         + beta.reshape(1, -1, 1, 1)
    if activation == "leaky_relu":
        return jnp.where(yn >= 0.0, yn, 0.01 * yn)
    return jax.nn.sigmoid(yn)


def reference_forward(params, x1, x2):
    c11 = _ref_conv_layer(x1[:, 0:1], *params["layer1"], "leaky_relu")
    c12 = _ref_conv_layer(x2[:, 0:1], *params["layer1"], "leaky_relu")
    c21 = _ref_conv_layer(c11, *params["layer2"], "leaky_relu")
    c22 = _ref_conv_layer(c12, *params["layer2"], "leaky_relu")
    f_m = c21 + c22
    c3 = _ref_conv_layer(f_m, *params["layer4"], "leaky_relu")
    c4 = _ref_conv_layer(c3, *params["layer5"], "leaky_relu")
    return _ref_conv_layer(c4, *params["layer6"], "sigmoid")


# ------------------------------------------------------------------ main

def _init_conv_layer(key, c_in, c_out, k):
    kw_, kb_, kg_, kbe_ = jax.random.split(key, 4)
    fan_in = c_in * k * k
    w = jax.random.normal(kw_, (c_out, c_in, k, k), jnp.float32) / np.sqrt(fan_in)
    b = 0.1 * jax.random.normal(kb_, (c_out,), jnp.float32)
    g = 1.0 + 0.1 * jax.random.normal(kg_, (c_out,), jnp.float32)
    be = 0.1 * jax.random.normal(kbe_, (c_out,), jnp.float32)
    return (w, b, g, be)


if __name__ == "__main__":
    key = jax.random.PRNGKey(0)
    kx1, kx2, k1, k2, k4, k5, k6 = jax.random.split(key, 7)

    N, H, W = 2, 16, 16
    x1 = jax.random.normal(kx1, (N, 1, H, W), dtype=jnp.float32)
    x2 = jax.random.normal(kx2, (N, 1, H, W), dtype=jnp.float32)

    params = {
        "layer1": _init_conv_layer(k1, 1, 16, 5),
        "layer2": _init_conv_layer(k2, 16, 32, 7),
        "layer4": _init_conv_layer(k4, 32, 32, 7),
        "layer5": _init_conv_layer(k5, 32, 16, 5),
        "layer6": _init_conv_layer(k6, 16, 1, 5),
    }

    fwd = jax.jit(deepfuse_forward)
    out = jax.block_until_ready(fwd(params, x1, x2))

    ref = reference_forward(params, x1, x2)
    np.testing.assert_allclose(np.asarray(out), np.asarray(ref), rtol=2e-2, atol=2e-2)

    print("KERNEL_OK")
</pallas_src>

<mosaic_0001>
module attributes {stable_mosaic.version = 11 : i64} {
  func.func @_conv_bn_act_kernel(%arg0: i32, %arg1: memref<1x128x512xbf16, #tpu.memory_space<vmem>>, %arg2: memref<16x128xbf16, #tpu.memory_space<vmem>>, %arg3: memref<16x1xf32, #tpu.memory_space<vmem>>, %arg4: memref<16x1xf32, #tpu.memory_space<vmem>>, %arg5: memref<16x1xf32, #tpu.memory_space<vmem>>, %arg6: memref<1x16x512xf32, #tpu.memory_space<vmem>>) attributes {dimension_semantics = [#tpu.dimension_semantics<parallel>], iteration_bounds = array<i64: 2>, scalar_prefetch = 0 : i64, scratch_operands = 0 : i64, tpu.core_type = #tpu.core_type<tc>, window_params = [{transform_indices = @transform_0, window_bounds = array<i64: 1, 128, 512>}, {pipeline_mode = #tpu.pipeline_mode<synchronous>, transform_indices = @transform_1, window_bounds = array<i64: 16, 128>}, {pipeline_mode = #tpu.pipeline_mode<synchronous>, transform_indices = @transform_2, window_bounds = array<i64: 16, 1>}, {pipeline_mode = #tpu.pipeline_mode<synchronous>, transform_indices = @transform_3, window_bounds = array<i64: 16, 1>}, {pipeline_mode = #tpu.pipeline_mode<synchronous>, transform_indices = @transform_4, window_bounds = array<i64: 16, 1>}, {transform_indices = @transform_5, window_bounds = array<i64: 1, 16, 512>}]} {
    %c0 = arith.constant 0 : index
    %c0_0 = arith.constant 0 : index
    %0 = vector.load %arg2[%c0, %c0_0] : memref<16x128xbf16, #tpu.memory_space<vmem>>, vector<16x128xbf16>
    %c0_1 = arith.constant 0 : index
    %c0_2 = arith.constant 0 : index
    %c0_3 = arith.constant 0 : index
    %1 = vector.load %arg1[%c0_1, %c0_2, %c0_3] : memref<1x128x512xbf16, #tpu.memory_space<vmem>>, vector<1x128x512xbf16>
    %2 = vector.shape_cast %1 : vector<1x128x512xbf16> to vector<128x512xbf16>
    %cst = arith.constant dense<0.000000e+00> : vector<16x512xf32>
    %3 = tpu.matmul %0, %2, %cst {dimension_numbers = #tpu.dot_dimension_numbers<[1], [0], [0], [1], [0, 0, 1, 1], [], []>} : vector<16x128xbf16>, vector<128x512xbf16>, vector<16x512xf32> -> vector<16x512xf32>
    %c0_4 = arith.constant 0 : index
    %c0_5 = arith.constant 0 : index
    %4 = vector.load %arg3[%c0_4, %c0_5] : memref<16x1xf32, #tpu.memory_space<vmem>>, vector<16x1xf32>
    %5 = vector.broadcast %4 : vector<16x1xf32> to vector<16x512xf32>
    %6 = arith.addf %3, %5 : vector<16x512xf32>
    %cst_6 = arith.constant dense<0.000000e+00> : vector<16xf32>
    %7 = vector.multi_reduction <add>, %6, %cst_6 [1] : vector<16x512xf32> to vector<16xf32>
    %8 = vector.shape_cast %7 : vector<16xf32> to vector<16x1xf32>
    %cst_7 = arith.constant 5.120000e+02 : f32
    %9 = vector.broadcast %cst_7 : f32 to vector<16x1xf32>
    %10 = arith.divf %8, %9 : vector<16x1xf32>
    %11 = vector.broadcast %10 : vector<16x1xf32> to vector<16x512xf32>
    %12 = arith.subf %6, %11 : vector<16x512xf32>
    %13 = arith.mulf %12, %12 : vector<16x512xf32>
    %cst_8 = arith.constant dense<0.000000e+00> : vector<16xf32>
    %14 = vector.multi_reduction <add>, %13, %cst_8 [1] : vector<16x512xf32> to vector<16xf32>
    %15 = vector.shape_cast %14 : vector<16xf32> to vector<16x1xf32>
    %cst_9 = arith.constant 5.120000e+02 : f32
    %16 = vector.broadcast %cst_9 : f32 to vector<16x1xf32>
    %17 = arith.divf %15, %16 : vector<16x1xf32>
    %cst_10 = arith.constant 9.99999974E-6 : f32
    %18 = vector.broadcast %cst_10 : f32 to vector<16x1xf32>
    %19 = arith.addf %17, %18 : vector<16x1xf32>
    %20 = math.rsqrt %19 : vector<16x1xf32>
    %c0_11 = arith.constant 0 : index
    %c0_12 = arith.constant 0 : index
    %21 = vector.load %arg4[%c0_11, %c0_12] : memref<16x1xf32, #tpu.memory_space<vmem>>, vector<16x1xf32>
    %22 = arith.mulf %20, %21 : vector<16x1xf32>
    %23 = vector.broadcast %22 : vector<16x1xf32> to vector<16x512xf32>
    %24 = arith.mulf %12, %23 : vector<16x512xf32>
    %c0_13 = arith.constant 0 : index
    %c0_14 = arith.constant 0 : index
    %25 = vector.load %arg5[%c0_13, %c0_14] : memref<16x1xf32, #tpu.memory_space<vmem>>, vector<16x1xf32>
    %26 = vector.broadcast %25 : vector<16x1xf32> to vector<16x512xf32>
    %27 = arith.addf %24, %26 : vector<16x512xf32>
    %cst_15 = arith.constant 0.000000e+00 : f32
    %28 = vector.broadcast %cst_15 : f32 to vector<16x512xf32>
    %29 = arith.cmpf oge, %27, %28 : vector<16x512xf32>
    %cst_16 = arith.constant 0.00999999977 : f32
    %30 = vector.broadcast %cst_16 : f32 to vector<16x512xf32>
    %31 = arith.mulf %30, %27 : vector<16x512xf32>
    %32 = arith.select %29, %27, %31 : vector<16x512xi1>, vector<16x512xf32>
    %c0_17 = arith.constant 0 : index
    %c0_18 = arith.constant 0 : index
    %c0_19 = arith.constant 0 : index
    %33 = vector.load %arg6[%c0_17, %c0_18, %c0_19] : memref<1x16x512xf32, #tpu.memory_space<vmem>>, vector<1x16x512xf32>
    %34 = vector.shape_cast %33 : vector<1x16x512xf32> to vector<16x512xf32>
    %35 = vector.shape_cast %32 : vector<16x512xf32> to vector<1x16x512xf32>
    tpu.vector_store %arg6[%c0_17, %c0_18, %c0_19], %35 {strides = array<i32>} : memref<1x16x512xf32, #tpu.memory_space<vmem>>, vector<1x16x512xf32>,
    return
  }
  func.func @transform_0(%arg0: i32) -> (i32, i32, i32) {
    %c0_i32 = arith.constant 0 : i32
    %c0_i32_0 = arith.constant 0 : i32
    %c0_i32_1 = arith.constant 0 : i32
    return %arg0, %c0_i32, %c0_i32_0 : i32, i32, i32
  }
  func.func @transform_1(%arg0: i32) -> (i32, i32) {
    %c0_i32 = arith.constant 0 : i32
    %c0_i32_0 = arith.constant 0 : i32
    %c0_i32_1 = arith.constant 0 : i32
    return %c0_i32, %c0_i32_0 : i32, i32
  }
  func.func @transform_2(%arg0: i32) -> (i32, i32) {
    %c0_i32 = arith.constant 0 : i32
    %c0_i32_0 = arith.constant 0 : i32
    %c0_i32_1 = arith.constant 0 : i32
    return %c0_i32, %c0_i32_0 : i32, i32
  }
  func.func @transform_3(%arg0: i32) -> (i32, i32) {
    %c0_i32 = arith.constant 0 : i32
    %c0_i32_0 = arith.constant 0 : i32
    %c0_i32_1 = arith.constant 0 : i32
    return %c0_i32, %c0_i32_0 : i32, i32
  }
  func.func @transform_4(%arg0: i32) -> (i32, i32) {
    %c0_i32 = arith.constant 0 : i32
    %c0_i32_0 = arith.constant 0 : i32
    %c0_i32_1 = arith.constant 0 : i32
    return %c0_i32, %c0_i32_0 : i32, i32
  }
  func.func @transform_5(%arg0: i32) -> (i32, i32, i32) {
    %c0_i32 = arith.constant 0 : i32
    %c0_i32_0 = arith.constant 0 : i32
    %c0_i32_1 = arith.constant 0 : i32
    return %arg0, %c0_i32, %c0_i32_0 : i32, i32, i32
  }
}

module attributes {stable_mosaic.version = 11 : i64} {
  func.func @_conv_bn_act_kernel(%arg0: i32, %arg1: memref<1x896x512xbf16, #tpu.memory_space<vmem>>, %arg2: memref<32x896xbf16, #tpu.memory_space<vmem>>, %arg3: memref<32x1xf32, #tpu.memory_space<vmem>>, %arg4: memref<32x1xf32, #tpu.memory_space<vmem>>, %arg5: memref<32x1xf32, #tpu.memory_space<vmem>>, %arg6: memref<1x32x512xf32, #tpu.memory_space<vmem>>) attributes {dimension_semantics = [#tpu.dimension_semantics<parallel>], iteration_bounds = array<i64: 2>, scalar_prefetch = 0 : i64, scratch_operands = 0 : i64, tpu.core_type = #tpu.core_type<tc>, window_params = [{transform_indices = @transform_0, window_bounds = array<i64: 1, 896, 512>}, {pipeline_mode = #tpu.pipeline_mode<synchronous>, transform_indices = @transform_1, window_bounds = array<i64: 32, 896>}, {pipeline_mode = #tpu.pipeline_mode<synchronous>, transform_indices = @transform_2, window_bounds = array<i64: 32, 1>}, {pipeline_mode = #tpu.pipeline_mode<synchronous>, transform_indices = @transform_3, window_bounds = array<i64: 32, 1>}, {pipeline_mode = #tpu.pipeline_mode<synchronous>, transform_indices = @transform_4, window_bounds = array<i64: 32, 1>}, {transform_indices = @transform_5, window_bounds = array<i64: 1, 32, 512>}]} {
    %c0 = arith.constant 0 : index
    %c0_0 = arith.constant 0 : index
    %0 = vector.load %arg2[%c0, %c0_0] : memref<32x896xbf16, #tpu.memory_space<vmem>>, vector<32x896xbf16>
    %c0_1 = arith.constant 0 : index
    %c0_2 = arith.constant 0 : index
    %c0_3 = arith.constant 0 : index
    %1 = vector.load %arg1[%c0_1, %c0_2, %c0_3] : memref<1x896x512xbf16, #tpu.memory_space<vmem>>, vector<1x896x512xbf16>
    %2 = vector.shape_cast %1 : vector<1x896x512xbf16> to vector<896x512xbf16>
    %cst = arith.constant dense<0.000000e+00> : vector<32x512xf32>
    %3 = tpu.matmul %0, %2, %cst {dimension_numbers = #tpu.dot_dimension_numbers<[1], [0], [0], [1], [0, 0, 1, 1], [], []>} : vector<32x896xbf16>, vector<896x512xbf16>, vector<32x512xf32> -> vector<32x512xf32>
    %c0_4 = arith.constant 0 : index
    %c0_5 = arith.constant 0 : index
    %4 = vector.load %arg3[%c0_4, %c0_5] : memref<32x1xf32, #tpu.memory_space<vmem>>, vector<32x1xf32>
    %5 = vector.broadcast %4 : vector<32x1xf32> to vector<32x512xf32>
    %6 = arith.addf %3, %5 : vector<32x512xf32>
    %cst_6 = arith.constant dense<0.000000e+00> : vector<32xf32>
    %7 = vector.multi_reduction <add>, %6, %cst_6 [1] : vector<32x512xf32> to vector<32xf32>
    %8 = vector.shape_cast %7 : vector<32xf32> to vector<32x1xf32>
    %cst_7 = arith.constant 5.120000e+02 : f32
    %9 = vector.broadcast %cst_7 : f32 to vector<32x1xf32>
    %10 = arith.divf %8, %9 : vector<32x1xf32>
    %11 = vector.broadcast %10 : vector<32x1xf32> to vector<32x512xf32>
    %12 = arith.subf %6, %11 : vector<32x512xf32>
    %13 = arith.mulf %12, %12 : vector<32x512xf32>
    %cst_8 = arith.constant dense<0.000000e+00> : vector<32xf32>
    %14 = vector.multi_reduction <add>, %13, %cst_8 [1] : vector<32x512xf32> to vector<32xf32>
    %15 = vector.shape_cast %14 : vector<32xf32> to vector<32x1xf32>
    %cst_9 = arith.constant 5.120000e+02 : f32
    %16 = vector.broadcast %cst_9 : f32 to vector<32x1xf32>
    %17 = arith.divf %15, %16 : vector<32x1xf32>
    %cst_10 = arith.constant 9.99999974E-6 : f32
    %18 = vector.broadcast %cst_10 : f32 to vector<32x1xf32>
    %19 = arith.addf %17, %18 : vector<32x1xf32>
    %20 = math.rsqrt %19 : vector<32x1xf32>
    %c0_11 = arith.constant 0 : index
    %c0_12 = arith.constant 0 : index
    %21 = vector.load %arg4[%c0_11, %c0_12] : memref<32x1xf32, #tpu.memory_space<vmem>>, vector<32x1xf32>
    %22 = arith.mulf %20, %21 : vector<32x1xf32>
    %23 = vector.broadcast %22 : vector<32x1xf32> to vector<32x512xf32>
    %24 = arith.mulf %12, %23 : vector<32x512xf32>
    %c0_13 = arith.constant 0 : index
    %c0_14 = arith.constant 0 : index
    %25 = vector.load %arg5[%c0_13, %c0_14] : memref<32x1xf32, #tpu.memory_space<vmem>>, vector<32x1xf32>
    %26 = vector.broadcast %25 : vector<32x1xf32> to vector<32x512xf32>
    %27 = arith.addf %24, %26 : vector<32x512xf32>
    %cst_15 = arith.constant 0.000000e+00 : f32
    %28 = vector.broadcast %cst_15 : f32 to vector<32x512xf32>
    %29 = arith.cmpf oge, %27, %28 : vector<32x512xf32>
    %cst_16 = arith.constant 0.00999999977 : f32
    %30 = vector.broadcast %cst_16 : f32 to vector<32x512xf32>
    %31 = arith.mulf %30, %27 : vector<32x512xf32>
    %32 = arith.select %29, %27, %31 : vector<32x512xi1>, vector<32x512xf32>
    %c0_17 = arith.constant 0 : index
    %c0_18 = arith.constant 0 : index
    %c0_19 = arith.constant 0 : index
    %33 = vector.load %arg6[%c0_17, %c0_18, %c0_19] : memref<1x32x512xf32, #tpu.memory_space<vmem>>, vector<1x32x512xf32>
    %34 = vector.shape_cast %33 : vector<1x32x512xf32> to vector<32x512xf32>
    %35 = vector.shape_cast %32 : vector<32x512xf32> to vector<1x32x512xf32>
    tpu.vector_store %arg6[%c0_17, %c0_18, %c0_19], %35 {strides = array<i32>} : memref<1x32x512xf32, #tpu.memory_space<vmem>>, vector<1x32x512xf32>,
    return
  }
  func.func @transform_0(%arg0: i32) -> (i32, i32, i32) {
    %c0_i32 = arith.constant 0 : i32
    %c0_i32_0 = arith.constant 0 : i32
    %c0_i32_1 = arith.constant 0 : i32
    return %arg0, %c0_i32, %c0_i32_0 : i32, i32, i32
  }
  func.func @transform_1(%arg0: i32) -> (i32, i32) {
    %c0_i32 = arith.constant 0 : i32
    %c0_i32_0 = arith.constant 0 : i32
    %c0_i32_1 = arith.constant 0 : i32
    return %c0_i32, %c0_i32_0 : i32, i32
  }
  func.func @transform_2(%arg0: i32) -> (i32, i32) {
    %c0_i32 = arith.constant 0 : i32
    %c0_i32_0 = arith.constant 0 : i32
    %c0_i32_1 = arith.constant 0 : i32
    return %c0_i32, %c0_i32_0 : i32, i32
  }
  func.func @transform_3(%arg0: i32) -> (i32, i32) {
    %c0_i32 = arith.constant 0 : i32
    %c0_i32_0 = arith.constant 0 : i32
    %c0_i32_1 = arith.constant 0 : i32
    return %c0_i32, %c0_i32_0 : i32, i32
  }
  func.func @transform_4(%arg0: i32) -> (i32, i32) {
    %c0_i32 = arith.constant 0 : i32
    %c0_i32_0 = arith.constant 0 : i32
    %c0_i32_1 = arith.constant 0 : i32
    return %c0_i32, %c0_i32_0 : i32, i32
  }
  func.func @transform_5(%arg0: i32) -> (i32, i32, i32) {
    %c0_i32 = arith.constant 0 : i32
    %c0_i32_0 = arith.constant 0 : i32
    %c0_i32_1 = arith.constant 0 : i32
    return %arg0, %c0_i32, %c0_i32_0 : i32, i32, i32
  }
}

module attributes {stable_mosaic.version = 11 : i64} {
  func.func @_fusion_add_kernel(%arg0: i32, %arg1: memref<2x32x512xf32, #tpu.memory_space<vmem>>, %arg2: memref<32x512xf32, #tpu.memory_space<vmem>>) attributes {dimension_semantics = [#tpu.dimension_semantics<arbitrary>], iteration_bounds = array<i64: 1>, scalar_prefetch = 0 : i64, scratch_operands = 0 : i64, tpu.core_type = #tpu.core_type<tc>, window_params = [{pipeline_mode = #tpu.pipeline_mode<synchronous>, transform_indices = @transform_0, window_bounds = array<i64: 2, 32, 512>}, {pipeline_mode = #tpu.pipeline_mode<synchronous>, transform_indices = @transform_1, window_bounds = array<i64: 32, 512>}]} {
    %c0 = arith.constant 0 : index
    %c0_0 = arith.constant 0 : index
    %c0_1 = arith.constant 0 : index
    %0 = vector.load %arg1[%c0, %c0_0, %c0_1] : memref<2x32x512xf32, #tpu.memory_space<vmem>>, vector<1x32x512xf32>
    %1 = vector.shape_cast %0 : vector<1x32x512xf32> to vector<32x512xf32>
    %c1 = arith.constant 1 : index
    %c0_2 = arith.constant 0 : index
    %c0_3 = arith.constant 0 : index
    %2 = vector.load %arg1[%c1, %c0_2, %c0_3] : memref<2x32x512xf32, #tpu.memory_space<vmem>>, vector<1x32x512xf32>
    %3 = vector.shape_cast %2 : vector<1x32x512xf32> to vector<32x512xf32>
    %4 = arith.addf %1, %3 : vector<32x512xf32>
    %c0_4 = arith.constant 0 : index
    %c0_5 = arith.constant 0 : index
    %5 = vector.load %arg2[%c0_4, %c0_5] : memref<32x512xf32, #tpu.memory_space<vmem>>, vector<32x512xf32>
    tpu.vector_store %arg2[%c0_4, %c0_5], %4 {strides = array<i32>} : memref<32x512xf32, #tpu.memory_space<vmem>>, vector<32x512xf32>,
    return
  }
  func.func @transform_0(%arg0: i32) -> (i32, i32, i32) {
    %c0_i32 = arith.constant 0 : i32
    %c0_i32_0 = arith.constant 0 : i32
    %c0_i32_1 = arith.constant 0 : i32
    %c0_i32_2 = arith.constant 0 : i32
    return %c0_i32, %c0_i32_0, %c0_i32_1 : i32, i32, i32
  }
  func.func @transform_1(%arg0: i32) -> (i32, i32) {
    %c0_i32 = arith.constant 0 : i32
    %c0_i32_0 = arith.constant 0 : i32
    %c0_i32_1 = arith.constant 0 : i32
    return %c0_i32, %c0_i32_0 : i32, i32
  }
}

module attributes {stable_mosaic.version = 11 : i64} {
  func.func @_conv_bn_act_kernel(%arg0: i32, %arg1: memref<1x1664x512xbf16, #tpu.memory_space<vmem>>, %arg2: memref<32x1664xbf16, #tpu.memory_space<vmem>>, %arg3: memref<32x1xf32, #tpu.memory_space<vmem>>, %arg4: memref<32x1xf32, #tpu.memory_space<vmem>>, %arg5: memref<32x1xf32, #tpu.memory_space<vmem>>, %arg6: memref<1x32x512xf32, #tpu.memory_space<vmem>>) attributes {dimension_semantics = [#tpu.dimension_semantics<parallel>], iteration_bounds = array<i64: 1>, scalar_prefetch = 0 : i64, scratch_operands = 0 : i64, tpu.core_type = #tpu.core_type<tc>, window_params = [{transform_indices = @transform_0, window_bounds = array<i64: 1, 1664, 512>}, {pipeline_mode = #tpu.pipeline_mode<synchronous>, transform_indices = @transform_1, window_bounds = array<i64: 32, 1664>}, {pipeline_mode = #tpu.pipeline_mode<synchronous>, transform_indices = @transform_2, window_bounds = array<i64: 32, 1>}, {pipeline_mode = #tpu.pipeline_mode<synchronous>, transform_indices = @transform_3, window_bounds = array<i64: 32, 1>}, {pipeline_mode = #tpu.pipeline_mode<synchronous>, transform_indices = @transform_4, window_bounds = array<i64: 32, 1>}, {transform_indices = @transform_5, window_bounds = array<i64: 1, 32, 512>}]} {
    %c0 = arith.constant 0 : index
    %c0_0 = arith.constant 0 : index
    %0 = vector.load %arg2[%c0, %c0_0] : memref<32x1664xbf16, #tpu.memory_space<vmem>>, vector<32x1664xbf16>
    %c0_1 = arith.constant 0 : index
    %c0_2 = arith.constant 0 : index
    %c0_3 = arith.constant 0 : index
    %1 = vector.load %arg1[%c0_1, %c0_2, %c0_3] : memref<1x1664x512xbf16, #tpu.memory_space<vmem>>, vector<1x1664x512xbf16>
    %2 = vector.shape_cast %1 : vector<1x1664x512xbf16> to vector<1664x512xbf16>
    %cst = arith.constant dense<0.000000e+00> : vector<32x512xf32>
    %3 = tpu.matmul %0, %2, %cst {dimension_numbers = #tpu.dot_dimension_numbers<[1], [0], [0], [1], [0, 0, 1, 1], [], []>} : vector<32x1664xbf16>, vector<1664x512xbf16>, vector<32x512xf32> -> vector<32x512xf32>
    %c0_4 = arith.constant 0 : index
    %c0_5 = arith.constant 0 : index
    %4 = vector.load %arg3[%c0_4, %c0_5] : memref<32x1xf32, #tpu.memory_space<vmem>>, vector<32x1xf32>
    %5 = vector.broadcast %4 : vector<32x1xf32> to vector<32x512xf32>
    %6 = arith.addf %3, %5 : vector<32x512xf32>
    %cst_6 = arith.constant dense<0.000000e+00> : vector<32xf32>
    %7 = vector.multi_reduction <add>, %6, %cst_6 [1] : vector<32x512xf32> to vector<32xf32>
    %8 = vector.shape_cast %7 : vector<32xf32> to vector<32x1xf32>
    %cst_7 = arith.constant 5.120000e+02 : f32
    %9 = vector.broadcast %cst_7 : f32 to vector<32x1xf32>
    %10 = arith.divf %8, %9 : vector<32x1xf32>
    %11 = vector.broadcast %10 : vector<32x1xf32> to vector<32x512xf32>
    %12 = arith.subf %6, %11 : vector<32x512xf32>
    %13 = arith.mulf %12, %12 : vector<32x512xf32>
    %cst_8 = arith.constant dense<0.000000e+00> : vector<32xf32>
    %14 = vector.multi_reduction <add>, %13, %cst_8 [1] : vector<32x512xf32> to vector<32xf32>
    %15 = vector.shape_cast %14 : vector<32xf32> to vector<32x1xf32>
    %cst_9 = arith.constant 5.120000e+02 : f32
    %16 = vector.broadcast %cst_9 : f32 to vector<32x1xf32>
    %17 = arith.divf %15, %16 : vector<32x1xf32>
    %cst_10 = arith.constant 9.99999974E-6 : f32
    %18 = vector.broadcast %cst_10 : f32 to vector<32x1xf32>
    %19 = arith.addf %17, %18 : vector<32x1xf32>
    %20 = math.rsqrt %19 : vector<32x1xf32>
    %c0_11 = arith.constant 0 : index
    %c0_12 = arith.constant 0 : index
    %21 = vector.load %arg4[%c0_11, %c0_12] : memref<32x1xf32, #tpu.memory_space<vmem>>, vector<32x1xf32>
    %22 = arith.mulf %20, %21 : vector<32x1xf32>
    %23 = vector.broadcast %22 : vector<32x1xf32> to vector<32x512xf32>
    %24 = arith.mulf %12, %23 : vector<32x512xf32>
    %c0_13 = arith.constant 0 : index
    %c0_14 = arith.constant 0 : index
    %25 = vector.load %arg5[%c0_13, %c0_14] : memref<32x1xf32, #tpu.memory_space<vmem>>, vector<32x1xf32>
    %26 = vector.broadcast %25 : vector<32x1xf32> to vector<32x512xf32>
    %27 = arith.addf %24, %26 : vector<32x512xf32>
    %cst_15 = arith.constant 0.000000e+00 : f32
    %28 = vector.broadcast %cst_15 : f32 to vector<32x512xf32>
    %29 = arith.cmpf oge, %27, %28 : vector<32x512xf32>
    %cst_16 = arith.constant 0.00999999977 : f32
    %30 = vector.broadcast %cst_16 : f32 to vector<32x512xf32>
    %31 = arith.mulf %30, %27 : vector<32x512xf32>
    %32 = arith.select %29, %27, %31 : vector<32x512xi1>, vector<32x512xf32>
    %c0_17 = arith.constant 0 : index
    %c0_18 = arith.constant 0 : index
    %c0_19 = arith.constant 0 : index
    %33 = vector.load %arg6[%c0_17, %c0_18, %c0_19] : memref<1x32x512xf32, #tpu.memory_space<vmem>>, vector<1x32x512xf32>
    %34 = vector.shape_cast %33 : vector<1x32x512xf32> to vector<32x512xf32>
    %35 = vector.shape_cast %32 : vector<32x512xf32> to vector<1x32x512xf32>
    tpu.vector_store %arg6[%c0_17, %c0_18, %c0_19], %35 {strides = array<i32>} : memref<1x32x512xf32, #tpu.memory_space<vmem>>, vector<1x32x512xf32>,
    return
  }
  func.func @transform_0(%arg0: i32) -> (i32, i32, i32) {
    %c0_i32 = arith.constant 0 : i32
    %c0_i32_0 = arith.constant 0 : i32
    %c0_i32_1 = arith.constant 0 : i32
    return %arg0, %c0_i32, %c0_i32_0 : i32, i32, i32
  }
  func.func @transform_1(%arg0: i32) -> (i32, i32) {
    %c0_i32 = arith.constant 0 : i32
    %c0_i32_0 = arith.constant 0 : i32
    %c0_i32_1 = arith.constant 0 : i32
    return %c0_i32, %c0_i32_0 : i32, i32
  }
  func.func @transform_2(%arg0: i32) -> (i32, i32) {
    %c0_i32 = arith.constant 0 : i32
    %c0_i32_0 = arith.constant 0 : i32
    %c0_i32_1 = arith.constant 0 : i32
    return %c0_i32, %c0_i32_0 : i32, i32
  }
  func.func @transform_3(%arg0: i32) -> (i32, i32) {
    %c0_i32 = arith.constant 0 : i32
    %c0_i32_0 = arith.constant 0 : i32
    %c0_i32_1 = arith.constant 0 : i32
    return %c0_i32, %c0_i32_0 : i32, i32
  }
  func.func @transform_4(%arg0: i32) -> (i32, i32) {
    %c0_i32 = arith.constant 0 : i32
    %c0_i32_0 = arith.constant 0 : i32
    %c0_i32_1 = arith.constant 0 : i32
    return %c0_i32, %c0_i32_0 : i32, i32
  }
  func.func @transform_5(%arg0: i32) -> (i32, i32, i32) {
    %c0_i32 = arith.constant 0 : i32
    %c0_i32_0 = arith.constant 0 : i32
    %c0_i32_1 = arith.constant 0 : i32
    return %arg0, %c0_i32, %c0_i32_0 : i32, i32, i32
  }
}

module attributes {stable_mosaic.version = 11 : i64} {
  func.func @_conv_bn_act_kernel(%arg0: i32, %arg1: memref<1x896x512xbf16, #tpu.memory_space<vmem>>, %arg2: memref<16x896xbf16, #tpu.memory_space<vmem>>, %arg3: memref<16x1xf32, #tpu.memory_space<vmem>>, %arg4: memref<16x1xf32, #tpu.memory_space<vmem>>, %arg5: memref<16x1xf32, #tpu.memory_space<vmem>>, %arg6: memref<1x16x512xf32, #tpu.memory_space<vmem>>) attributes {dimension_semantics = [#tpu.dimension_semantics<parallel>], iteration_bounds = array<i64: 1>, scalar_prefetch = 0 : i64, scratch_operands = 0 : i64, tpu.core_type = #tpu.core_type<tc>, window_params = [{transform_indices = @transform_0, window_bounds = array<i64: 1, 896, 512>}, {pipeline_mode = #tpu.pipeline_mode<synchronous>, transform_indices = @transform_1, window_bounds = array<i64: 16, 896>}, {pipeline_mode = #tpu.pipeline_mode<synchronous>, transform_indices = @transform_2, window_bounds = array<i64: 16, 1>}, {pipeline_mode = #tpu.pipeline_mode<synchronous>, transform_indices = @transform_3, window_bounds = array<i64: 16, 1>}, {pipeline_mode = #tpu.pipeline_mode<synchronous>, transform_indices = @transform_4, window_bounds = array<i64: 16, 1>}, {transform_indices = @transform_5, window_bounds = array<i64: 1, 16, 512>}]} {
    %c0 = arith.constant 0 : index
    %c0_0 = arith.constant 0 : index
    %0 = vector.load %arg2[%c0, %c0_0] : memref<16x896xbf16, #tpu.memory_space<vmem>>, vector<16x896xbf16>
    %c0_1 = arith.constant 0 : index
    %c0_2 = arith.constant 0 : index
    %c0_3 = arith.constant 0 : index
    %1 = vector.load %arg1[%c0_1, %c0_2, %c0_3] : memref<1x896x512xbf16, #tpu.memory_space<vmem>>, vector<1x896x512xbf16>
    %2 = vector.shape_cast %1 : vector<1x896x512xbf16> to vector<896x512xbf16>
    %cst = arith.constant dense<0.000000e+00> : vector<16x512xf32>
    %3 = tpu.matmul %0, %2, %cst {dimension_numbers = #tpu.dot_dimension_numbers<[1], [0], [0], [1], [0, 0, 1, 1], [], []>} : vector<16x896xbf16>, vector<896x512xbf16>, vector<16x512xf32> -> vector<16x512xf32>
    %c0_4 = arith.constant 0 : index
    %c0_5 = arith.constant 0 : index
    %4 = vector.load %arg3[%c0_4, %c0_5] : memref<16x1xf32, #tpu.memory_space<vmem>>, vector<16x1xf32>
    %5 = vector.broadcast %4 : vector<16x1xf32> to vector<16x512xf32>
    %6 = arith.addf %3, %5 : vector<16x512xf32>
    %cst_6 = arith.constant dense<0.000000e+00> : vector<16xf32>
    %7 = vector.multi_reduction <add>, %6, %cst_6 [1] : vector<16x512xf32> to vector<16xf32>
    %8 = vector.shape_cast %7 : vector<16xf32> to vector<16x1xf32>
    %cst_7 = arith.constant 5.120000e+02 : f32
    %9 = vector.broadcast %cst_7 : f32 to vector<16x1xf32>
    %10 = arith.divf %8, %9 : vector<16x1xf32>
    %11 = vector.broadcast %10 : vector<16x1xf32> to vector<16x512xf32>
    %12 = arith.subf %6, %11 : vector<16x512xf32>
    %13 = arith.mulf %12, %12 : vector<16x512xf32>
    %cst_8 = arith.constant dense<0.000000e+00> : vector<16xf32>
    %14 = vector.multi_reduction <add>, %13, %cst_8 [1] : vector<16x512xf32> to vector<16xf32>
    %15 = vector.shape_cast %14 : vector<16xf32> to vector<16x1xf32>
    %cst_9 = arith.constant 5.120000e+02 : f32
    %16 = vector.broadcast %cst_9 : f32 to vector<16x1xf32>
    %17 = arith.divf %15, %16 : vector<16x1xf32>
    %cst_10 = arith.constant 9.99999974E-6 : f32
    %18 = vector.broadcast %cst_10 : f32 to vector<16x1xf32>
    %19 = arith.addf %17, %18 : vector<16x1xf32>
    %20 = math.rsqrt %19 : vector<16x1xf32>
    %c0_11 = arith.constant 0 : index
    %c0_12 = arith.constant 0 : index
    %21 = vector.load %arg4[%c0_11, %c0_12] : memref<16x1xf32, #tpu.memory_space<vmem>>, vector<16x1xf32>
    %22 = arith.mulf %20, %21 : vector<16x1xf32>
    %23 = vector.broadcast %22 : vector<16x1xf32> to vector<16x512xf32>
    %24 = arith.mulf %12, %23 : vector<16x512xf32>
    %c0_13 = arith.constant 0 : index
    %c0_14 = arith.constant 0 : index
    %25 = vector.load %arg5[%c0_13, %c0_14] : memref<16x1xf32, #tpu.memory_space<vmem>>, vector<16x1xf32>
    %26 = vector.broadcast %25 : vector<16x1xf32> to vector<16x512xf32>
    %27 = arith.addf %24, %26 : vector<16x512xf32>
    %cst_15 = arith.constant 0.000000e+00 : f32
    %28 = vector.broadcast %cst_15 : f32 to vector<16x512xf32>
    %29 = arith.cmpf oge, %27, %28 : vector<16x512xf32>
    %cst_16 = arith.constant 0.00999999977 : f32
    %30 = vector.broadcast %cst_16 : f32 to vector<16x512xf32>
    %31 = arith.mulf %30, %27 : vector<16x512xf32>
    %32 = arith.select %29, %27, %31 : vector<16x512xi1>, vector<16x512xf32>
    %c0_17 = arith.constant 0 : index
    %c0_18 = arith.constant 0 : index
    %c0_19 = arith.constant 0 : index
    %33 = vector.load %arg6[%c0_17, %c0_18, %c0_19] : memref<1x16x512xf32, #tpu.memory_space<vmem>>, vector<1x16x512xf32>
    %34 = vector.shape_cast %33 : vector<1x16x512xf32> to vector<16x512xf32>
    %35 = vector.shape_cast %32 : vector<16x512xf32> to vector<1x16x512xf32>
    tpu.vector_store %arg6[%c0_17, %c0_18, %c0_19], %35 {strides = array<i32>} : memref<1x16x512xf32, #tpu.memory_space<vmem>>, vector<1x16x512xf32>,
    return
  }
  func.func @transform_0(%arg0: i32) -> (i32, i32, i32) {
    %c0_i32 = arith.constant 0 : i32
    %c0_i32_0 = arith.constant 0 : i32
    %c0_i32_1 = arith.constant 0 : i32
    return %arg0, %c0_i32, %c0_i32_0 : i32, i32, i32
  }
  func.func @transform_1(%arg0: i32) -> (i32, i32) {
    %c0_i32 = arith.constant 0 : i32
    %c0_i32_0 = arith.constant 0 : i32
    %c0_i32_1 = arith.constant 0 : i32
    return %c0_i32, %c0_i32_0 : i32, i32
  }
  func.func @transform_2(%arg0: i32) -> (i32, i32) {
    %c0_i32 = arith.constant 0 : i32
    %c0_i32_0 = arith.constant 0 : i32
    %c0_i32_1 = arith.constant 0 : i32
    return %c0_i32, %c0_i32_0 : i32, i32
  }
  func.func @transform_3(%arg0: i32) -> (i32, i32) {
    %c0_i32 = arith.constant 0 : i32
    %c0_i32_0 = arith.constant 0 : i32
    %c0_i32_1 = arith.constant 0 : i32
    return %c0_i32, %c0_i32_0 : i32, i32
  }
  func.func @transform_4(%arg0: i32) -> (i32, i32) {
    %c0_i32 = arith.constant 0 : i32
    %c0_i32_0 = arith.constant 0 : i32
    %c0_i32_1 = arith.constant 0 : i32
    return %c0_i32, %c0_i32_0 : i32, i32
  }
  func.func @transform_5(%arg0: i32) -> (i32, i32, i32) {
    %c0_i32 = arith.constant 0 : i32
    %c0_i32_0 = arith.constant 0 : i32
    %c0_i32_1 = arith.constant 0 : i32
    return %arg0, %c0_i32, %c0_i32_0 : i32, i32, i32
  }
}

module attributes {stable_mosaic.version = 11 : i64} {
  func.func @_conv_bn_act_kernel(%arg0: i32, %arg1: memref<1x512x512xbf16, #tpu.memory_space<vmem>>, %arg2: memref<1x512xbf16, #tpu.memory_space<vmem>>, %arg3: memref<1x1xf32, #tpu.memory_space<vmem>>, %arg4: memref<1x1xf32, #tpu.memory_space<vmem>>, %arg5: memref<1x1xf32, #tpu.memory_space<vmem>>, %arg6: memref<1x1x512xf32, #tpu.memory_space<vmem>>) attributes {dimension_semantics = [#tpu.dimension_semantics<parallel>], iteration_bounds = array<i64: 1>, scalar_prefetch = 0 : i64, scratch_operands = 0 : i64, tpu.core_type = #tpu.core_type<tc>, window_params = [{transform_indices = @transform_0, window_bounds = array<i64: 1, 512, 512>}, {pipeline_mode = #tpu.pipeline_mode<synchronous>, transform_indices = @transform_1, window_bounds = array<i64: 1, 512>}, {pipeline_mode = #tpu.pipeline_mode<synchronous>, transform_indices = @transform_2, window_bounds = array<i64: 1, 1>}, {pipeline_mode = #tpu.pipeline_mode<synchronous>, transform_indices = @transform_3, window_bounds = array<i64: 1, 1>}, {pipeline_mode = #tpu.pipeline_mode<synchronous>, transform_indices = @transform_4, window_bounds = array<i64: 1, 1>}, {transform_indices = @transform_5, window_bounds = array<i64: 1, 1, 512>}]} {
    %c0 = arith.constant 0 : index
    %c0_0 = arith.constant 0 : index
    %0 = vector.load %arg2[%c0, %c0_0] : memref<1x512xbf16, #tpu.memory_space<vmem>>, vector<1x512xbf16>
    %c0_1 = arith.constant 0 : index
    %c0_2 = arith.constant 0 : index
    %c0_3 = arith.constant 0 : index
    %1 = vector.load %arg1[%c0_1, %c0_2, %c0_3] : memref<1x512x512xbf16, #tpu.memory_space<vmem>>, vector<1x512x512xbf16>
    %2 = vector.shape_cast %1 : vector<1x512x512xbf16> to vector<512x512xbf16>
    %cst = arith.constant dense<0.000000e+00> : vector<1x512xf32>
    %3 = tpu.matmul %0, %2, %cst {dimension_numbers = #tpu.dot_dimension_numbers<[1], [0], [0], [1], [0, 0, 1, 1], [], []>} : vector<1x512xbf16>, vector<512x512xbf16>, vector<1x512xf32> -> vector<1x512xf32>
    %c0_4 = arith.constant 0 : index
    %c0_5 = arith.constant 0 : index
    %4 = vector.load %arg3[%c0_4, %c0_5] : memref<1x1xf32, #tpu.memory_space<vmem>>, vector<1x1xf32>
    %5 = vector.broadcast %4 : vector<1x1xf32> to vector<1x512xf32>
    %6 = arith.addf %3, %5 : vector<1x512xf32>
    %cst_6 = arith.constant dense<0.000000e+00> : vector<1xf32>
    %7 = vector.multi_reduction <add>, %6, %cst_6 [1] : vector<1x512xf32> to vector<1xf32>
    %8 = vector.shape_cast %7 : vector<1xf32> to vector<1x1xf32>
    %cst_7 = arith.constant 5.120000e+02 : f32
    %9 = vector.broadcast %cst_7 : f32 to vector<1x1xf32>
    %10 = arith.divf %8, %9 : vector<1x1xf32>
    %11 = vector.broadcast %10 : vector<1x1xf32> to vector<1x512xf32>
    %12 = arith.subf %6, %11 : vector<1x512xf32>
    %13 = arith.mulf %12, %12 : vector<1x512xf32>
    %cst_8 = arith.constant dense<0.000000e+00> : vector<1xf32>
    %14 = vector.multi_reduction <add>, %13, %cst_8 [1] : vector<1x512xf32> to vector<1xf32>
    %15 = vector.shape_cast %14 : vector<1xf32> to vector<1x1xf32>
    %cst_9 = arith.constant 5.120000e+02 : f32
    %16 = vector.broadcast %cst_9 : f32 to vector<1x1xf32>
    %17 = arith.divf %15, %16 : vector<1x1xf32>
    %cst_10 = arith.constant 9.99999974E-6 : f32
    %18 = vector.broadcast %cst_10 : f32 to vector<1x1xf32>
    %19 = arith.addf %17, %18 : vector<1x1xf32>
    %20 = math.rsqrt %19 : vector<1x1xf32>
    %c0_11 = arith.constant 0 : index
    %c0_12 = arith.constant 0 : index
    %21 = vector.load %arg4[%c0_11, %c0_12] : memref<1x1xf32, #tpu.memory_space<vmem>>, vector<1x1xf32>
    %22 = arith.mulf %20, %21 : vector<1x1xf32>
    %23 = vector.broadcast %22 : vector<1x1xf32> to vector<1x512xf32>
    %24 = arith.mulf %12, %23 : vector<1x512xf32>
    %c0_13 = arith.constant 0 : index
    %c0_14 = arith.constant 0 : index
    %25 = vector.load %arg5[%c0_13, %c0_14] : memref<1x1xf32, #tpu.memory_space<vmem>>, vector<1x1xf32>
    %26 = vector.broadcast %25 : vector<1x1xf32> to vector<1x512xf32>
    %27 = arith.addf %24, %26 : vector<1x512xf32>
    %cst_15 = arith.constant 0.000000e+00 : f32
    %28 = vector.broadcast %cst_15 : f32 to vector<1x512xf32>
    %29 = arith.subf %28, %27 : vector<1x512xf32>
    %30 = math.exp %29 : vector<1x512xf32>
    %cst_16 = arith.constant 1.000000e+00 : f32
    %31 = vector.broadcast %cst_16 : f32 to vector<1x512xf32>
    %32 = arith.addf %31, %30 : vector<1x512xf32>
    %cst_17 = arith.constant 1.000000e+00 : f32
    %33 = vector.broadcast %cst_17 : f32 to vector<1x512xf32>
    %34 = arith.divf %33, %32 : vector<1x512xf32>
    %c0_18 = arith.constant 0 : index
    %c0_19 = arith.constant 0 : index
    %c0_20 = arith.constant 0 : index
    %35 = vector.load %arg6[%c0_18, %c0_19, %c0_20] : memref<1x1x512xf32, #tpu.memory_space<vmem>>, vector<1x1x512xf32>
    %36 = vector.shape_cast %35 : vector<1x1x512xf32> to vector<1x512xf32>
    %37 = vector.shape_cast %34 : vector<1x512xf32> to vector<1x1x512xf32>
    tpu.vector_store %arg6[%c0_18, %c0_19, %c0_20], %37 {strides = array<i32>} : memref<1x1x512xf32, #tpu.memory_space<vmem>>, vector<1x1x512xf32>,
    return
  }
  func.func @transform_0(%arg0: i32) -> (i32, i32, i32) {
    %c0_i32 = arith.constant 0 : i32
    %c0_i32_0 = arith.constant 0 : i32
    %c0_i32_1 = arith.constant 0 : i32
    return %arg0, %c0_i32, %c0_i32_0 : i32, i32, i32
  }
  func.func @transform_1(%arg0: i32) -> (i32, i32) {
    %c0_i32 = arith.constant 0 : i32
    %c0_i32_0 = arith.constant 0 : i32
    %c0_i32_1 = arith.constant 0 : i32
    return %c0_i32, %c0_i32_0 : i32, i32
  }
  func.func @transform_2(%arg0: i32) -> (i32, i32) {
    %c0_i32 = arith.constant 0 : i32
    %c0_i32_0 = arith.constant 0 : i32
    %c0_i32_1 = arith.constant 0 : i32
    return %c0_i32, %c0_i32_0 : i32, i32
  }
  func.func @transform_3(%arg0: i32) -> (i32, i32) {
    %c0_i32 = arith.constant 0 : i32
    %c0_i32_0 = arith.constant 0 : i32
    %c0_i32_1 = arith.constant 0 : i32
    return %c0_i32, %c0_i32_0 : i32, i32
  }
  func.func @transform_4(%arg0: i32) -> (i32, i32) {
    %c0_i32 = arith.constant 0 : i32
    %c0_i32_0 = arith.constant 0 : i32
    %c0_i32_1 = arith.constant 0 : i32
    return %c0_i32, %c0_i32_0 : i32, i32
  }
  func.func @transform_5(%arg0: i32) -> (i32, i32, i32) {
    %c0_i32 = arith.constant 0 : i32
    %c0_i32_0 = arith.constant 0 : i32
    %c0_i32_1 = arith.constant 0 : i32
    return %arg0, %c0_i32, %c0_i32_0 : i32, i32, i32
  }
}

</mosaic_0001>

<bundles_post_ra>
// kernel: deepfuse_forward.6
= control target key start
LH: loop header
LB: loop body
LE: loop exit
PB: predicated region body
PF: predicated region fallthrough
CT: control target
= control target key end

     0   :  { %s847_s18 = smov 0   ;;  %s933_s0 = inlined_call_operand.vmem [shape: bf16[2,128,512], index: 0, kind: input, shape index: {}]   ;;  %s934_s1 = inlined_call_operand.vmem [shape: bf16[16,128], index: 1, kind: input, shape index: {}]   ;;  %s935_s2 = inlined_call_operand.vmem [shape: f32[16,1], index: 2, kind: input, shape index: {}]   ;;  %s936_s3 = inlined_call_operand.vmem [shape: f32[16,1], index: 3, kind: input, shape index: {}]   ;;  %s937_s4 = inlined_call_operand.vmem [shape: f32[16,1], index: 4, kind: input, shape index: {}]   ;;  %s938_s5 = inlined_call_operand.vmem [shape: f32[2,16,512], index: 5, kind: output, shape index: {}]  }
   0x1 LB: > { %s698_s19 = sadd.s32 4294967295, %s814_s18   ;;  %p702_p0 = scmp.ge.s32.totalorder %s814_s18, 1  ;;  %s814_s18 = sphi %s847_s18, %s15_s18  }
   0x2   : > { %p187_p1 = scmp.lt.s32.totalorder %s814_s18, 3 }
   0x4   : > { %p188_p2 = pnand %p702_p0, %p187_p1 }
   0x5   : > { %p215_p3 = scmp.lt.s32.totalorder (!%p188_p2), %s698_s19, 1  ;;  %v816_v0 = vmov (!%p188_p2), 0   ;;  %v260_v1 = vld [vmem:[%s935_s2] sm:$0xff] (!%p188_p2)  ;;  %v261_v2 = vld [vmem:[%s935_s2 + $0x8] sm:$0xff] (!%p188_p2) }
   0x6   : > { %191 = sbr.rel (%p188_p2) target bundleno = 726 (0x2d6), region = 40  ;;  %470 = vmatprep.mubr.bf16.mxu0 (!%p188_p2), %v816_v0  ;;  %513 = vmatprep.mubr.bf16.mxu1 (!%p188_p2), %v816_v0  ;;  %v803_v35 = vld [vmem:[%s934_s1] sm:$0xff] (!%p188_p2)  }
   0x7   : > { %753 = vset.pattern.permute.xlu0 (!%p188_p2), %v816_v0  ;;  %754 = vset.pattern.permute.xlu1 (!%p188_p2), %v816_v0 }
   0x8   : > { %264 = vperm.xlu0 (!%p188_p2), %753, %v260_v1  }
   0xc   : > { %269 = vperm.xlu0 (!%p188_p2), %753, %v261_v2  }
   0xd   : > { %s940_s19 = smov (!%p215_p3, %s698_s19), 1 }
   0xe   : > { %s742_s22 = sshll.u32 %s940_s19, 8  ;;  %s743_s13 = sshll.u32 %s940_s19, 6 }
   0xf   : > { %s867_s27 = scalar_lea.vmem %s933_s0, %s742_s22  ;;  %s920_s16 = scalar_lea.vmem %s938_s5, %s743_s13 }
  0x10   : > { %v755_v3 = vld [vmem:[%s867_s27 + $0x4] ss:$16 sps:$4 sm:$0xff]   ;;  %v757_v4 = vld [vmem:[%s867_s27 + $0xc] ss:$16 sps:$4 sm:$0xff]   ;;  %v759_v5 = vld [vmem:[%s867_s27] ss:$16 sps:$4 sm:$0xff]  }
  0x11   : > { %438 = vmatprep.subr.bf16.mxu0 %v755_v3  ;;  %v760_v6 = vld [vmem:[%s867_s27 + $0x8] ss:$16 sps:$4 sm:$0xff]   ;;  %481 = vmatprep.subr.bf16.mxu1 %v757_v4  ;;  %v761_v7 = vld [vmem:[%s867_s27 + $0x24] ss:$16 sps:$4 sm:$0xff]   ;;  %v763_v8 = vld [vmem:[%s867_s27 + $0x2c] ss:$16 sps:$4 sm:$0xff]  }
  0x12   : > { %439 = vmatpush1.bf16.msra.mxu0 %v759_v5  ;;  %482 = vmatpush1.bf16.msra.mxu1 %v760_v6  ;;  %v765_v9 = vld [vmem:[%s867_s27 + $0x20] ss:$16 sps:$4 sm:$0xff]   ;;  %v766_v10 = vld [vmem:[%s867_s27 + $0x28] ss:$16 sps:$4 sm:$0xff]   ;;  %v767_v11 = vld [vmem:[%s867_s27 + $0x44] ss:$16 sps:$4 sm:$0xff]  }
  0x13   : > { %440 = vmatprep.subr.bf16.mxu0 %v761_v7  ;;  %483 = vmatprep.subr.bf16.mxu1 %v763_v8  ;;  %v769_v12 = vld [vmem:[%s867_s27 + $0x4c] ss:$16 sps:$4 sm:$0xff]   ;;  %v771_v13 = vld [vmem:[%s867_s27 + $0x40] ss:$16 sps:$4 sm:$0xff]   ;;  %v772_v14 = vld [vmem:[%s867_s27 + $0x48] ss:$16 sps:$4 sm:$0xff]  }
  0x14   : > { %v773_v15 = vld [vmem:[%s867_s27 + $0x64] ss:$16 sps:$4 sm:$0xff]   ;;  %v775_v16 = vld [vmem:[%s867_s27 + $0x6c] ss:$16 sps:$4 sm:$0xff]   ;;  %v777_v17 = vld [vmem:[%s867_s27 + $0x60] ss:$16 sps:$4 sm:$0xff]  }
  0x15   : > { %v778_v18 = vld [vmem:[%s867_s27 + $0x68] ss:$16 sps:$4 sm:$0xff]   ;;  %v779_v19 = vld [vmem:[%s867_s27 + $0x84] ss:$16 sps:$4 sm:$0xff]   ;;  %v781_v20 = vld [vmem:[%s867_s27 + $0x8c] ss:$16 sps:$4 sm:$0xff]  }
  0x16   : > { %441 = vmatpush1.bf16.msra.mxu0 %v765_v9  ;;  %484 = vmatpush1.bf16.msra.mxu1 %v766_v10  ;;  %v783_v21 = vld [vmem:[%s867_s27 + $0x80] ss:$16 sps:$4 sm:$0xff]   ;;  %v784_v22 = vld [vmem:[%s867_s27 + $0x88] ss:$16 sps:$4 sm:$0xff]   ;;  %v785_v23 = vld [vmem:[%s867_s27 + $0xa4] ss:$16 sps:$4 sm:$0xff]  }
  0x17   : > { %442 = vmatprep.subr.bf16.mxu0 %v767_v11  ;;  %485 = vmatprep.subr.bf16.mxu1 %v769_v12  ;;  %v787_v24 = vld [vmem:[%s867_s27 + $0xac] ss:$16 sps:$4 sm:$0xff]   ;;  %v789_v25 = vld [vmem:[%s867_s27 + $0xa0] ss:$16 sps:$4 sm:$0xff]   ;;  %v790_v26 = vld [vmem:[%s867_s27 + $0xa8] ss:$16 sps:$4 sm:$0xff]  }
  0x18   : > { %v791_v27 = vld [vmem:[%s867_s27 + $0xc4] ss:$16 sps:$4 sm:$0xff]   ;;  %v793_v28 = vld [vmem:[%s867_s27 + $0xcc] ss:$16 sps:$4 sm:$0xff]   ;;  %v795_v29 = vld [vmem:[%s867_s27 + $0xc0] ss:$16 sps:$4 sm:$0xff]  }
  0x19   : > { %v796_v30 = vld [vmem:[%s867_s27 + $0xc8] ss:$16 sps:$4 sm:$0xff]   ;;  %v797_v31 = vld [vmem:[%s867_s27 + $0xe4] ss:$16 sps:$4 sm:$0xff]   ;;  %v799_v32 = vld [vmem:[%s867_s27 + $0xec] ss:$16 sps:$4 sm:$0xff]  }
  0x1a   : > { %443 = vmatpush1.bf16.msra.mxu0 %v771_v13  ;;  %486 = vmatpush1.bf16.msra.mxu1 %v772_v14  ;;  %v801_v33 = vld [vmem:[%s867_s27 + $0xe0] ss:$16 sps:$4 sm:$0xff]   ;;  %v802_v34 = vld [vmem:[%s867_s27 + $0xe8] ss:$16 sps:$4 sm:$0xff]  }
  0x1b   : > { %444 = vmatprep.subr.bf16.mxu0 %v773_v15  ;;  %487 = vmatprep.subr.bf16.mxu1 %v775_v16 }
  0x1e   : > { %445 = vmatpush1.bf16.msra.mxu0 %v777_v17  ;;  %488 = vmatpush1.bf16.msra.mxu1 %v778_v18 }
  0x1f   : > { %446 = vmatprep.subr.bf16.mxu0 %v779_v19  ;;  %489 = vmatprep.subr.bf16.mxu1 %v781_v20 }
  0x22   : > { %447 = vmatpush1.bf16.msra.mxu0 %v783_v21  ;;  %490 = vmatpush1.bf16.msra.mxu1 %v784_v22  ;;  %v591_v22 = vld [vmem:[%s937_s4] sm:$0xff] }
  0x23   : > { %448 = vmatprep.subr.bf16.mxu0 %v785_v23  ;;  %491 = vmatprep.subr.bf16.mxu1 %v787_v24 }
  0x26   : > { %449 = vmatpush1.bf16.msra.mxu0 %v789_v25  ;;  %492 = vmatpush1.bf16.msra.mxu1 %v790_v26 }
  0x27   : > { %450 = vmatprep.subr.bf16.mxu0 %v791_v27  ;;  %493 = vmatprep.subr.bf16.mxu1 %v793_v28 }
  0x2a   : > { %451 = vmatpush1.bf16.msra.mxu0 %v795_v29  ;;  %494 = vmatpush1.bf16.msra.mxu1 %v796_v30  ;;  %v569_v29 = vld [vmem:[%s936_s3] sm:$0xff] }
  0x2b   : > { %452 = vmatprep.subr.bf16.mxu0 %v797_v31  ;;  %495 = vmatprep.subr.bf16.mxu1 %v799_v32  ;;  %v570_v32 = vld [vmem:[%s936_s3 + $0x8] sm:$0xff] }
  0x2e   : > { %453 = vmatpush1.bf16.msra.mxu0 %v801_v33  ;;  %496 = vmatpush1.bf16.msra.mxu1 %v802_v34 }
  0x31   : > { %471 = vmatmul.mubr.bf16.vlgmr.msra.gmra.mrb[0].mxu0 %v803_v35  ;;  %514 = vmatmul.mubr.bf16.vlgmr.msra.gmra.mrb[0].mxu1 %v803_v35  ;;  %v592_v35 = vld [vmem:[%s937_s4 + $0x8] sm:$0xff] }
  0x87   : > { %v265_v36 = vpop.permute.xlu0 %264 }
  0x8b   : > { %v270_v37 = vpop.permute.xlu0 %269 }
 0x104   : > { %v472_v38 = vpop.f32.mrb[0].mxu0  ;;  %v515_v39 = vpop.f32.mrb[0].mxu1 }
 0x105   : > { %v473_v40 = vadd.f32 %v472_v38, %v265_v36  ;;  %v474_v41 = vpop.f32.mrb[1].mxu0  ;;  %v517_v42 = vpop.f32.mrb[1].mxu1  ;;  %v516_v49 = vadd.f32 %v515_v39, %v265_v36 }
 0x106   : > { %v475_v43 = vadd.f32 %v474_v41, %v265_v36  ;;  %v476_v44 = vpop.f32.mrb[2].mxu0  ;;  %v519_v45 = vpop.f32.mrb[2].mxu1  ;;  %v518_v52 = vadd.f32 %v517_v42, %v265_v36 }
 0x107   : > { %v477_v46 = vadd.f32 %v476_v44, %v270_v37  ;;  %v478_v47 = vpop.f32.mrb[3].mxu0  ;;  %v521_v48 = vpop.f32.mrb[3].mxu1  ;;  %v520_v53 = vadd.f32 %v519_v45, %v270_v37 }
 0x108   : > { %v524_v50 = vadd.f32 %v475_v43, %v473_v40  ;;  %v479_v51 = vadd.f32 %v478_v47, %v270_v37  ;;  %v522_v58 = vadd.f32 %v521_v48, %v270_v37 }
 0x10a   : > { %v529_v54 = vadd.f32 %v479_v51, %v477_v46  ;;  %v525_v55 = vadd.f32 %v524_v50, %v516_v49 }
 0x10c   : > { %v526_v56 = vadd.f32 %v525_v55, %v518_v52  ;;  %v530_v57 = vadd.f32 %v529_v54, %v520_v53 }
 0x10e   : > { %527 = vadd.xlane.f32.xlu1 %v526_v56  ;;  %v531_v59 = vadd.f32 %v530_v57, %v522_v58 }
 0x112   : > { %532 = vadd.xlane.f32.xlu1 %v531_v59 }
 0x19b   : > { %v528_v60 = vpop.xlane.xlu1 %527 }
 0x19c   : > { %v535_v61 = vmul.f32 0.001953125, %v528_v60 }
 0x19e   : > { %v537_v62 = vsub.f32 %v473_v40, %v535_v61  ;;  %v538_v63 = vsub.f32 %v475_v43, %v535_v61  ;;  %v539_v0 = vsub.f32 %v516_v49, %v535_v61  ;;  %v540_v2 = vsub.f32 %v518_v52, %v535_v61 }
 0x19f   : > { %v533_v1 = vpop.xlane.xlu1 %532 }
 0x1a0   : > { %v536_v3 = vmul.f32 0.001953125, %v533_v1  ;;  %v545_v4 = vmul.f32 %v537_v62, %v537_v62  ;;  %v546_v5 = vmul.f32 %v538_v63, %v538_v63  ;;  %v547_v6 = vmul.f32 %v539_v0, %v539_v0 }
 0x1a1   : > { %v548_v11 = vmul.f32 %v540_v2, %v540_v2 }
 0x1a2   : > { %v541_v7 = vsub.f32 %v477_v46, %v536_v3  ;;  %v542_v8 = vsub.f32 %v479_v51, %v536_v3  ;;  %v553_v9 = vadd.f32 %v546_v5, %v545_v4  ;;  %v543_v10 = vsub.f32 %v520_v53, %v536_v3 }
 0x1a3   : > { %v544_v13 = vsub.f32 %v522_v58, %v536_v3 }
 0x1a4   : > { %v554_v12 = vadd.f32 %v553_v9, %v547_v6  ;;  %v549_v14 = vmul.f32 %v541_v7, %v541_v7  ;;  %v550_v15 = vmul.f32 %v542_v8, %v542_v8  ;;  %v551_v17 = vmul.f32 %v543_v10, %v543_v10 }
 0x1a5   : > { %v552_v19 = vmul.f32 %v544_v13, %v544_v13 }
 0x1a6   : > { %v555_v16 = vadd.f32 %v554_v12, %v548_v11  ;;  %v558_v18 = vadd.f32 %v550_v15, %v549_v14 }
 0x1a8   : > { %556 = vadd.xlane.f32.xlu0 %v555_v16  ;;  %v559_v20 = vadd.f32 %v558_v18, %v551_v17 }
 0x1aa   : > { %v560_v21 = vadd.f32 %v559_v20, %v552_v19 }
 0x1ac   : > { %561 = vadd.xlane.f32.xlu1 %v560_v21 }
 0x1bd   : > { %595 = vperm.xlu1 %754, %v591_v22  }
 0x235   : > { %v557_v23 = vpop.xlane.xlu0 %556 }
 0x236   : > { %v563_v24 = vmul.f32 0.001953125, %v557_v23 }
 0x238   : > { %v565_v25 = vadd.f32 1e-05, %v563_v24 }
 0x239   : > { %v562_v26 = vpop.xlane.xlu1 %561 }
 0x23a   : > { %804 = vrsqrt.f32 %v565_v25  ;;  %v564_v27 = vmul.f32 0.001953125, %v562_v26 }
 0x23c   : > { %v566_v28 = vadd.f32 1e-05, %v564_v27 }
 0x23d   : > { %v596_v36 = vpop.permute.xlu1 %595 }
 0x23e   : > { %806 = vrsqrt.f32 %v566_v28 }
 0x244   : > { %v805_v30 = vpop.eup %804 }
 0x245   : > { %v571_v31 = vmul.f32 %v805_v30, %v569_v29 }
 0x247   : > { %575 = vperm.xlu1 %754, %v571_v31  }
 0x248   : > { %v807_v33 = vpop.eup %806 }
 0x249   : > { %v572_v34 = vmul.f32 %v807_v33, %v570_v32 }
 0x24b   : > { %580 = vperm.xlu1 %754, %v572_v34  }
 0x24f   : > { %600 = vperm.xlu1 %754, %v592_v35  }
 0x2c6   : > { %v576_v37 = vpop.permute.xlu1 %575 }
 0x2c7   : > { %v583_v38 = vmul.f32 %v576_v37, %v537_v62  ;;  %v584_v39 = vmul.f32 %v576_v37, %v538_v63  ;;  %v585_v40 = vmul.f32 %v576_v37, %v539_v0  ;;  %v586_v41 = vmul.f32 %v576_v37, %v540_v2 }
 0x2c9   : > { %v603_v42 = vadd.f32 %v596_v36, %v583_v38  ;;  %v604_v43 = vadd.f32 %v596_v36, %v584_v39  ;;  %v605_v44 = vadd.f32 %v596_v36, %v585_v40  ;;  %v606_v45 = vadd.f32 %v596_v36, %v586_v41 }
 0x2ca   : > { %v581_v46 = vpop.permute.xlu1 %580 }
 0x2cb   : > { %vm611_vm0 = vcmp.ge.f32.partialorder %v603_v42, 0.0  ;;  %vm612_vm1 = vcmp.ge.f32.partialorder %v604_v43, 0.0  ;;  %vm613_vm2 = vcmp.ge.f32.partialorder %v605_v44, 0.0  ;;  %vm614_vm3 = vcmp.ge.f32.partialorder %v606_v45, 0.0 }
 0x2cc   : > { %v619_v47 = vmul.f32 0.01, %v603_v42  ;;  %v620_v48 = vmul.f32 0.01, %v604_v43  ;;  %v621_v49 = vmul.f32 0.01, %v605_v44  ;;  %v587_v51 = vmul.f32 %v581_v46, %v541_v7 }
 0x2cd   : > { %v622_v50 = vmul.f32 0.01, %v606_v45  ;;  %v588_v52 = vmul.f32 %v581_v46, %v542_v8  ;;  %v589_v53 = vmul.f32 %v581_v46, %v543_v10  ;;  %v590_v57 = vmul.f32 %v581_v46, %v544_v13 }
 0x2ce   : > { %v627_v54 = vsel %vm611_vm0, %v603_v42, %v619_v47  ;;  %v628_v55 = vsel %vm612_vm1, %v604_v43, %v620_v48  ;;  %v629_v56 = vsel %vm613_vm2, %v605_v44, %v621_v49  ;;  %v601_v58 = vpop.permute.xlu1 %600 }
 0x2cf   : > { %v630_v59 = vsel %vm614_vm3, %v606_v45, %v622_v50  ;;  %635 = vst [vmem:[%s920_s16] sm:$0xff] %v627_v54  ;;  %636 = vst [vmem:[%s920_s16 + $0x8] sm:$0xff] %v628_v55  ;;  %v607_v60 = vadd.f32 %v601_v58, %v587_v51  ;;  %v608_v61 = vadd.f32 %v601_v58, %v588_v52 }
 0x2d0   : > { %637 = vst [vmem:[%s920_s16 + $0x10] sm:$0xff] %v629_v56  ;;  %v609_v62 = vadd.f32 %v601_v58, %v589_v53  ;;  %638 = vst [vmem:[%s920_s16 + $0x18] sm:$0xff] %v630_v59  ;;  %v610_v63 = vadd.f32 %v601_v58, %v590_v57 }
 0x2d1   : > { %vm615_vm4 = vcmp.ge.f32.partialorder %v607_v60, 0.0  ;;  %vm616_vm5 = vcmp.ge.f32.partialorder %v608_v61, 0.0  ;;  %v623_v0 = vmul.f32 0.01, %v607_v60  ;;  %v624_v1 = vmul.f32 0.01, %v608_v61 }
 0x2d2   : > { %vm617_vm6 = vcmp.ge.f32.partialorder %v609_v62, 0.0  ;;  %vm618_vm7 = vcmp.ge.f32.partialorder %v610_v63, 0.0  ;;  %v625_v2 = vmul.f32 0.01, %v609_v62  ;;  %v626_v3 = vmul.f32 0.01, %v610_v63 }
 0x2d3   : > { %v631_v4 = vsel %vm615_vm4, %v607_v60, %v623_v0  ;;  %v632_v5 = vsel %vm616_vm5, %v608_v61, %v624_v1 }
 0x2d4   : > { %v633_v6 = vsel %vm617_vm6, %v609_v62, %v625_v2  ;;  %639 = vst [vmem:[%s920_s16 + $0x20] sm:$0xff] %v631_v4  ;;  %v634_v7 = vsel %vm618_vm7, %v610_v63, %v626_v3  ;;  %640 = vst [vmem:[%s920_s16 + $0x28] sm:$0xff] %v632_v5 }
 0x2d5   : > { %641 = vst [vmem:[%s920_s16 + $0x30] sm:$0xff] %v633_v6  ;;  %642 = vst [vmem:[%s920_s16 + $0x38] sm:$0xff] %v634_v7 }
 0x2d6 PF: > { %s15_s18 = sadd.s32 1, %s814_s18  }
 0x2d7   : > { %p12_p4 = scmp.ge.s32.totalorder %s15_s18, 4  }
 0x2d9   :  { %14 = sbr.rel (!%p12_p4) target bundleno = 1 (0x1), region = 70 }

// kernel: deepfuse_forward.8
= control target key start
LH: loop header
LB: loop body
LE: loop exit
PB: predicated region body
PF: predicated region fallthrough
CT: control target
= control target key end

     0   :  { %s247_s0 = inlined_call_operand.vmem [shape: f32[2,32,512], index: 0, kind: input, shape index: {}]   ;;  %s248_s1 = inlined_call_operand.vmem [shape: f32[32,512], index: 1, kind: output, shape index: {}]  }
   0x1   :  { %v8_v0 = vld [vmem:[%s247_s0] sm:$0xff]  ;;  %v9_v2 = vld [vmem:[%s247_s0 + $0x8] sm:$0xff]  ;;  %v10_v5 = vld [vmem:[%s247_s0 + $0x10] sm:$0xff] }
   0x2   :  { %v77_v1 = vld [vmem:[%s247_s0 + $0x80] sm:$0xff]  ;;  %v78_v4 = vld [vmem:[%s247_s0 + $0x88] sm:$0xff]  ;;  %v79_v6 = vld [vmem:[%s247_s0 + $0x90] sm:$0xff] }
   0x3   :  { %v41_v3 = vadd.f32 %v77_v1, %v8_v0  ;;  %v42_v7 = vadd.f32 %v78_v4, %v9_v2  ;;  %v43_v8 = vadd.f32 %v79_v6, %v10_v5  ;;  %v11_v9 = vld [vmem:[%s247_s0 + $0x18] sm:$0xff]  ;;  %v12_v11 = vld [vmem:[%s247_s0 + $0x20] sm:$0xff]  ;;  %v13_v14 = vld [vmem:[%s247_s0 + $0x28] sm:$0xff] }
   0x4   :  { %v80_v10 = vld [vmem:[%s247_s0 + $0x98] sm:$0xff]  ;;  %v81_v13 = vld [vmem:[%s247_s0 + $0xa0] sm:$0xff]  ;;  %v82_v15 = vld [vmem:[%s247_s0 + $0xa8] sm:$0xff] }
   0x5   :  { %57 = vst [vmem:[%s248_s1] sm:$0xff] %v41_v3  ;;  %v44_v12 = vadd.f32 %v80_v10, %v11_v9  ;;  %58 = vst [vmem:[%s248_s1 + $0x8] sm:$0xff] %v42_v7  ;;  %v45_v16 = vadd.f32 %v81_v13, %v12_v11  ;;  %v46_v17 = vadd.f32 %v82_v15, %v13_v14  ;;  %v14_v18 = vld [vmem:[%s247_s0 + $0x30] sm:$0xff]  ;;  %v15_v20 = vld [vmem:[%s247_s0 + $0x38] sm:$0xff] }
   0x6   :  { %59 = vst [vmem:[%s248_s1 + $0x10] sm:$0xff] %v43_v8  ;;  %v83_v19 = vld [vmem:[%s247_s0 + $0xb0] sm:$0xff]  ;;  %v84_v22 = vld [vmem:[%s247_s0 + $0xb8] sm:$0xff]  ;;  %v16_v23 = vld [vmem:[%s247_s0 + $0x40] sm:$0xff] }
   0x7   :  { %60 = vst [vmem:[%s248_s1 + $0x18] sm:$0xff] %v44_v12  ;;  %v47_v21 = vadd.f32 %v83_v19, %v14_v18  ;;  %v85_v24 = vld [vmem:[%s247_s0 + $0xc0] sm:$0xff]  ;;  %61 = vst [vmem:[%s248_s1 + $0x20] sm:$0xff] %v45_v16  ;;  %v48_v25 = vadd.f32 %v84_v22, %v15_v20  ;;  %v17_v27 = vld [vmem:[%s247_s0 + $0x48] sm:$0xff] }
   0x8   :  { %62 = vst [vmem:[%s248_s1 + $0x28] sm:$0xff] %v46_v17  ;;  %v49_v26 = vadd.f32 %v85_v24, %v16_v23  ;;  %v86_v28 = vld [vmem:[%s247_s0 + $0xc8] sm:$0xff]  ;;  %v18_v29 = vld [vmem:[%s247_s0 + $0x50] sm:$0xff]  ;;  %v19_v32 = vld [vmem:[%s247_s0 + $0x58] sm:$0xff] }
   0x9   :  { %63 = vst [vmem:[%s248_s1 + $0x30] sm:$0xff] %v47_v21  ;;  %v50_v30 = vadd.f32 %v86_v28, %v17_v27  ;;  %v87_v31 = vld [vmem:[%s247_s0 + $0xd0] sm:$0xff]  ;;  %v88_v33 = vld [vmem:[%s247_s0 + $0xd8] sm:$0xff]  ;;  %64 = vst [vmem:[%s248_s1 + $0x38] sm:$0xff] %v48_v25 }
   0xa   :  { %65 = vst [vmem:[%s248_s1 + $0x40] sm:$0xff] %v49_v26  ;;  %v51_v34 = vadd.f32 %v87_v31, %v18_v29  ;;  %v52_v35 = vadd.f32 %v88_v33, %v19_v32  ;;  %v20_v36 = vld [vmem:[%s247_s0 + $0x60] sm:$0xff]  ;;  %v21_v38 = vld [vmem:[%s247_s0 + $0x68] sm:$0xff]  ;;  %v22_v41 = vld [vmem:[%s247_s0 + $0x70] sm:$0xff] }
   0xb   :  { %v89_v37 = vld [vmem:[%s247_s0 + $0xe0] sm:$0xff]  ;;  %66 = vst [vmem:[%s248_s1 + $0x48] sm:$0xff] %v50_v30  ;;  %v90_v40 = vld [vmem:[%s247_s0 + $0xe8] sm:$0xff]  ;;  %v91_v42 = vld [vmem:[%s247_s0 + $0xf0] sm:$0xff] }
   0xc   :  { %v53_v39 = vadd.f32 %v89_v37, %v20_v36  ;;  %67 = vst [vmem:[%s248_s1 + $0x50] sm:$0xff] %v51_v34  ;;  %68 = vst [vmem:[%s248_s1 + $0x58] sm:$0xff] %v52_v35  ;;  %v54_v43 = vadd.f32 %v90_v40, %v21_v38  ;;  %v55_v44 = vadd.f32 %v91_v42, %v22_v41  ;;  %v23_v45 = vld [vmem:[%s247_s0 + $0x78] sm:$0xff] }
   0xd   :  { %v92_v46 = vld [vmem:[%s247_s0 + $0xf8] sm:$0xff] }
   0xe   :  { %69 = vst [vmem:[%s248_s1 + $0x60] sm:$0xff] %v53_v39  ;;  %v56_v47 = vadd.f32 %v92_v46, %v23_v45  ;;  %70 = vst [vmem:[%s248_s1 + $0x68] sm:$0xff] %v54_v43 }
   0xf   :  { %71 = vst [vmem:[%s248_s1 + $0x70] sm:$0xff] %v55_v44 }
  0x10   :  { %72 = vst [vmem:[%s248_s1 + $0x78] sm:$0xff] %v56_v47 }

// kernel: deepfuse_forward.7
= control target key start
LH: loop header
LB: loop body
LE: loop exit
PB: predicated region body
PF: predicated region fallthrough
CT: control target
= control target key end

     0   :  { %s3126_s18 = smov 0   ;;  %s3557_s0 = inlined_call_operand.vmem [shape: bf16[2,896,512], index: 0, kind: input, shape index: {}]   ;;  %s3558_s1 = inlined_call_operand.vmem [shape: bf16[32,896], index: 1, kind: input, shape index: {}]   ;;  %s3559_s2 = inlined_call_operand.vmem [shape: f32[32,1], index: 2, kind: input, shape index: {}]   ;;  %s3560_s3 = inlined_call_operand.vmem [shape: f32[32,1], index: 3, kind: input, shape index: {}]   ;;  %s3561_s4 = inlined_call_operand.vmem [shape: f32[32,1], index: 4, kind: input, shape index: {}]   ;;  %s3562_s5 = inlined_call_operand.vmem [shape: f32[2,32,512], index: 5, kind: output, shape index: {}]  }
   0x1 LB: > { %s2398_s19 = sadd.s32 4294967295, %s3093_s18   ;;  %p2402_p0 = scmp.ge.s32.totalorder %s3093_s18, 1  ;;  %s3093_s18 = sphi %s3126_s18, %s15_s18  }
   0x2   : > { %p187_p1 = scmp.lt.s32.totalorder %s3093_s18, 3 }
   0x4   : > { %p188_p2 = pnand %p2402_p0, %p187_p1 }
   0x5   : > { %p215_p3 = scmp.lt.s32.totalorder (!%p188_p2), %s2398_s19, 1  ;;  %v2821_v0 = vld [vmem:[%s3558_s1 + $0x4] ss:$28 sps:$4 sm:$0xff] (!%p188_p2)  }
   0x6   : > { %191 = sbr.rel (%p188_p2) target bundleno = 928 (0x3a0), region = 40  ;;  %1714 = vmatprep.mubr.bf16.mxu0 (!%p188_p2), %v2821_v0  ;;  %1926 = vmatprep.mubr.bf16.mxu1 (!%p188_p2), %v2821_v0 }
   0xd   : > { %s3564_s19 = smov (!%p215_p3, %s2398_s19), 1 }
   0xe   : > { %s2711_s22 = smul.u32 1792, %s3564_s19  ;;  %s2646_s6 = sshll.u32 %s3564_s19, 7 }
   0xf   : > { %s3526_s19 = scalar_lea.vmem %s3562_s5, %s2646_s6 }
  0x10   : > { %s3143_s25 = scalar_lea.vmem %s3557_s0, %s2711_s22 }
  0x11   : > { %v2723_v1 = vld [vmem:[%s3143_s25 + $0x4] ss:$16 sps:$4 sm:$0xff]   ;;  %v2725_v2 = vld [vmem:[%s3143_s25 + $0xc] ss:$16 sps:$4 sm:$0xff]   ;;  %v2727_v3 = vld [vmem:[%s3143_s25] ss:$16 sps:$4 sm:$0xff]  }
  0x12   : > { %1682 = vmatprep.subr.bf16.mxu0 %v2723_v1  ;;  %v2728_v4 = vld [vmem:[%s3143_s25 + $0x8] ss:$16 sps:$4 sm:$0xff]   ;;  %1894 = vmatprep.subr.bf16.mxu1 %v2725_v2  ;;  %v2729_v5 = vld [vmem:[%s3143_s25 + $0x24] ss:$16 sps:$4 sm:$0xff]   ;;  %v2731_v6 = vld [vmem:[%s3143_s25 + $0x2c] ss:$16 sps:$4 sm:$0xff]  }
  0x13   : > { %1683 = vmatpush1.bf16.msra.mxu0 %v2727_v3  ;;  %1895 = vmatpush1.bf16.msra.mxu1 %v2728_v4  ;;  %v2733_v7 = vld [vmem:[%s3143_s25 + $0x20] ss:$16 sps:$4 sm:$0xff]   ;;  %v2734_v8 = vld [vmem:[%s3143_s25 + $0x28] ss:$16 sps:$4 sm:$0xff]   ;;  %v2735_v9 = vld [vmem:[%s3143_s25 + $0x44] ss:$16 sps:$4 sm:$0xff]  }
  0x14   : > { %1684 = vmatprep.subr.bf16.mxu0 %v2729_v5  ;;  %1896 = vmatprep.subr.bf16.mxu1 %v2731_v6  ;;  %v2737_v10 = vld [vmem:[%s3143_s25 + $0x4c] ss:$16 sps:$4 sm:$0xff]   ;;  %v2739_v11 = vld [vmem:[%s3143_s25 + $0x40] ss:$16 sps:$4 sm:$0xff]   ;;  %v2740_v12 = vld [vmem:[%s3143_s25 + $0x48] ss:$16 sps:$4 sm:$0xff]  }
  0x15   : > { %v2741_v13 = vld [vmem:[%s3143_s25 + $0x64] ss:$16 sps:$4 sm:$0xff]   ;;  %v2743_v14 = vld [vmem:[%s3143_s25 + $0x6c] ss:$16 sps:$4 sm:$0xff]   ;;  %v2745_v15 = vld [vmem:[%s3143_s25 + $0x60] ss:$16 sps:$4 sm:$0xff]  }
  0x16   : > { %v2746_v16 = vld [vmem:[%s3143_s25 + $0x68] ss:$16 sps:$4 sm:$0xff]   ;;  %v2747_v17 = vld [vmem:[%s3143_s25 + $0x84] ss:$16 sps:$4 sm:$0xff]   ;;  %v2749_v18 = vld [vmem:[%s3143_s25 + $0x8c] ss:$16 sps:$4 sm:$0xff]  }
  0x17   : > { %1685 = vmatpush1.bf16.msra.mxu0 %v2733_v7  ;;  %1897 = vmatpush1.bf16.msra.mxu1 %v2734_v8  ;;  %v2751_v19 = vld [vmem:[%s3143_s25 + $0x80] ss:$16 sps:$4 sm:$0xff]   ;;  %v2752_v20 = vld [vmem:[%s3143_s25 + $0x88] ss:$16 sps:$4 sm:$0xff]   ;;  %v2753_v21 = vld [vmem:[%s3143_s25 + $0xa4] ss:$16 sps:$4 sm:$0xff]  }
  0x18   : > { %1686 = vmatprep.subr.bf16.mxu0 %v2735_v9  ;;  %1898 = vmatprep.subr.bf16.mxu1 %v2737_v10  ;;  %v2755_v22 = vld [vmem:[%s3143_s25 + $0xac] ss:$16 sps:$4 sm:$0xff]   ;;  %v2757_v23 = vld [vmem:[%s3143_s25 + $0xa0] ss:$16 sps:$4 sm:$0xff]   ;;  %v2758_v24 = vld [vmem:[%s3143_s25 + $0xa8] ss:$16 sps:$4 sm:$0xff]  }
  0x19   : > { %v2759_v25 = vld [vmem:[%s3143_s25 + $0xc4] ss:$16 sps:$4 sm:$0xff]   ;;  %v2761_v26 = vld [vmem:[%s3143_s25 + $0xcc] ss:$16 sps:$4 sm:$0xff]   ;;  %v2763_v27 = vld [vmem:[%s3143_s25 + $0xc0] ss:$16 sps:$4 sm:$0xff]  }
  0x1a   : > { %v2764_v28 = vld [vmem:[%s3143_s25 + $0xc8] ss:$16 sps:$4 sm:$0xff]   ;;  %v2765_v29 = vld [vmem:[%s3143_s25 + $0xe4] ss:$16 sps:$4 sm:$0xff]   ;;  %v2767_v30 = vld [vmem:[%s3143_s25 + $0xec] ss:$16 sps:$4 sm:$0xff]  }
  0x1b   : > { %1687 = vmatpush1.bf16.msra.mxu0 %v2739_v11  ;;  %1899 = vmatpush1.bf16.msra.mxu1 %v2740_v12  ;;  %v2769_v31 = vld [vmem:[%s3143_s25 + $0xe0] ss:$16 sps:$4 sm:$0xff]   ;;  %v2770_v32 = vld [vmem:[%s3143_s25 + $0xe8] ss:$16 sps:$4 sm:$0xff]   ;;  %v2771_v33 = vld [vmem:[%s3143_s25 + $0x104] ss:$16 sps:$4 sm:$0xff]  }
  0x1c   : > { %1688 = vmatprep.subr.bf16.mxu0 %v2741_v13  ;;  %1900 = vmatprep.subr.bf16.mxu1 %v2743_v14  ;;  %v2773_v34 = vld [vmem:[%s3143_s25 + $0x10c] ss:$16 sps:$4 sm:$0xff]   ;;  %v2775_v35 = vld [vmem:[%s3143_s25 + $0x100] ss:$16 sps:$4 sm:$0xff]   ;;  %v2776_v36 = vld [vmem:[%s3143_s25 + $0x108] ss:$16 sps:$4 sm:$0xff]  }
  0x1d   : > { %v2777_v37 = vld [vmem:[%s3143_s25 + $0x124] ss:$16 sps:$4 sm:$0xff]   ;;  %v2779_v38 = vld [vmem:[%s3143_s25 + $0x12c] ss:$16 sps:$4 sm:$0xff]   ;;  %v2781_v39 = vld [vmem:[%s3143_s25 + $0x120] ss:$16 sps:$4 sm:$0xff]  }
  0x1e   : > { %v2782_v40 = vld [vmem:[%s3143_s25 + $0x128] ss:$16 sps:$4 sm:$0xff]   ;;  %v2783_v41 = vld [vmem:[%s3143_s25 + $0x144] ss:$16 sps:$4 sm:$0xff]   ;;  %v2785_v42 = vld [vmem:[%s3143_s25 + $0x14c] ss:$16 sps:$4 sm:$0xff]  }
  0x1f   : > { %1689 = vmatpush1.bf16.msra.mxu0 %v2745_v15  ;;  %1901 = vmatpush1.bf16.msra.mxu1 %v2746_v16  ;;  %v2787_v43 = vld [vmem:[%s3143_s25 + $0x140] ss:$16 sps:$4 sm:$0xff]   ;;  %v2788_v44 = vld [vmem:[%s3143_s25 + $0x148] ss:$16 sps:$4 sm:$0xff]   ;;  %v2789_v45 = vld [vmem:[%s3143_s25 + $0x164] ss:$16 sps:$4 sm:$0xff]  }
  0x20   : > { %1690 = vmatprep.subr.bf16.mxu0 %v2747_v17  ;;  %1902 = vmatprep.subr.bf16.mxu1 %v2749_v18  ;;  %v2791_v46 = vld [vmem:[%s3143_s25 + $0x16c] ss:$16 sps:$4 sm:$0xff]   ;;  %v2793_v47 = vld [vmem:[%s3143_s25 + $0x160] ss:$16 sps:$4 sm:$0xff]   ;;  %v2794_v48 = vld [vmem:[%s3143_s25 + $0x168] ss:$16 sps:$4 sm:$0xff]  }
  0x21   : > { %v2795_v49 = vld [vmem:[%s3143_s25 + $0x184] ss:$16 sps:$4 sm:$0xff]   ;;  %v2797_v50 = vld [vmem:[%s3143_s25 + $0x18c] ss:$16 sps:$4 sm:$0xff]   ;;  %v2799_v51 = vld [vmem:[%s3143_s25 + $0x180] ss:$16 sps:$4 sm:$0xff]  }
  0x22   : > { %v2800_v52 = vld [vmem:[%s3143_s25 + $0x188] ss:$16 sps:$4 sm:$0xff]   ;;  %v2801_v53 = vld [vmem:[%s3143_s25 + $0x1a4] ss:$16 sps:$4 sm:$0xff]   ;;  %v2803_v54 = vld [vmem:[%s3143_s25 + $0x1ac] ss:$16 sps:$4 sm:$0xff]  }
  0x23   : > { %1691 = vmatpush1.bf16.msra.mxu0 %v2751_v19  ;;  %1903 = vmatpush1.bf16.msra.mxu1 %v2752_v20  ;;  %v2805_v55 = vld [vmem:[%s3143_s25 + $0x1a0] ss:$16 sps:$4 sm:$0xff]   ;;  %v2806_v56 = vld [vmem:[%s3143_s25 + $0x1a8] ss:$16 sps:$4 sm:$0xff]   ;;  %v2807_v57 = vld [vmem:[%s3143_s25 + $0x1c4] ss:$16 sps:$4 sm:$0xff]  }
  0x24   : > { %1692 = vmatprep.subr.bf16.mxu0 %v2753_v21  ;;  %1904 = vmatprep.subr.bf16.mxu1 %v2755_v22  ;;  %v2809_v58 = vld [vmem:[%s3143_s25 + $0x1cc] ss:$16 sps:$4 sm:$0xff]   ;;  %v2811_v59 = vld [vmem:[%s3143_s25 + $0x1c0] ss:$16 sps:$4 sm:$0xff]   ;;  %v2812_v60 = vld [vmem:[%s3143_s25 + $0x1c8] ss:$16 sps:$4 sm:$0xff]  }
  0x25   : > { %v2813_v61 = vld [vmem:[%s3143_s25 + $0x1e4] ss:$16 sps:$4 sm:$0xff]   ;;  %v2815_v62 = vld [vmem:[%s3143_s25 + $0x1ec] ss:$16 sps:$4 sm:$0xff]   ;;  %v2817_v63 = vld [vmem:[%s3143_s25 + $0x1e0] ss:$16 sps:$4 sm:$0xff]  }
  0x26   : > { %v2818_v0 = vld [vmem:[%s3143_s25 + $0x1e8] ss:$16 sps:$4 sm:$0xff]   ;;  %v2824_v1 = vld [vmem:[%s3143_s25 + $0x204] ss:$16 sps:$4 sm:$0xff]   ;;  %v2827_v2 = vld [vmem:[%s3143_s25 + $0x20c] ss:$16 sps:$4 sm:$0xff]  }
  0x27   : > { %1693 = vmatpush1.bf16.msra.mxu0 %v2757_v23  ;;  %1905 = vmatpush1.bf16.msra.mxu1 %v2758_v24  ;;  %v2819_v3 = vld [vmem:[%s3558_s1] ss:$28 sps:$4 sm:$0xff]   ;;  %v2825_v5 = vld [vmem:[%s3143_s25 + $0x208] ss:$16 sps:$4 sm:$0xff]   ;;  %v2830_v6 = vld [vmem:[%s3143_s25 + $0x224] ss:$16 sps:$4 sm:$0xff]  }
  0x28   : > { %1694 = vmatprep.subr.bf16.mxu0 %v2759_v25  ;;  %1906 = vmatprep.subr.bf16.mxu1 %v2761_v26  ;;  %v2822_v4 = vld [vmem:[%s3143_s25 + $0x200] ss:$16 sps:$4 sm:$0xff]   ;;  %v2833_v7 = vld [vmem:[%s3143_s25 + $0x22c] ss:$16 sps:$4 sm:$0xff]   ;;  %v2831_v10 = vld [vmem:[%s3143_s25 + $0x228] ss:$16 sps:$4 sm:$0xff]  }
  0x29   : > { %v2906_v8 = vld [vmem:[%s3558_s1 + $0x3c] ss:$28 sps:$4 sm:$0xff]   ;;  %v2828_v9 = vld [vmem:[%s3143_s25 + $0x220] ss:$16 sps:$4 sm:$0xff]   ;;  %v2836_v11 = vld [vmem:[%s3143_s25 + $0x244] ss:$16 sps:$4 sm:$0xff]  }
  0x2a   : > { %v2839_v12 = vld [vmem:[%s3143_s25 + $0x24c] ss:$16 sps:$4 sm:$0xff]   ;;  %v2914_v13 = vld [vmem:[%s3558_s1 + $0x38] ss:$28 sps:$4 sm:$0xff]   ;;  %v2834_v14 = vld [vmem:[%s3143_s25 + $0x240] ss:$16 sps:$4 sm:$0xff]  }
  0x2b   : > { %1695 = vmatpush1.bf16.msra.mxu0 %v2763_v27  ;;  %1907 = vmatpush1.bf16.msra.mxu1 %v2764_v28  ;;  %v2837_v15 = vld [vmem:[%s3143_s25 + $0x248] ss:$16 sps:$4 sm:$0xff]   ;;  %v2842_v16 = vld [vmem:[%s3143_s25 + $0x264] ss:$16 sps:$4 sm:$0xff]   ;;  %v2845_v17 = vld [vmem:[%s3143_s25 + $0x26c] ss:$16 sps:$4 sm:$0xff]  }
  0x2c   : > { %1696 = vmatprep.subr.bf16.mxu0 %v2765_v29  ;;  %1908 = vmatprep.subr.bf16.mxu1 %v2767_v30  ;;  %v2840_v18 = vld [vmem:[%s3143_s25 + $0x260] ss:$16 sps:$4 sm:$0xff]   ;;  %v2843_v19 = vld [vmem:[%s3143_s25 + $0x268] ss:$16 sps:$4 sm:$0xff]   ;;  %v2848_v20 = vld [vmem:[%s3143_s25 + $0x284] ss:$16 sps:$4 sm:$0xff]  }
  0x2d   : > { %v2851_v21 = vld [vmem:[%s3143_s25 + $0x28c] ss:$16 sps:$4 sm:$0xff]   ;;  %v2846_v22 = vld [vmem:[%s3143_s25 + $0x280] ss:$16 sps:$4 sm:$0xff]   ;;  %v2849_v23 = vld [vmem:[%s3143_s25 + $0x288] ss:$16 sps:$4 sm:$0xff]  }
  0x2e   : > { %v2854_v24 = vld [vmem:[%s3143_s25 + $0x2a4] ss:$16 sps:$4 sm:$0xff]   ;;  %v2857_v25 = vld [vmem:[%s3143_s25 + $0x2ac] ss:$16 sps:$4 sm:$0xff]   ;;  %v2852_v26 = vld [vmem:[%s3143_s25 + $0x2a0] ss:$16 sps:$4 sm:$0xff]  }
  0x2f   : > { %1697 = vmatpush1.bf16.msra.mxu0 %v2769_v31  ;;  %1909 = vmatpush1.bf16.msra.mxu1 %v2770_v32  ;;  %v2855_v27 = vld [vmem:[%s3143_s25 + $0x2a8] ss:$16 sps:$4 sm:$0xff]   ;;  %v2860_v28 = vld [vmem:[%s3143_s25 + $0x2c4] ss:$16 sps:$4 sm:$0xff]   ;;  %v2863_v29 = vld [vmem:[%s3143_s25 + $0x2cc] ss:$16 sps:$4 sm:$0xff]  }
  0x30   : > { %1698 = vmatprep.subr.bf16.mxu0 %v2771_v33  ;;  %1910 = vmatprep.subr.bf16.mxu1 %v2773_v34  ;;  %v2923_v30 = vld [vmem:[%s3558_s1 + $0xc] ss:$28 sps:$4 sm:$0xff]   ;;  %v2858_v31 = vld [vmem:[%s3143_s25 + $0x2c0] ss:$16 sps:$4 sm:$0xff]   ;;  %v2866_v33 = vld [vmem:[%s3143_s25 + $0x2e4] ss:$16 sps:$4 sm:$0xff]  }
  0x31   : > { %v2861_v32 = vld [vmem:[%s3143_s25 + $0x2c8] ss:$16 sps:$4 sm:$0xff]   ;;  %v2869_v34 = vld [vmem:[%s3143_s25 + $0x2ec] ss:$16 sps:$4 sm:$0xff]  }
  0x33   : > { %1699 = vmatpush1.bf16.msra.mxu0 %v2775_v35  ;;  %1911 = vmatpush1.bf16.msra.mxu1 %v2776_v36  ;;  %v2864_v35 = vld [vmem:[%s3143_s25 + $0x2e0] ss:$16 sps:$4 sm:$0xff]   ;;  %v2867_v36 = vld [vmem:[%s3143_s25 + $0x2e8] ss:$16 sps:$4 sm:$0xff]  }
  0x34   : > { %1700 = vmatprep.subr.bf16.mxu0 %v2777_v37  ;;  %1912 = vmatprep.subr.bf16.mxu1 %v2779_v38  ;;  %v2872_v37 = vld [vmem:[%s3143_s25 + $0x304] ss:$16 sps:$4 sm:$0xff]   ;;  %v2875_v38 = vld [vmem:[%s3143_s25 + $0x30c] ss:$16 sps:$4 sm:$0xff]  }
  0x37   : > { %1701 = vmatpush1.bf16.msra.mxu0 %v2781_v39  ;;  %1913 = vmatpush1.bf16.msra.mxu1 %v2782_v40  ;;  %v2870_v39 = vld [vmem:[%s3143_s25 + $0x300] ss:$16 sps:$4 sm:$0xff]   ;;  %v2873_v40 = vld [vmem:[%s3143_s25 + $0x308] ss:$16 sps:$4 sm:$0xff]  }
  0x38   : > { %1702 = vmatprep.subr.bf16.mxu0 %v2783_v41  ;;  %1914 = vmatprep.subr.bf16.mxu1 %v2785_v42  ;;  %v2878_v41 = vld [vmem:[%s3143_s25 + $0x324] ss:$16 sps:$4 sm:$0xff]   ;;  %v2881_v42 = vld [vmem:[%s3143_s25 + $0x32c] ss:$16 sps:$4 sm:$0xff]  }
  0x3b   : > { %1703 = vmatpush1.bf16.msra.mxu0 %v2787_v43  ;;  %1915 = vmatpush1.bf16.msra.mxu1 %v2788_v44  ;;  %v3095_v43 = vmov 0   ;;  %v2876_v44 = vld [vmem:[%s3143_s25 + $0x320] ss:$16 sps:$4 sm:$0xff]  }
  0x3c   : > { %1704 = vmatprep.subr.bf16.mxu0 %v2789_v45  ;;  %1916 = vmatprep.subr.bf16.mxu1 %v2791_v46  ;;  %v2879_v45 = vld [vmem:[%s3143_s25 + $0x328] ss:$16 sps:$4 sm:$0xff]   ;;  %v2884_v46 = vld [vmem:[%s3143_s25 + $0x344] ss:$16 sps:$4 sm:$0xff]  }
  0x3d   : > { %2721 = vset.pattern.permute.xlu0 %v3095_v43  ;;  %2722 = vset.pattern.permute.xlu1 %v3095_v43 }
  0x3f   : > { %1705 = vmatpush1.bf16.msra.mxu0 %v2793_v47  ;;  %1917 = vmatpush1.bf16.msra.mxu1 %v2794_v48  ;;  %v2887_v47 = vld [vmem:[%s3143_s25 + $0x34c] ss:$16 sps:$4 sm:$0xff]   ;;  %v2882_v48 = vld [vmem:[%s3143_s25 + $0x340] ss:$16 sps:$4 sm:$0xff]  }
  0x40   : > { %1706 = vmatprep.subr.bf16.mxu0 %v2795_v49  ;;  %1918 = vmatprep.subr.bf16.mxu1 %v2797_v50  ;;  %v2885_v49 = vld [vmem:[%s3143_s25 + $0x348] ss:$16 sps:$4 sm:$0xff]   ;;  %v2890_v50 = vld [vmem:[%s3143_s25 + $0x364] ss:$16 sps:$4 sm:$0xff]  }
  0x43   : > { %1707 = vmatpush1.bf16.msra.mxu0 %v2799_v51  ;;  %1919 = vmatpush1.bf16.msra.mxu1 %v2800_v52  ;;  %v2893_v51 = vld [vmem:[%s3143_s25 + $0x36c] ss:$16 sps:$4 sm:$0xff]   ;;  %v2888_v52 = vld [vmem:[%s3143_s25 + $0x360] ss:$16 sps:$4 sm:$0xff]  }
  0x44   : > { %1708 = vmatprep.subr.bf16.mxu0 %v2801_v53  ;;  %1920 = vmatprep.subr.bf16.mxu1 %v2803_v54  ;;  %v2891_v53 = vld [vmem:[%s3143_s25 + $0x368] ss:$16 sps:$4 sm:$0xff]   ;;  %v2896_v54 = vld [vmem:[%s3143_s25 + $0x384] ss:$16 sps:$4 sm:$0xff]  }
  0x47   : > { %1709 = vmatpush1.bf16.msra.mxu0 %v2805_v55  ;;  %1921 = vmatpush1.bf16.msra.mxu1 %v2806_v56  ;;  %v2899_v55 = vld [vmem:[%s3143_s25 + $0x38c] ss:$16 sps:$4 sm:$0xff]   ;;  %v2894_v56 = vld [vmem:[%s3143_s25 + $0x380] ss:$16 sps:$4 sm:$0xff]  }
  0x48   : > { %1710 = vmatprep.subr.bf16.mxu0 %v2807_v57  ;;  %1922 = vmatprep.subr.bf16.mxu1 %v2809_v58  ;;  %v2897_v57 = vld [vmem:[%s3143_s25 + $0x388] ss:$16 sps:$4 sm:$0xff]   ;;  %v2902_v58 = vld [vmem:[%s3143_s25 + $0x3a4] ss:$16 sps:$4 sm:$0xff]  }
  0x4b   : > { %1711 = vmatpush1.bf16.msra.mxu0 %v2811_v59  ;;  %1923 = vmatpush1.bf16.msra.mxu1 %v2812_v60  ;;  %v2905_v59 = vld [vmem:[%s3143_s25 + $0x3ac] ss:$16 sps:$4 sm:$0xff]   ;;  %v2900_v60 = vld [vmem:[%s3143_s25 + $0x3a0] ss:$16 sps:$4 sm:$0xff]  }
  0x4c   : > { %1712 = vmatprep.subr.bf16.mxu0 %v2813_v61  ;;  %1924 = vmatprep.subr.bf16.mxu1 %v2815_v62  ;;  %v2903_v61 = vld [vmem:[%s3143_s25 + $0x3a8] ss:$16 sps:$4 sm:$0xff]   ;;  %v2910_v62 = vld [vmem:[%s3143_s25 + $0x3c4] ss:$16 sps:$4 sm:$0xff]  }
  0x4f   : > { %1713 = vmatpush1.bf16.msra.mxu0 %v2817_v63  ;;  %1925 = vmatpush1.bf16.msra.mxu1 %v2818_v0  ;;  %v2913_v63 = vld [vmem:[%s3143_s25 + $0x3cc] ss:$16 sps:$4 sm:$0xff]   ;;  %v2908_v0 = vld [vmem:[%s3143_s25 + $0x3c0] ss:$16 sps:$4 sm:$0xff]  }
  0x50   : > { %1735 = vmatprep.subr.bf16.mxu0 %v2824_v1  ;;  %1947 = vmatprep.subr.bf16.mxu1 %v2827_v2  ;;  %v2911_v1 = vld [vmem:[%s3143_s25 + $0x3c8] ss:$16 sps:$4 sm:$0xff]   ;;  %v2917_v2 = vld [vmem:[%s3143_s25 + $0x3e4] ss:$16 sps:$4 sm:$0xff]  }
  0x52   : > { %1715 = vmatmul.mubr.bf16.vlgmr.msra.gmra.mrb[0].mxu0 %v2819_v3  ;;  %1927 = vmatmul.mubr.bf16.vlgmr.msra.gmra.mrb[0].mxu1 %v2819_v3  ;;  %v2920_v3 = vld [vmem:[%s3143_s25 + $0x3ec] ss:$16 sps:$4 sm:$0xff]  }
  0x53   : > { %1736 = vmatpush1.bf16.msra.mxu0 %v2822_v4  ;;  %1948 = vmatpush1.bf16.msra.mxu1 %v2825_v5  ;;  %v2915_v4 = vld [vmem:[%s3143_s25 + $0x3e0] ss:$16 sps:$4 sm:$0xff]   ;;  %v2918_v5 = vld [vmem:[%s3143_s25 + $0x3e8] ss:$16 sps:$4 sm:$0xff]  }
  0x54   : > { %1737 = vmatprep.subr.bf16.mxu0 %v2830_v6  ;;  %1949 = vmatprep.subr.bf16.mxu1 %v2833_v7  ;;  %v2926_v6 = vld [vmem:[%s3143_s25 + $0x404] ss:$16 sps:$4 sm:$0xff]   ;;  %v2929_v7 = vld [vmem:[%s3143_s25 + $0x40c] ss:$16 sps:$4 sm:$0xff]  }
  0x55   : > { %1724 = vmatprep.mubr.bf16.mxu0 %v2906_v8  ;;  %1936 = vmatprep.mubr.bf16.mxu1 %v2906_v8  ;;  %v2921_v8 = vld [vmem:[%s3558_s1 + $0x8] ss:$28 sps:$4 sm:$0xff]  }
  0x57   : > { %1738 = vmatpush1.bf16.msra.mxu0 %v2828_v9  ;;  %1950 = vmatpush1.bf16.msra.mxu1 %v2831_v10  ;;  %v2924_v9 = vld [vmem:[%s3143_s25 + $0x400] ss:$16 sps:$4 sm:$0xff]   ;;  %v2927_v10 = vld [vmem:[%s3143_s25 + $0x408] ss:$16 sps:$4 sm:$0xff]  }
  0x58   : > { %1739 = vmatprep.subr.bf16.mxu0 %v2836_v11  ;;  %1951 = vmatprep.subr.bf16.mxu1 %v2839_v12  ;;  %v2932_v11 = vld [vmem:[%s3143_s25 + $0x424] ss:$16 sps:$4 sm:$0xff]   ;;  %v2935_v12 = vld [vmem:[%s3143_s25 + $0x42c] ss:$16 sps:$4 sm:$0xff]  }
  0x5a   : > { %1725 = vmatmul.mubr.bf16.gmra.mrb[4].mxu0 %v2914_v13  ;;  %1937 = vmatmul.mubr.bf16.gmra.mrb[4].mxu1 %v2914_v13  ;;  %v3008_v13 = vld [vmem:[%s3558_s1 + $0x44] ss:$28 sps:$4 sm:$0xff]  }
  0x5b   : > { %1740 = vmatpush1.bf16.msra.mxu0 %v2834_v14  ;;  %1952 = vmatpush1.bf16.msra.mxu1 %v2837_v15  ;;  %v2930_v14 = vld [vmem:[%s3143_s25 + $0x420] ss:$16 sps:$4 sm:$0xff]   ;;  %v2933_v15 = vld [vmem:[%s3143_s25 + $0x428] ss:$16 sps:$4 sm:$0xff]  }
  0x5c   : > { %1741 = vmatprep.subr.bf16.mxu0 %v2842_v16  ;;  %1953 = vmatprep.subr.bf16.mxu1 %v2845_v17  ;;  %v2938_v16 = vld [vmem:[%s3143_s25 + $0x444] ss:$16 sps:$4 sm:$0xff]   ;;  %v2941_v17 = vld [vmem:[%s3143_s25 + $0x44c] ss:$16 sps:$4 sm:$0xff]  }
  0x5d   : > { %1767 = vmatprep.mubr.bf16.mxu0 %v2923_v30  ;;  %1979 = vmatprep.mubr.bf16.mxu1 %v2923_v30  ;;  %v2956_v30 = vld [vmem:[%s3143_s25 + $0x4a4] ss:$16 sps:$4 sm:$0xff]  }
  0x5f   : > { %1742 = vmatpush1.bf16.msra.mxu0 %v2840_v18  ;;  %1954 = vmatpush1.bf16.msra.mxu1 %v2843_v19  ;;  %v3016_v18 = vld [vmem:[%s3558_s1 + $0x40] ss:$28 sps:$4 sm:$0xff]  }
  0x60   : > { %1743 = vmatprep.subr.bf16.mxu0 %v2848_v20  ;;  %1955 = vmatprep.subr.bf16.mxu1 %v2851_v21  ;;  %v2936_v19 = vld [vmem:[%s3143_s25 + $0x440] ss:$16 sps:$4 sm:$0xff]   ;;  %v2939_v20 = vld [vmem:[%s3143_s25 + $0x448] ss:$16 sps:$4 sm:$0xff]   ;;  %v2944_v21 = vld [vmem:[%s3143_s25 + $0x464] ss:$16 sps:$4 sm:$0xff]  }
  0x63   : > { %1744 = vmatpush1.bf16.msra.mxu0 %v2846_v22  ;;  %1956 = vmatpush1.bf16.msra.mxu1 %v2849_v23  ;;  %v2947_v22 = vld [vmem:[%s3143_s25 + $0x46c] ss:$16 sps:$4 sm:$0xff]   ;;  %v3025_v23 = vld [vmem:[%s3558_s1 + $0x14] ss:$28 sps:$4 sm:$0xff]  }
  0x64   : > { %1745 = vmatprep.subr.bf16.mxu0 %v2854_v24  ;;  %1957 = vmatprep.subr.bf16.mxu1 %v2857_v25  ;;  %v2942_v24 = vld [vmem:[%s3143_s25 + $0x460] ss:$16 sps:$4 sm:$0xff]   ;;  %v2945_v25 = vld [vmem:[%s3143_s25 + $0x468] ss:$16 sps:$4 sm:$0xff]  }
  0x67   : > { %1746 = vmatpush1.bf16.msra.mxu0 %v2852_v26  ;;  %1958 = vmatpush1.bf16.msra.mxu1 %v2855_v27  ;;  %v2950_v26 = vld [vmem:[%s3143_s25 + $0x484] ss:$16 sps:$4 sm:$0xff]   ;;  %v2953_v27 = vld [vmem:[%s3143_s25 + $0x48c] ss:$16 sps:$4 sm:$0xff]  }
  0x68   : > { %1747 = vmatprep.subr.bf16.mxu0 %v2860_v28  ;;  %1959 = vmatprep.subr.bf16.mxu1 %v2863_v29  ;;  %v2948_v28 = vld [vmem:[%s3143_s25 + $0x480] ss:$16 sps:$4 sm:$0xff]   ;;  %v2951_v29 = vld [vmem:[%s3143_s25 + $0x488] ss:$16 sps:$4 sm:$0xff]  }
  0x6b   : > { %1748 = vmatpush1.bf16.msra.mxu0 %v2858_v31  ;;  %1960 = vmatpush1.bf16.msra.mxu1 %v2861_v32  ;;  %v2959_v31 = vld [vmem:[%s3143_s25 + $0x4ac] ss:$16 sps:$4 sm:$0xff]   ;;  %v2954_v32 = vld [vmem:[%s3143_s25 + $0x4a0] ss:$16 sps:$4 sm:$0xff]  }
  0x6c   : > { %1749 = vmatprep.subr.bf16.mxu0 %v2866_v33  ;;  %1961 = vmatprep.subr.bf16.mxu1 %v2869_v34  ;;  %v2957_v33 = vld [vmem:[%s3143_s25 + $0x4a8] ss:$16 sps:$4 sm:$0xff]   ;;  %v2962_v34 = vld [vmem:[%s3143_s25 + $0x4c4] ss:$16 sps:$4 sm:$0xff]  }
  0x6f   : > { %1750 = vmatpush1.bf16.msra.mxu0 %v2864_v35  ;;  %1962 = vmatpush1.bf16.msra.mxu1 %v2867_v36  ;;  %v2965_v35 = vld [vmem:[%s3143_s25 + $0x4cc] ss:$16 sps:$4 sm:$0xff]   ;;  %v2960_v36 = vld [vmem:[%s3143_s25 + $0x4c0] ss:$16 sps:$4 sm:$0xff]  }
  0x70   : > { %1751 = vmatprep.subr.bf16.mxu0 %v2872_v37  ;;  %1963 = vmatprep.subr.bf16.mxu1 %v2875_v38  ;;  %v2963_v37 = vld [vmem:[%s3143_s25 + $0x4c8] ss:$16 sps:$4 sm:$0xff]   ;;  %v466_v38 = vld [vmem:[%s3559_s2] sm:$0xff] }
  0x71   : > { %472 = vperm.xlu0 %2721, %v466_v38   ;;  %v3058_v38 = vld [vmem:[%s3143_s25 + $0x6a4] ss:$16 sps:$4 sm:$0xff]  }
  0x73   : > { %1752 = vmatpush1.bf16.msra.mxu0 %v2870_v39  ;;  %1964 = vmatpush1.bf16.msra.mxu1 %v2873_v40  ;;  %v2968_v39 = vld [vmem:[%s3143_s25 + $0x4e4] ss:$16 sps:$4 sm:$0xff]   ;;  %v2971_v40 = vld [vmem:[%s3143_s25 + $0x4ec] ss:$16 sps:$4 sm:$0xff]  }
  0x74   : > { %1753 = vmatprep.subr.bf16.mxu0 %v2878_v41  ;;  %1965 = vmatprep.subr.bf16.mxu1 %v2881_v42  ;;  %v468_v41 = vld [vmem:[%s3559_s2 + $0x10] sm:$0xff]  ;;  %v467_v42 = vld [vmem:[%s3559_s2 + $0x8] sm:$0xff] }
  0x75   : > { %482 = vperm.xlu1 %2722, %v468_v41   ;;  %477 = vperm.xlu0 %2721, %v467_v42   ;;  %v3059_v41 = vld [vmem:[%s3143_s25 + $0x6a8] ss:$16 sps:$4 sm:$0xff]   ;;  %v3067_v42 = vld [vmem:[%s3143_s25 + $0x6c4] ss:$16 sps:$4 sm:$0xff]  }
  0x77   : > { %1754 = vmatpush1.bf16.msra.mxu0 %v2876_v44  ;;  %1966 = vmatpush1.bf16.msra.mxu1 %v2879_v45  ;;  %v469_v44 = vld [vmem:[%s3559_s2 + $0x18] sm:$0xff]  ;;  %v2966_v45 = vld [vmem:[%s3143_s25 + $0x4e0] ss:$16 sps:$4 sm:$0xff]  }
  0x78   : > { %1755 = vmatprep.subr.bf16.mxu0 %v2884_v46  ;;  %1967 = vmatprep.subr.bf16.mxu1 %v2887_v47  ;;  %v2969_v46 = vld [vmem:[%s3143_s25 + $0x4e8] ss:$16 sps:$4 sm:$0xff]   ;;  %v2974_v47 = vld [vmem:[%s3143_s25 + $0x504] ss:$16 sps:$4 sm:$0xff]  }
  0x79   : > { %487 = vperm.xlu1 %2722, %v469_v44   ;;  %v3070_v44 = vld [vmem:[%s3143_s25 + $0x6cc] ss:$16 sps:$4 sm:$0xff]  }
  0x7b   : > { %1756 = vmatpush1.bf16.msra.mxu0 %v2882_v48  ;;  %1968 = vmatpush1.bf16.msra.mxu1 %v2885_v49  ;;  %v2977_v48 = vld [vmem:[%s3143_s25 + $0x50c] ss:$16 sps:$4 sm:$0xff]   ;;  %v2972_v49 = vld [vmem:[%s3143_s25 + $0x500] ss:$16 sps:$4 sm:$0xff]  }
  0x7c   : > { %1757 = vmatprep.subr.bf16.mxu0 %v2890_v50  ;;  %1969 = vmatprep.subr.bf16.mxu1 %v2893_v51  ;;  %v2975_v50 = vld [vmem:[%s3143_s25 + $0x508] ss:$16 sps:$4 sm:$0xff]   ;;  %v2980_v51 = vld [vmem:[%s3143_s25 + $0x524] ss:$16 sps:$4 sm:$0xff]  }
  0x7f   : > { %1758 = vmatpush1.bf16.msra.mxu0 %v2888_v52  ;;  %1970 = vmatpush1.bf16.msra.mxu1 %v2891_v53  ;;  %v2983_v52 = vld [vmem:[%s3143_s25 + $0x52c] ss:$16 sps:$4 sm:$0xff]   ;;  %v2978_v53 = vld [vmem:[%s3143_s25 + $0x520] ss:$16 sps:$4 sm:$0xff]  }
  0x80   : > { %1759 = vmatprep.subr.bf16.mxu0 %v2896_v54  ;;  %1971 = vmatprep.subr.bf16.mxu1 %v2899_v55  ;;  %v2981_v54 = vld [vmem:[%s3143_s25 + $0x528] ss:$16 sps:$4 sm:$0xff]   ;;  %v2986_v55 = vld [vmem:[%s3143_s25 + $0x544] ss:$16 sps:$4 sm:$0xff]  }
  0x83   : > { %1760 = vmatpush1.bf16.msra.mxu0 %v2894_v56  ;;  %1972 = vmatpush1.bf16.msra.mxu1 %v2897_v57  ;;  %v2989_v56 = vld [vmem:[%s3143_s25 + $0x54c] ss:$16 sps:$4 sm:$0xff]   ;;  %v2984_v57 = vld [vmem:[%s3143_s25 + $0x540] ss:$16 sps:$4 sm:$0xff]  }
  0x84   : > { %1761 = vmatprep.subr.bf16.mxu0 %v2902_v58  ;;  %1973 = vmatprep.subr.bf16.mxu1 %v2905_v59  ;;  %v2987_v58 = vld [vmem:[%s3143_s25 + $0x548] ss:$16 sps:$4 sm:$0xff]   ;;  %v2992_v59 = vld [vmem:[%s3143_s25 + $0x564] ss:$16 sps:$4 sm:$0xff]  }
  0x87   : > { %1762 = vmatpush1.bf16.msra.mxu0 %v2900_v60  ;;  %1974 = vmatpush1.bf16.msra.mxu1 %v2903_v61  ;;  %v2995_v60 = vld [vmem:[%s3143_s25 + $0x56c] ss:$16 sps:$4 sm:$0xff]   ;;  %v2990_v61 = vld [vmem:[%s3143_s25 + $0x560] ss:$16 sps:$4 sm:$0xff]  }
  0x88   : > { %1763 = vmatprep.subr.bf16.mxu0 %v2910_v62  ;;  %1975 = vmatprep.subr.bf16.mxu1 %v2913_v63  ;;  %v2993_v62 = vld [vmem:[%s3143_s25 + $0x568] ss:$16 sps:$4 sm:$0xff]   ;;  %v2998_v63 = vld [vmem:[%s3143_s25 + $0x584] ss:$16 sps:$4 sm:$0xff]  }
  0x8b   : > { %1764 = vmatpush1.bf16.msra.mxu0 %v2908_v0  ;;  %1976 = vmatpush1.bf16.msra.mxu1 %v2911_v1  ;;  %v3001_v0 = vld [vmem:[%s3143_s25 + $0x58c] ss:$16 sps:$4 sm:$0xff]   ;;  %v2996_v1 = vld [vmem:[%s3143_s25 + $0x580] ss:$16 sps:$4 sm:$0xff]  }
  0x8c   : > { %1765 = vmatprep.subr.bf16.mxu0 %v2917_v2  ;;  %1977 = vmatprep.subr.bf16.mxu1 %v2920_v3  ;;  %v2999_v2 = vld [vmem:[%s3143_s25 + $0x588] ss:$16 sps:$4 sm:$0xff]   ;;  %v3004_v3 = vld [vmem:[%s3143_s25 + $0x5a4] ss:$16 sps:$4 sm:$0xff]  }
  0x8f   : > { %1766 = vmatpush1.bf16.msra.mxu0 %v2915_v4  ;;  %1978 = vmatpush1.bf16.msra.mxu1 %v2918_v5  ;;  %v3007_v4 = vld [vmem:[%s3143_s25 + $0x5ac] ss:$16 sps:$4 sm:$0xff]   ;;  %v3002_v5 = vld [vmem:[%s3143_s25 + $0x5a0] ss:$16 sps:$4 sm:$0xff]  }
  0x90   : > { %1788 = vmatprep.subr.bf16.mxu0 %v2926_v6  ;;  %2000 = vmatprep.subr.bf16.mxu1 %v2929_v7  ;;  %v3005_v6 = vld [vmem:[%s3143_s25 + $0x5a8] ss:$16 sps:$4 sm:$0xff]   ;;  %v3012_v7 = vld [vmem:[%s3143_s25 + $0x5c4] ss:$16 sps:$4 sm:$0xff]  }
  0x92   : > { %1768 = vmatmul.mubr.bf16.vlgmr.msra.gmra.mrb[0].mxu0 %v2921_v8  ;;  %1980 = vmatmul.mubr.bf16.vlgmr.msra.gmra.mrb[0].mxu1 %v2921_v8  ;;  %v3015_v8 = vld [vmem:[%s3143_s25 + $0x5cc] ss:$16 sps:$4 sm:$0xff]  }
  0x93   : > { %1789 = vmatpush1.bf16.msra.mxu0 %v2924_v9  ;;  %2001 = vmatpush1.bf16.msra.mxu1 %v2927_v10  ;;  %v3010_v9 = vld [vmem:[%s3143_s25 + $0x5c0] ss:$16 sps:$4 sm:$0xff]   ;;  %v3013_v10 = vld [vmem:[%s3143_s25 + $0x5c8] ss:$16 sps:$4 sm:$0xff]  }
  0x94   : > { %1790 = vmatprep.subr.bf16.mxu0 %v2932_v11  ;;  %2002 = vmatprep.subr.bf16.mxu1 %v2935_v12  ;;  %v3019_v11 = vld [vmem:[%s3143_s25 + $0x5e4] ss:$16 sps:$4 sm:$0xff]   ;;  %v3022_v12 = vld [vmem:[%s3143_s25 + $0x5ec] ss:$16 sps:$4 sm:$0xff]  }
  0x95   : > { %1777 = vmatprep.mubr.bf16.mxu0 %v3008_v13  ;;  %1989 = vmatprep.mubr.bf16.mxu1 %v3008_v13  ;;  %v3017_v13 = vld [vmem:[%s3143_s25 + $0x5e0] ss:$16 sps:$4 sm:$0xff]  }
  0x97   : > { %1791 = vmatpush1.bf16.msra.mxu0 %v2930_v14  ;;  %2003 = vmatpush1.bf16.msra.mxu1 %v2933_v15  ;;  %v3020_v14 = vld [vmem:[%s3143_s25 + $0x5e8] ss:$16 sps:$4 sm:$0xff]   ;;  %v3028_v15 = vld [vmem:[%s3143_s25 + $0x604] ss:$16 sps:$4 sm:$0xff]  }
  0x98   : > { %1792 = vmatprep.subr.bf16.mxu0 %v2938_v16  ;;  %2004 = vmatprep.subr.bf16.mxu1 %v2941_v17  ;;  %v3031_v16 = vld [vmem:[%s3143_s25 + $0x60c] ss:$16 sps:$4 sm:$0xff]  }
  0x99   : > { %v3023_v17 = vld [vmem:[%s3558_s1 + $0x10] ss:$28 sps:$4 sm:$0xff]  }
  0x9a   : > { %1778 = vmatmul.mubr.bf16.gmra.mrb[4].mxu0 %v3016_v18  ;;  %1990 = vmatmul.mubr.bf16.gmra.mrb[4].mxu1 %v3016_v18  ;;  %v3026_v18 = vld [vmem:[%s3143_s25 + $0x600] ss:$16 sps:$4 sm:$0xff]  }
  0x9b   : > { %1793 = vmatpush1.bf16.msra.mxu0 %v2936_v19  ;;  %2005 = vmatpush1.bf16.msra.mxu1 %v2939_v20  ;;  %v3029_v19 = vld [vmem:[%s3143_s25 + $0x608] ss:$16 sps:$4 sm:$0xff]   ;;  %v3034_v20 = vld [vmem:[%s3143_s25 + $0x624] ss:$16 sps:$4 sm:$0xff]  }
  0x9c   : > { %1794 = vmatprep.subr.bf16.mxu0 %v2944_v21  ;;  %2006 = vmatprep.subr.bf16.mxu1 %v2947_v22  ;;  %v3037_v21 = vld [vmem:[%s3143_s25 + $0x62c] ss:$16 sps:$4 sm:$0xff]  }
  0x9d   : > { %1820 = vmatprep.mubr.bf16.mxu0 %v3025_v23  ;;  %2032 = vmatprep.mubr.bf16.mxu1 %v3025_v23  ;;  %v3062_v22 = vld [vmem:[%s3558_s1 + $0x4c] ss:$28 sps:$4 sm:$0xff]   ;;  %v3032_v23 = vld [vmem:[%s3143_s25 + $0x620] ss:$16 sps:$4 sm:$0xff]  }
  0x9f   : > { %1795 = vmatpush1.bf16.msra.mxu0 %v2942_v24  ;;  %2007 = vmatpush1.bf16.msra.mxu1 %v2945_v25  ;;  %v3035_v24 = vld [vmem:[%s3143_s25 + $0x628] ss:$16 sps:$4 sm:$0xff]   ;;  %v3040_v25 = vld [vmem:[%s3143_s25 + $0x644] ss:$16 sps:$4 sm:$0xff]  }
  0xa0   : > { %1796 = vmatprep.subr.bf16.mxu0 %v2950_v26  ;;  %2008 = vmatprep.subr.bf16.mxu1 %v2953_v27  ;;  %v3043_v26 = vld [vmem:[%s3143_s25 + $0x64c] ss:$16 sps:$4 sm:$0xff]   ;;  %v3064_v27 = vld [vmem:[%s3558_s1 + $0x48] ss:$28 sps:$4 sm:$0xff]  }
  0xa3   : > { %1797 = vmatpush1.bf16.msra.mxu0 %v2948_v28  ;;  %2009 = vmatpush1.bf16.msra.mxu1 %v2951_v29  ;;  %v3038_v28 = vld [vmem:[%s3143_s25 + $0x640] ss:$16 sps:$4 sm:$0xff]   ;;  %v3041_v29 = vld [vmem:[%s3143_s25 + $0x648] ss:$16 sps:$4 sm:$0xff]  }
  0xa4   : > { %1798 = vmatprep.subr.bf16.mxu0 %v2956_v30  ;;  %2010 = vmatprep.subr.bf16.mxu1 %v2959_v31  ;;  %v3046_v30 = vld [vmem:[%s3143_s25 + $0x664] ss:$16 sps:$4 sm:$0xff]   ;;  %v3049_v31 = vld [vmem:[%s3143_s25 + $0x66c] ss:$16 sps:$4 sm:$0xff]  }
  0xa7   : > { %1799 = vmatpush1.bf16.msra.mxu0 %v2954_v32  ;;  %2011 = vmatpush1.bf16.msra.mxu1 %v2957_v33  ;;  %v3044_v32 = vld [vmem:[%s3143_s25 + $0x660] ss:$16 sps:$4 sm:$0xff]   ;;  %v3047_v33 = vld [vmem:[%s3143_s25 + $0x668] ss:$16 sps:$4 sm:$0xff]  }
  0xa8   : > { %1800 = vmatprep.subr.bf16.mxu0 %v2962_v34  ;;  %2012 = vmatprep.subr.bf16.mxu1 %v2965_v35  ;;  %v3052_v34 = vld [vmem:[%s3143_s25 + $0x684] ss:$16 sps:$4 sm:$0xff]   ;;  %v3055_v35 = vld [vmem:[%s3143_s25 + $0x68c] ss:$16 sps:$4 sm:$0xff]  }
  0xab   : > { %1801 = vmatpush1.bf16.msra.mxu0 %v2960_v36  ;;  %2013 = vmatpush1.bf16.msra.mxu1 %v2963_v37  ;;  %v3050_v36 = vld [vmem:[%s3143_s25 + $0x680] ss:$16 sps:$4 sm:$0xff]   ;;  %v3053_v37 = vld [vmem:[%s3143_s25 + $0x688] ss:$16 sps:$4 sm:$0xff]  }
  0xac   : > { %1802 = vmatprep.subr.bf16.mxu0 %v2968_v39  ;;  %2014 = vmatprep.subr.bf16.mxu1 %v2971_v40  ;;  %v3061_v39 = vld [vmem:[%s3143_s25 + $0x6ac] ss:$16 sps:$4 sm:$0xff]   ;;  %v3056_v40 = vld [vmem:[%s3143_s25 + $0x6a0] ss:$16 sps:$4 sm:$0xff]  }
  0xaf   : > { %1803 = vmatpush1.bf16.msra.mxu0 %v2966_v45  ;;  %2015 = vmatpush1.bf16.msra.mxu1 %v2969_v46  ;;  %v3065_v45 = vld [vmem:[%s3143_s25 + $0x6c0] ss:$16 sps:$4 sm:$0xff]   ;;  %v3068_v46 = vld [vmem:[%s3143_s25 + $0x6c8] ss:$16 sps:$4 sm:$0xff]  }
  0xb0   : > { %1804 = vmatprep.subr.bf16.mxu0 %v2974_v47  ;;  %2016 = vmatprep.subr.bf16.mxu1 %v2977_v48  ;;  %v3073_v47 = vld [vmem:[%s3143_s25 + $0x6e4] ss:$16 sps:$4 sm:$0xff]   ;;  %v3076_v48 = vld [vmem:[%s3143_s25 + $0x6ec] ss:$16 sps:$4 sm:$0xff]  }
  0xb3   : > { %1805 = vmatpush1.bf16.msra.mxu0 %v2972_v49  ;;  %2017 = vmatpush1.bf16.msra.mxu1 %v2975_v50  ;;  %v3071_v49 = vld [vmem:[%s3143_s25 + $0x6e0] ss:$16 sps:$4 sm:$0xff]   ;;  %v3074_v50 = vld [vmem:[%s3143_s25 + $0x6e8] ss:$16 sps:$4 sm:$0xff]  }
  0xb4   : > { %1806 = vmatprep.subr.bf16.mxu0 %v2980_v51  ;;  %2018 = vmatprep.subr.bf16.mxu1 %v2983_v52  ;;  %v3077_v51 = vld [vmem:[%s3558_s1 + $0x18] ss:$28 sps:$4 sm:$0xff]   ;;  %v3078_v52 = vld [vmem:[%s3558_s1 + $0x50] ss:$28 sps:$4 sm:$0xff]  }
  0xb7   : > { %1807 = vmatpush1.bf16.msra.mxu0 %v2978_v53  ;;  %2019 = vmatpush1.bf16.msra.mxu1 %v2981_v54 }
  0xb8   : > { %1808 = vmatprep.subr.bf16.mxu0 %v2986_v55  ;;  %2020 = vmatprep.subr.bf16.mxu1 %v2989_v56 }
  0xbb   : > { %1809 = vmatpush1.bf16.msra.mxu0 %v2984_v57  ;;  %2021 = vmatpush1.bf16.msra.mxu1 %v2987_v58 }
  0xbc   : > { %1810 = vmatprep.subr.bf16.mxu0 %v2992_v59  ;;  %2022 = vmatprep.subr.bf16.mxu1 %v2995_v60 }
  0xbf   : > { %1811 = vmatpush1.bf16.msra.mxu0 %v2990_v61  ;;  %2023 = vmatpush1.bf16.msra.mxu1 %v2993_v62 }
  0xc0   : > { %1812 = vmatprep.subr.bf16.mxu0 %v2998_v63  ;;  %2024 = vmatprep.subr.bf16.mxu1 %v3001_v0 }
  0xc3   : > { %1813 = vmatpush1.bf16.msra.mxu0 %v2996_v1  ;;  %2025 = vmatpush1.bf16.msra.mxu1 %v2999_v2 }
  0xc4   : > { %1814 = vmatprep.subr.bf16.mxu0 %v3004_v3  ;;  %2026 = vmatprep.subr.bf16.mxu1 %v3007_v4 }
  0xc7   : > { %1815 = vmatpush1.bf16.msra.mxu0 %v3002_v5  ;;  %2027 = vmatpush1.bf16.msra.mxu1 %v3005_v6 }
  0xc8   : > { %1816 = vmatprep.subr.bf16.mxu0 %v3012_v7  ;;  %2028 = vmatprep.subr.bf16.mxu1 %v3015_v8 }
  0xcb   : > { %1817 = vmatpush1.bf16.msra.mxu0 %v3010_v9  ;;  %2029 = vmatpush1.bf16.msra.mxu1 %v3013_v10 }
  0xcc   : > { %1818 = vmatprep.subr.bf16.mxu0 %v3019_v11  ;;  %2030 = vmatprep.subr.bf16.mxu1 %v3022_v12 }
  0xcf   : > { %1819 = vmatpush1.bf16.msra.mxu0 %v3017_v13  ;;  %2031 = vmatpush1.bf16.msra.mxu1 %v3020_v14 }
  0xd0   : > { %1841 = vmatprep.subr.bf16.mxu0 %v3028_v15  ;;  %2053 = vmatprep.subr.bf16.mxu1 %v3031_v16 }
  0xd2   : > { %1821 = vmatmul.mubr.bf16.vlgmr.msra.gmra.mrb[0].mxu0 %v3023_v17  ;;  %2033 = vmatmul.mubr.bf16.vlgmr.msra.gmra.mrb[0].mxu1 %v3023_v17 }
  0xd3   : > { %1842 = vmatpush1.bf16.msra.mxu0 %v3026_v18  ;;  %2054 = vmatpush1.bf16.msra.mxu1 %v3029_v19 }
  0xd4   : > { %1843 = vmatprep.subr.bf16.mxu0 %v3034_v20  ;;  %2055 = vmatprep.subr.bf16.mxu1 %v3037_v21 }
  0xd5   : > { %1830 = vmatprep.mubr.bf16.mxu0 %v3062_v22  ;;  %2042 = vmatprep.mubr.bf16.mxu1 %v3062_v22 }
  0xd7   : > { %1844 = vmatpush1.bf16.msra.mxu0 %v3032_v23  ;;  %2056 = vmatpush1.bf16.msra.mxu1 %v3035_v24 }
  0xd8   : > { %1845 = vmatprep.subr.bf16.mxu0 %v3040_v25  ;;  %2057 = vmatprep.subr.bf16.mxu1 %v3043_v26 }
  0xda   : > { %1831 = vmatmul.mubr.bf16.gmra.mrb[4].mxu0 %v3064_v27  ;;  %2043 = vmatmul.mubr.bf16.gmra.mrb[4].mxu1 %v3064_v27 }
  0xdb   : > { %1846 = vmatpush1.bf16.msra.mxu0 %v3038_v28  ;;  %2058 = vmatpush1.bf16.msra.mxu1 %v3041_v29 }
  0xdc   : > { %1847 = vmatprep.subr.bf16.mxu0 %v3046_v30  ;;  %2059 = vmatprep.subr.bf16.mxu1 %v3049_v31 }
  0xdd   : > { %1873 = vmatprep.mubr.bf16.mxu0 %v3095_v43  ;;  %2085 = vmatprep.mubr.bf16.mxu1 %v3095_v43 }
  0xdf   : > { %1848 = vmatpush1.bf16.msra.mxu0 %v3044_v32  ;;  %2060 = vmatpush1.bf16.msra.mxu1 %v3047_v33 }
  0xe0   : > { %1849 = vmatprep.subr.bf16.mxu0 %v3052_v34  ;;  %2061 = vmatprep.subr.bf16.mxu1 %v3055_v35 }
  0xe3   : > { %1850 = vmatpush1.bf16.msra.mxu0 %v3050_v36  ;;  %2062 = vmatpush1.bf16.msra.mxu1 %v3053_v37 }
  0xe4   : > { %1851 = vmatprep.subr.bf16.mxu0 %v3058_v38  ;;  %2063 = vmatprep.subr.bf16.mxu1 %v3061_v39 }
  0xe7   : > { %1852 = vmatpush1.bf16.msra.mxu0 %v3056_v40  ;;  %2064 = vmatpush1.bf16.msra.mxu1 %v3059_v41 }
  0xe8   : > { %1853 = vmatprep.subr.bf16.mxu0 %v3067_v42  ;;  %2065 = vmatprep.subr.bf16.mxu1 %v3070_v44 }
  0xeb   : > { %1854 = vmatpush1.bf16.msra.mxu0 %v3065_v45  ;;  %2066 = vmatpush1.bf16.msra.mxu1 %v3068_v46 }
  0xec   : > { %1855 = vmatprep.subr.bf16.mxu0 %v3073_v47  ;;  %2067 = vmatprep.subr.bf16.mxu1 %v3076_v48 }
  0xef   : > { %1856 = vmatpush1.bf16.msra.mxu0 %v3071_v49  ;;  %2068 = vmatpush1.bf16.msra.mxu1 %v3074_v50 }
  0xf0   : > { %v473_v53 = vpop.permute.xlu0 %472 }
  0xf2   : > { %1874 = vmatmul.mubr.bf16.vlgmr.msra.gmra.mrb[0].mxu0 %v3077_v51  ;;  %2086 = vmatmul.mubr.bf16.vlgmr.msra.gmra.mrb[0].mxu1 %v3077_v51 }
  0xf3   : > { %1883 = vmatprep.mubr.bf16.mxu0 %v3095_v43  ;;  %2095 = vmatprep.mubr.bf16.mxu1 %v3095_v43 }
  0xf4   : > { %v478_v54 = vpop.permute.xlu0 %477  ;;  %v483_v55 = vpop.permute.xlu1 %482 }
  0xf8   : > { %v488_v9 = vpop.permute.xlu1 %487 }
  0xfa   : > { %1884 = vmatmul.mubr.bf16.gmra.mrb[4].mxu0 %v3078_v52  ;;  %2096 = vmatmul.mubr.bf16.gmra.mrb[4].mxu1 %v3078_v52 }
 0x1c5   : > { %v1875_v56 = vpop.f32.mrb[0].mxu0  ;;  %v2087_v57 = vpop.f32.mrb[0].mxu1 }
 0x1c6   : > { %v2647_v58 = vadd.f32 %v1875_v56, %v473_v53  ;;  %v1877_v59 = vpop.f32.mrb[1].mxu0  ;;  %v2089_v60 = vpop.f32.mrb[1].mxu1  ;;  %v2655_v2 = vadd.f32 %v2087_v57, %v473_v53 }
 0x1c7   : > { %v2648_v61 = vadd.f32 %v1877_v59, %v473_v53  ;;  %v1879_v62 = vpop.f32.mrb[2].mxu0  ;;  %v2091_v63 = vpop.f32.mrb[2].mxu1  ;;  %v2656_v5 = vadd.f32 %v2089_v60, %v473_v53 }
 0x1c8   : > { %v2649_v0 = vadd.f32 %v1879_v62, %v478_v54  ;;  %v1881_v1 = vpop.f32.mrb[3].mxu0  ;;  %v2093_v43 = vpop.f32.mrb[3].mxu1  ;;  %v2657_v6 = vadd.f32 %v2091_v63, %v478_v54 }
 0x1c9   : > { %v2106_v3 = vadd.f32 %v2648_v61, %v2647_v58  ;;  %v2650_v4 = vadd.f32 %v1881_v1, %v478_v54  ;;  %v2658_v10 = vadd.f32 %v2093_v43, %v478_v54 }
 0x1cb   : > { %v2111_v7 = vadd.f32 %v2650_v4, %v2649_v0  ;;  %v2107_v8 = vadd.f32 %v2655_v2, %v2106_v3 }
 0x1cd   : > { %v1885_v11 = vpop.f32.mrb[4].mxu0  ;;  %v2097_v12 = vpop.f32.mrb[4].mxu1  ;;  %v2108_v13 = vadd.f32 %v2656_v5, %v2107_v8  ;;  %v2112_v14 = vadd.f32 %v2657_v6, %v2111_v7 }
 0x1ce   : > { %v2651_v15 = vadd.f32 %v1885_v11, %v483_v55  ;;  %v1887_v16 = vpop.f32.mrb[5].mxu0  ;;  %v2099_v17 = vpop.f32.mrb[5].mxu1  ;;  %v2659_v25 = vadd.f32 %v2097_v12, %v483_v55 }
 0x1cf   : > { %v2652_v18 = vadd.f32 %v1887_v16, %v483_v55  ;;  %v1889_v19 = vpop.f32.mrb[6].mxu0  ;;  %v2101_v20 = vpop.f32.mrb[6].mxu1  ;;  %2109 = vadd.xlane.f32.xlu0 %v2108_v13  ;;  %v2113_v21 = vadd.f32 %v2658_v10, %v2112_v14  ;;  %v2660_v28 = vadd.f32 %v2099_v17, %v483_v55 }
 0x1d0   : > { %v2653_v22 = vadd.f32 %v1889_v19, %v488_v9  ;;  %v1891_v23 = vpop.f32.mrb[7].mxu0  ;;  %v2103_v24 = vpop.f32.mrb[7].mxu1  ;;  %v2661_v29 = vadd.f32 %v2101_v20, %v488_v9 }
 0x1d1   : > { %v2116_v26 = vadd.f32 %v2652_v18, %v2651_v15  ;;  %v2654_v27 = vadd.f32 %v1891_v23, %v488_v9  ;;  %2114 = vadd.xlane.f32.xlu1 %v2113_v21  ;;  %v2662_v34 = vadd.f32 %v2103_v24, %v488_v9  ;;  %v2240_v24 = vld [vmem:[%s3561_s4 + $0x8] sm:$0xff] }
 0x1d3   : > { %v2121_v30 = vadd.f32 %v2654_v27, %v2653_v22  ;;  %v2117_v31 = vadd.f32 %v2659_v25, %v2116_v26 }
 0x1d5   : > { %v2118_v32 = vadd.f32 %v2660_v28, %v2117_v31  ;;  %v2122_v33 = vadd.f32 %v2661_v29, %v2121_v30 }
 0x1d7   : > { %2119 = vadd.xlane.f32.xlu0 %v2118_v32  ;;  %v2123_v35 = vadd.f32 %v2662_v34, %v2122_v33 }
 0x1db   : > { %2124 = vadd.xlane.f32.xlu0 %v2123_v35 }
 0x25c   : > { %v2110_v36 = vpop.xlane.xlu0 %2109 }
 0x25d   : > { %v2127_v37 = vmul.f32 0.001953125, %v2110_v36 }
 0x25e   : > { %v2115_v38 = vpop.xlane.xlu1 %2114 }
 0x25f   : > { %v3426_v39 = vsub.f32 %v2647_v58, %v2127_v37  ;;  %v3428_v40 = vsub.f32 %v2648_v61, %v2127_v37  ;;  %v2128_v41 = vmul.f32 0.001953125, %v2115_v38  ;;  %v3430_v42 = vsub.f32 %v2655_v2, %v2127_v37 }
 0x260   : > { %v3432_v44 = vsub.f32 %v2656_v5, %v2127_v37  ;;  %v2195_v37 = vld [vmem:[%s3560_s3] sm:$0xff] }
 0x261   : > { %v3434_v45 = vsub.f32 %v2649_v0, %v2128_v41  ;;  %v3436_v46 = vsub.f32 %v2650_v4, %v2128_v41  ;;  %v2147_v47 = vmul.f32 %v3426_v39, %v3426_v39  ;;  %v2148_v48 = vmul.f32 %v3428_v40, %v3428_v40 }
 0x262   : > { %v3442_v49 = vsub.f32 %v2657_v6, %v2128_v41  ;;  %v3444_v50 = vsub.f32 %v2658_v10, %v2128_v41  ;;  %v2149_v51 = vmul.f32 %v3430_v42, %v3430_v42  ;;  %v2150_v56 = vmul.f32 %v3432_v44, %v3432_v44 }
 0x263   : > { %v2163_v52 = vadd.f32 %v2148_v48, %v2147_v47  ;;  %v2151_v53 = vmul.f32 %v3434_v45, %v3434_v45  ;;  %v2152_v54 = vmul.f32 %v3436_v46, %v3436_v46  ;;  %v2196_v47 = vld [vmem:[%s3560_s3 + $0x8] sm:$0xff] }
 0x264   : > { %v2120_v55 = vpop.xlane.xlu0 %2119  ;;  %v2153_v59 = vmul.f32 %v3442_v49, %v3442_v49  ;;  %v2154_v61 = vmul.f32 %v3444_v50, %v3444_v50 }
 0x265   : > { %v2129_v57 = vmul.f32 0.001953125, %v2120_v55  ;;  %v2164_v58 = vadd.f32 %v2163_v52, %v2149_v51  ;;  %v2168_v60 = vadd.f32 %v2152_v54, %v2151_v53  ;;  %v2241_v53 = vld [vmem:[%s3561_s4 + $0x10] sm:$0xff] }
 0x266   : > { %v2197_v54 = vld [vmem:[%s3560_s3 + $0x10] sm:$0xff] }
 0x267   : > { %v3458_v62 = vsub.f32 %v2651_v15, %v2129_v57  ;;  %v3460_v63 = vsub.f32 %v2652_v18, %v2129_v57  ;;  %v2165_v0 = vadd.f32 %v2164_v58, %v2150_v56  ;;  %v2169_v1 = vadd.f32 %v2168_v60, %v2153_v59  ;;  %v2242_v60 = vld [vmem:[%s3561_s4 + $0x18] sm:$0xff] }
 0x268   : > { %v2125_v43 = vpop.xlane.xlu0 %2124  ;;  %v3462_v2 = vsub.f32 %v2659_v25, %v2129_v57  ;;  %v3464_v3 = vsub.f32 %v2660_v28, %v2129_v57  ;;  %v2239_v25 = vld [vmem:[%s3561_s4] sm:$0xff]  ;;  %v2198_v57 = vld [vmem:[%s3560_s3 + $0x18] sm:$0xff] }
 0x269   : > { %v2130_v4 = vmul.f32 0.001953125, %v2125_v43  ;;  %2166 = vadd.xlane.f32.xlu1 %v2165_v0  ;;  %v2170_v5 = vadd.f32 %v2169_v1, %v2154_v61  ;;  %v2155_v6 = vmul.f32 %v3458_v62, %v3458_v62  ;;  %v2156_v7 = vmul.f32 %v3460_v63, %v3460_v63 }
 0x26a   : > { %v2157_v8 = vmul.f32 %v3462_v2, %v3462_v2  ;;  %v2158_v13 = vmul.f32 %v3464_v3, %v3464_v3 }
 0x26b   : > { %v3472_v9 = vsub.f32 %v2653_v22, %v2130_v4  ;;  %v3474_v10 = vsub.f32 %v2654_v27, %v2130_v4  ;;  %2171 = vadd.xlane.f32.xlu0 %v2170_v5  ;;  %v2173_v11 = vadd.f32 %v2156_v7, %v2155_v6  ;;  %v3476_v12 = vsub.f32 %v2661_v29, %v2130_v4 }
 0x26c   : > { %v3480_v15 = vsub.f32 %v2662_v34, %v2130_v4 }
 0x26d   : > { %v2174_v14 = vadd.f32 %v2173_v11, %v2157_v8  ;;  %v2159_v16 = vmul.f32 %v3472_v9, %v3472_v9  ;;  %v2160_v17 = vmul.f32 %v3474_v10, %v3474_v10  ;;  %v2161_v19 = vmul.f32 %v3476_v12, %v3476_v12 }
 0x26e   : > { %v2162_v21 = vmul.f32 %v3480_v15, %v3480_v15 }
 0x26f   : > { %v2175_v18 = vadd.f32 %v2174_v14, %v2158_v13  ;;  %v2178_v20 = vadd.f32 %v2160_v17, %v2159_v16 }
 0x271   : > { %2176 = vadd.xlane.f32.xlu1 %v2175_v18  ;;  %v2179_v22 = vadd.f32 %v2178_v20, %v2161_v19 }
 0x273   : > { %v2180_v23 = vadd.f32 %v2179_v22, %v2162_v21 }
 0x275   : > { %2181 = vadd.xlane.f32.xlu0 %v2180_v23 }
 0x282   : > { %2250 = vperm.xlu1 %2722, %v2240_v24  }
 0x28b   : > { %2245 = vperm.xlu0 %2721, %v2239_v25  }
 0x2f6   : > { %v2167_v26 = vpop.xlane.xlu1 %2166 }
 0x2f7   : > { %v2183_v27 = vmul.f32 0.001953125, %v2167_v26 }
 0x2f8   : > { %v2172_v28 = vpop.xlane.xlu0 %2171 }
 0x2f9   : > { %v2187_v29 = vadd.f32 1e-05, %v2183_v27  ;;  %v2184_v30 = vmul.f32 0.001953125, %v2172_v28 }
 0x2fb   : > { %3079 = vrsqrt.f32 %v2187_v29  ;;  %v2188_v31 = vadd.f32 1e-05, %v2184_v30 }
 0x2fd   : > { %3081 = vrsqrt.f32 %v2188_v31 }
 0x2fe   : > { %v2177_v32 = vpop.xlane.xlu1 %2176 }
 0x2ff   : > { %v2185_v33 = vmul.f32 0.001953125, %v2177_v32 }
 0x301   : > { %v2189_v34 = vadd.f32 1e-05, %v2185_v33 }
 0x302   : > { %v2182_v35 = vpop.xlane.xlu0 %2181  ;;  %v2251_v61 = vpop.permute.xlu1 %2250 }
 0x303   : > { %3083 = vrsqrt.f32 %v2189_v34  ;;  %v2186_v36 = vmul.f32 0.001953125, %v2182_v35 }
 0x305   : > { %v3080_v38 = vpop.eup %3079  ;;  %v2190_v41 = vadd.f32 1e-05, %v2186_v36 }
 0x306   : > { %v2199_v48 = vmul.f32 %v3080_v38, %v2195_v37 }
 0x307   : > { %v3082_v51 = vpop.eup %3081  ;;  %3085 = vrsqrt.f32 %v2190_v41 }
 0x308   : > { %2205 = vperm.xlu1 %2722, %v2199_v48   ;;  %v2200_v52 = vmul.f32 %v3082_v51, %v2196_v47 }
 0x30a   : > { %2210 = vperm.xlu0 %2721, %v2200_v52   ;;  %v2246_v0 = vpop.permute.xlu0 %2245 }
 0x30d   : > { %v3084_v55 = vpop.eup %3083 }
 0x30e   : > { %2255 = vperm.xlu0 %2721, %v2241_v53   ;;  %v2201_v56 = vmul.f32 %v3084_v55, %v2197_v54 }
 0x310   : > { %2215 = vperm.xlu1 %2722, %v2201_v56  }
 0x311   : > { %v3086_v58 = vpop.eup %3085 }
 0x312   : > { %v2202_v59 = vmul.f32 %v3086_v58, %v2198_v57 }
 0x314   : > { %2220 = vperm.xlu1 %2722, %v2202_v59  }
 0x318   : > { %2260 = vperm.xlu1 %2722, %v2242_v60  }
 0x387   : > { %v2206_v1 = vpop.permute.xlu1 %2205 }
 0x388   : > { %v2223_v43 = vmul.f32 %v2206_v1, %v3426_v39  ;;  %v2224_v4 = vmul.f32 %v2206_v1, %v3428_v40  ;;  %v2225_v5 = vmul.f32 %v2206_v1, %v3430_v42  ;;  %v2226_v6 = vmul.f32 %v2206_v1, %v3432_v44 }
 0x389   : > { %v2211_v7 = vpop.permute.xlu0 %2210 }
 0x38a   : > { %v2263_v8 = vadd.f32 %v2246_v0, %v2223_v43  ;;  %v2264_v11 = vadd.f32 %v2246_v0, %v2224_v4  ;;  %v2265_v13 = vadd.f32 %v2246_v0, %v2225_v5  ;;  %v2266_v14 = vadd.f32 %v2246_v0, %v2226_v6 }
 0x38b   : > { %v2227_v16 = vmul.f32 %v2211_v7, %v3434_v45  ;;  %v2228_v17 = vmul.f32 %v2211_v7, %v3436_v46  ;;  %v2229_v18 = vmul.f32 %v2211_v7, %v3442_v49  ;;  %v2230_v39 = vmul.f32 %v2211_v7, %v3444_v50 }
 0x38c   : > { %vm2279_vm0 = vcmp.ge.f32.partialorder %v2263_v8, 0.0  ;;  %vm2280_vm1 = vcmp.ge.f32.partialorder %v2264_v11, 0.0  ;;  %vm2281_vm2 = vcmp.ge.f32.partialorder %v2265_v13, 0.0  ;;  %vm2282_vm3 = vcmp.ge.f32.partialorder %v2266_v14, 0.0 }
 0x38d   : > { %v2295_v40 = vmul.f32 0.01, %v2263_v8  ;;  %v2296_v42 = vmul.f32 0.01, %v2264_v11  ;;  %v2297_v44 = vmul.f32 0.01, %v2265_v13  ;;  %v2267_v45 = vadd.f32 %v2251_v61, %v2227_v16  ;;  %v2256_v30 = vpop.permute.xlu0 %2255 }
 0x38e   : > { %v2298_v46 = vmul.f32 0.01, %v2266_v14  ;;  %v2268_v49 = vadd.f32 %v2251_v61, %v2228_v17  ;;  %v2269_v50 = vadd.f32 %v2251_v61, %v2229_v18  ;;  %v2270_v19 = vadd.f32 %v2251_v61, %v2230_v39 }
 0x38f   : > { %v2311_v20 = vsel %vm2279_vm0, %v2263_v8, %v2295_v40  ;;  %v2312_v21 = vsel %vm2280_vm1, %v2264_v11, %v2296_v42  ;;  %v2313_v22 = vsel %vm2281_vm2, %v2265_v13, %v2297_v44  ;;  %vm2283_vm4 = vcmp.ge.f32.partialorder %v2267_v45, 0.0  ;;  %v2216_v23 = vpop.permute.xlu1 %2215 }
 0x390   : > { %v2314_v24 = vsel %vm2282_vm3, %v2266_v14, %v2298_v46  ;;  %2327 = vst [vmem:[%s3526_s19] sm:$0xff] %v2311_v20  ;;  %2328 = vst [vmem:[%s3526_s19 + $0x8] sm:$0xff] %v2312_v21  ;;  %vm2284_vm5 = vcmp.ge.f32.partialorder %v2268_v49, 0.0  ;;  %vm2285_vm6 = vcmp.ge.f32.partialorder %v2269_v50, 0.0  ;;  %vm2286_vm7 = vcmp.ge.f32.partialorder %v2270_v19, 0.0 }
 0x391   : > { %2329 = vst [vmem:[%s3526_s19 + $0x10] sm:$0xff] %v2313_v22  ;;  %2330 = vst [vmem:[%s3526_s19 + $0x18] sm:$0xff] %v2314_v24  ;;  %v2299_v25 = vmul.f32 0.01, %v2267_v45  ;;  %v2300_v26 = vmul.f32 0.01, %v2268_v49  ;;  %v2231_v28 = vmul.f32 %v2216_v23, %v3458_v62  ;;  %v2232_v31 = vmul.f32 %v2216_v23, %v3460_v63 }
 0x392   : > { %v2301_v27 = vmul.f32 0.01, %v2269_v50  ;;  %v2302_v29 = vmul.f32 0.01, %v2270_v19  ;;  %v2233_v32 = vmul.f32 %v2216_v23, %v3462_v2  ;;  %v2234_v33 = vmul.f32 %v2216_v23, %v3464_v3 }
 0x393   : > { %v2315_v34 = vsel %vm2283_vm4, %v2267_v45, %v2299_v25  ;;  %v2316_v35 = vsel %vm2284_vm5, %v2268_v49, %v2300_v26  ;;  %v2271_v37 = vadd.f32 %v2256_v30, %v2231_v28  ;;  %v2221_v38 = vpop.permute.xlu1 %2220  ;;  %v2272_v62 = vadd.f32 %v2256_v30, %v2232_v31 }
 0x394   : > { %v2317_v36 = vsel %vm2285_vm6, %v2269_v50, %v2301_v27  ;;  %v2318_v41 = vsel %vm2286_vm7, %v2270_v19, %v2302_v29  ;;  %2331 = vst [vmem:[%s3526_s19 + $0x20] sm:$0xff] %v2315_v34  ;;  %2332 = vst [vmem:[%s3526_s19 + $0x28] sm:$0xff] %v2316_v35  ;;  %v2273_v47 = vadd.f32 %v2256_v30, %v2233_v32 }
 0x395   : > { %2333 = vst [vmem:[%s3526_s19 + $0x30] sm:$0xff] %v2317_v36  ;;  %v2274_v48 = vadd.f32 %v2256_v30, %v2234_v33  ;;  %2334 = vst [vmem:[%s3526_s19 + $0x38] sm:$0xff] %v2318_v41  ;;  %vm2287_vm8 = vcmp.ge.f32.partialorder %v2271_v37, 0.0  ;;  %v2303_v63 = vmul.f32 0.01, %v2271_v37  ;;  %v2235_v2 = vmul.f32 %v2221_v38, %v3472_v9 }
 0x396   : > { %v2236_v3 = vmul.f32 %v2221_v38, %v3474_v10  ;;  %vm2288_vm9 = vcmp.ge.f32.partialorder %v2272_v62, 0.0  ;;  %vm2289_vm10 = vcmp.ge.f32.partialorder %v2273_v47, 0.0  ;;  %v2304_v51 = vmul.f32 0.01, %v2272_v62 }
 0x397   : > { %vm2290_vm11 = vcmp.ge.f32.partialorder %v2274_v48, 0.0  ;;  %v2305_v52 = vmul.f32 0.01, %v2273_v47  ;;  %v2306_v53 = vmul.f32 0.01, %v2274_v48  ;;  %v2319_v54 = vsel %vm2287_vm8, %v2271_v37, %v2303_v63  ;;  %v2261_v56 = vpop.permute.xlu1 %2260 }
 0x398   : > { %v2237_v55 = vmul.f32 %v2221_v38, %v3476_v12  ;;  %v2320_v57 = vsel %vm2288_vm9, %v2272_v62, %v2304_v51  ;;  %2335 = vst [vmem:[%s3526_s19 + $0x40] sm:$0xff] %v2319_v54  ;;  %v2238_v58 = vmul.f32 %v2221_v38, %v3480_v15  ;;  %v2275_v9 = vadd.f32 %v2261_v56, %v2235_v2 }
 0x399   : > { %v2276_v59 = vadd.f32 %v2261_v56, %v2236_v3  ;;  %v2321_v10 = vsel %vm2289_vm10, %v2273_v47, %v2305_v52  ;;  %v2322_v60 = vsel %vm2290_vm11, %v2274_v48, %v2306_v53  ;;  %2336 = vst [vmem:[%s3526_s19 + $0x48] sm:$0xff] %v2320_v57 }
 0x39a   : > { %v2277_v61 = vadd.f32 %v2261_v56, %v2237_v55  ;;  %2337 = vst [vmem:[%s3526_s19 + $0x50] sm:$0xff] %v2321_v10  ;;  %2338 = vst [vmem:[%s3526_s19 + $0x58] sm:$0xff] %v2322_v60  ;;  %v2278_v0 = vadd.f32 %v2261_v56, %v2238_v58  ;;  %vm2291_vm12 = vcmp.ge.f32.partialorder %v2275_v9, 0.0  ;;  %v2307_v12 = vmul.f32 0.01, %v2275_v9 }
 0x39b   : > { %vm2292_vm13 = vcmp.ge.f32.partialorder %v2276_v59, 0.0  ;;  %v2308_v1 = vmul.f32 0.01, %v2276_v59 }
 0x39c   : > { %vm2293_vm14 = vcmp.ge.f32.partialorder %v2277_v61, 0.0  ;;  %v2309_v43 = vmul.f32 0.01, %v2277_v61  ;;  %vm2294_vm15 = vcmp.ge.f32.partialorder %v2278_v0, 0.0  ;;  %v2310_v15 = vmul.f32 0.01, %v2278_v0 }
 0x39d   : > { %v2323_v4 = vsel %vm2291_vm12, %v2275_v9, %v2307_v12  ;;  %v2324_v5 = vsel %vm2292_vm13, %v2276_v59, %v2308_v1 }
 0x39e   : > { %v2325_v6 = vsel %vm2293_vm14, %v2277_v61, %v2309_v43  ;;  %2339 = vst [vmem:[%s3526_s19 + $0x60] sm:$0xff] %v2323_v4  ;;  %v2326_v7 = vsel %vm2294_vm15, %v2278_v0, %v2310_v15  ;;  %2340 = vst [vmem:[%s3526_s19 + $0x68] sm:$0xff] %v2324_v5 }
 0x39f   : > { %2341 = vst [vmem:[%s3526_s19 + $0x70] sm:$0xff] %v2325_v6  ;;  %2342 = vst [vmem:[%s3526_s19 + $0x78] sm:$0xff] %v2326_v7 }
 0x3a0 PF: > { %s15_s18 = sadd.s32 1, %s3093_s18  }
 0x3a1   : > { %p12_p4 = scmp.ge.s32.totalorder %s15_s18, 4  }
 0x3a3   :  { %14 = sbr.rel (!%p12_p4) target bundleno = 1 (0x1), region = 70 }

// kernel: deepfuse_forward.9
= control target key start
LH: loop header
LB: loop body
LE: loop exit
PB: predicated region body
PF: predicated region fallthrough
CT: control target
= control target key end

     0   :  { %s6440_s0 = inlined_call_operand.vmem [shape: bf16[1,1664,512], index: 0, kind: input, shape index: {}]   ;;  %s6441_s1 = inlined_call_operand.vmem [shape: bf16[32,1664], index: 1, kind: input, shape index: {}]   ;;  %s6442_s2 = inlined_call_operand.vmem [shape: f32[32,1], index: 2, kind: input, shape index: {}]   ;;  %s6443_s4 = inlined_call_operand.vmem [shape: f32[32,1], index: 4, kind: input, shape index: {}]   ;;  %s6444_s3 = inlined_call_operand.vmem [shape: f32[32,1], index: 3, kind: input, shape index: {}]   ;;  %s6445_s5 = inlined_call_operand.vmem [shape: f32[1,32,512], index: 5, kind: output, shape index: {}]  }
   0x1   :  { %v4241_v0 = vld [vmem:[%s6440_s0 + $0x4] ss:$16 sps:$4 sm:$0xff]   ;;  %v4243_v1 = vld [vmem:[%s6440_s0 + $0xc] ss:$16 sps:$4 sm:$0xff]   ;;  %v4245_v2 = vld [vmem:[%s6440_s0] ss:$16 sps:$4 sm:$0xff]  }
   0x2   :  { %2701 = vmatprep.subr.bf16.mxu0 %v4241_v0  ;;  %v4246_v3 = vld [vmem:[%s6440_s0 + $0x8] ss:$16 sps:$4 sm:$0xff]   ;;  %3072 = vmatprep.subr.bf16.mxu1 %v4243_v1  ;;  %v4247_v4 = vld [vmem:[%s6440_s0 + $0x24] ss:$16 sps:$4 sm:$0xff]   ;;  %v4249_v5 = vld [vmem:[%s6440_s0 + $0x2c] ss:$16 sps:$4 sm:$0xff]  }
   0x3   :  { %2702 = vmatpush1.bf16.msra.mxu0 %v4245_v2  ;;  %3073 = vmatpush1.bf16.msra.mxu1 %v4246_v3  ;;  %v4251_v6 = vld [vmem:[%s6440_s0 + $0x20] ss:$16 sps:$4 sm:$0xff]   ;;  %v4252_v7 = vld [vmem:[%s6440_s0 + $0x28] ss:$16 sps:$4 sm:$0xff]   ;;  %v4253_v8 = vld [vmem:[%s6440_s0 + $0x44] ss:$16 sps:$4 sm:$0xff]  }
   0x4   :  { %2703 = vmatprep.subr.bf16.mxu0 %v4247_v4  ;;  %3074 = vmatprep.subr.bf16.mxu1 %v4249_v5  ;;  %v4255_v9 = vld [vmem:[%s6440_s0 + $0x4c] ss:$16 sps:$4 sm:$0xff]   ;;  %v4257_v10 = vld [vmem:[%s6440_s0 + $0x40] ss:$16 sps:$4 sm:$0xff]   ;;  %v4258_v11 = vld [vmem:[%s6440_s0 + $0x48] ss:$16 sps:$4 sm:$0xff]  }
   0x5   :  { %v4259_v12 = vld [vmem:[%s6440_s0 + $0x64] ss:$16 sps:$4 sm:$0xff]   ;;  %v4261_v13 = vld [vmem:[%s6440_s0 + $0x6c] ss:$16 sps:$4 sm:$0xff]   ;;  %v4263_v14 = vld [vmem:[%s6440_s0 + $0x60] ss:$16 sps:$4 sm:$0xff]  }
   0x6   :  { %v4264_v15 = vld [vmem:[%s6440_s0 + $0x68] ss:$16 sps:$4 sm:$0xff]   ;;  %v4265_v16 = vld [vmem:[%s6440_s0 + $0x84] ss:$16 sps:$4 sm:$0xff]   ;;  %v4267_v17 = vld [vmem:[%s6440_s0 + $0x8c] ss:$16 sps:$4 sm:$0xff]  }
   0x7   :  { %2704 = vmatpush1.bf16.msra.mxu0 %v4251_v6  ;;  %3075 = vmatpush1.bf16.msra.mxu1 %v4252_v7  ;;  %v4269_v18 = vld [vmem:[%s6440_s0 + $0x80] ss:$16 sps:$4 sm:$0xff]   ;;  %v4270_v19 = vld [vmem:[%s6440_s0 + $0x88] ss:$16 sps:$4 sm:$0xff]   ;;  %v4271_v20 = vld [vmem:[%s6440_s0 + $0xa4] ss:$16 sps:$4 sm:$0xff]  }
   0x8   :  { %2705 = vmatprep.subr.bf16.mxu0 %v4253_v8  ;;  %3076 = vmatprep.subr.bf16.mxu1 %v4255_v9  ;;  %v4273_v21 = vld [vmem:[%s6440_s0 + $0xac] ss:$16 sps:$4 sm:$0xff]   ;;  %v4275_v22 = vld [vmem:[%s6440_s0 + $0xa0] ss:$16 sps:$4 sm:$0xff]   ;;  %v4276_v23 = vld [vmem:[%s6440_s0 + $0xa8] ss:$16 sps:$4 sm:$0xff]  }
   0x9   :  { %v4277_v24 = vld [vmem:[%s6440_s0 + $0xc4] ss:$16 sps:$4 sm:$0xff]   ;;  %v4279_v25 = vld [vmem:[%s6440_s0 + $0xcc] ss:$16 sps:$4 sm:$0xff]   ;;  %v4281_v26 = vld [vmem:[%s6440_s0 + $0xc0] ss:$16 sps:$4 sm:$0xff]  }
   0xa   :  { %v4282_v27 = vld [vmem:[%s6440_s0 + $0xc8] ss:$16 sps:$4 sm:$0xff]   ;;  %v4283_v28 = vld [vmem:[%s6440_s0 + $0xe4] ss:$16 sps:$4 sm:$0xff]   ;;  %v4285_v29 = vld [vmem:[%s6440_s0 + $0xec] ss:$16 sps:$4 sm:$0xff]  }
   0xb   :  { %2706 = vmatpush1.bf16.msra.mxu0 %v4257_v10  ;;  %3077 = vmatpush1.bf16.msra.mxu1 %v4258_v11  ;;  %v4287_v30 = vld [vmem:[%s6440_s0 + $0xe0] ss:$16 sps:$4 sm:$0xff]   ;;  %v4288_v31 = vld [vmem:[%s6440_s0 + $0xe8] ss:$16 sps:$4 sm:$0xff]   ;;  %v4289_v32 = vld [vmem:[%s6440_s0 + $0x104] ss:$16 sps:$4 sm:$0xff]  }
   0xc   :  { %2707 = vmatprep.subr.bf16.mxu0 %v4259_v12  ;;  %3078 = vmatprep.subr.bf16.mxu1 %v4261_v13  ;;  %v4291_v33 = vld [vmem:[%s6440_s0 + $0x10c] ss:$16 sps:$4 sm:$0xff]   ;;  %v4293_v34 = vld [vmem:[%s6440_s0 + $0x100] ss:$16 sps:$4 sm:$0xff]   ;;  %v4294_v35 = vld [vmem:[%s6440_s0 + $0x108] ss:$16 sps:$4 sm:$0xff]  }
   0xd   :  { %v4295_v36 = vld [vmem:[%s6440_s0 + $0x124] ss:$16 sps:$4 sm:$0xff]   ;;  %v4297_v37 = vld [vmem:[%s6440_s0 + $0x12c] ss:$16 sps:$4 sm:$0xff]   ;;  %v4299_v38 = vld [vmem:[%s6440_s0 + $0x120] ss:$16 sps:$4 sm:$0xff]  }
   0xe   :  { %v4300_v39 = vld [vmem:[%s6440_s0 + $0x128] ss:$16 sps:$4 sm:$0xff]   ;;  %v4301_v40 = vld [vmem:[%s6440_s0 + $0x144] ss:$16 sps:$4 sm:$0xff]   ;;  %v4303_v41 = vld [vmem:[%s6440_s0 + $0x14c] ss:$16 sps:$4 sm:$0xff]  }
   0xf   :  { %2708 = vmatpush1.bf16.msra.mxu0 %v4263_v14  ;;  %3079 = vmatpush1.bf16.msra.mxu1 %v4264_v15  ;;  %v4305_v42 = vld [vmem:[%s6440_s0 + $0x140] ss:$16 sps:$4 sm:$0xff]   ;;  %v4306_v43 = vld [vmem:[%s6440_s0 + $0x148] ss:$16 sps:$4 sm:$0xff]   ;;  %v4307_v44 = vld [vmem:[%s6440_s0 + $0x164] ss:$16 sps:$4 sm:$0xff]  }
  0x10   :  { %2709 = vmatprep.subr.bf16.mxu0 %v4265_v16  ;;  %3080 = vmatprep.subr.bf16.mxu1 %v4267_v17  ;;  %v4309_v45 = vld [vmem:[%s6440_s0 + $0x16c] ss:$16 sps:$4 sm:$0xff]   ;;  %v4311_v46 = vld [vmem:[%s6440_s0 + $0x160] ss:$16 sps:$4 sm:$0xff]   ;;  %v4312_v47 = vld [vmem:[%s6440_s0 + $0x168] ss:$16 sps:$4 sm:$0xff]  }
  0x11   :  { %v4339_v48 = vld [vmem:[%s6441_s1 + $0x4] ss:$52 sps:$4 sm:$0xff]   ;;  %v4315_v50 = vld [vmem:[%s6440_s0 + $0x18c] ss:$16 sps:$4 sm:$0xff]   ;;  %v4317_v51 = vld [vmem:[%s6440_s0 + $0x180] ss:$16 sps:$4 sm:$0xff]  }
  0x12   :  { %v4313_v49 = vld [vmem:[%s6440_s0 + $0x184] ss:$16 sps:$4 sm:$0xff]   ;;  %2733 = vmatprep.mubr.bf16.mxu0 %v4339_v48  ;;  %3104 = vmatprep.mubr.bf16.mxu1 %v4339_v48  ;;  %v4318_v52 = vld [vmem:[%s6440_s0 + $0x188] ss:$16 sps:$4 sm:$0xff]   ;;  %v4321_v54 = vld [vmem:[%s6440_s0 + $0x1ac] ss:$16 sps:$4 sm:$0xff]  }
  0x13   :  { %2710 = vmatpush1.bf16.msra.mxu0 %v4269_v18  ;;  %3081 = vmatpush1.bf16.msra.mxu1 %v4270_v19  ;;  %v4319_v53 = vld [vmem:[%s6440_s0 + $0x1a4] ss:$16 sps:$4 sm:$0xff]   ;;  %v4323_v55 = vld [vmem:[%s6440_s0 + $0x1a0] ss:$16 sps:$4 sm:$0xff]   ;;  %v4324_v56 = vld [vmem:[%s6440_s0 + $0x1a8] ss:$16 sps:$4 sm:$0xff]  }
  0x14   :  { %2711 = vmatprep.subr.bf16.mxu0 %v4271_v20  ;;  %3082 = vmatprep.subr.bf16.mxu1 %v4273_v21  ;;  %v4325_v57 = vld [vmem:[%s6440_s0 + $0x1c4] ss:$16 sps:$4 sm:$0xff]   ;;  %v4327_v58 = vld [vmem:[%s6440_s0 + $0x1cc] ss:$16 sps:$4 sm:$0xff]   ;;  %v4329_v59 = vld [vmem:[%s6440_s0 + $0x1c0] ss:$16 sps:$4 sm:$0xff]  }
  0x15   :  { %v4330_v60 = vld [vmem:[%s6440_s0 + $0x1c8] ss:$16 sps:$4 sm:$0xff]   ;;  %v4331_v61 = vld [vmem:[%s6440_s0 + $0x1e4] ss:$16 sps:$4 sm:$0xff]   ;;  %v4333_v62 = vld [vmem:[%s6440_s0 + $0x1ec] ss:$16 sps:$4 sm:$0xff]  }
  0x16   :  { %v4335_v63 = vld [vmem:[%s6440_s0 + $0x1e0] ss:$16 sps:$4 sm:$0xff]   ;;  %v4336_v0 = vld [vmem:[%s6440_s0 + $0x1e8] ss:$16 sps:$4 sm:$0xff]   ;;  %v4342_v1 = vld [vmem:[%s6440_s0 + $0x204] ss:$16 sps:$4 sm:$0xff]  }
  0x17   :  { %2712 = vmatpush1.bf16.msra.mxu0 %v4275_v22  ;;  %3083 = vmatpush1.bf16.msra.mxu1 %v4276_v23  ;;  %v4345_v2 = vld [vmem:[%s6440_s0 + $0x20c] ss:$16 sps:$4 sm:$0xff]   ;;  %v4337_v3 = vld [vmem:[%s6441_s1] ss:$52 sps:$4 sm:$0xff]   ;;  %v4343_v5 = vld [vmem:[%s6440_s0 + $0x208] ss:$16 sps:$4 sm:$0xff]  }
  0x18   :  { %2713 = vmatprep.subr.bf16.mxu0 %v4277_v24  ;;  %3084 = vmatprep.subr.bf16.mxu1 %v4279_v25  ;;  %v4340_v4 = vld [vmem:[%s6440_s0 + $0x200] ss:$16 sps:$4 sm:$0xff]   ;;  %v4348_v6 = vld [vmem:[%s6440_s0 + $0x224] ss:$16 sps:$4 sm:$0xff]   ;;  %v4351_v7 = vld [vmem:[%s6440_s0 + $0x22c] ss:$16 sps:$4 sm:$0xff]  }
  0x19   :  { %v4346_v8 = vld [vmem:[%s6440_s0 + $0x220] ss:$16 sps:$4 sm:$0xff]   ;;  %v4349_v9 = vld [vmem:[%s6440_s0 + $0x228] ss:$16 sps:$4 sm:$0xff]   ;;  %v4354_v10 = vld [vmem:[%s6440_s0 + $0x244] ss:$16 sps:$4 sm:$0xff]  }
  0x1a   :  { %v4357_v11 = vld [vmem:[%s6440_s0 + $0x24c] ss:$16 sps:$4 sm:$0xff]   ;;  %v4352_v12 = vld [vmem:[%s6440_s0 + $0x240] ss:$16 sps:$4 sm:$0xff]   ;;  %v4355_v13 = vld [vmem:[%s6440_s0 + $0x248] ss:$16 sps:$4 sm:$0xff]  }
  0x1b   :  { %2714 = vmatpush1.bf16.msra.mxu0 %v4281_v26  ;;  %3085 = vmatpush1.bf16.msra.mxu1 %v4282_v27  ;;  %v4360_v14 = vld [vmem:[%s6440_s0 + $0x264] ss:$16 sps:$4 sm:$0xff]   ;;  %v4363_v15 = vld [vmem:[%s6440_s0 + $0x26c] ss:$16 sps:$4 sm:$0xff]   ;;  %v4358_v16 = vld [vmem:[%s6440_s0 + $0x260] ss:$16 sps:$4 sm:$0xff]  }
  0x1c   :  { %2715 = vmatprep.subr.bf16.mxu0 %v4283_v28  ;;  %3086 = vmatprep.subr.bf16.mxu1 %v4285_v29  ;;  %v4361_v17 = vld [vmem:[%s6440_s0 + $0x268] ss:$16 sps:$4 sm:$0xff]   ;;  %v4366_v18 = vld [vmem:[%s6440_s0 + $0x284] ss:$16 sps:$4 sm:$0xff]   ;;  %v4369_v19 = vld [vmem:[%s6440_s0 + $0x28c] ss:$16 sps:$4 sm:$0xff]  }
  0x1d   :  { %v4364_v20 = vld [vmem:[%s6440_s0 + $0x280] ss:$16 sps:$4 sm:$0xff]   ;;  %v4367_v21 = vld [vmem:[%s6440_s0 + $0x288] ss:$16 sps:$4 sm:$0xff]   ;;  %v4372_v22 = vld [vmem:[%s6440_s0 + $0x2a4] ss:$16 sps:$4 sm:$0xff]  }
  0x1e   :  { %v4375_v23 = vld [vmem:[%s6440_s0 + $0x2ac] ss:$16 sps:$4 sm:$0xff]   ;;  %v4370_v25 = vld [vmem:[%s6440_s0 + $0x2a0] ss:$16 sps:$4 sm:$0xff]   ;;  %v4373_v26 = vld [vmem:[%s6440_s0 + $0x2a8] ss:$16 sps:$4 sm:$0xff]  }
  0x1f   :  { %2716 = vmatpush1.bf16.msra.mxu0 %v4287_v30  ;;  %3087 = vmatpush1.bf16.msra.mxu1 %v4288_v31  ;;  %v4424_v24 = vld [vmem:[%s6441_s1 + $0x6c] ss:$52 sps:$4 sm:$0xff]   ;;  %v4378_v27 = vld [vmem:[%s6440_s0 + $0x2c4] ss:$16 sps:$4 sm:$0xff]   ;;  %v4432_v29 = vld [vmem:[%s6441_s1 + $0x68] ss:$52 sps:$4 sm:$0xff]  }
  0x20   :  { %2717 = vmatprep.subr.bf16.mxu0 %v4289_v32  ;;  %3088 = vmatprep.subr.bf16.mxu1 %v4291_v33  ;;  %v4381_v28 = vld [vmem:[%s6440_s0 + $0x2cc] ss:$16 sps:$4 sm:$0xff]   ;;  %v4376_v30 = vld [vmem:[%s6440_s0 + $0x2c0] ss:$16 sps:$4 sm:$0xff]   ;;  %v4379_v31 = vld [vmem:[%s6440_s0 + $0x2c8] ss:$16 sps:$4 sm:$0xff]  }
  0x21   :  { %v4384_v32 = vld [vmem:[%s6440_s0 + $0x2e4] ss:$16 sps:$4 sm:$0xff]   ;;  %v4387_v33 = vld [vmem:[%s6440_s0 + $0x2ec] ss:$16 sps:$4 sm:$0xff]   ;;  %v4403_v48 = vld [vmem:[%s6440_s0 + $0x348] ss:$16 sps:$4 sm:$0xff]  }
  0x23   :  { %2718 = vmatpush1.bf16.msra.mxu0 %v4293_v34  ;;  %3089 = vmatpush1.bf16.msra.mxu1 %v4294_v35  ;;  %v4441_v34 = vld [vmem:[%s6441_s1 + $0xc] ss:$52 sps:$4 sm:$0xff]  }
  0x24   :  { %2719 = vmatprep.subr.bf16.mxu0 %v4295_v36  ;;  %3090 = vmatprep.subr.bf16.mxu1 %v4297_v37  ;;  %v4382_v35 = vld [vmem:[%s6440_s0 + $0x2e0] ss:$16 sps:$4 sm:$0xff]   ;;  %v4385_v36 = vld [vmem:[%s6440_s0 + $0x2e8] ss:$16 sps:$4 sm:$0xff]   ;;  %v4390_v37 = vld [vmem:[%s6440_s0 + $0x304] ss:$16 sps:$4 sm:$0xff]  }
  0x27   :  { %2720 = vmatpush1.bf16.msra.mxu0 %v4299_v38  ;;  %3091 = vmatpush1.bf16.msra.mxu1 %v4300_v39  ;;  %v4393_v38 = vld [vmem:[%s6440_s0 + $0x30c] ss:$16 sps:$4 sm:$0xff]   ;;  %v4388_v39 = vld [vmem:[%s6440_s0 + $0x300] ss:$16 sps:$4 sm:$0xff]  }
  0x28   :  { %2721 = vmatprep.subr.bf16.mxu0 %v4301_v40  ;;  %3092 = vmatprep.subr.bf16.mxu1 %v4303_v41  ;;  %v4391_v40 = vld [vmem:[%s6440_s0 + $0x308] ss:$16 sps:$4 sm:$0xff]   ;;  %v4396_v41 = vld [vmem:[%s6440_s0 + $0x324] ss:$16 sps:$4 sm:$0xff]  }
  0x2b   :  { %2722 = vmatpush1.bf16.msra.mxu0 %v4305_v42  ;;  %3093 = vmatpush1.bf16.msra.mxu1 %v4306_v43  ;;  %v4399_v42 = vld [vmem:[%s6440_s0 + $0x32c] ss:$16 sps:$4 sm:$0xff]   ;;  %v4394_v43 = vld [vmem:[%s6440_s0 + $0x320] ss:$16 sps:$4 sm:$0xff]  }
  0x2c   :  { %2723 = vmatprep.subr.bf16.mxu0 %v4307_v44  ;;  %3094 = vmatprep.subr.bf16.mxu1 %v4309_v45  ;;  %v4397_v44 = vld [vmem:[%s6440_s0 + $0x328] ss:$16 sps:$4 sm:$0xff]   ;;  %v4402_v45 = vld [vmem:[%s6440_s0 + $0x344] ss:$16 sps:$4 sm:$0xff]  }
  0x2f   :  { %2724 = vmatpush1.bf16.msra.mxu0 %v4311_v46  ;;  %3095 = vmatpush1.bf16.msra.mxu1 %v4312_v47  ;;  %v4405_v46 = vld [vmem:[%s6440_s0 + $0x34c] ss:$16 sps:$4 sm:$0xff]   ;;  %v4400_v47 = vld [vmem:[%s6440_s0 + $0x340] ss:$16 sps:$4 sm:$0xff]  }
  0x30   :  { %2725 = vmatprep.subr.bf16.mxu0 %v4313_v49  ;;  %3096 = vmatprep.subr.bf16.mxu1 %v4315_v50  ;;  %v4408_v49 = vld [vmem:[%s6440_s0 + $0x364] ss:$16 sps:$4 sm:$0xff]   ;;  %v4411_v50 = vld [vmem:[%s6440_s0 + $0x36c] ss:$16 sps:$4 sm:$0xff]  }
  0x33   :  { %2726 = vmatpush1.bf16.msra.mxu0 %v4317_v51  ;;  %3097 = vmatpush1.bf16.msra.mxu1 %v4318_v52  ;;  %v4406_v51 = vld [vmem:[%s6440_s0 + $0x360] ss:$16 sps:$4 sm:$0xff]   ;;  %v4409_v52 = vld [vmem:[%s6440_s0 + $0x368] ss:$16 sps:$4 sm:$0xff]  }
  0x34   :  { %2727 = vmatprep.subr.bf16.mxu0 %v4319_v53  ;;  %3098 = vmatprep.subr.bf16.mxu1 %v4321_v54  ;;  %v4414_v53 = vld [vmem:[%s6440_s0 + $0x384] ss:$16 sps:$4 sm:$0xff]   ;;  %v4417_v54 = vld [vmem:[%s6440_s0 + $0x38c] ss:$16 sps:$4 sm:$0xff]  }
  0x37   :  { %2728 = vmatpush1.bf16.msra.mxu0 %v4323_v55  ;;  %3099 = vmatpush1.bf16.msra.mxu1 %v4324_v56  ;;  %v4412_v55 = vld [vmem:[%s6440_s0 + $0x380] ss:$16 sps:$4 sm:$0xff]   ;;  %v4415_v56 = vld [vmem:[%s6440_s0 + $0x388] ss:$16 sps:$4 sm:$0xff]  }
  0x38   :  { %2729 = vmatprep.subr.bf16.mxu0 %v4325_v57  ;;  %3100 = vmatprep.subr.bf16.mxu1 %v4327_v58  ;;  %v4420_v57 = vld [vmem:[%s6440_s0 + $0x3a4] ss:$16 sps:$4 sm:$0xff]   ;;  %v4423_v58 = vld [vmem:[%s6440_s0 + $0x3ac] ss:$16 sps:$4 sm:$0xff]  }
  0x3b   :  { %2730 = vmatpush1.bf16.msra.mxu0 %v4329_v59  ;;  %3101 = vmatpush1.bf16.msra.mxu1 %v4330_v60  ;;  %v4418_v59 = vld [vmem:[%s6440_s0 + $0x3a0] ss:$16 sps:$4 sm:$0xff]   ;;  %v4421_v60 = vld [vmem:[%s6440_s0 + $0x3a8] ss:$16 sps:$4 sm:$0xff]  }
  0x3c   :  { %2731 = vmatprep.subr.bf16.mxu0 %v4331_v61  ;;  %3102 = vmatprep.subr.bf16.mxu1 %v4333_v62  ;;  %v4428_v61 = vld [vmem:[%s6440_s0 + $0x3c4] ss:$16 sps:$4 sm:$0xff]   ;;  %v4431_v62 = vld [vmem:[%s6440_s0 + $0x3cc] ss:$16 sps:$4 sm:$0xff]  }
  0x3f   :  { %2732 = vmatpush1.bf16.msra.mxu0 %v4335_v63  ;;  %3103 = vmatpush1.bf16.msra.mxu1 %v4336_v0  ;;  %v4426_v63 = vld [vmem:[%s6440_s0 + $0x3c0] ss:$16 sps:$4 sm:$0xff]   ;;  %v4429_v0 = vld [vmem:[%s6440_s0 + $0x3c8] ss:$16 sps:$4 sm:$0xff]  }
  0x40   :  { %2754 = vmatprep.subr.bf16.mxu0 %v4342_v1  ;;  %3125 = vmatprep.subr.bf16.mxu1 %v4345_v2  ;;  %v4435_v1 = vld [vmem:[%s6440_s0 + $0x3e4] ss:$16 sps:$4 sm:$0xff]   ;;  %v4438_v2 = vld [vmem:[%s6440_s0 + $0x3ec] ss:$16 sps:$4 sm:$0xff]  }
  0x42   :  { %2734 = vmatmul.mubr.bf16.vlgmr.msra.gmra.mrb[0].mxu0 %v4337_v3  ;;  %3105 = vmatmul.mubr.bf16.vlgmr.msra.gmra.mrb[0].mxu1 %v4337_v3  ;;  %v4433_v3 = vld [vmem:[%s6440_s0 + $0x3e0] ss:$16 sps:$4 sm:$0xff]  }
  0x43   :  { %2755 = vmatpush1.bf16.msra.mxu0 %v4340_v4  ;;  %3126 = vmatpush1.bf16.msra.mxu1 %v4343_v5  ;;  %v4436_v4 = vld [vmem:[%s6440_s0 + $0x3e8] ss:$16 sps:$4 sm:$0xff]   ;;  %v4444_v5 = vld [vmem:[%s6440_s0 + $0x404] ss:$16 sps:$4 sm:$0xff]  }
  0x44   :  { %2756 = vmatprep.subr.bf16.mxu0 %v4348_v6  ;;  %3127 = vmatprep.subr.bf16.mxu1 %v4351_v7  ;;  %v4447_v6 = vld [vmem:[%s6440_s0 + $0x40c] ss:$16 sps:$4 sm:$0xff]  }
  0x45   :  { %2743 = vmatprep.mubr.bf16.mxu0 %v4424_v24  ;;  %3114 = vmatprep.mubr.bf16.mxu1 %v4424_v24  ;;  %v4439_v7 = vld [vmem:[%s6441_s1 + $0x8] ss:$52 sps:$4 sm:$0xff]  }
  0x46   :  { %v4463_v24 = vld [vmem:[%s6440_s0 + $0x468] ss:$16 sps:$4 sm:$0xff]  }
  0x47   :  { %2757 = vmatpush1.bf16.msra.mxu0 %v4346_v8  ;;  %3128 = vmatpush1.bf16.msra.mxu1 %v4349_v9  ;;  %v4442_v8 = vld [vmem:[%s6440_s0 + $0x400] ss:$16 sps:$4 sm:$0xff]   ;;  %v4445_v9 = vld [vmem:[%s6440_s0 + $0x408] ss:$16 sps:$4 sm:$0xff]  }
  0x48   :  { %2758 = vmatprep.subr.bf16.mxu0 %v4354_v10  ;;  %3129 = vmatprep.subr.bf16.mxu1 %v4357_v11  ;;  %v4450_v10 = vld [vmem:[%s6440_s0 + $0x424] ss:$16 sps:$4 sm:$0xff]   ;;  %v4453_v11 = vld [vmem:[%s6440_s0 + $0x42c] ss:$16 sps:$4 sm:$0xff]  }
  0x4a   :  { %2744 = vmatmul.mubr.bf16.gmra.mrb[4].mxu0 %v4432_v29  ;;  %3115 = vmatmul.mubr.bf16.gmra.mrb[4].mxu1 %v4432_v29  ;;  %v4474_v29 = vld [vmem:[%s6440_s0 + $0x4a4] ss:$16 sps:$4 sm:$0xff]  }
  0x4b   :  { %2759 = vmatpush1.bf16.msra.mxu0 %v4352_v12  ;;  %3130 = vmatpush1.bf16.msra.mxu1 %v4355_v13  ;;  %v4526_v12 = vld [vmem:[%s6441_s1 + $0x74] ss:$52 sps:$4 sm:$0xff]   ;;  %v4448_v13 = vld [vmem:[%s6440_s0 + $0x420] ss:$16 sps:$4 sm:$0xff]  }
  0x4c   :  { %2760 = vmatprep.subr.bf16.mxu0 %v4360_v14  ;;  %3131 = vmatprep.subr.bf16.mxu1 %v4363_v15  ;;  %v4451_v14 = vld [vmem:[%s6440_s0 + $0x428] ss:$16 sps:$4 sm:$0xff]   ;;  %v4456_v15 = vld [vmem:[%s6440_s0 + $0x444] ss:$16 sps:$4 sm:$0xff]  }
  0x4d   :  { %2786 = vmatprep.mubr.bf16.mxu0 %v4441_v34  ;;  %3157 = vmatprep.mubr.bf16.mxu1 %v4441_v34  ;;  %v4483_v34 = vld [vmem:[%s6440_s0 + $0x4cc] ss:$16 sps:$4 sm:$0xff]  }
  0x4f   :  { %2761 = vmatpush1.bf16.msra.mxu0 %v4358_v16  ;;  %3132 = vmatpush1.bf16.msra.mxu1 %v4361_v17  ;;  %v4459_v16 = vld [vmem:[%s6440_s0 + $0x44c] ss:$16 sps:$4 sm:$0xff]   ;;  %v4454_v17 = vld [vmem:[%s6440_s0 + $0x440] ss:$16 sps:$4 sm:$0xff]  }
  0x50   :  { %2762 = vmatprep.subr.bf16.mxu0 %v4366_v18  ;;  %3133 = vmatprep.subr.bf16.mxu1 %v4369_v19  ;;  %v4457_v18 = vld [vmem:[%s6440_s0 + $0x448] ss:$16 sps:$4 sm:$0xff]   ;;  %v4534_v19 = vld [vmem:[%s6441_s1 + $0x70] ss:$52 sps:$4 sm:$0xff]  }
  0x53   :  { %2763 = vmatpush1.bf16.msra.mxu0 %v4364_v20  ;;  %3134 = vmatpush1.bf16.msra.mxu1 %v4367_v21  ;;  %v4462_v20 = vld [vmem:[%s6440_s0 + $0x464] ss:$16 sps:$4 sm:$0xff]   ;;  %v4465_v21 = vld [vmem:[%s6440_s0 + $0x46c] ss:$16 sps:$4 sm:$0xff]  }
  0x54   :  { %2764 = vmatprep.subr.bf16.mxu0 %v4372_v22  ;;  %3135 = vmatprep.subr.bf16.mxu1 %v4375_v23  ;;  %v4543_v22 = vld [vmem:[%s6441_s1 + $0x14] ss:$52 sps:$4 sm:$0xff]   ;;  %v4460_v23 = vld [vmem:[%s6440_s0 + $0x460] ss:$16 sps:$4 sm:$0xff]  }
  0x57   :  { %2765 = vmatpush1.bf16.msra.mxu0 %v4370_v25  ;;  %3136 = vmatpush1.bf16.msra.mxu1 %v4373_v26  ;;  %v4468_v25 = vld [vmem:[%s6440_s0 + $0x484] ss:$16 sps:$4 sm:$0xff]   ;;  %v4471_v26 = vld [vmem:[%s6440_s0 + $0x48c] ss:$16 sps:$4 sm:$0xff]  }
  0x58   :  { %2766 = vmatprep.subr.bf16.mxu0 %v4378_v27  ;;  %3137 = vmatprep.subr.bf16.mxu1 %v4381_v28  ;;  %v4466_v27 = vld [vmem:[%s6440_s0 + $0x480] ss:$16 sps:$4 sm:$0xff]   ;;  %v4469_v28 = vld [vmem:[%s6440_s0 + $0x488] ss:$16 sps:$4 sm:$0xff]  }
  0x5b   :  { %2767 = vmatpush1.bf16.msra.mxu0 %v4376_v30  ;;  %3138 = vmatpush1.bf16.msra.mxu1 %v4379_v31  ;;  %v4477_v30 = vld [vmem:[%s6440_s0 + $0x4ac] ss:$16 sps:$4 sm:$0xff]   ;;  %v4472_v31 = vld [vmem:[%s6440_s0 + $0x4a0] ss:$16 sps:$4 sm:$0xff]  }
  0x5c   :  { %2768 = vmatprep.subr.bf16.mxu0 %v4384_v32  ;;  %3139 = vmatprep.subr.bf16.mxu1 %v4387_v33  ;;  %v4475_v32 = vld [vmem:[%s6440_s0 + $0x4a8] ss:$16 sps:$4 sm:$0xff]   ;;  %v4480_v33 = vld [vmem:[%s6440_s0 + $0x4c4] ss:$16 sps:$4 sm:$0xff]  }
  0x5f   :  { %2769 = vmatpush1.bf16.msra.mxu0 %v4382_v35  ;;  %3140 = vmatpush1.bf16.msra.mxu1 %v4385_v36  ;;  %v4478_v35 = vld [vmem:[%s6440_s0 + $0x4c0] ss:$16 sps:$4 sm:$0xff]   ;;  %v4481_v36 = vld [vmem:[%s6440_s0 + $0x4c8] ss:$16 sps:$4 sm:$0xff]  }
  0x60   :  { %2770 = vmatprep.subr.bf16.mxu0 %v4390_v37  ;;  %3141 = vmatprep.subr.bf16.mxu1 %v4393_v38  ;;  %v4486_v37 = vld [vmem:[%s6440_s0 + $0x4e4] ss:$16 sps:$4 sm:$0xff]   ;;  %v4489_v38 = vld [vmem:[%s6440_s0 + $0x4ec] ss:$16 sps:$4 sm:$0xff]  }
  0x63   :  { %2771 = vmatpush1.bf16.msra.mxu0 %v4388_v39  ;;  %3142 = vmatpush1.bf16.msra.mxu1 %v4391_v40  ;;  %v4484_v39 = vld [vmem:[%s6440_s0 + $0x4e0] ss:$16 sps:$4 sm:$0xff]   ;;  %v4487_v40 = vld [vmem:[%s6440_s0 + $0x4e8] ss:$16 sps:$4 sm:$0xff]  }
  0x64   :  { %2772 = vmatprep.subr.bf16.mxu0 %v4396_v41  ;;  %3143 = vmatprep.subr.bf16.mxu1 %v4399_v42  ;;  %v4492_v41 = vld [vmem:[%s6440_s0 + $0x504] ss:$16 sps:$4 sm:$0xff]   ;;  %v4495_v42 = vld [vmem:[%s6440_s0 + $0x50c] ss:$16 sps:$4 sm:$0xff]  }
  0x67   :  { %2773 = vmatpush1.bf16.msra.mxu0 %v4394_v43  ;;  %3144 = vmatpush1.bf16.msra.mxu1 %v4397_v44  ;;  %v4490_v43 = vld [vmem:[%s6440_s0 + $0x500] ss:$16 sps:$4 sm:$0xff]   ;;  %v4493_v44 = vld [vmem:[%s6440_s0 + $0x508] ss:$16 sps:$4 sm:$0xff]  }
  0x68   :  { %2774 = vmatprep.subr.bf16.mxu0 %v4402_v45  ;;  %3145 = vmatprep.subr.bf16.mxu1 %v4405_v46  ;;  %v4498_v45 = vld [vmem:[%s6440_s0 + $0x524] ss:$16 sps:$4 sm:$0xff]   ;;  %v4501_v46 = vld [vmem:[%s6440_s0 + $0x52c] ss:$16 sps:$4 sm:$0xff]  }
  0x6b   :  { %2775 = vmatpush1.bf16.msra.mxu0 %v4400_v47  ;;  %3146 = vmatpush1.bf16.msra.mxu1 %v4403_v48  ;;  %v4496_v47 = vld [vmem:[%s6440_s0 + $0x520] ss:$16 sps:$4 sm:$0xff]   ;;  %v4499_v48 = vld [vmem:[%s6440_s0 + $0x528] ss:$16 sps:$4 sm:$0xff]  }
  0x6c   :  { %2776 = vmatprep.subr.bf16.mxu0 %v4408_v49  ;;  %3147 = vmatprep.subr.bf16.mxu1 %v4411_v50  ;;  %v4504_v49 = vld [vmem:[%s6440_s0 + $0x544] ss:$16 sps:$4 sm:$0xff]   ;;  %v4507_v50 = vld [vmem:[%s6440_s0 + $0x54c] ss:$16 sps:$4 sm:$0xff]  }
  0x6f   :  { %2777 = vmatpush1.bf16.msra.mxu0 %v4406_v51  ;;  %3148 = vmatpush1.bf16.msra.mxu1 %v4409_v52  ;;  %v4502_v51 = vld [vmem:[%s6440_s0 + $0x540] ss:$16 sps:$4 sm:$0xff]   ;;  %v4505_v52 = vld [vmem:[%s6440_s0 + $0x548] ss:$16 sps:$4 sm:$0xff]  }
  0x70   :  { %2778 = vmatprep.subr.bf16.mxu0 %v4414_v53  ;;  %3149 = vmatprep.subr.bf16.mxu1 %v4417_v54  ;;  %v4510_v53 = vld [vmem:[%s6440_s0 + $0x564] ss:$16 sps:$4 sm:$0xff]   ;;  %v4513_v54 = vld [vmem:[%s6440_s0 + $0x56c] ss:$16 sps:$4 sm:$0xff]  }
  0x73   :  { %2779 = vmatpush1.bf16.msra.mxu0 %v4412_v55  ;;  %3150 = vmatpush1.bf16.msra.mxu1 %v4415_v56  ;;  %v4508_v55 = vld [vmem:[%s6440_s0 + $0x560] ss:$16 sps:$4 sm:$0xff]   ;;  %v4511_v56 = vld [vmem:[%s6440_s0 + $0x568] ss:$16 sps:$4 sm:$0xff]  }
  0x74   :  { %2780 = vmatprep.subr.bf16.mxu0 %v4420_v57  ;;  %3151 = vmatprep.subr.bf16.mxu1 %v4423_v58  ;;  %v4516_v57 = vld [vmem:[%s6440_s0 + $0x584] ss:$16 sps:$4 sm:$0xff]   ;;  %v4519_v58 = vld [vmem:[%s6440_s0 + $0x58c] ss:$16 sps:$4 sm:$0xff]  }
  0x77   :  { %2781 = vmatpush1.bf16.msra.mxu0 %v4418_v59  ;;  %3152 = vmatpush1.bf16.msra.mxu1 %v4421_v60  ;;  %v4514_v59 = vld [vmem:[%s6440_s0 + $0x580] ss:$16 sps:$4 sm:$0xff]   ;;  %v4517_v60 = vld [vmem:[%s6440_s0 + $0x588] ss:$16 sps:$4 sm:$0xff]  }
  0x78   :  { %2782 = vmatprep.subr.bf16.mxu0 %v4428_v61  ;;  %3153 = vmatprep.subr.bf16.mxu1 %v4431_v62  ;;  %v4522_v61 = vld [vmem:[%s6440_s0 + $0x5a4] ss:$16 sps:$4 sm:$0xff]   ;;  %v4525_v62 = vld [vmem:[%s6440_s0 + $0x5ac] ss:$16 sps:$4 sm:$0xff]  }
  0x7b   :  { %2783 = vmatpush1.bf16.msra.mxu0 %v4426_v63  ;;  %3154 = vmatpush1.bf16.msra.mxu1 %v4429_v0  ;;  %v4520_v63 = vld [vmem:[%s6440_s0 + $0x5a0] ss:$16 sps:$4 sm:$0xff]   ;;  %v4523_v0 = vld [vmem:[%s6440_s0 + $0x5a8] ss:$16 sps:$4 sm:$0xff]  }
  0x7c   :  { %2784 = vmatprep.subr.bf16.mxu0 %v4435_v1  ;;  %3155 = vmatprep.subr.bf16.mxu1 %v4438_v2  ;;  %v4530_v1 = vld [vmem:[%s6440_s0 + $0x5c4] ss:$16 sps:$4 sm:$0xff]   ;;  %v4533_v2 = vld [vmem:[%s6440_s0 + $0x5cc] ss:$16 sps:$4 sm:$0xff]  }
  0x7f   :  { %2785 = vmatpush1.bf16.msra.mxu0 %v4433_v3  ;;  %3156 = vmatpush1.bf16.msra.mxu1 %v4436_v4  ;;  %v4528_v3 = vld [vmem:[%s6440_s0 + $0x5c0] ss:$16 sps:$4 sm:$0xff]   ;;  %v4531_v4 = vld [vmem:[%s6440_s0 + $0x5c8] ss:$16 sps:$4 sm:$0xff]  }
  0x80   :  { %2807 = vmatprep.subr.bf16.mxu0 %v4444_v5  ;;  %3178 = vmatprep.subr.bf16.mxu1 %v4447_v6  ;;  %v4537_v5 = vld [vmem:[%s6440_s0 + $0x5e4] ss:$16 sps:$4 sm:$0xff]   ;;  %v4540_v6 = vld [vmem:[%s6440_s0 + $0x5ec] ss:$16 sps:$4 sm:$0xff]  }
  0x82   :  { %2787 = vmatmul.mubr.bf16.vlgmr.msra.gmra.mrb[0].mxu0 %v4439_v7  ;;  %3158 = vmatmul.mubr.bf16.vlgmr.msra.gmra.mrb[0].mxu1 %v4439_v7  ;;  %v4535_v7 = vld [vmem:[%s6440_s0 + $0x5e0] ss:$16 sps:$4 sm:$0xff]  }
  0x83   :  { %2808 = vmatpush1.bf16.msra.mxu0 %v4442_v8  ;;  %3179 = vmatpush1.bf16.msra.mxu1 %v4445_v9  ;;  %v4538_v8 = vld [vmem:[%s6440_s0 + $0x5e8] ss:$16 sps:$4 sm:$0xff]   ;;  %v4546_v9 = vld [vmem:[%s6440_s0 + $0x604] ss:$16 sps:$4 sm:$0xff]  }
  0x84   :  { %2809 = vmatprep.subr.bf16.mxu0 %v4450_v10  ;;  %3180 = vmatprep.subr.bf16.mxu1 %v4453_v11  ;;  %v4549_v10 = vld [vmem:[%s6440_s0 + $0x60c] ss:$16 sps:$4 sm:$0xff]   ;;  %v4541_v11 = vld [vmem:[%s6441_s1 + $0x10] ss:$52 sps:$4 sm:$0xff]  }
  0x85   :  { %2796 = vmatprep.mubr.bf16.mxu0 %v4526_v12  ;;  %3167 = vmatprep.mubr.bf16.mxu1 %v4526_v12  ;;  %v4544_v12 = vld [vmem:[%s6440_s0 + $0x600] ss:$16 sps:$4 sm:$0xff]  }
  0x87   :  { %2810 = vmatpush1.bf16.msra.mxu0 %v4448_v13  ;;  %3181 = vmatpush1.bf16.msra.mxu1 %v4451_v14  ;;  %v4547_v13 = vld [vmem:[%s6440_s0 + $0x608] ss:$16 sps:$4 sm:$0xff]   ;;  %v4552_v14 = vld [vmem:[%s6440_s0 + $0x624] ss:$16 sps:$4 sm:$0xff]  }
  0x88   :  { %2811 = vmatprep.subr.bf16.mxu0 %v4456_v15  ;;  %3182 = vmatprep.subr.bf16.mxu1 %v4459_v16  ;;  %v4555_v15 = vld [vmem:[%s6440_s0 + $0x62c] ss:$16 sps:$4 sm:$0xff]  }
  0x89   :  { %v4628_v16 = vld [vmem:[%s6441_s1 + $0x7c] ss:$52 sps:$4 sm:$0xff]  }
  0x8a   :  { %2797 = vmatmul.mubr.bf16.gmra.mrb[4].mxu0 %v4534_v19  ;;  %3168 = vmatmul.mubr.bf16.gmra.mrb[4].mxu1 %v4534_v19  ;;  %v4558_v19 = vld [vmem:[%s6440_s0 + $0x644] ss:$16 sps:$4 sm:$0xff]  }
  0x8b   :  { %2812 = vmatpush1.bf16.msra.mxu0 %v4454_v17  ;;  %3183 = vmatpush1.bf16.msra.mxu1 %v4457_v18  ;;  %v4550_v17 = vld [vmem:[%s6440_s0 + $0x620] ss:$16 sps:$4 sm:$0xff]   ;;  %v4553_v18 = vld [vmem:[%s6440_s0 + $0x628] ss:$16 sps:$4 sm:$0xff]  }
  0x8c   :  { %2813 = vmatprep.subr.bf16.mxu0 %v4462_v20  ;;  %3184 = vmatprep.subr.bf16.mxu1 %v4465_v21  ;;  %v4561_v20 = vld [vmem:[%s6440_s0 + $0x64c] ss:$16 sps:$4 sm:$0xff]   ;;  %v4556_v21 = vld [vmem:[%s6440_s0 + $0x640] ss:$16 sps:$4 sm:$0xff]  }
  0x8d   :  { %2839 = vmatprep.mubr.bf16.mxu0 %v4543_v22  ;;  %3210 = vmatprep.mubr.bf16.mxu1 %v4543_v22  ;;  %v4559_v22 = vld [vmem:[%s6440_s0 + $0x648] ss:$16 sps:$4 sm:$0xff]  }
  0x8f   :  { %2814 = vmatpush1.bf16.msra.mxu0 %v4460_v23  ;;  %3185 = vmatpush1.bf16.msra.mxu1 %v4463_v24  ;;  %v4636_v23 = vld [vmem:[%s6441_s1 + $0x78] ss:$52 sps:$4 sm:$0xff]   ;;  %v4564_v24 = vld [vmem:[%s6440_s0 + $0x664] ss:$16 sps:$4 sm:$0xff]  }
  0x90   :  { %2815 = vmatprep.subr.bf16.mxu0 %v4468_v25  ;;  %3186 = vmatprep.subr.bf16.mxu1 %v4471_v26  ;;  %v4567_v25 = vld [vmem:[%s6440_s0 + $0x66c] ss:$16 sps:$4 sm:$0xff]  }
  0x91   :  { %v4645_v26 = vld [vmem:[%s6441_s1 + $0x1c] ss:$52 sps:$4 sm:$0xff]  }
  0x93   :  { %2816 = vmatpush1.bf16.msra.mxu0 %v4466_v27  ;;  %3187 = vmatpush1.bf16.msra.mxu1 %v4469_v28  ;;  %v4562_v27 = vld [vmem:[%s6440_s0 + $0x660] ss:$16 sps:$4 sm:$0xff]   ;;  %v4565_v28 = vld [vmem:[%s6440_s0 + $0x668] ss:$16 sps:$4 sm:$0xff]  }
  0x94   :  { %2817 = vmatprep.subr.bf16.mxu0 %v4474_v29  ;;  %3188 = vmatprep.subr.bf16.mxu1 %v4477_v30  ;;  %v4570_v29 = vld [vmem:[%s6440_s0 + $0x684] ss:$16 sps:$4 sm:$0xff]   ;;  %v4573_v30 = vld [vmem:[%s6440_s0 + $0x68c] ss:$16 sps:$4 sm:$0xff]  }
  0x97   :  { %2818 = vmatpush1.bf16.msra.mxu0 %v4472_v31  ;;  %3189 = vmatpush1.bf16.msra.mxu1 %v4475_v32  ;;  %v4568_v31 = vld [vmem:[%s6440_s0 + $0x680] ss:$16 sps:$4 sm:$0xff]   ;;  %v4571_v32 = vld [vmem:[%s6440_s0 + $0x688] ss:$16 sps:$4 sm:$0xff]  }
  0x98   :  { %2819 = vmatprep.subr.bf16.mxu0 %v4480_v33  ;;  %3190 = vmatprep.subr.bf16.mxu1 %v4483_v34  ;;  %v4576_v33 = vld [vmem:[%s6440_s0 + $0x6a4] ss:$16 sps:$4 sm:$0xff]   ;;  %v4579_v34 = vld [vmem:[%s6440_s0 + $0x6ac] ss:$16 sps:$4 sm:$0xff]  }
  0x9b   :  { %2820 = vmatpush1.bf16.msra.mxu0 %v4478_v35  ;;  %3191 = vmatpush1.bf16.msra.mxu1 %v4481_v36  ;;  %v4574_v35 = vld [vmem:[%s6440_s0 + $0x6a0] ss:$16 sps:$4 sm:$0xff]   ;;  %v4577_v36 = vld [vmem:[%s6440_s0 + $0x6a8] ss:$16 sps:$4 sm:$0xff]  }
  0x9c   :  { %2821 = vmatprep.subr.bf16.mxu0 %v4486_v37  ;;  %3192 = vmatprep.subr.bf16.mxu1 %v4489_v38  ;;  %v4582_v37 = vld [vmem:[%s6440_s0 + $0x6c4] ss:$16 sps:$4 sm:$0xff]   ;;  %v4585_v38 = vld [vmem:[%s6440_s0 + $0x6cc] ss:$16 sps:$4 sm:$0xff]  }
  0x9f   :  { %2822 = vmatpush1.bf16.msra.mxu0 %v4484_v39  ;;  %3193 = vmatpush1.bf16.msra.mxu1 %v4487_v40  ;;  %v4580_v39 = vld [vmem:[%s6440_s0 + $0x6c0] ss:$16 sps:$4 sm:$0xff]   ;;  %v4583_v40 = vld [vmem:[%s6440_s0 + $0x6c8] ss:$16 sps:$4 sm:$0xff]  }
  0xa0   :  { %2823 = vmatprep.subr.bf16.mxu0 %v4492_v41  ;;  %3194 = vmatprep.subr.bf16.mxu1 %v4495_v42  ;;  %v4588_v41 = vld [vmem:[%s6440_s0 + $0x6e4] ss:$16 sps:$4 sm:$0xff]   ;;  %v4591_v42 = vld [vmem:[%s6440_s0 + $0x6ec] ss:$16 sps:$4 sm:$0xff]  }
  0xa3   :  { %2824 = vmatpush1.bf16.msra.mxu0 %v4490_v43  ;;  %3195 = vmatpush1.bf16.msra.mxu1 %v4493_v44  ;;  %v4586_v43 = vld [vmem:[%s6440_s0 + $0x6e0] ss:$16 sps:$4 sm:$0xff]   ;;  %v4589_v44 = vld [vmem:[%s6440_s0 + $0x6e8] ss:$16 sps:$4 sm:$0xff]  }
  0xa4   :  { %2825 = vmatprep.subr.bf16.mxu0 %v4498_v45  ;;  %3196 = vmatprep.subr.bf16.mxu1 %v4501_v46  ;;  %v4594_v45 = vld [vmem:[%s6440_s0 + $0x704] ss:$16 sps:$4 sm:$0xff]   ;;  %v4597_v46 = vld [vmem:[%s6440_s0 + $0x70c] ss:$16 sps:$4 sm:$0xff]  }
  0xa7   :  { %2826 = vmatpush1.bf16.msra.mxu0 %v4496_v47  ;;  %3197 = vmatpush1.bf16.msra.mxu1 %v4499_v48  ;;  %v4592_v47 = vld [vmem:[%s6440_s0 + $0x700] ss:$16 sps:$4 sm:$0xff]   ;;  %v4595_v48 = vld [vmem:[%s6440_s0 + $0x708] ss:$16 sps:$4 sm:$0xff]  }
  0xa8   :  { %2827 = vmatprep.subr.bf16.mxu0 %v4504_v49  ;;  %3198 = vmatprep.subr.bf16.mxu1 %v4507_v50  ;;  %v4600_v49 = vld [vmem:[%s6440_s0 + $0x724] ss:$16 sps:$4 sm:$0xff]   ;;  %v4603_v50 = vld [vmem:[%s6440_s0 + $0x72c] ss:$16 sps:$4 sm:$0xff]  }
  0xab   :  { %2828 = vmatpush1.bf16.msra.mxu0 %v4502_v51  ;;  %3199 = vmatpush1.bf16.msra.mxu1 %v4505_v52  ;;  %v4598_v51 = vld [vmem:[%s6440_s0 + $0x720] ss:$16 sps:$4 sm:$0xff]   ;;  %v4601_v52 = vld [vmem:[%s6440_s0 + $0x728] ss:$16 sps:$4 sm:$0xff]  }
  0xac   :  { %2829 = vmatprep.subr.bf16.mxu0 %v4510_v53  ;;  %3200 = vmatprep.subr.bf16.mxu1 %v4513_v54  ;;  %v4606_v53 = vld [vmem:[%s6440_s0 + $0x744] ss:$16 sps:$4 sm:$0xff]   ;;  %v4609_v54 = vld [vmem:[%s6440_s0 + $0x74c] ss:$16 sps:$4 sm:$0xff]  }
  0xaf   :  { %2830 = vmatpush1.bf16.msra.mxu0 %v4508_v55  ;;  %3201 = vmatpush1.bf16.msra.mxu1 %v4511_v56  ;;  %v4604_v55 = vld [vmem:[%s6440_s0 + $0x740] ss:$16 sps:$4 sm:$0xff]   ;;  %v4607_v56 = vld [vmem:[%s6440_s0 + $0x748] ss:$16 sps:$4 sm:$0xff]  }
  0xb0   :  { %2831 = vmatprep.subr.bf16.mxu0 %v4516_v57  ;;  %3202 = vmatprep.subr.bf16.mxu1 %v4519_v58  ;;  %v4612_v57 = vld [vmem:[%s6440_s0 + $0x764] ss:$16 sps:$4 sm:$0xff]   ;;  %v4615_v58 = vld [vmem:[%s6440_s0 + $0x76c] ss:$16 sps:$4 sm:$0xff]  }
  0xb3   :  { %2832 = vmatpush1.bf16.msra.mxu0 %v4514_v59  ;;  %3203 = vmatpush1.bf16.msra.mxu1 %v4517_v60  ;;  %v4610_v59 = vld [vmem:[%s6440_s0 + $0x760] ss:$16 sps:$4 sm:$0xff]   ;;  %v4613_v60 = vld [vmem:[%s6440_s0 + $0x768] ss:$16 sps:$4 sm:$0xff]  }
  0xb4   :  { %2833 = vmatprep.subr.bf16.mxu0 %v4522_v61  ;;  %3204 = vmatprep.subr.bf16.mxu1 %v4525_v62  ;;  %v4618_v61 = vld [vmem:[%s6440_s0 + $0x784] ss:$16 sps:$4 sm:$0xff]   ;;  %v4621_v62 = vld [vmem:[%s6440_s0 + $0x78c] ss:$16 sps:$4 sm:$0xff]  }
  0xb7   :  { %2834 = vmatpush1.bf16.msra.mxu0 %v4520_v63  ;;  %3205 = vmatpush1.bf16.msra.mxu1 %v4523_v0  ;;  %v4616_v63 = vld [vmem:[%s6440_s0 + $0x780] ss:$16 sps:$4 sm:$0xff]   ;;  %v4619_v0 = vld [vmem:[%s6440_s0 + $0x788] ss:$16 sps:$4 sm:$0xff]  }
  0xb8   :  { %2835 = vmatprep.subr.bf16.mxu0 %v4530_v1  ;;  %3206 = vmatprep.subr.bf16.mxu1 %v4533_v2  ;;  %v4624_v1 = vld [vmem:[%s6440_s0 + $0x7a4] ss:$16 sps:$4 sm:$0xff]   ;;  %v4627_v2 = vld [vmem:[%s6440_s0 + $0x7ac] ss:$16 sps:$4 sm:$0xff]  }
  0xbb   :  { %2836 = vmatpush1.bf16.msra.mxu0 %v4528_v3  ;;  %3207 = vmatpush1.bf16.msra.mxu1 %v4531_v4  ;;  %v4622_v3 = vld [vmem:[%s6440_s0 + $0x7a0] ss:$16 sps:$4 sm:$0xff]   ;;  %v4625_v4 = vld [vmem:[%s6440_s0 + $0x7a8] ss:$16 sps:$4 sm:$0xff]  }
  0xbc   :  { %2837 = vmatprep.subr.bf16.mxu0 %v4537_v5  ;;  %3208 = vmatprep.subr.bf16.mxu1 %v4540_v6  ;;  %v4632_v5 = vld [vmem:[%s6440_s0 + $0x7c4] ss:$16 sps:$4 sm:$0xff]   ;;  %v4635_v6 = vld [vmem:[%s6440_s0 + $0x7cc] ss:$16 sps:$4 sm:$0xff]  }
  0xbf   :  { %2838 = vmatpush1.bf16.msra.mxu0 %v4535_v7  ;;  %3209 = vmatpush1.bf16.msra.mxu1 %v4538_v8  ;;  %v4630_v7 = vld [vmem:[%s6440_s0 + $0x7c0] ss:$16 sps:$4 sm:$0xff]   ;;  %v4633_v8 = vld [vmem:[%s6440_s0 + $0x7c8] ss:$16 sps:$4 sm:$0xff]  }
  0xc0   :  { %2860 = vmatprep.subr.bf16.mxu0 %v4546_v9  ;;  %3231 = vmatprep.subr.bf16.mxu1 %v4549_v10  ;;  %v4639_v9 = vld [vmem:[%s6440_s0 + $0x7e4] ss:$16 sps:$4 sm:$0xff]   ;;  %v4642_v10 = vld [vmem:[%s6440_s0 + $0x7ec] ss:$16 sps:$4 sm:$0xff]  }
  0xc2   :  { %2840 = vmatmul.mubr.bf16.vlgmr.msra.gmra.mrb[0].mxu0 %v4541_v11  ;;  %3211 = vmatmul.mubr.bf16.vlgmr.msra.gmra.mrb[0].mxu1 %v4541_v11  ;;  %v4637_v11 = vld [vmem:[%s6440_s0 + $0x7e0] ss:$16 sps:$4 sm:$0xff]  }
  0xc3   :  { %2861 = vmatpush1.bf16.msra.mxu0 %v4544_v12  ;;  %3232 = vmatpush1.bf16.msra.mxu1 %v4547_v13  ;;  %v4640_v12 = vld [vmem:[%s6440_s0 + $0x7e8] ss:$16 sps:$4 sm:$0xff]   ;;  %v4648_v13 = vld [vmem:[%s6440_s0 + $0x804] ss:$16 sps:$4 sm:$0xff]  }
  0xc4   :  { %2862 = vmatprep.subr.bf16.mxu0 %v4552_v14  ;;  %3233 = vmatprep.subr.bf16.mxu1 %v4555_v15  ;;  %v4651_v14 = vld [vmem:[%s6440_s0 + $0x80c] ss:$16 sps:$4 sm:$0xff]  }
  0xc5   :  { %2849 = vmatprep.mubr.bf16.mxu0 %v4628_v16  ;;  %3220 = vmatprep.mubr.bf16.mxu1 %v4628_v16  ;;  %v4643_v15 = vld [vmem:[%s6441_s1 + $0x18] ss:$52 sps:$4 sm:$0xff]   ;;  %v4646_v16 = vld [vmem:[%s6440_s0 + $0x800] ss:$16 sps:$4 sm:$0xff]  }
  0xc7   :  { %2863 = vmatpush1.bf16.msra.mxu0 %v4550_v17  ;;  %3234 = vmatpush1.bf16.msra.mxu1 %v4553_v18  ;;  %v4649_v17 = vld [vmem:[%s6440_s0 + $0x808] ss:$16 sps:$4 sm:$0xff]   ;;  %v4654_v18 = vld [vmem:[%s6440_s0 + $0x824] ss:$16 sps:$4 sm:$0xff]  }
  0xc8   :  { %2864 = vmatprep.subr.bf16.mxu0 %v4558_v19  ;;  %3235 = vmatprep.subr.bf16.mxu1 %v4561_v20  ;;  %v4657_v19 = vld [vmem:[%s6440_s0 + $0x82c] ss:$16 sps:$4 sm:$0xff]   ;;  %v4730_v20 = vld [vmem:[%s6441_s1 + $0x84] ss:$52 sps:$4 sm:$0xff]  }
  0xca   :  { %2850 = vmatmul.mubr.bf16.gmra.mrb[4].mxu0 %v4636_v23  ;;  %3221 = vmatmul.mubr.bf16.gmra.mrb[4].mxu1 %v4636_v23  ;;  %v4660_v23 = vld [vmem:[%s6440_s0 + $0x844] ss:$16 sps:$4 sm:$0xff]  }
  0xcb   :  { %2865 = vmatpush1.bf16.msra.mxu0 %v4556_v21  ;;  %3236 = vmatpush1.bf16.msra.mxu1 %v4559_v22  ;;  %v4652_v21 = vld [vmem:[%s6440_s0 + $0x820] ss:$16 sps:$4 sm:$0xff]   ;;  %v4655_v22 = vld [vmem:[%s6440_s0 + $0x828] ss:$16 sps:$4 sm:$0xff]  }
  0xcc   :  { %2866 = vmatprep.subr.bf16.mxu0 %v4564_v24  ;;  %3237 = vmatprep.subr.bf16.mxu1 %v4567_v25  ;;  %v4663_v24 = vld [vmem:[%s6440_s0 + $0x84c] ss:$16 sps:$4 sm:$0xff]   ;;  %v4658_v25 = vld [vmem:[%s6440_s0 + $0x840] ss:$16 sps:$4 sm:$0xff]  }
  0xcd   :  { %2892 = vmatprep.mubr.bf16.mxu0 %v4645_v26  ;;  %3263 = vmatprep.mubr.bf16.mxu1 %v4645_v26  ;;  %v4738_v26 = vld [vmem:[%s6441_s1 + $0x80] ss:$52 sps:$4 sm:$0xff]  }
  0xcf   :  { %2867 = vmatpush1.bf16.msra.mxu0 %v4562_v27  ;;  %3238 = vmatpush1.bf16.msra.mxu1 %v4565_v28  ;;  %v4661_v27 = vld [vmem:[%s6440_s0 + $0x848] ss:$16 sps:$4 sm:$0xff]   ;;  %v4666_v28 = vld [vmem:[%s6440_s0 + $0x864] ss:$16 sps:$4 sm:$0xff]  }
  0xd0   :  { %2868 = vmatprep.subr.bf16.mxu0 %v4570_v29  ;;  %3239 = vmatprep.subr.bf16.mxu1 %v4573_v30  ;;  %v4669_v29 = vld [vmem:[%s6440_s0 + $0x86c] ss:$16 sps:$4 sm:$0xff]   ;;  %v4747_v30 = vld [vmem:[%s6441_s1 + $0x24] ss:$52 sps:$4 sm:$0xff]  }
  0xd3   :  { %2869 = vmatpush1.bf16.msra.mxu0 %v4568_v31  ;;  %3240 = vmatpush1.bf16.msra.mxu1 %v4571_v32  ;;  %v4664_v31 = vld [vmem:[%s6440_s0 + $0x860] ss:$16 sps:$4 sm:$0xff]   ;;  %v4667_v32 = vld [vmem:[%s6440_s0 + $0x868] ss:$16 sps:$4 sm:$0xff]  }
  0xd4   :  { %2870 = vmatprep.subr.bf16.mxu0 %v4576_v33  ;;  %3241 = vmatprep.subr.bf16.mxu1 %v4579_v34  ;;  %v4672_v33 = vld [vmem:[%s6440_s0 + $0x884] ss:$16 sps:$4 sm:$0xff]   ;;  %v4675_v34 = vld [vmem:[%s6440_s0 + $0x88c] ss:$16 sps:$4 sm:$0xff]  }
  0xd7   :  { %2871 = vmatpush1.bf16.msra.mxu0 %v4574_v35  ;;  %3242 = vmatpush1.bf16.msra.mxu1 %v4577_v36  ;;  %v4670_v35 = vld [vmem:[%s6440_s0 + $0x880] ss:$16 sps:$4 sm:$0xff]   ;;  %v4673_v36 = vld [vmem:[%s6440_s0 + $0x888] ss:$16 sps:$4 sm:$0xff]  }
  0xd8   :  { %2872 = vmatprep.subr.bf16.mxu0 %v4582_v37  ;;  %3243 = vmatprep.subr.bf16.mxu1 %v4585_v38  ;;  %v4678_v37 = vld [vmem:[%s6440_s0 + $0x8a4] ss:$16 sps:$4 sm:$0xff]   ;;  %v4681_v38 = vld [vmem:[%s6440_s0 + $0x8ac] ss:$16 sps:$4 sm:$0xff]  }
  0xdb   :  { %2873 = vmatpush1.bf16.msra.mxu0 %v4580_v39  ;;  %3244 = vmatpush1.bf16.msra.mxu1 %v4583_v40  ;;  %v4676_v39 = vld [vmem:[%s6440_s0 + $0x8a0] ss:$16 sps:$4 sm:$0xff]   ;;  %v4679_v40 = vld [vmem:[%s6440_s0 + $0x8a8] ss:$16 sps:$4 sm:$0xff]  }
  0xdc   :  { %2874 = vmatprep.subr.bf16.mxu0 %v4588_v41  ;;  %3245 = vmatprep.subr.bf16.mxu1 %v4591_v42  ;;  %v4684_v41 = vld [vmem:[%s6440_s0 + $0x8c4] ss:$16 sps:$4 sm:$0xff]   ;;  %v4687_v42 = vld [vmem:[%s6440_s0 + $0x8cc] ss:$16 sps:$4 sm:$0xff]  }
  0xdf   :  { %2875 = vmatpush1.bf16.msra.mxu0 %v4586_v43  ;;  %3246 = vmatpush1.bf16.msra.mxu1 %v4589_v44  ;;  %v4682_v43 = vld [vmem:[%s6440_s0 + $0x8c0] ss:$16 sps:$4 sm:$0xff]   ;;  %v4685_v44 = vld [vmem:[%s6440_s0 + $0x8c8] ss:$16 sps:$4 sm:$0xff]  }
  0xe0   :  { %2876 = vmatprep.subr.bf16.mxu0 %v4594_v45  ;;  %3247 = vmatprep.subr.bf16.mxu1 %v4597_v46  ;;  %v4690_v45 = vld [vmem:[%s6440_s0 + $0x8e4] ss:$16 sps:$4 sm:$0xff]   ;;  %v4693_v46 = vld [vmem:[%s6440_s0 + $0x8ec] ss:$16 sps:$4 sm:$0xff]  }
  0xe3   :  { %2877 = vmatpush1.bf16.msra.mxu0 %v4592_v47  ;;  %3248 = vmatpush1.bf16.msra.mxu1 %v4595_v48  ;;  %v4688_v47 = vld [vmem:[%s6440_s0 + $0x8e0] ss:$16 sps:$4 sm:$0xff]   ;;  %v4691_v48 = vld [vmem:[%s6440_s0 + $0x8e8] ss:$16 sps:$4 sm:$0xff]  }
  0xe4   :  { %2878 = vmatprep.subr.bf16.mxu0 %v4600_v49  ;;  %3249 = vmatprep.subr.bf16.mxu1 %v4603_v50  ;;  %v4696_v49 = vld [vmem:[%s6440_s0 + $0x904] ss:$16 sps:$4 sm:$0xff]   ;;  %v4699_v50 = vld [vmem:[%s6440_s0 + $0x90c] ss:$16 sps:$4 sm:$0xff]  }
  0xe7   :  { %2879 = vmatpush1.bf16.msra.mxu0 %v4598_v51  ;;  %3250 = vmatpush1.bf16.msra.mxu1 %v4601_v52  ;;  %v4694_v51 = vld [vmem:[%s6440_s0 + $0x900] ss:$16 sps:$4 sm:$0xff]   ;;  %v4697_v52 = vld [vmem:[%s6440_s0 + $0x908] ss:$16 sps:$4 sm:$0xff]  }
  0xe8   :  { %2880 = vmatprep.subr.bf16.mxu0 %v4606_v53  ;;  %3251 = vmatprep.subr.bf16.mxu1 %v4609_v54  ;;  %v4702_v53 = vld [vmem:[%s6440_s0 + $0x924] ss:$16 sps:$4 sm:$0xff]   ;;  %v4705_v54 = vld [vmem:[%s6440_s0 + $0x92c] ss:$16 sps:$4 sm:$0xff]  }
  0xeb   :  { %2881 = vmatpush1.bf16.msra.mxu0 %v4604_v55  ;;  %3252 = vmatpush1.bf16.msra.mxu1 %v4607_v56  ;;  %v4911_v55 = vmov 0   ;;  %v4700_v56 = vld [vmem:[%s6440_s0 + $0x920] ss:$16 sps:$4 sm:$0xff]  }
  0xec   :  { %2882 = vmatprep.subr.bf16.mxu0 %v4612_v57  ;;  %3253 = vmatprep.subr.bf16.mxu1 %v4615_v58  ;;  %v4703_v57 = vld [vmem:[%s6440_s0 + $0x928] ss:$16 sps:$4 sm:$0xff]   ;;  %v4708_v58 = vld [vmem:[%s6440_s0 + $0x944] ss:$16 sps:$4 sm:$0xff]  }
  0xed   :  { %4239 = vset.pattern.permute.xlu0 %v4911_v55  ;;  %4240 = vset.pattern.permute.xlu1 %v4911_v55 }
  0xef   :  { %2883 = vmatpush1.bf16.msra.mxu0 %v4610_v59  ;;  %3254 = vmatpush1.bf16.msra.mxu1 %v4613_v60  ;;  %v4711_v59 = vld [vmem:[%s6440_s0 + $0x94c] ss:$16 sps:$4 sm:$0xff]   ;;  %v4706_v60 = vld [vmem:[%s6440_s0 + $0x940] ss:$16 sps:$4 sm:$0xff]  }
  0xf0   :  { %2884 = vmatprep.subr.bf16.mxu0 %v4618_v61  ;;  %3255 = vmatprep.subr.bf16.mxu1 %v4621_v62  ;;  %v4709_v61 = vld [vmem:[%s6440_s0 + $0x948] ss:$16 sps:$4 sm:$0xff]   ;;  %v4714_v62 = vld [vmem:[%s6440_s0 + $0x964] ss:$16 sps:$4 sm:$0xff]  }
  0xf3   :  { %2885 = vmatpush1.bf16.msra.mxu0 %v4616_v63  ;;  %3256 = vmatpush1.bf16.msra.mxu1 %v4619_v0  ;;  %v4717_v63 = vld [vmem:[%s6440_s0 + $0x96c] ss:$16 sps:$4 sm:$0xff]   ;;  %v4712_v0 = vld [vmem:[%s6440_s0 + $0x960] ss:$16 sps:$4 sm:$0xff]  }
  0xf4   :  { %2886 = vmatprep.subr.bf16.mxu0 %v4624_v1  ;;  %3257 = vmatprep.subr.bf16.mxu1 %v4627_v2  ;;  %v4715_v1 = vld [vmem:[%s6440_s0 + $0x968] ss:$16 sps:$4 sm:$0xff]   ;;  %v465_v2 = vld [vmem:[%s6442_s2] sm:$0xff] }
  0xf5   :  { %471 = vperm.xlu0 %4239, %v465_v2   ;;  %v4805_v2 = vld [vmem:[%s6440_s0 + $0xb28] ss:$16 sps:$4 sm:$0xff]  }
  0xf7   :  { %2887 = vmatpush1.bf16.msra.mxu0 %v4622_v3  ;;  %3258 = vmatpush1.bf16.msra.mxu1 %v4625_v4  ;;  %v467_v3 = vld [vmem:[%s6442_s2 + $0x10] sm:$0xff] }
  0xf8   :  { %2888 = vmatprep.subr.bf16.mxu0 %v4632_v5  ;;  %3259 = vmatprep.subr.bf16.mxu1 %v4635_v6  ;;  %v4720_v4 = vld [vmem:[%s6440_s0 + $0x984] ss:$16 sps:$4 sm:$0xff]   ;;  %v4723_v5 = vld [vmem:[%s6440_s0 + $0x98c] ss:$16 sps:$4 sm:$0xff]  }
  0xf9   :  { %481 = vperm.xlu1 %4240, %v467_v3   ;;  %v466_v6 = vld [vmem:[%s6442_s2 + $0x8] sm:$0xff]  ;;  %v4810_v3 = vld [vmem:[%s6440_s0 + $0xb44] ss:$16 sps:$4 sm:$0xff]  }
  0xfa   :  { %476 = vperm.xlu0 %4239, %v466_v6   ;;  %v4811_v6 = vld [vmem:[%s6440_s0 + $0xb48] ss:$16 sps:$4 sm:$0xff]  }
  0xfb   :  { %2889 = vmatpush1.bf16.msra.mxu0 %v4630_v7  ;;  %3260 = vmatpush1.bf16.msra.mxu1 %v4633_v8  ;;  %v468_v7 = vld [vmem:[%s6442_s2 + $0x18] sm:$0xff]  ;;  %v4718_v8 = vld [vmem:[%s6440_s0 + $0x980] ss:$16 sps:$4 sm:$0xff]  }
  0xfc   :  { %2890 = vmatprep.subr.bf16.mxu0 %v4639_v9  ;;  %3261 = vmatprep.subr.bf16.mxu1 %v4642_v10  ;;  %v4721_v9 = vld [vmem:[%s6440_s0 + $0x988] ss:$16 sps:$4 sm:$0xff]   ;;  %v4726_v10 = vld [vmem:[%s6440_s0 + $0x9a4] ss:$16 sps:$4 sm:$0xff]  }
  0xfd   :  { %486 = vperm.xlu1 %4240, %v468_v7   ;;  %v4816_v7 = vld [vmem:[%s6440_s0 + $0xb64] ss:$16 sps:$4 sm:$0xff]  }
  0xff   :  { %2891 = vmatpush1.bf16.msra.mxu0 %v4637_v11  ;;  %3262 = vmatpush1.bf16.msra.mxu1 %v4640_v12  ;;  %v4729_v11 = vld [vmem:[%s6440_s0 + $0x9ac] ss:$16 sps:$4 sm:$0xff]   ;;  %v4724_v12 = vld [vmem:[%s6440_s0 + $0x9a0] ss:$16 sps:$4 sm:$0xff]  }
 0x100   :  { %2913 = vmatprep.subr.bf16.mxu0 %v4648_v13  ;;  %3284 = vmatprep.subr.bf16.mxu1 %v4651_v14  ;;  %v4727_v13 = vld [vmem:[%s6440_s0 + $0x9a8] ss:$16 sps:$4 sm:$0xff]   ;;  %v4734_v14 = vld [vmem:[%s6440_s0 + $0x9c4] ss:$16 sps:$4 sm:$0xff]  }
 0x102   :  { %2893 = vmatmul.mubr.bf16.vlgmr.msra.gmra.mrb[0].mxu0 %v4643_v15  ;;  %3264 = vmatmul.mubr.bf16.vlgmr.msra.gmra.mrb[0].mxu1 %v4643_v15  ;;  %v4737_v15 = vld [vmem:[%s6440_s0 + $0x9cc] ss:$16 sps:$4 sm:$0xff]  }
 0x103   :  { %2914 = vmatpush1.bf16.msra.mxu0 %v4646_v16  ;;  %3285 = vmatpush1.bf16.msra.mxu1 %v4649_v17  ;;  %v4732_v16 = vld [vmem:[%s6440_s0 + $0x9c0] ss:$16 sps:$4 sm:$0xff]   ;;  %v4735_v17 = vld [vmem:[%s6440_s0 + $0x9c8] ss:$16 sps:$4 sm:$0xff]  }
 0x104   :  { %2915 = vmatprep.subr.bf16.mxu0 %v4654_v18  ;;  %3286 = vmatprep.subr.bf16.mxu1 %v4657_v19  ;;  %v4741_v18 = vld [vmem:[%s6440_s0 + $0x9e4] ss:$16 sps:$4 sm:$0xff]   ;;  %v4744_v19 = vld [vmem:[%s6440_s0 + $0x9ec] ss:$16 sps:$4 sm:$0xff]  }
 0x105   :  { %2902 = vmatprep.mubr.bf16.mxu0 %v4730_v20  ;;  %3273 = vmatprep.mubr.bf16.mxu1 %v4730_v20  ;;  %v4739_v20 = vld [vmem:[%s6440_s0 + $0x9e0] ss:$16 sps:$4 sm:$0xff]  }
 0x107   :  { %2916 = vmatpush1.bf16.msra.mxu0 %v4652_v21  ;;  %3287 = vmatpush1.bf16.msra.mxu1 %v4655_v22  ;;  %v4742_v21 = vld [vmem:[%s6440_s0 + $0x9e8] ss:$16 sps:$4 sm:$0xff]   ;;  %v4750_v22 = vld [vmem:[%s6440_s0 + $0xa04] ss:$16 sps:$4 sm:$0xff]  }
 0x108   :  { %2917 = vmatprep.subr.bf16.mxu0 %v4660_v23  ;;  %3288 = vmatprep.subr.bf16.mxu1 %v4663_v24  ;;  %v4753_v23 = vld [vmem:[%s6440_s0 + $0xa0c] ss:$16 sps:$4 sm:$0xff]   ;;  %v4745_v24 = vld [vmem:[%s6441_s1 + $0x20] ss:$52 sps:$4 sm:$0xff]  }
 0x10a   :  { %2903 = vmatmul.mubr.bf16.gmra.mrb[4].mxu0 %v4738_v26  ;;  %3274 = vmatmul.mubr.bf16.gmra.mrb[4].mxu1 %v4738_v26  ;;  %v4751_v26 = vld [vmem:[%s6440_s0 + $0xa08] ss:$16 sps:$4 sm:$0xff]  }
 0x10b   :  { %2918 = vmatpush1.bf16.msra.mxu0 %v4658_v25  ;;  %3289 = vmatpush1.bf16.msra.mxu1 %v4661_v27  ;;  %v4748_v25 = vld [vmem:[%s6440_s0 + $0xa00] ss:$16 sps:$4 sm:$0xff]   ;;  %v4756_v27 = vld [vmem:[%s6440_s0 + $0xa24] ss:$16 sps:$4 sm:$0xff]  }
 0x10c   :  { %2919 = vmatprep.subr.bf16.mxu0 %v4666_v28  ;;  %3290 = vmatprep.subr.bf16.mxu1 %v4669_v29  ;;  %v4759_v28 = vld [vmem:[%s6440_s0 + $0xa2c] ss:$16 sps:$4 sm:$0xff]  }
 0x10d   :  { %2945 = vmatprep.mubr.bf16.mxu0 %v4747_v30  ;;  %3316 = vmatprep.mubr.bf16.mxu1 %v4747_v30  ;;  %v4832_v29 = vld [vmem:[%s6441_s1 + $0x8c] ss:$52 sps:$4 sm:$0xff]  }
 0x10e   :  { %v4754_v30 = vld [vmem:[%s6440_s0 + $0xa20] ss:$16 sps:$4 sm:$0xff]  }
 0x10f   :  { %2920 = vmatpush1.bf16.msra.mxu0 %v4664_v31  ;;  %3291 = vmatpush1.bf16.msra.mxu1 %v4667_v32  ;;  %v4757_v31 = vld [vmem:[%s6440_s0 + $0xa28] ss:$16 sps:$4 sm:$0xff]   ;;  %v4762_v32 = vld [vmem:[%s6440_s0 + $0xa44] ss:$16 sps:$4 sm:$0xff]  }
 0x110   :  { %2921 = vmatprep.subr.bf16.mxu0 %v4672_v33  ;;  %3292 = vmatprep.subr.bf16.mxu1 %v4675_v34  ;;  %v4765_v33 = vld [vmem:[%s6440_s0 + $0xa4c] ss:$16 sps:$4 sm:$0xff]  }
 0x111   :  { %v4840_v34 = vld [vmem:[%s6441_s1 + $0x88] ss:$52 sps:$4 sm:$0xff]  }
 0x113   :  { %2922 = vmatpush1.bf16.msra.mxu0 %v4670_v35  ;;  %3293 = vmatpush1.bf16.msra.mxu1 %v4673_v36  ;;  %v4760_v35 = vld [vmem:[%s6440_s0 + $0xa40] ss:$16 sps:$4 sm:$0xff]   ;;  %v4763_v36 = vld [vmem:[%s6440_s0 + $0xa48] ss:$16 sps:$4 sm:$0xff]  }
 0x114   :  { %2923 = vmatprep.subr.bf16.mxu0 %v4678_v37  ;;  %3294 = vmatprep.subr.bf16.mxu1 %v4681_v38  ;;  %v4768_v37 = vld [vmem:[%s6440_s0 + $0xa64] ss:$16 sps:$4 sm:$0xff]   ;;  %v4771_v38 = vld [vmem:[%s6440_s0 + $0xa6c] ss:$16 sps:$4 sm:$0xff]  }
 0x117   :  { %2924 = vmatpush1.bf16.msra.mxu0 %v4676_v39  ;;  %3295 = vmatpush1.bf16.msra.mxu1 %v4679_v40  ;;  %v4849_v39 = vld [vmem:[%s6441_s1 + $0x2c] ss:$52 sps:$4 sm:$0xff]  }
 0x118   :  { %2925 = vmatprep.subr.bf16.mxu0 %v4684_v41  ;;  %3296 = vmatprep.subr.bf16.mxu1 %v4687_v42  ;;  %v4766_v40 = vld [vmem:[%s6440_s0 + $0xa60] ss:$16 sps:$4 sm:$0xff]   ;;  %v4769_v41 = vld [vmem:[%s6440_s0 + $0xa68] ss:$16 sps:$4 sm:$0xff]   ;;  %v4774_v42 = vld [vmem:[%s6440_s0 + $0xa84] ss:$16 sps:$4 sm:$0xff]  }
 0x11b   :  { %2926 = vmatpush1.bf16.msra.mxu0 %v4682_v43  ;;  %3297 = vmatpush1.bf16.msra.mxu1 %v4685_v44  ;;  %v4777_v43 = vld [vmem:[%s6440_s0 + $0xa8c] ss:$16 sps:$4 sm:$0xff]   ;;  %v4772_v44 = vld [vmem:[%s6440_s0 + $0xa80] ss:$16 sps:$4 sm:$0xff]  }
 0x11c   :  { %2927 = vmatprep.subr.bf16.mxu0 %v4690_v45  ;;  %3298 = vmatprep.subr.bf16.mxu1 %v4693_v46  ;;  %v4775_v45 = vld [vmem:[%s6440_s0 + $0xa88] ss:$16 sps:$4 sm:$0xff]   ;;  %v4780_v46 = vld [vmem:[%s6440_s0 + $0xaa4] ss:$16 sps:$4 sm:$0xff]  }
 0x11f   :  { %2928 = vmatpush1.bf16.msra.mxu0 %v4688_v47  ;;  %3299 = vmatpush1.bf16.msra.mxu1 %v4691_v48  ;;  %v4783_v47 = vld [vmem:[%s6440_s0 + $0xaac] ss:$16 sps:$4 sm:$0xff]   ;;  %v4778_v48 = vld [vmem:[%s6440_s0 + $0xaa0] ss:$16 sps:$4 sm:$0xff]  }
 0x120   :  { %2929 = vmatprep.subr.bf16.mxu0 %v4696_v49  ;;  %3300 = vmatprep.subr.bf16.mxu1 %v4699_v50  ;;  %v4781_v49 = vld [vmem:[%s6440_s0 + $0xaa8] ss:$16 sps:$4 sm:$0xff]   ;;  %v4786_v50 = vld [vmem:[%s6440_s0 + $0xac4] ss:$16 sps:$4 sm:$0xff]  }
 0x123   :  { %2930 = vmatpush1.bf16.msra.mxu0 %v4694_v51  ;;  %3301 = vmatpush1.bf16.msra.mxu1 %v4697_v52  ;;  %v4789_v51 = vld [vmem:[%s6440_s0 + $0xacc] ss:$16 sps:$4 sm:$0xff]   ;;  %v4784_v52 = vld [vmem:[%s6440_s0 + $0xac0] ss:$16 sps:$4 sm:$0xff]  }
 0x124   :  { %2931 = vmatprep.subr.bf16.mxu0 %v4702_v53  ;;  %3302 = vmatprep.subr.bf16.mxu1 %v4705_v54  ;;  %v4787_v53 = vld [vmem:[%s6440_s0 + $0xac8] ss:$16 sps:$4 sm:$0xff]   ;;  %v4792_v54 = vld [vmem:[%s6440_s0 + $0xae4] ss:$16 sps:$4 sm:$0xff]  }
 0x127   :  { %2932 = vmatpush1.bf16.msra.mxu0 %v4700_v56  ;;  %3303 = vmatpush1.bf16.msra.mxu1 %v4703_v57  ;;  %v4795_v56 = vld [vmem:[%s6440_s0 + $0xaec] ss:$16 sps:$4 sm:$0xff]   ;;  %v4790_v57 = vld [vmem:[%s6440_s0 + $0xae0] ss:$16 sps:$4 sm:$0xff]  }
 0x128   :  { %2933 = vmatprep.subr.bf16.mxu0 %v4708_v58  ;;  %3304 = vmatprep.subr.bf16.mxu1 %v4711_v59  ;;  %v4793_v58 = vld [vmem:[%s6440_s0 + $0xae8] ss:$16 sps:$4 sm:$0xff]   ;;  %v4798_v59 = vld [vmem:[%s6440_s0 + $0xb04] ss:$16 sps:$4 sm:$0xff]  }
 0x12b   :  { %2934 = vmatpush1.bf16.msra.mxu0 %v4706_v60  ;;  %3305 = vmatpush1.bf16.msra.mxu1 %v4709_v61  ;;  %v4801_v60 = vld [vmem:[%s6440_s0 + $0xb0c] ss:$16 sps:$4 sm:$0xff]   ;;  %v4796_v61 = vld [vmem:[%s6440_s0 + $0xb00] ss:$16 sps:$4 sm:$0xff]  }
 0x12c   :  { %2935 = vmatprep.subr.bf16.mxu0 %v4714_v62  ;;  %3306 = vmatprep.subr.bf16.mxu1 %v4717_v63  ;;  %v4799_v62 = vld [vmem:[%s6440_s0 + $0xb08] ss:$16 sps:$4 sm:$0xff]   ;;  %v4804_v63 = vld [vmem:[%s6440_s0 + $0xb24] ss:$16 sps:$4 sm:$0xff]  }
 0x12f   :  { %2936 = vmatpush1.bf16.msra.mxu0 %v4712_v0  ;;  %3307 = vmatpush1.bf16.msra.mxu1 %v4715_v1  ;;  %v4807_v0 = vld [vmem:[%s6440_s0 + $0xb2c] ss:$16 sps:$4 sm:$0xff]   ;;  %v4802_v1 = vld [vmem:[%s6440_s0 + $0xb20] ss:$16 sps:$4 sm:$0xff]  }
 0x130   :  { %2937 = vmatprep.subr.bf16.mxu0 %v4720_v4  ;;  %3308 = vmatprep.subr.bf16.mxu1 %v4723_v5  ;;  %v4813_v4 = vld [vmem:[%s6440_s0 + $0xb4c] ss:$16 sps:$4 sm:$0xff]   ;;  %v4808_v5 = vld [vmem:[%s6440_s0 + $0xb40] ss:$16 sps:$4 sm:$0xff]  }
 0x133   :  { %2938 = vmatpush1.bf16.msra.mxu0 %v4718_v8  ;;  %3309 = vmatpush1.bf16.msra.mxu1 %v4721_v9  ;;  %v4819_v8 = vld [vmem:[%s6440_s0 + $0xb6c] ss:$16 sps:$4 sm:$0xff]   ;;  %v4814_v9 = vld [vmem:[%s6440_s0 + $0xb60] ss:$16 sps:$4 sm:$0xff]  }
 0x134   :  { %2939 = vmatprep.subr.bf16.mxu0 %v4726_v10  ;;  %3310 = vmatprep.subr.bf16.mxu1 %v4729_v11  ;;  %v4817_v10 = vld [vmem:[%s6440_s0 + $0xb68] ss:$16 sps:$4 sm:$0xff]   ;;  %v4822_v11 = vld [vmem:[%s6440_s0 + $0xb84] ss:$16 sps:$4 sm:$0xff]  }
 0x137   :  { %2940 = vmatpush1.bf16.msra.mxu0 %v4724_v12  ;;  %3311 = vmatpush1.bf16.msra.mxu1 %v4727_v13  ;;  %v4825_v12 = vld [vmem:[%s6440_s0 + $0xb8c] ss:$16 sps:$4 sm:$0xff]   ;;  %v4820_v13 = vld [vmem:[%s6440_s0 + $0xb80] ss:$16 sps:$4 sm:$0xff]  }
 0x138   :  { %2941 = vmatprep.subr.bf16.mxu0 %v4734_v14  ;;  %3312 = vmatprep.subr.bf16.mxu1 %v4737_v15  ;;  %v4823_v14 = vld [vmem:[%s6440_s0 + $0xb88] ss:$16 sps:$4 sm:$0xff]   ;;  %v4828_v15 = vld [vmem:[%s6440_s0 + $0xba4] ss:$16 sps:$4 sm:$0xff]  }
 0x13b   :  { %2942 = vmatpush1.bf16.msra.mxu0 %v4732_v16  ;;  %3313 = vmatpush1.bf16.msra.mxu1 %v4735_v17  ;;  %v4831_v16 = vld [vmem:[%s6440_s0 + $0xbac] ss:$16 sps:$4 sm:$0xff]   ;;  %v4826_v17 = vld [vmem:[%s6440_s0 + $0xba0] ss:$16 sps:$4 sm:$0xff]  }
 0x13c   :  { %2943 = vmatprep.subr.bf16.mxu0 %v4741_v18  ;;  %3314 = vmatprep.subr.bf16.mxu1 %v4744_v19  ;;  %v4829_v18 = vld [vmem:[%s6440_s0 + $0xba8] ss:$16 sps:$4 sm:$0xff]   ;;  %v4836_v19 = vld [vmem:[%s6440_s0 + $0xbc4] ss:$16 sps:$4 sm:$0xff]  }
 0x13f   :  { %2944 = vmatpush1.bf16.msra.mxu0 %v4739_v20  ;;  %3315 = vmatpush1.bf16.msra.mxu1 %v4742_v21  ;;  %v4839_v20 = vld [vmem:[%s6440_s0 + $0xbcc] ss:$16 sps:$4 sm:$0xff]   ;;  %v4834_v21 = vld [vmem:[%s6440_s0 + $0xbc0] ss:$16 sps:$4 sm:$0xff]  }
 0x140   :  { %2966 = vmatprep.subr.bf16.mxu0 %v4750_v22  ;;  %3337 = vmatprep.subr.bf16.mxu1 %v4753_v23  ;;  %v4837_v22 = vld [vmem:[%s6440_s0 + $0xbc8] ss:$16 sps:$4 sm:$0xff]   ;;  %v4843_v23 = vld [vmem:[%s6440_s0 + $0xbe4] ss:$16 sps:$4 sm:$0xff]  }
 0x142   :  { %2946 = vmatmul.mubr.bf16.vlgmr.msra.gmra.mrb[0].mxu0 %v4745_v24  ;;  %3317 = vmatmul.mubr.bf16.vlgmr.msra.gmra.mrb[0].mxu1 %v4745_v24  ;;  %v4846_v24 = vld [vmem:[%s6440_s0 + $0xbec] ss:$16 sps:$4 sm:$0xff]  }
 0x143   :  { %2967 = vmatpush1.bf16.msra.mxu0 %v4748_v25  ;;  %3338 = vmatpush1.bf16.msra.mxu1 %v4751_v26  ;;  %v4841_v25 = vld [vmem:[%s6440_s0 + $0xbe0] ss:$16 sps:$4 sm:$0xff]   ;;  %v4844_v26 = vld [vmem:[%s6440_s0 + $0xbe8] ss:$16 sps:$4 sm:$0xff]  }
 0x144   :  { %2968 = vmatprep.subr.bf16.mxu0 %v4756_v27  ;;  %3339 = vmatprep.subr.bf16.mxu1 %v4759_v28  ;;  %v4852_v27 = vld [vmem:[%s6440_s0 + $0xc04] ss:$16 sps:$4 sm:$0xff]   ;;  %v4855_v28 = vld [vmem:[%s6440_s0 + $0xc0c] ss:$16 sps:$4 sm:$0xff]  }
 0x145   :  { %2955 = vmatprep.mubr.bf16.mxu0 %v4832_v29  ;;  %3326 = vmatprep.mubr.bf16.mxu1 %v4832_v29  ;;  %v4847_v29 = vld [vmem:[%s6441_s1 + $0x28] ss:$52 sps:$4 sm:$0xff]  }
 0x147   :  { %2969 = vmatpush1.bf16.msra.mxu0 %v4754_v30  ;;  %3340 = vmatpush1.bf16.msra.mxu1 %v4757_v31  ;;  %v4850_v30 = vld [vmem:[%s6440_s0 + $0xc00] ss:$16 sps:$4 sm:$0xff]   ;;  %v4853_v31 = vld [vmem:[%s6440_s0 + $0xc08] ss:$16 sps:$4 sm:$0xff]  }
 0x148   :  { %2970 = vmatprep.subr.bf16.mxu0 %v4762_v32  ;;  %3341 = vmatprep.subr.bf16.mxu1 %v4765_v33  ;;  %v4858_v32 = vld [vmem:[%s6440_s0 + $0xc24] ss:$16 sps:$4 sm:$0xff]   ;;  %v4861_v33 = vld [vmem:[%s6440_s0 + $0xc2c] ss:$16 sps:$4 sm:$0xff]  }
 0x14a   :  { %2956 = vmatmul.mubr.bf16.gmra.mrb[4].mxu0 %v4840_v34  ;;  %3327 = vmatmul.mubr.bf16.gmra.mrb[4].mxu1 %v4840_v34  ;;  %v4886_v34 = vld [vmem:[%s6441_s1 + $0x94] ss:$52 sps:$4 sm:$0xff]  }
 0x14b   :  { %2971 = vmatpush1.bf16.msra.mxu0 %v4760_v35  ;;  %3342 = vmatpush1.bf16.msra.mxu1 %v4763_v36  ;;  %v4856_v35 = vld [vmem:[%s6440_s0 + $0xc20] ss:$16 sps:$4 sm:$0xff]   ;;  %v4859_v36 = vld [vmem:[%s6440_s0 + $0xc28] ss:$16 sps:$4 sm:$0xff]  }
 0x14c   :  { %2972 = vmatprep.subr.bf16.mxu0 %v4768_v37  ;;  %3343 = vmatprep.subr.bf16.mxu1 %v4771_v38  ;;  %v4864_v37 = vld [vmem:[%s6440_s0 + $0xc44] ss:$16 sps:$4 sm:$0xff]   ;;  %v4867_v38 = vld [vmem:[%s6440_s0 + $0xc4c] ss:$16 sps:$4 sm:$0xff]  }
 0x14d   :  { %2998 = vmatprep.mubr.bf16.mxu0 %v4849_v39  ;;  %3369 = vmatprep.mubr.bf16.mxu1 %v4849_v39  ;;  %v4888_v39 = vld [vmem:[%s6441_s1 + $0x90] ss:$52 sps:$4 sm:$0xff]  }
 0x14f   :  { %2973 = vmatpush1.bf16.msra.mxu0 %v4766_v40  ;;  %3344 = vmatpush1.bf16.msra.mxu1 %v4769_v41  ;;  %v4862_v40 = vld [vmem:[%s6440_s0 + $0xc40] ss:$16 sps:$4 sm:$0xff]   ;;  %v4865_v41 = vld [vmem:[%s6440_s0 + $0xc48] ss:$16 sps:$4 sm:$0xff]  }
 0x150   :  { %2974 = vmatprep.subr.bf16.mxu0 %v4774_v42  ;;  %3345 = vmatprep.subr.bf16.mxu1 %v4777_v43  ;;  %v4870_v42 = vld [vmem:[%s6440_s0 + $0xc64] ss:$16 sps:$4 sm:$0xff]   ;;  %v4873_v43 = vld [vmem:[%s6440_s0 + $0xc6c] ss:$16 sps:$4 sm:$0xff]  }
 0x153   :  { %2975 = vmatpush1.bf16.msra.mxu0 %v4772_v44  ;;  %3346 = vmatpush1.bf16.msra.mxu1 %v4775_v45  ;;  %v4868_v44 = vld [vmem:[%s6440_s0 + $0xc60] ss:$16 sps:$4 sm:$0xff]   ;;  %v4871_v45 = vld [vmem:[%s6440_s0 + $0xc68] ss:$16 sps:$4 sm:$0xff]  }
 0x154   :  { %2976 = vmatprep.subr.bf16.mxu0 %v4780_v46  ;;  %3347 = vmatprep.subr.bf16.mxu1 %v4783_v47  ;;  %v4876_v46 = vld [vmem:[%s6440_s0 + $0xc84] ss:$16 sps:$4 sm:$0xff]   ;;  %v4879_v47 = vld [vmem:[%s6440_s0 + $0xc8c] ss:$16 sps:$4 sm:$0xff]  }
 0x157   :  { %2977 = vmatpush1.bf16.msra.mxu0 %v4778_v48  ;;  %3348 = vmatpush1.bf16.msra.mxu1 %v4781_v49  ;;  %v4874_v48 = vld [vmem:[%s6440_s0 + $0xc80] ss:$16 sps:$4 sm:$0xff]   ;;  %v4877_v49 = vld [vmem:[%s6440_s0 + $0xc88] ss:$16 sps:$4 sm:$0xff]  }
 0x158   :  { %2978 = vmatprep.subr.bf16.mxu0 %v4786_v50  ;;  %3349 = vmatprep.subr.bf16.mxu1 %v4789_v51  ;;  %v4882_v50 = vld [vmem:[%s6440_s0 + $0xca4] ss:$16 sps:$4 sm:$0xff]   ;;  %v4885_v51 = vld [vmem:[%s6440_s0 + $0xcac] ss:$16 sps:$4 sm:$0xff]  }
 0x15b   :  { %2979 = vmatpush1.bf16.msra.mxu0 %v4784_v52  ;;  %3350 = vmatpush1.bf16.msra.mxu1 %v4787_v53  ;;  %v4880_v52 = vld [vmem:[%s6440_s0 + $0xca0] ss:$16 sps:$4 sm:$0xff]   ;;  %v4883_v53 = vld [vmem:[%s6440_s0 + $0xca8] ss:$16 sps:$4 sm:$0xff]  }
 0x15c   :  { %2980 = vmatprep.subr.bf16.mxu0 %v4792_v54  ;;  %3351 = vmatprep.subr.bf16.mxu1 %v4795_v56  ;;  %v4891_v54 = vld [vmem:[%s6440_s0 + $0xcc4] ss:$16 sps:$4 sm:$0xff]   ;;  %v4894_v56 = vld [vmem:[%s6440_s0 + $0xccc] ss:$16 sps:$4 sm:$0xff]  }
 0x15f   :  { %2981 = vmatpush1.bf16.msra.mxu0 %v4790_v57  ;;  %3352 = vmatpush1.bf16.msra.mxu1 %v4793_v58  ;;  %v4889_v57 = vld [vmem:[%s6440_s0 + $0xcc0] ss:$16 sps:$4 sm:$0xff]   ;;  %v4892_v58 = vld [vmem:[%s6440_s0 + $0xcc8] ss:$16 sps:$4 sm:$0xff]  }
 0x160   :  { %2982 = vmatprep.subr.bf16.mxu0 %v4798_v59  ;;  %3353 = vmatprep.subr.bf16.mxu1 %v4801_v60  ;;  %v4897_v59 = vld [vmem:[%s6440_s0 + $0xce4] ss:$16 sps:$4 sm:$0xff]   ;;  %v4900_v60 = vld [vmem:[%s6440_s0 + $0xcec] ss:$16 sps:$4 sm:$0xff]  }
 0x163   :  { %2983 = vmatpush1.bf16.msra.mxu0 %v4796_v61  ;;  %3354 = vmatpush1.bf16.msra.mxu1 %v4799_v62  ;;  %v4895_v61 = vld [vmem:[%s6440_s0 + $0xce0] ss:$16 sps:$4 sm:$0xff]   ;;  %v4898_v62 = vld [vmem:[%s6440_s0 + $0xce8] ss:$16 sps:$4 sm:$0xff]  }
 0x164   :  { %2984 = vmatprep.subr.bf16.mxu0 %v4804_v63  ;;  %3355 = vmatprep.subr.bf16.mxu1 %v4807_v0  ;;  %v4901_v63 = vld [vmem:[%s6441_s1 + $0x30] ss:$52 sps:$4 sm:$0xff]   ;;  %v4902_v0 = vld [vmem:[%s6441_s1 + $0x98] ss:$52 sps:$4 sm:$0xff]  }
 0x167   :  { %2985 = vmatpush1.bf16.msra.mxu0 %v4802_v1  ;;  %3356 = vmatpush1.bf16.msra.mxu1 %v4805_v2 }
 0x168   :  { %2986 = vmatprep.subr.bf16.mxu0 %v4810_v3  ;;  %3357 = vmatprep.subr.bf16.mxu1 %v4813_v4 }
 0x16b   :  { %2987 = vmatpush1.bf16.msra.mxu0 %v4808_v5  ;;  %3358 = vmatpush1.bf16.msra.mxu1 %v4811_v6 }
 0x16c   :  { %2988 = vmatprep.subr.bf16.mxu0 %v4816_v7  ;;  %3359 = vmatprep.subr.bf16.mxu1 %v4819_v8 }
 0x16f   :  { %2989 = vmatpush1.bf16.msra.mxu0 %v4814_v9  ;;  %3360 = vmatpush1.bf16.msra.mxu1 %v4817_v10 }
 0x170   :  { %2990 = vmatprep.subr.bf16.mxu0 %v4822_v11  ;;  %3361 = vmatprep.subr.bf16.mxu1 %v4825_v12 }
 0x173   :  { %2991 = vmatpush1.bf16.msra.mxu0 %v4820_v13  ;;  %3362 = vmatpush1.bf16.msra.mxu1 %v4823_v14 }
 0x174   :  { %2992 = vmatprep.subr.bf16.mxu0 %v4828_v15  ;;  %3363 = vmatprep.subr.bf16.mxu1 %v4831_v16  ;;  %v472_v1 = vpop.permute.xlu0 %471 }
 0x177   :  { %2993 = vmatpush1.bf16.msra.mxu0 %v4826_v17  ;;  %3364 = vmatpush1.bf16.msra.mxu1 %v4829_v18 }
 0x178   :  { %2994 = vmatprep.subr.bf16.mxu0 %v4836_v19  ;;  %3365 = vmatprep.subr.bf16.mxu1 %v4839_v20  ;;  %v482_v3 = vpop.permute.xlu1 %481 }
 0x179   :  { %v477_v2 = vpop.permute.xlu0 %476 }
 0x17b   :  { %2995 = vmatpush1.bf16.msra.mxu0 %v4834_v21  ;;  %3366 = vmatpush1.bf16.msra.mxu1 %v4837_v22 }
 0x17c   :  { %2996 = vmatprep.subr.bf16.mxu0 %v4843_v23  ;;  %3367 = vmatprep.subr.bf16.mxu1 %v4846_v24  ;;  %v487_v21 = vpop.permute.xlu1 %486 }
 0x17f   :  { %2997 = vmatpush1.bf16.msra.mxu0 %v4841_v25  ;;  %3368 = vmatpush1.bf16.msra.mxu1 %v4844_v26 }
 0x180   :  { %3019 = vmatprep.subr.bf16.mxu0 %v4852_v27  ;;  %3390 = vmatprep.subr.bf16.mxu1 %v4855_v28 }
 0x182   :  { %2999 = vmatmul.mubr.bf16.vlgmr.msra.gmra.mrb[0].mxu0 %v4847_v29  ;;  %3370 = vmatmul.mubr.bf16.vlgmr.msra.gmra.mrb[0].mxu1 %v4847_v29 }
 0x183   :  { %3020 = vmatpush1.bf16.msra.mxu0 %v4850_v30  ;;  %3391 = vmatpush1.bf16.msra.mxu1 %v4853_v31 }
 0x184   :  { %3021 = vmatprep.subr.bf16.mxu0 %v4858_v32  ;;  %3392 = vmatprep.subr.bf16.mxu1 %v4861_v33 }
 0x185   :  { %3008 = vmatprep.mubr.bf16.mxu0 %v4886_v34  ;;  %3379 = vmatprep.mubr.bf16.mxu1 %v4886_v34 }
 0x187   :  { %3022 = vmatpush1.bf16.msra.mxu0 %v4856_v35  ;;  %3393 = vmatpush1.bf16.msra.mxu1 %v4859_v36 }
 0x188   :  { %3023 = vmatprep.subr.bf16.mxu0 %v4864_v37  ;;  %3394 = vmatprep.subr.bf16.mxu1 %v4867_v38 }
 0x18a   :  { %3009 = vmatmul.mubr.bf16.gmra.mrb[4].mxu0 %v4888_v39  ;;  %3380 = vmatmul.mubr.bf16.gmra.mrb[4].mxu1 %v4888_v39 }
 0x18b   :  { %3024 = vmatpush1.bf16.msra.mxu0 %v4862_v40  ;;  %3395 = vmatpush1.bf16.msra.mxu1 %v4865_v41 }
 0x18c   :  { %3025 = vmatprep.subr.bf16.mxu0 %v4870_v42  ;;  %3396 = vmatprep.subr.bf16.mxu1 %v4873_v43 }
 0x18d   :  { %3051 = vmatprep.mubr.bf16.mxu0 %v4911_v55  ;;  %3422 = vmatprep.mubr.bf16.mxu1 %v4911_v55 }
 0x18f   :  { %3026 = vmatpush1.bf16.msra.mxu0 %v4868_v44  ;;  %3397 = vmatpush1.bf16.msra.mxu1 %v4871_v45 }
 0x190   :  { %3027 = vmatprep.subr.bf16.mxu0 %v4876_v46  ;;  %3398 = vmatprep.subr.bf16.mxu1 %v4879_v47 }
 0x193   :  { %3028 = vmatpush1.bf16.msra.mxu0 %v4874_v48  ;;  %3399 = vmatpush1.bf16.msra.mxu1 %v4877_v49 }
 0x194   :  { %3029 = vmatprep.subr.bf16.mxu0 %v4882_v50  ;;  %3400 = vmatprep.subr.bf16.mxu1 %v4885_v51 }
 0x197   :  { %3030 = vmatpush1.bf16.msra.mxu0 %v4880_v52  ;;  %3401 = vmatpush1.bf16.msra.mxu1 %v4883_v53 }
 0x198   :  { %3031 = vmatprep.subr.bf16.mxu0 %v4891_v54  ;;  %3402 = vmatprep.subr.bf16.mxu1 %v4894_v56 }
 0x19b   :  { %3032 = vmatpush1.bf16.msra.mxu0 %v4889_v57  ;;  %3403 = vmatpush1.bf16.msra.mxu1 %v4892_v58 }
 0x19c   :  { %3033 = vmatprep.subr.bf16.mxu0 %v4897_v59  ;;  %3404 = vmatprep.subr.bf16.mxu1 %v4900_v60 }
 0x19f   :  { %3034 = vmatpush1.bf16.msra.mxu0 %v4895_v61  ;;  %3405 = vmatpush1.bf16.msra.mxu1 %v4898_v62 }
 0x1a2   :  { %3052 = vmatmul.mubr.bf16.vlgmr.msra.gmra.mrb[0].mxu0 %v4901_v63  ;;  %3423 = vmatmul.mubr.bf16.vlgmr.msra.gmra.mrb[0].mxu1 %v4901_v63 }
 0x1a3   :  { %3061 = vmatprep.mubr.bf16.mxu0 %v4911_v55  ;;  %3432 = vmatprep.mubr.bf16.mxu1 %v4911_v55 }
 0x1aa   :  { %3062 = vmatmul.mubr.bf16.gmra.mrb[4].mxu0 %v4902_v0  ;;  %3433 = vmatmul.mubr.bf16.gmra.mrb[4].mxu1 %v4902_v0 }
 0x275   :  { %v3053_v4 = vpop.f32.mrb[0].mxu0  ;;  %v3424_v5 = vpop.f32.mrb[0].mxu1 }
 0x276   :  { %v4126_v6 = vadd.f32 %v3053_v4, %v472_v1  ;;  %v3055_v7 = vpop.f32.mrb[1].mxu0  ;;  %v3426_v8 = vpop.f32.mrb[1].mxu1  ;;  %v4134_v14 = vadd.f32 %v3424_v5, %v472_v1 }
 0x277   :  { %v4127_v9 = vadd.f32 %v3055_v7, %v472_v1  ;;  %v3057_v10 = vpop.f32.mrb[2].mxu0  ;;  %v3428_v11 = vpop.f32.mrb[2].mxu1  ;;  %v4135_v17 = vadd.f32 %v3426_v8, %v472_v1 }
 0x278   :  { %v4128_v12 = vadd.f32 %v3057_v10, %v477_v2  ;;  %v3059_v13 = vpop.f32.mrb[3].mxu0  ;;  %v3430_v55 = vpop.f32.mrb[3].mxu1  ;;  %v4136_v18 = vadd.f32 %v3428_v11, %v477_v2 }
 0x279   :  { %v3443_v15 = vadd.f32 %v4127_v9, %v4126_v6  ;;  %v4129_v16 = vadd.f32 %v3059_v13, %v477_v2  ;;  %v4137_v22 = vadd.f32 %v3430_v55, %v477_v2 }
 0x27b   :  { %v3448_v19 = vadd.f32 %v4129_v16, %v4128_v12  ;;  %v3444_v20 = vadd.f32 %v4134_v14, %v3443_v15 }
 0x27d   :  { %v3063_v23 = vpop.f32.mrb[4].mxu0  ;;  %v3434_v24 = vpop.f32.mrb[4].mxu1  ;;  %v3445_v25 = vadd.f32 %v4135_v17, %v3444_v20  ;;  %v3449_v26 = vadd.f32 %v4136_v18, %v3448_v19 }
 0x27e   :  { %v4130_v27 = vadd.f32 %v3063_v23, %v482_v3  ;;  %v3065_v28 = vpop.f32.mrb[5].mxu0  ;;  %v3436_v29 = vpop.f32.mrb[5].mxu1  ;;  %v4138_v37 = vadd.f32 %v3434_v24, %v482_v3 }
 0x27f   :  { %v4131_v30 = vadd.f32 %v3065_v28, %v482_v3  ;;  %v3067_v31 = vpop.f32.mrb[6].mxu0  ;;  %v3438_v32 = vpop.f32.mrb[6].mxu1  ;;  %3446 = vadd.xlane.f32.xlu0 %v3445_v25  ;;  %v3450_v33 = vadd.f32 %v4137_v22, %v3449_v26  ;;  %v4139_v40 = vadd.f32 %v3436_v29, %v482_v3 }
 0x280   :  { %v4132_v34 = vadd.f32 %v3067_v31, %v487_v21  ;;  %v3069_v35 = vpop.f32.mrb[7].mxu0  ;;  %v3440_v36 = vpop.f32.mrb[7].mxu1  ;;  %v4140_v41 = vadd.f32 %v3438_v32, %v487_v21 }
 0x281   :  { %v3453_v38 = vadd.f32 %v4131_v30, %v4130_v27  ;;  %v4133_v39 = vadd.f32 %v3069_v35, %v487_v21  ;;  %3451 = vadd.xlane.f32.xlu1 %v3450_v33  ;;  %v4141_v46 = vadd.f32 %v3440_v36, %v487_v21  ;;  %v3577_v36 = vld [vmem:[%s6443_s4 + $0x8] sm:$0xff] }
 0x283   :  { %v3458_v42 = vadd.f32 %v4133_v39, %v4132_v34  ;;  %v3454_v43 = vadd.f32 %v4138_v37, %v3453_v38 }
 0x285   :  { %v3455_v44 = vadd.f32 %v4139_v40, %v3454_v43  ;;  %v3459_v45 = vadd.f32 %v4140_v41, %v3458_v42 }
 0x287   :  { %3456 = vadd.xlane.f32.xlu0 %v3455_v44  ;;  %v3460_v47 = vadd.f32 %v4141_v46, %v3459_v45 }
 0x28b   :  { %3461 = vadd.xlane.f32.xlu0 %v3460_v47 }
 0x30c   :  { %v3447_v48 = vpop.xlane.xlu0 %3446 }
 0x30d   :  { %v3464_v49 = vmul.f32 0.001953125, %v3447_v48 }
 0x30e   :  { %v3452_v50 = vpop.xlane.xlu1 %3451 }
 0x30f   :  { %v6286_v51 = vsub.f32 %v4126_v6, %v3464_v49  ;;  %v6288_v52 = vsub.f32 %v4127_v9, %v3464_v49  ;;  %v3465_v53 = vmul.f32 0.001953125, %v3452_v50  ;;  %v6290_v54 = vsub.f32 %v4134_v14, %v3464_v49 }
 0x310   :  { %v6292_v56 = vsub.f32 %v4135_v17, %v3464_v49  ;;  %v3532_v49 = vld [vmem:[%s6444_s3] sm:$0xff] }
 0x311   :  { %v6294_v57 = vsub.f32 %v4128_v12, %v3465_v53  ;;  %v6296_v58 = vsub.f32 %v4129_v16, %v3465_v53  ;;  %v3484_v59 = vmul.f32 %v6286_v51, %v6286_v51  ;;  %v3485_v60 = vmul.f32 %v6288_v52, %v6288_v52 }
 0x312   :  { %v6302_v61 = vsub.f32 %v4136_v18, %v3465_v53  ;;  %v6304_v62 = vsub.f32 %v4137_v22, %v3465_v53  ;;  %v3486_v63 = vmul.f32 %v6290_v54, %v6290_v54  ;;  %v3487_v4 = vmul.f32 %v6292_v56, %v6292_v56 }
 0x313   :  { %v3500_v0 = vadd.f32 %v3485_v60, %v3484_v59  ;;  %v3488_v1 = vmul.f32 %v6294_v57, %v6294_v57  ;;  %v3489_v2 = vmul.f32 %v6296_v58, %v6296_v58  ;;  %v3533_v59 = vld [vmem:[%s6444_s3 + $0x8] sm:$0xff] }
 0x314   :  { %v3457_v3 = vpop.xlane.xlu0 %3456  ;;  %v3490_v7 = vmul.f32 %v6302_v61, %v6302_v61  ;;  %v3491_v9 = vmul.f32 %v6304_v62, %v6304_v62 }
 0x315   :  { %v3466_v5 = vmul.f32 0.001953125, %v3457_v3  ;;  %v3501_v6 = vadd.f32 %v3500_v0, %v3486_v63  ;;  %v3505_v8 = vadd.f32 %v3489_v2, %v3488_v1  ;;  %v3578_v1 = vld [vmem:[%s6443_s4 + $0x10] sm:$0xff] }
 0x316   :  { %v3534_v2 = vld [vmem:[%s6444_s3 + $0x10] sm:$0xff] }
 0x317   :  { %v6318_v10 = vsub.f32 %v4130_v27, %v3466_v5  ;;  %v6320_v11 = vsub.f32 %v4131_v30, %v3466_v5  ;;  %v3502_v12 = vadd.f32 %v3501_v6, %v3487_v4  ;;  %v3506_v13 = vadd.f32 %v3505_v8, %v3490_v7  ;;  %v3579_v8 = vld [vmem:[%s6443_s4 + $0x18] sm:$0xff] }
 0x318   :  { %v3462_v55 = vpop.xlane.xlu0 %3461  ;;  %v6322_v14 = vsub.f32 %v4138_v37, %v3466_v5  ;;  %v6324_v15 = vsub.f32 %v4139_v40, %v3466_v5  ;;  %v3576_v37 = vld [vmem:[%s6443_s4] sm:$0xff]  ;;  %v3535_v5 = vld [vmem:[%s6444_s3 + $0x18] sm:$0xff] }
 0x319   :  { %v3467_v16 = vmul.f32 0.001953125, %v3462_v55  ;;  %3503 = vadd.xlane.f32.xlu1 %v3502_v12  ;;  %v3507_v17 = vadd.f32 %v3506_v13, %v3491_v9  ;;  %v3492_v18 = vmul.f32 %v6318_v10, %v6318_v10  ;;  %v3493_v19 = vmul.f32 %v6320_v11, %v6320_v11 }
 0x31a   :  { %v3494_v20 = vmul.f32 %v6322_v14, %v6322_v14  ;;  %v3495_v25 = vmul.f32 %v6324_v15, %v6324_v15 }
 0x31b   :  { %v6332_v21 = vsub.f32 %v4132_v34, %v3467_v16  ;;  %v6334_v22 = vsub.f32 %v4133_v39, %v3467_v16  ;;  %3508 = vadd.xlane.f32.xlu0 %v3507_v17  ;;  %v3510_v23 = vadd.f32 %v3493_v19, %v3492_v18  ;;  %v6336_v24 = vsub.f32 %v4140_v41, %v3467_v16 }
 0x31c   :  { %v6340_v27 = vsub.f32 %v4141_v46, %v3467_v16 }
 0x31d   :  { %v3511_v26 = vadd.f32 %v3510_v23, %v3494_v20  ;;  %v3496_v28 = vmul.f32 %v6332_v21, %v6332_v21  ;;  %v3497_v29 = vmul.f32 %v6334_v22, %v6334_v22  ;;  %v3498_v31 = vmul.f32 %v6336_v24, %v6336_v24 }
 0x31e   :  { %v3499_v33 = vmul.f32 %v6340_v27, %v6340_v27 }
 0x31f   :  { %v3512_v30 = vadd.f32 %v3511_v26, %v3495_v25  ;;  %v3515_v32 = vadd.f32 %v3497_v29, %v3496_v28 }
 0x321   :  { %3513 = vadd.xlane.f32.xlu1 %v3512_v30  ;;  %v3516_v34 = vadd.f32 %v3515_v32, %v3498_v31 }
 0x323   :  { %v3517_v35 = vadd.f32 %v3516_v34, %v3499_v33 }
 0x325   :  { %3518 = vadd.xlane.f32.xlu0 %v3517_v35 }
 0x332   :  { %3587 = vperm.xlu1 %4240, %v3577_v36  }
 0x33b   :  { %3582 = vperm.xlu0 %4239, %v3576_v37  }
 0x3a6   :  { %v3504_v38 = vpop.xlane.xlu1 %3503 }
 0x3a7   :  { %v3520_v39 = vmul.f32 0.001953125, %v3504_v38 }
 0x3a8   :  { %v3509_v40 = vpop.xlane.xlu0 %3508 }
 0x3a9   :  { %v3524_v41 = vadd.f32 1e-05, %v3520_v39  ;;  %v3521_v42 = vmul.f32 0.001953125, %v3509_v40 }
 0x3ab   :  { %4903 = vrsqrt.f32 %v3524_v41  ;;  %v3525_v43 = vadd.f32 1e-05, %v3521_v42 }
 0x3ad   :  { %4905 = vrsqrt.f32 %v3525_v43 }
 0x3ae   :  { %v3514_v44 = vpop.xlane.xlu1 %3513 }
 0x3af   :  { %v3522_v45 = vmul.f32 0.001953125, %v3514_v44 }
 0x3b1   :  { %v3526_v46 = vadd.f32 1e-05, %v3522_v45 }
 0x3b2   :  { %v3519_v47 = vpop.xlane.xlu0 %3518  ;;  %v3588_v9 = vpop.permute.xlu1 %3587 }
 0x3b3   :  { %4907 = vrsqrt.f32 %v3526_v46  ;;  %v3523_v48 = vmul.f32 0.001953125, %v3519_v47 }
 0x3b5   :  { %v4904_v50 = vpop.eup %4903  ;;  %v3527_v53 = vadd.f32 1e-05, %v3523_v48 }
 0x3b6   :  { %v3536_v60 = vmul.f32 %v4904_v50, %v3532_v49 }
 0x3b7   :  { %v4906_v63 = vpop.eup %4905  ;;  %4909 = vrsqrt.f32 %v3527_v53 }
 0x3b8   :  { %3542 = vperm.xlu1 %4240, %v3536_v60   ;;  %v3537_v0 = vmul.f32 %v4906_v63, %v3533_v59 }
 0x3ba   :  { %3547 = vperm.xlu0 %4239, %v3537_v0   ;;  %v3583_v12 = vpop.permute.xlu0 %3582 }
 0x3bd   :  { %v4908_v3 = vpop.eup %4907 }
 0x3be   :  { %3592 = vperm.xlu0 %4239, %v3578_v1   ;;  %v3538_v4 = vmul.f32 %v4908_v3, %v3534_v2 }
 0x3c0   :  { %3552 = vperm.xlu1 %4240, %v3538_v4  }
 0x3c1   :  { %v4910_v6 = vpop.eup %4909 }
 0x3c2   :  { %v3539_v7 = vmul.f32 %v4910_v6, %v3535_v5 }
 0x3c4   :  { %3557 = vperm.xlu1 %4240, %v3539_v7  }
 0x3c8   :  { %3597 = vperm.xlu1 %4240, %v3579_v8  }
 0x437   :  { %v3543_v13 = vpop.permute.xlu1 %3542 }
 0x438   :  { %v3560_v55 = vmul.f32 %v3543_v13, %v6286_v51  ;;  %v3561_v16 = vmul.f32 %v3543_v13, %v6288_v52  ;;  %v3562_v17 = vmul.f32 %v3543_v13, %v6290_v54  ;;  %v3563_v18 = vmul.f32 %v3543_v13, %v6292_v56 }
 0x439   :  { %v3548_v19 = vpop.permute.xlu0 %3547 }
 0x43a   :  { %v3600_v20 = vadd.f32 %v3583_v12, %v3560_v55  ;;  %v3601_v23 = vadd.f32 %v3583_v12, %v3561_v16  ;;  %v3602_v25 = vadd.f32 %v3583_v12, %v3562_v17  ;;  %v3603_v26 = vadd.f32 %v3583_v12, %v3563_v18 }
 0x43b   :  { %v3564_v28 = vmul.f32 %v3548_v19, %v6294_v57  ;;  %v3565_v29 = vmul.f32 %v3548_v19, %v6296_v58  ;;  %v3566_v30 = vmul.f32 %v3548_v19, %v6302_v61  ;;  %v3567_v31 = vmul.f32 %v3548_v19, %v6304_v62 }
 0x43c   :  { %vm3616_vm0 = vcmp.ge.f32.partialorder %v3600_v20, 0.0  ;;  %vm3617_vm1 = vcmp.ge.f32.partialorder %v3601_v23, 0.0  ;;  %vm3618_vm2 = vcmp.ge.f32.partialorder %v3602_v25, 0.0  ;;  %vm3619_vm3 = vcmp.ge.f32.partialorder %v3603_v26, 0.0 }
 0x43d   :  { %v3632_v51 = vmul.f32 0.01, %v3600_v20  ;;  %v3633_v52 = vmul.f32 0.01, %v3601_v23  ;;  %v3634_v54 = vmul.f32 0.01, %v3602_v25  ;;  %v3604_v56 = vadd.f32 %v3588_v9, %v3564_v28  ;;  %v3593_v42 = vpop.permute.xlu0 %3592 }
 0x43e   :  { %v3635_v32 = vmul.f32 0.01, %v3603_v26  ;;  %v3605_v33 = vadd.f32 %v3588_v9, %v3565_v29  ;;  %v3606_v34 = vadd.f32 %v3588_v9, %v3566_v30  ;;  %v3607_v35 = vadd.f32 %v3588_v9, %v3567_v31 }
 0x43f   :  { %v3648_v36 = vsel %vm3616_vm0, %v3600_v20, %v3632_v51  ;;  %v3649_v57 = vsel %vm3617_vm1, %v3601_v23, %v3633_v52  ;;  %v3650_v37 = vsel %vm3618_vm2, %v3602_v25, %v3634_v54  ;;  %vm3620_vm4 = vcmp.ge.f32.partialorder %v3604_v56, 0.0  ;;  %v3553_v58 = vpop.permute.xlu1 %3552 }
 0x440   :  { %v3651_v61 = vsel %vm3619_vm3, %v3603_v26, %v3635_v32  ;;  %3664 = vst [vmem:[%s6445_s5] sm:$0xff] %v3648_v36  ;;  %3665 = vst [vmem:[%s6445_s5 + $0x8] sm:$0xff] %v3649_v57  ;;  %vm3621_vm5 = vcmp.ge.f32.partialorder %v3605_v33, 0.0  ;;  %vm3622_vm6 = vcmp.ge.f32.partialorder %v3606_v34, 0.0  ;;  %vm3623_vm7 = vcmp.ge.f32.partialorder %v3607_v35, 0.0 }
 0x441   :  { %3666 = vst [vmem:[%s6445_s5 + $0x10] sm:$0xff] %v3650_v37  ;;  %3667 = vst [vmem:[%s6445_s5 + $0x18] sm:$0xff] %v3651_v61  ;;  %v3636_v62 = vmul.f32 0.01, %v3604_v56  ;;  %v3637_v38 = vmul.f32 0.01, %v3605_v33  ;;  %v3568_v40 = vmul.f32 %v3553_v58, %v6318_v10  ;;  %v3569_v43 = vmul.f32 %v3553_v58, %v6320_v11 }
 0x442   :  { %v3638_v39 = vmul.f32 0.01, %v3606_v34  ;;  %v3639_v41 = vmul.f32 0.01, %v3607_v35  ;;  %v3570_v44 = vmul.f32 %v3553_v58, %v6322_v14  ;;  %v3571_v45 = vmul.f32 %v3553_v58, %v6324_v15 }
 0x443   :  { %v3652_v46 = vsel %vm3620_vm4, %v3604_v56, %v3636_v62  ;;  %v3653_v47 = vsel %vm3621_vm5, %v3605_v33, %v3637_v38  ;;  %v3608_v49 = vadd.f32 %v3593_v42, %v3568_v40  ;;  %v3558_v50 = vpop.permute.xlu1 %3557  ;;  %v3609_v10 = vadd.f32 %v3593_v42, %v3569_v43 }
 0x444   :  { %v3654_v48 = vsel %vm3622_vm6, %v3606_v34, %v3638_v39  ;;  %v3655_v53 = vsel %vm3623_vm7, %v3607_v35, %v3639_v41  ;;  %3668 = vst [vmem:[%s6445_s5 + $0x20] sm:$0xff] %v3652_v46  ;;  %3669 = vst [vmem:[%s6445_s5 + $0x28] sm:$0xff] %v3653_v47  ;;  %v3610_v11 = vadd.f32 %v3593_v42, %v3570_v44 }
 0x445   :  { %3670 = vst [vmem:[%s6445_s5 + $0x30] sm:$0xff] %v3654_v48  ;;  %v3611_v14 = vadd.f32 %v3593_v42, %v3571_v45  ;;  %3671 = vst [vmem:[%s6445_s5 + $0x38] sm:$0xff] %v3655_v53  ;;  %vm3624_vm8 = vcmp.ge.f32.partialorder %v3608_v49, 0.0  ;;  %v3640_v15 = vmul.f32 0.01, %v3608_v49  ;;  %v3572_v59 = vmul.f32 %v3558_v50, %v6332_v21 }
 0x446   :  { %v3573_v60 = vmul.f32 %v3558_v50, %v6334_v22  ;;  %vm3625_vm9 = vcmp.ge.f32.partialorder %v3609_v10, 0.0  ;;  %vm3626_vm10 = vcmp.ge.f32.partialorder %v3610_v11, 0.0  ;;  %v3641_v63 = vmul.f32 0.01, %v3609_v10 }
 0x447   :  { %vm3627_vm11 = vcmp.ge.f32.partialorder %v3611_v14, 0.0  ;;  %v3642_v0 = vmul.f32 0.01, %v3610_v11  ;;  %v3643_v1 = vmul.f32 0.01, %v3611_v14  ;;  %v3656_v2 = vsel %vm3624_vm8, %v3608_v49, %v3640_v15  ;;  %v3598_v4 = vpop.permute.xlu1 %3597 }
 0x448   :  { %v3574_v3 = vmul.f32 %v3558_v50, %v6336_v24  ;;  %v3657_v5 = vsel %vm3625_vm9, %v3609_v10, %v3641_v63  ;;  %3672 = vst [vmem:[%s6445_s5 + $0x40] sm:$0xff] %v3656_v2  ;;  %v3575_v6 = vmul.f32 %v3558_v50, %v6340_v27  ;;  %v3612_v21 = vadd.f32 %v3598_v4, %v3572_v59 }
 0x449   :  { %v3613_v7 = vadd.f32 %v3598_v4, %v3573_v60  ;;  %v3658_v22 = vsel %vm3626_vm10, %v3610_v11, %v3642_v0  ;;  %v3659_v8 = vsel %vm3627_vm11, %v3611_v14, %v3643_v1  ;;  %3673 = vst [vmem:[%s6445_s5 + $0x48] sm:$0xff] %v3657_v5 }
 0x44a   :  { %v3614_v9 = vadd.f32 %v3598_v4, %v3574_v3  ;;  %3674 = vst [vmem:[%s6445_s5 + $0x50] sm:$0xff] %v3658_v22  ;;  %3675 = vst [vmem:[%s6445_s5 + $0x58] sm:$0xff] %v3659_v8  ;;  %v3615_v24 = vadd.f32 %v3598_v4, %v3575_v6  ;;  %vm3628_vm12 = vcmp.ge.f32.partialorder %v3612_v21, 0.0  ;;  %v3644_v27 = vmul.f32 0.01, %v3612_v21 }
 0x44b   :  { %vm3629_vm13 = vcmp.ge.f32.partialorder %v3613_v7, 0.0  ;;  %v3645_v12 = vmul.f32 0.01, %v3613_v7 }
 0x44c   :  { %vm3630_vm14 = vcmp.ge.f32.partialorder %v3614_v9, 0.0  ;;  %v3646_v13 = vmul.f32 0.01, %v3614_v9  ;;  %vm3631_vm15 = vcmp.ge.f32.partialorder %v3615_v24, 0.0  ;;  %v3647_v55 = vmul.f32 0.01, %v3615_v24 }
 0x44d   :  { %v3660_v16 = vsel %vm3628_vm12, %v3612_v21, %v3644_v27  ;;  %v3661_v17 = vsel %vm3629_vm13, %v3613_v7, %v3645_v12 }
 0x44e   :  { %v3662_v18 = vsel %vm3630_vm14, %v3614_v9, %v3646_v13  ;;  %3676 = vst [vmem:[%s6445_s5 + $0x60] sm:$0xff] %v3660_v16  ;;  %v3663_v19 = vsel %vm3631_vm15, %v3615_v24, %v3647_v55  ;;  %3677 = vst [vmem:[%s6445_s5 + $0x68] sm:$0xff] %v3661_v17 }
 0x44f   :  { %3678 = vst [vmem:[%s6445_s5 + $0x70] sm:$0xff] %v3662_v18  ;;  %3679 = vst [vmem:[%s6445_s5 + $0x78] sm:$0xff] %v3663_v19 }

// kernel: deepfuse_forward.10
= control target key start
LH: loop header
LB: loop body
LE: loop exit
PB: predicated region body
PF: predicated region fallthrough
CT: control target
= control target key end

     0   :  { %s3274_s0 = inlined_call_operand.vmem [shape: bf16[1,896,512], index: 0, kind: input, shape index: {}]   ;;  %s3275_s1 = inlined_call_operand.vmem [shape: bf16[16,896], index: 1, kind: input, shape index: {}]   ;;  %s3276_s2 = inlined_call_operand.vmem [shape: f32[16,1], index: 2, kind: input, shape index: {}]   ;;  %s3277_s4 = inlined_call_operand.vmem [shape: f32[16,1], index: 4, kind: input, shape index: {}]   ;;  %s3278_s3 = inlined_call_operand.vmem [shape: f32[16,1], index: 3, kind: input, shape index: {}]   ;;  %s3279_s5 = inlined_call_operand.vmem [shape: f32[1,16,512], index: 5, kind: output, shape index: {}]  }
   0x1   :  { %v2154_v0 = vld [vmem:[%s3274_s0 + $0x4] ss:$16 sps:$4 sm:$0xff]   ;;  %v2156_v1 = vld [vmem:[%s3274_s0 + $0xc] ss:$16 sps:$4 sm:$0xff]   ;;  %v2158_v2 = vld [vmem:[%s3274_s0] ss:$16 sps:$4 sm:$0xff]  }
   0x2   :  { %1421 = vmatprep.subr.bf16.mxu0 %v2154_v0  ;;  %v2159_v3 = vld [vmem:[%s3274_s0 + $0x8] ss:$16 sps:$4 sm:$0xff]   ;;  %1593 = vmatprep.subr.bf16.mxu1 %v2156_v1  ;;  %v2160_v4 = vld [vmem:[%s3274_s0 + $0x24] ss:$16 sps:$4 sm:$0xff]   ;;  %v2162_v5 = vld [vmem:[%s3274_s0 + $0x2c] ss:$16 sps:$4 sm:$0xff]  }
   0x3   :  { %1422 = vmatpush1.bf16.msra.mxu0 %v2158_v2  ;;  %1594 = vmatpush1.bf16.msra.mxu1 %v2159_v3  ;;  %v2164_v6 = vld [vmem:[%s3274_s0 + $0x20] ss:$16 sps:$4 sm:$0xff]   ;;  %v2165_v7 = vld [vmem:[%s3274_s0 + $0x28] ss:$16 sps:$4 sm:$0xff]   ;;  %v2166_v8 = vld [vmem:[%s3274_s0 + $0x44] ss:$16 sps:$4 sm:$0xff]  }
   0x4   :  { %1423 = vmatprep.subr.bf16.mxu0 %v2160_v4  ;;  %1595 = vmatprep.subr.bf16.mxu1 %v2162_v5  ;;  %v2168_v9 = vld [vmem:[%s3274_s0 + $0x4c] ss:$16 sps:$4 sm:$0xff]   ;;  %v2170_v10 = vld [vmem:[%s3274_s0 + $0x40] ss:$16 sps:$4 sm:$0xff]   ;;  %v2171_v11 = vld [vmem:[%s3274_s0 + $0x48] ss:$16 sps:$4 sm:$0xff]  }
   0x5   :  { %v2172_v12 = vld [vmem:[%s3274_s0 + $0x64] ss:$16 sps:$4 sm:$0xff]   ;;  %v2174_v13 = vld [vmem:[%s3274_s0 + $0x6c] ss:$16 sps:$4 sm:$0xff]   ;;  %v2176_v14 = vld [vmem:[%s3274_s0 + $0x60] ss:$16 sps:$4 sm:$0xff]  }
   0x6   :  { %v2177_v15 = vld [vmem:[%s3274_s0 + $0x68] ss:$16 sps:$4 sm:$0xff]   ;;  %v2178_v16 = vld [vmem:[%s3274_s0 + $0x84] ss:$16 sps:$4 sm:$0xff]   ;;  %v2180_v17 = vld [vmem:[%s3274_s0 + $0x8c] ss:$16 sps:$4 sm:$0xff]  }
   0x7   :  { %1424 = vmatpush1.bf16.msra.mxu0 %v2164_v6  ;;  %1596 = vmatpush1.bf16.msra.mxu1 %v2165_v7  ;;  %v2182_v18 = vld [vmem:[%s3274_s0 + $0x80] ss:$16 sps:$4 sm:$0xff]   ;;  %v2183_v19 = vld [vmem:[%s3274_s0 + $0x88] ss:$16 sps:$4 sm:$0xff]   ;;  %v2184_v20 = vld [vmem:[%s3274_s0 + $0xa4] ss:$16 sps:$4 sm:$0xff]  }
   0x8   :  { %1425 = vmatprep.subr.bf16.mxu0 %v2166_v8  ;;  %1597 = vmatprep.subr.bf16.mxu1 %v2168_v9  ;;  %v2186_v21 = vld [vmem:[%s3274_s0 + $0xac] ss:$16 sps:$4 sm:$0xff]   ;;  %v2188_v22 = vld [vmem:[%s3274_s0 + $0xa0] ss:$16 sps:$4 sm:$0xff]   ;;  %v2189_v23 = vld [vmem:[%s3274_s0 + $0xa8] ss:$16 sps:$4 sm:$0xff]  }
   0x9   :  { %v2190_v24 = vld [vmem:[%s3274_s0 + $0xc4] ss:$16 sps:$4 sm:$0xff]   ;;  %v2192_v25 = vld [vmem:[%s3274_s0 + $0xcc] ss:$16 sps:$4 sm:$0xff]   ;;  %v2194_v26 = vld [vmem:[%s3274_s0 + $0xc0] ss:$16 sps:$4 sm:$0xff]  }
   0xa   :  { %v2195_v27 = vld [vmem:[%s3274_s0 + $0xc8] ss:$16 sps:$4 sm:$0xff]   ;;  %v2196_v28 = vld [vmem:[%s3274_s0 + $0xe4] ss:$16 sps:$4 sm:$0xff]   ;;  %v2198_v29 = vld [vmem:[%s3274_s0 + $0xec] ss:$16 sps:$4 sm:$0xff]  }
   0xb   :  { %1426 = vmatpush1.bf16.msra.mxu0 %v2170_v10  ;;  %1598 = vmatpush1.bf16.msra.mxu1 %v2171_v11  ;;  %v2200_v30 = vld [vmem:[%s3274_s0 + $0xe0] ss:$16 sps:$4 sm:$0xff]   ;;  %v2201_v31 = vld [vmem:[%s3274_s0 + $0xe8] ss:$16 sps:$4 sm:$0xff]   ;;  %v2202_v32 = vld [vmem:[%s3274_s0 + $0x104] ss:$16 sps:$4 sm:$0xff]  }
   0xc   :  { %1427 = vmatprep.subr.bf16.mxu0 %v2172_v12  ;;  %1599 = vmatprep.subr.bf16.mxu1 %v2174_v13  ;;  %v2204_v33 = vld [vmem:[%s3274_s0 + $0x10c] ss:$16 sps:$4 sm:$0xff]   ;;  %v2206_v34 = vld [vmem:[%s3274_s0 + $0x100] ss:$16 sps:$4 sm:$0xff]   ;;  %v2207_v35 = vld [vmem:[%s3274_s0 + $0x108] ss:$16 sps:$4 sm:$0xff]  }
   0xd   :  { %v2208_v36 = vld [vmem:[%s3274_s0 + $0x124] ss:$16 sps:$4 sm:$0xff]   ;;  %v2210_v37 = vld [vmem:[%s3274_s0 + $0x12c] ss:$16 sps:$4 sm:$0xff]   ;;  %v2212_v38 = vld [vmem:[%s3274_s0 + $0x120] ss:$16 sps:$4 sm:$0xff]  }
   0xe   :  { %v2213_v39 = vld [vmem:[%s3274_s0 + $0x128] ss:$16 sps:$4 sm:$0xff]   ;;  %v2214_v40 = vld [vmem:[%s3274_s0 + $0x144] ss:$16 sps:$4 sm:$0xff]   ;;  %v2216_v41 = vld [vmem:[%s3274_s0 + $0x14c] ss:$16 sps:$4 sm:$0xff]  }
   0xf   :  { %1428 = vmatpush1.bf16.msra.mxu0 %v2176_v14  ;;  %1600 = vmatpush1.bf16.msra.mxu1 %v2177_v15  ;;  %v2218_v42 = vld [vmem:[%s3274_s0 + $0x140] ss:$16 sps:$4 sm:$0xff]   ;;  %v2219_v43 = vld [vmem:[%s3274_s0 + $0x148] ss:$16 sps:$4 sm:$0xff]   ;;  %v2220_v44 = vld [vmem:[%s3274_s0 + $0x164] ss:$16 sps:$4 sm:$0xff]  }
  0x10   :  { %1429 = vmatprep.subr.bf16.mxu0 %v2178_v16  ;;  %1601 = vmatprep.subr.bf16.mxu1 %v2180_v17  ;;  %v2222_v45 = vld [vmem:[%s3274_s0 + $0x16c] ss:$16 sps:$4 sm:$0xff]   ;;  %v2224_v46 = vld [vmem:[%s3274_s0 + $0x160] ss:$16 sps:$4 sm:$0xff]   ;;  %v2225_v47 = vld [vmem:[%s3274_s0 + $0x168] ss:$16 sps:$4 sm:$0xff]  }
  0x11   :  { %v2252_v48 = vld [vmem:[%s3275_s1 + $0x4] ss:$28 sps:$4 sm:$0xff]   ;;  %v2228_v50 = vld [vmem:[%s3274_s0 + $0x18c] ss:$16 sps:$4 sm:$0xff]   ;;  %v2231_v52 = vld [vmem:[%s3274_s0 + $0x188] ss:$16 sps:$4 sm:$0xff]  }
  0x12   :  { %v2226_v49 = vld [vmem:[%s3274_s0 + $0x184] ss:$16 sps:$4 sm:$0xff]   ;;  %1453 = vmatprep.mubr.bf16.mxu0 %v2252_v48  ;;  %1625 = vmatprep.mubr.bf16.mxu1 %v2252_v48  ;;  %v2230_v51 = vld [vmem:[%s3274_s0 + $0x180] ss:$16 sps:$4 sm:$0xff]   ;;  %v2234_v54 = vld [vmem:[%s3274_s0 + $0x1ac] ss:$16 sps:$4 sm:$0xff]  }
  0x13   :  { %1430 = vmatpush1.bf16.msra.mxu0 %v2182_v18  ;;  %1602 = vmatpush1.bf16.msra.mxu1 %v2183_v19  ;;  %v2232_v53 = vld [vmem:[%s3274_s0 + $0x1a4] ss:$16 sps:$4 sm:$0xff]   ;;  %v2236_v55 = vld [vmem:[%s3274_s0 + $0x1a0] ss:$16 sps:$4 sm:$0xff]   ;;  %v2237_v56 = vld [vmem:[%s3274_s0 + $0x1a8] ss:$16 sps:$4 sm:$0xff]  }
  0x14   :  { %1431 = vmatprep.subr.bf16.mxu0 %v2184_v20  ;;  %1603 = vmatprep.subr.bf16.mxu1 %v2186_v21  ;;  %v2238_v57 = vld [vmem:[%s3274_s0 + $0x1c4] ss:$16 sps:$4 sm:$0xff]   ;;  %v2240_v58 = vld [vmem:[%s3274_s0 + $0x1cc] ss:$16 sps:$4 sm:$0xff]   ;;  %v2242_v59 = vld [vmem:[%s3274_s0 + $0x1c0] ss:$16 sps:$4 sm:$0xff]  }
  0x15   :  { %v2243_v60 = vld [vmem:[%s3274_s0 + $0x1c8] ss:$16 sps:$4 sm:$0xff]   ;;  %v2244_v61 = vld [vmem:[%s3274_s0 + $0x1e4] ss:$16 sps:$4 sm:$0xff]   ;;  %v2246_v62 = vld [vmem:[%s3274_s0 + $0x1ec] ss:$16 sps:$4 sm:$0xff]  }
  0x16   :  { %v2248_v63 = vld [vmem:[%s3274_s0 + $0x1e0] ss:$16 sps:$4 sm:$0xff]   ;;  %v2249_v0 = vld [vmem:[%s3274_s0 + $0x1e8] ss:$16 sps:$4 sm:$0xff]   ;;  %v2255_v1 = vld [vmem:[%s3274_s0 + $0x204] ss:$16 sps:$4 sm:$0xff]  }
  0x17   :  { %1432 = vmatpush1.bf16.msra.mxu0 %v2188_v22  ;;  %1604 = vmatpush1.bf16.msra.mxu1 %v2189_v23  ;;  %v2258_v2 = vld [vmem:[%s3274_s0 + $0x20c] ss:$16 sps:$4 sm:$0xff]   ;;  %v2253_v4 = vld [vmem:[%s3274_s0 + $0x200] ss:$16 sps:$4 sm:$0xff]   ;;  %v2256_v5 = vld [vmem:[%s3274_s0 + $0x208] ss:$16 sps:$4 sm:$0xff]  }
  0x18   :  { %1433 = vmatprep.subr.bf16.mxu0 %v2190_v24  ;;  %1605 = vmatprep.subr.bf16.mxu1 %v2192_v25  ;;  %v2250_v3 = vld [vmem:[%s3275_s1] ss:$28 sps:$4 sm:$0xff]   ;;  %v2261_v6 = vld [vmem:[%s3274_s0 + $0x224] ss:$16 sps:$4 sm:$0xff]   ;;  %v2262_v9 = vld [vmem:[%s3274_s0 + $0x228] ss:$16 sps:$4 sm:$0xff]  }
  0x19   :  { %v2264_v7 = vld [vmem:[%s3274_s0 + $0x22c] ss:$16 sps:$4 sm:$0xff]   ;;  %v2259_v8 = vld [vmem:[%s3274_s0 + $0x220] ss:$16 sps:$4 sm:$0xff]   ;;  %v2267_v10 = vld [vmem:[%s3274_s0 + $0x244] ss:$16 sps:$4 sm:$0xff]  }
  0x1a   :  { %v2270_v11 = vld [vmem:[%s3274_s0 + $0x24c] ss:$16 sps:$4 sm:$0xff]   ;;  %v2265_v12 = vld [vmem:[%s3274_s0 + $0x240] ss:$16 sps:$4 sm:$0xff]   ;;  %v2268_v13 = vld [vmem:[%s3274_s0 + $0x248] ss:$16 sps:$4 sm:$0xff]  }
  0x1b   :  { %1434 = vmatpush1.bf16.msra.mxu0 %v2194_v26  ;;  %1606 = vmatpush1.bf16.msra.mxu1 %v2195_v27  ;;  %v2273_v14 = vld [vmem:[%s3274_s0 + $0x264] ss:$16 sps:$4 sm:$0xff]   ;;  %v2276_v15 = vld [vmem:[%s3274_s0 + $0x26c] ss:$16 sps:$4 sm:$0xff]   ;;  %v2271_v16 = vld [vmem:[%s3274_s0 + $0x260] ss:$16 sps:$4 sm:$0xff]  }
  0x1c   :  { %1435 = vmatprep.subr.bf16.mxu0 %v2196_v28  ;;  %1607 = vmatprep.subr.bf16.mxu1 %v2198_v29  ;;  %v2274_v17 = vld [vmem:[%s3274_s0 + $0x268] ss:$16 sps:$4 sm:$0xff]   ;;  %v2279_v18 = vld [vmem:[%s3274_s0 + $0x284] ss:$16 sps:$4 sm:$0xff]   ;;  %v2282_v19 = vld [vmem:[%s3274_s0 + $0x28c] ss:$16 sps:$4 sm:$0xff]  }
  0x1d   :  { %v2277_v20 = vld [vmem:[%s3274_s0 + $0x280] ss:$16 sps:$4 sm:$0xff]   ;;  %v2280_v21 = vld [vmem:[%s3274_s0 + $0x288] ss:$16 sps:$4 sm:$0xff]   ;;  %v2285_v22 = vld [vmem:[%s3274_s0 + $0x2a4] ss:$16 sps:$4 sm:$0xff]  }
  0x1e   :  { %v2288_v23 = vld [vmem:[%s3274_s0 + $0x2ac] ss:$16 sps:$4 sm:$0xff]   ;;  %v2283_v24 = vld [vmem:[%s3274_s0 + $0x2a0] ss:$16 sps:$4 sm:$0xff]   ;;  %v2286_v25 = vld [vmem:[%s3274_s0 + $0x2a8] ss:$16 sps:$4 sm:$0xff]  }
  0x1f   :  { %1436 = vmatpush1.bf16.msra.mxu0 %v2200_v30  ;;  %1608 = vmatpush1.bf16.msra.mxu1 %v2201_v31  ;;  %v2291_v26 = vld [vmem:[%s3274_s0 + $0x2c4] ss:$16 sps:$4 sm:$0xff]   ;;  %v2294_v27 = vld [vmem:[%s3274_s0 + $0x2cc] ss:$16 sps:$4 sm:$0xff]   ;;  %v2289_v28 = vld [vmem:[%s3274_s0 + $0x2c0] ss:$16 sps:$4 sm:$0xff]  }
  0x20   :  { %1437 = vmatprep.subr.bf16.mxu0 %v2202_v32  ;;  %1609 = vmatprep.subr.bf16.mxu1 %v2204_v33  ;;  %v2292_v29 = vld [vmem:[%s3274_s0 + $0x2c8] ss:$16 sps:$4 sm:$0xff]   ;;  %v2297_v31 = vld [vmem:[%s3274_s0 + $0x2e4] ss:$16 sps:$4 sm:$0xff]   ;;  %v2300_v32 = vld [vmem:[%s3274_s0 + $0x2ec] ss:$16 sps:$4 sm:$0xff]  }
  0x21   :  { %v2351_v30 = vld [vmem:[%s3275_s1 + $0xc] ss:$28 sps:$4 sm:$0xff]   ;;  %v2295_v33 = vld [vmem:[%s3274_s0 + $0x2e0] ss:$16 sps:$4 sm:$0xff]   ;;  %v2321_v48 = vld [vmem:[%s3274_s0 + $0x364] ss:$16 sps:$4 sm:$0xff]  }
  0x23   :  { %1438 = vmatpush1.bf16.msra.mxu0 %v2206_v34  ;;  %1610 = vmatpush1.bf16.msra.mxu1 %v2207_v35  ;;  %v2298_v34 = vld [vmem:[%s3274_s0 + $0x2e8] ss:$16 sps:$4 sm:$0xff]   ;;  %v2303_v35 = vld [vmem:[%s3274_s0 + $0x304] ss:$16 sps:$4 sm:$0xff]  }
  0x24   :  { %1439 = vmatprep.subr.bf16.mxu0 %v2208_v36  ;;  %1611 = vmatprep.subr.bf16.mxu1 %v2210_v37  ;;  %v2306_v36 = vld [vmem:[%s3274_s0 + $0x30c] ss:$16 sps:$4 sm:$0xff]   ;;  %v2301_v37 = vld [vmem:[%s3274_s0 + $0x300] ss:$16 sps:$4 sm:$0xff]  }
  0x27   :  { %1440 = vmatpush1.bf16.msra.mxu0 %v2212_v38  ;;  %1612 = vmatpush1.bf16.msra.mxu1 %v2213_v39  ;;  %v2304_v38 = vld [vmem:[%s3274_s0 + $0x308] ss:$16 sps:$4 sm:$0xff]   ;;  %v2309_v39 = vld [vmem:[%s3274_s0 + $0x324] ss:$16 sps:$4 sm:$0xff]  }
  0x28   :  { %1441 = vmatprep.subr.bf16.mxu0 %v2214_v40  ;;  %1613 = vmatprep.subr.bf16.mxu1 %v2216_v41  ;;  %v2312_v40 = vld [vmem:[%s3274_s0 + $0x32c] ss:$16 sps:$4 sm:$0xff]   ;;  %v2504_v41 = vmov 0  }
  0x29   :  { %2152 = vset.pattern.permute.xlu0 %v2504_v41  ;;  %2153 = vset.pattern.permute.xlu1 %v2504_v41 }
  0x2b   :  { %1442 = vmatpush1.bf16.msra.mxu0 %v2218_v42  ;;  %1614 = vmatpush1.bf16.msra.mxu1 %v2219_v43  ;;  %v2307_v42 = vld [vmem:[%s3274_s0 + $0x320] ss:$16 sps:$4 sm:$0xff]   ;;  %v2310_v43 = vld [vmem:[%s3274_s0 + $0x328] ss:$16 sps:$4 sm:$0xff]  }
  0x2c   :  { %1443 = vmatprep.subr.bf16.mxu0 %v2220_v44  ;;  %1615 = vmatprep.subr.bf16.mxu1 %v2222_v45  ;;  %v2315_v44 = vld [vmem:[%s3274_s0 + $0x344] ss:$16 sps:$4 sm:$0xff]   ;;  %v2318_v45 = vld [vmem:[%s3274_s0 + $0x34c] ss:$16 sps:$4 sm:$0xff]  }
  0x2f   :  { %1444 = vmatpush1.bf16.msra.mxu0 %v2224_v46  ;;  %1616 = vmatpush1.bf16.msra.mxu1 %v2225_v47  ;;  %v2313_v46 = vld [vmem:[%s3274_s0 + $0x340] ss:$16 sps:$4 sm:$0xff]   ;;  %v2316_v47 = vld [vmem:[%s3274_s0 + $0x348] ss:$16 sps:$4 sm:$0xff]  }
  0x30   :  { %1445 = vmatprep.subr.bf16.mxu0 %v2226_v49  ;;  %1617 = vmatprep.subr.bf16.mxu1 %v2228_v50  ;;  %v2324_v49 = vld [vmem:[%s3274_s0 + $0x36c] ss:$16 sps:$4 sm:$0xff]   ;;  %v2319_v50 = vld [vmem:[%s3274_s0 + $0x360] ss:$16 sps:$4 sm:$0xff]  }
  0x33   :  { %1446 = vmatpush1.bf16.msra.mxu0 %v2230_v51  ;;  %1618 = vmatpush1.bf16.msra.mxu1 %v2231_v52  ;;  %v2322_v51 = vld [vmem:[%s3274_s0 + $0x368] ss:$16 sps:$4 sm:$0xff]   ;;  %v2327_v52 = vld [vmem:[%s3274_s0 + $0x384] ss:$16 sps:$4 sm:$0xff]  }
  0x34   :  { %1447 = vmatprep.subr.bf16.mxu0 %v2232_v53  ;;  %1619 = vmatprep.subr.bf16.mxu1 %v2234_v54  ;;  %v2330_v53 = vld [vmem:[%s3274_s0 + $0x38c] ss:$16 sps:$4 sm:$0xff]   ;;  %v2325_v54 = vld [vmem:[%s3274_s0 + $0x380] ss:$16 sps:$4 sm:$0xff]  }
  0x37   :  { %1448 = vmatpush1.bf16.msra.mxu0 %v2236_v55  ;;  %1620 = vmatpush1.bf16.msra.mxu1 %v2237_v56  ;;  %v2328_v55 = vld [vmem:[%s3274_s0 + $0x388] ss:$16 sps:$4 sm:$0xff]   ;;  %v2333_v56 = vld [vmem:[%s3274_s0 + $0x3a4] ss:$16 sps:$4 sm:$0xff]  }
  0x38   :  { %1449 = vmatprep.subr.bf16.mxu0 %v2238_v57  ;;  %1621 = vmatprep.subr.bf16.mxu1 %v2240_v58  ;;  %v2336_v57 = vld [vmem:[%s3274_s0 + $0x3ac] ss:$16 sps:$4 sm:$0xff]   ;;  %v2331_v58 = vld [vmem:[%s3274_s0 + $0x3a0] ss:$16 sps:$4 sm:$0xff]  }
  0x3b   :  { %1450 = vmatpush1.bf16.msra.mxu0 %v2242_v59  ;;  %1622 = vmatpush1.bf16.msra.mxu1 %v2243_v60  ;;  %v2334_v59 = vld [vmem:[%s3274_s0 + $0x3a8] ss:$16 sps:$4 sm:$0xff]   ;;  %v2339_v60 = vld [vmem:[%s3274_s0 + $0x3c4] ss:$16 sps:$4 sm:$0xff]  }
  0x3c   :  { %1451 = vmatprep.subr.bf16.mxu0 %v2244_v61  ;;  %1623 = vmatprep.subr.bf16.mxu1 %v2246_v62  ;;  %v2342_v61 = vld [vmem:[%s3274_s0 + $0x3cc] ss:$16 sps:$4 sm:$0xff]   ;;  %v2337_v62 = vld [vmem:[%s3274_s0 + $0x3c0] ss:$16 sps:$4 sm:$0xff]  }
  0x3f   :  { %1452 = vmatpush1.bf16.msra.mxu0 %v2248_v63  ;;  %1624 = vmatpush1.bf16.msra.mxu1 %v2249_v0  ;;  %v2340_v63 = vld [vmem:[%s3274_s0 + $0x3c8] ss:$16 sps:$4 sm:$0xff]   ;;  %v2345_v0 = vld [vmem:[%s3274_s0 + $0x3e4] ss:$16 sps:$4 sm:$0xff]  }
  0x40   :  { %1464 = vmatprep.subr.bf16.mxu0 %v2255_v1  ;;  %1636 = vmatprep.subr.bf16.mxu1 %v2258_v2  ;;  %v2348_v1 = vld [vmem:[%s3274_s0 + $0x3ec] ss:$16 sps:$4 sm:$0xff]   ;;  %v2343_v2 = vld [vmem:[%s3274_s0 + $0x3e0] ss:$16 sps:$4 sm:$0xff]  }
  0x42   :  { %1454 = vmatmul.mubr.bf16.vlgmr.msra.gmra.mrb[0].mxu0 %v2250_v3  ;;  %1626 = vmatmul.mubr.bf16.vlgmr.msra.gmra.mrb[0].mxu1 %v2250_v3  ;;  %v2346_v3 = vld [vmem:[%s3274_s0 + $0x3e8] ss:$16 sps:$4 sm:$0xff]  }
  0x43   :  { %1465 = vmatpush1.bf16.msra.mxu0 %v2253_v4  ;;  %1637 = vmatpush1.bf16.msra.mxu1 %v2256_v5  ;;  %v2354_v4 = vld [vmem:[%s3274_s0 + $0x404] ss:$16 sps:$4 sm:$0xff]   ;;  %v2357_v5 = vld [vmem:[%s3274_s0 + $0x40c] ss:$16 sps:$4 sm:$0xff]  }
  0x44   :  { %1466 = vmatprep.subr.bf16.mxu0 %v2261_v6  ;;  %1638 = vmatprep.subr.bf16.mxu1 %v2264_v7  ;;  %v2349_v6 = vld [vmem:[%s3275_s1 + $0x8] ss:$28 sps:$4 sm:$0xff]   ;;  %v2352_v7 = vld [vmem:[%s3274_s0 + $0x400] ss:$16 sps:$4 sm:$0xff]  }
  0x45   :  { %1496 = vmatprep.mubr.bf16.mxu0 %v2351_v30  ;;  %1668 = vmatprep.mubr.bf16.mxu1 %v2351_v30  ;;  %v2390_v30 = vld [vmem:[%s3274_s0 + $0x4c4] ss:$16 sps:$4 sm:$0xff]  }
  0x47   :  { %1467 = vmatpush1.bf16.msra.mxu0 %v2259_v8  ;;  %1639 = vmatpush1.bf16.msra.mxu1 %v2262_v9  ;;  %v2355_v8 = vld [vmem:[%s3274_s0 + $0x408] ss:$16 sps:$4 sm:$0xff]   ;;  %v2360_v9 = vld [vmem:[%s3274_s0 + $0x424] ss:$16 sps:$4 sm:$0xff]  }
  0x48   :  { %1468 = vmatprep.subr.bf16.mxu0 %v2267_v10  ;;  %1640 = vmatprep.subr.bf16.mxu1 %v2270_v11  ;;  %v2363_v10 = vld [vmem:[%s3274_s0 + $0x42c] ss:$16 sps:$4 sm:$0xff]   ;;  %v2358_v11 = vld [vmem:[%s3274_s0 + $0x420] ss:$16 sps:$4 sm:$0xff]  }
  0x4b   :  { %1469 = vmatpush1.bf16.msra.mxu0 %v2265_v12  ;;  %1641 = vmatpush1.bf16.msra.mxu1 %v2268_v13  ;;  %v2361_v12 = vld [vmem:[%s3274_s0 + $0x428] ss:$16 sps:$4 sm:$0xff]   ;;  %v2450_v13 = vld [vmem:[%s3275_s1 + $0x14] ss:$28 sps:$4 sm:$0xff]  }
  0x4c   :  { %1470 = vmatprep.subr.bf16.mxu0 %v2273_v14  ;;  %1642 = vmatprep.subr.bf16.mxu1 %v2276_v15  ;;  %v2366_v14 = vld [vmem:[%s3274_s0 + $0x444] ss:$16 sps:$4 sm:$0xff]   ;;  %v2369_v15 = vld [vmem:[%s3274_s0 + $0x44c] ss:$16 sps:$4 sm:$0xff]  }
  0x4f   :  { %1471 = vmatpush1.bf16.msra.mxu0 %v2271_v16  ;;  %1643 = vmatpush1.bf16.msra.mxu1 %v2274_v17  ;;  %v2364_v16 = vld [vmem:[%s3274_s0 + $0x440] ss:$16 sps:$4 sm:$0xff]   ;;  %v2367_v17 = vld [vmem:[%s3274_s0 + $0x448] ss:$16 sps:$4 sm:$0xff]  }
  0x50   :  { %1472 = vmatprep.subr.bf16.mxu0 %v2279_v18  ;;  %1644 = vmatprep.subr.bf16.mxu1 %v2282_v19  ;;  %v2372_v18 = vld [vmem:[%s3274_s0 + $0x464] ss:$16 sps:$4 sm:$0xff]   ;;  %v2375_v19 = vld [vmem:[%s3274_s0 + $0x46c] ss:$16 sps:$4 sm:$0xff]  }
  0x53   :  { %1473 = vmatpush1.bf16.msra.mxu0 %v2277_v20  ;;  %1645 = vmatpush1.bf16.msra.mxu1 %v2280_v21  ;;  %v2370_v20 = vld [vmem:[%s3274_s0 + $0x460] ss:$16 sps:$4 sm:$0xff]   ;;  %v2373_v21 = vld [vmem:[%s3274_s0 + $0x468] ss:$16 sps:$4 sm:$0xff]  }
  0x54   :  { %1474 = vmatprep.subr.bf16.mxu0 %v2285_v22  ;;  %1646 = vmatprep.subr.bf16.mxu1 %v2288_v23  ;;  %v2378_v22 = vld [vmem:[%s3274_s0 + $0x484] ss:$16 sps:$4 sm:$0xff]   ;;  %v2381_v23 = vld [vmem:[%s3274_s0 + $0x48c] ss:$16 sps:$4 sm:$0xff]  }
  0x57   :  { %1475 = vmatpush1.bf16.msra.mxu0 %v2283_v24  ;;  %1647 = vmatpush1.bf16.msra.mxu1 %v2286_v25  ;;  %v2376_v24 = vld [vmem:[%s3274_s0 + $0x480] ss:$16 sps:$4 sm:$0xff]   ;;  %v2379_v25 = vld [vmem:[%s3274_s0 + $0x488] ss:$16 sps:$4 sm:$0xff]  }
  0x58   :  { %1476 = vmatprep.subr.bf16.mxu0 %v2291_v26  ;;  %1648 = vmatprep.subr.bf16.mxu1 %v2294_v27  ;;  %v2384_v26 = vld [vmem:[%s3274_s0 + $0x4a4] ss:$16 sps:$4 sm:$0xff]   ;;  %v2387_v27 = vld [vmem:[%s3274_s0 + $0x4ac] ss:$16 sps:$4 sm:$0xff]  }
  0x5b   :  { %1477 = vmatpush1.bf16.msra.mxu0 %v2289_v28  ;;  %1649 = vmatpush1.bf16.msra.mxu1 %v2292_v29  ;;  %v2382_v28 = vld [vmem:[%s3274_s0 + $0x4a0] ss:$16 sps:$4 sm:$0xff]   ;;  %v2385_v29 = vld [vmem:[%s3274_s0 + $0x4a8] ss:$16 sps:$4 sm:$0xff]  }
  0x5c   :  { %1478 = vmatprep.subr.bf16.mxu0 %v2297_v31  ;;  %1650 = vmatprep.subr.bf16.mxu1 %v2300_v32  ;;  %v2393_v31 = vld [vmem:[%s3274_s0 + $0x4cc] ss:$16 sps:$4 sm:$0xff]   ;;  %v2388_v32 = vld [vmem:[%s3274_s0 + $0x4c0] ss:$16 sps:$4 sm:$0xff]  }
  0x5f   :  { %1479 = vmatpush1.bf16.msra.mxu0 %v2295_v33  ;;  %1651 = vmatpush1.bf16.msra.mxu1 %v2298_v34  ;;  %v2391_v33 = vld [vmem:[%s3274_s0 + $0x4c8] ss:$16 sps:$4 sm:$0xff]   ;;  %v2396_v34 = vld [vmem:[%s3274_s0 + $0x4e4] ss:$16 sps:$4 sm:$0xff]  }
  0x60   :  { %1480 = vmatprep.subr.bf16.mxu0 %v2303_v35  ;;  %1652 = vmatprep.subr.bf16.mxu1 %v2306_v36  ;;  %v2399_v35 = vld [vmem:[%s3274_s0 + $0x4ec] ss:$16 sps:$4 sm:$0xff]   ;;  %v253_v36 = vld [vmem:[%s3276_s2] sm:$0xff] }
  0x61   :  { %257 = vperm.xlu0 %2152, %v253_v36   ;;  %v2490_v36 = vld [vmem:[%s3274_s0 + $0x6c8] ss:$16 sps:$4 sm:$0xff]  }
  0x63   :  { %1481 = vmatpush1.bf16.msra.mxu0 %v2301_v37  ;;  %1653 = vmatpush1.bf16.msra.mxu1 %v2304_v38  ;;  %v2394_v37 = vld [vmem:[%s3274_s0 + $0x4e0] ss:$16 sps:$4 sm:$0xff]   ;;  %v2397_v38 = vld [vmem:[%s3274_s0 + $0x4e8] ss:$16 sps:$4 sm:$0xff]  }
  0x64   :  { %1482 = vmatprep.subr.bf16.mxu0 %v2309_v39  ;;  %1654 = vmatprep.subr.bf16.mxu1 %v2312_v40  ;;  %v254_v39 = vld [vmem:[%s3276_s2 + $0x8] sm:$0xff]  ;;  %v2402_v40 = vld [vmem:[%s3274_s0 + $0x504] ss:$16 sps:$4 sm:$0xff]  }
  0x65   :  { %262 = vperm.xlu0 %2152, %v254_v39   ;;  %v2493_v39 = vld [vmem:[%s3274_s0 + $0x6e0] ss:$16 sps:$4 sm:$0xff]  }
  0x67   :  { %1483 = vmatpush1.bf16.msra.mxu0 %v2307_v42  ;;  %1655 = vmatpush1.bf16.msra.mxu1 %v2310_v43  ;;  %v2405_v42 = vld [vmem:[%s3274_s0 + $0x50c] ss:$16 sps:$4 sm:$0xff]   ;;  %v2400_v43 = vld [vmem:[%s3274_s0 + $0x500] ss:$16 sps:$4 sm:$0xff]  }
  0x68   :  { %1484 = vmatprep.subr.bf16.mxu0 %v2315_v44  ;;  %1656 = vmatprep.subr.bf16.mxu1 %v2318_v45  ;;  %v2403_v44 = vld [vmem:[%s3274_s0 + $0x508] ss:$16 sps:$4 sm:$0xff]   ;;  %v2408_v45 = vld [vmem:[%s3274_s0 + $0x524] ss:$16 sps:$4 sm:$0xff]  }
  0x6b   :  { %1485 = vmatpush1.bf16.msra.mxu0 %v2313_v46  ;;  %1657 = vmatpush1.bf16.msra.mxu1 %v2316_v47  ;;  %v2411_v46 = vld [vmem:[%s3274_s0 + $0x52c] ss:$16 sps:$4 sm:$0xff]   ;;  %v2406_v47 = vld [vmem:[%s3274_s0 + $0x520] ss:$16 sps:$4 sm:$0xff]  }
  0x6c   :  { %1486 = vmatprep.subr.bf16.mxu0 %v2321_v48  ;;  %1658 = vmatprep.subr.bf16.mxu1 %v2324_v49  ;;  %v2409_v48 = vld [vmem:[%s3274_s0 + $0x528] ss:$16 sps:$4 sm:$0xff]   ;;  %v2414_v49 = vld [vmem:[%s3274_s0 + $0x544] ss:$16 sps:$4 sm:$0xff]  }
  0x6f   :  { %1487 = vmatpush1.bf16.msra.mxu0 %v2319_v50  ;;  %1659 = vmatpush1.bf16.msra.mxu1 %v2322_v51  ;;  %v2417_v50 = vld [vmem:[%s3274_s0 + $0x54c] ss:$16 sps:$4 sm:$0xff]   ;;  %v2412_v51 = vld [vmem:[%s3274_s0 + $0x540] ss:$16 sps:$4 sm:$0xff]  }
  0x70   :  { %1488 = vmatprep.subr.bf16.mxu0 %v2327_v52  ;;  %1660 = vmatprep.subr.bf16.mxu1 %v2330_v53  ;;  %v2415_v52 = vld [vmem:[%s3274_s0 + $0x548] ss:$16 sps:$4 sm:$0xff]   ;;  %v2420_v53 = vld [vmem:[%s3274_s0 + $0x564] ss:$16 sps:$4 sm:$0xff]  }
  0x73   :  { %1489 = vmatpush1.bf16.msra.mxu0 %v2325_v54  ;;  %1661 = vmatpush1.bf16.msra.mxu1 %v2328_v55  ;;  %v2423_v54 = vld [vmem:[%s3274_s0 + $0x56c] ss:$16 sps:$4 sm:$0xff]   ;;  %v2418_v55 = vld [vmem:[%s3274_s0 + $0x560] ss:$16 sps:$4 sm:$0xff]  }
  0x74   :  { %1490 = vmatprep.subr.bf16.mxu0 %v2333_v56  ;;  %1662 = vmatprep.subr.bf16.mxu1 %v2336_v57  ;;  %v2421_v56 = vld [vmem:[%s3274_s0 + $0x568] ss:$16 sps:$4 sm:$0xff]   ;;  %v2426_v57 = vld [vmem:[%s3274_s0 + $0x584] ss:$16 sps:$4 sm:$0xff]  }
  0x77   :  { %1491 = vmatpush1.bf16.msra.mxu0 %v2331_v58  ;;  %1663 = vmatpush1.bf16.msra.mxu1 %v2334_v59  ;;  %v2429_v58 = vld [vmem:[%s3274_s0 + $0x58c] ss:$16 sps:$4 sm:$0xff]   ;;  %v2424_v59 = vld [vmem:[%s3274_s0 + $0x580] ss:$16 sps:$4 sm:$0xff]  }
  0x78   :  { %1492 = vmatprep.subr.bf16.mxu0 %v2339_v60  ;;  %1664 = vmatprep.subr.bf16.mxu1 %v2342_v61  ;;  %v2427_v60 = vld [vmem:[%s3274_s0 + $0x588] ss:$16 sps:$4 sm:$0xff]   ;;  %v2432_v61 = vld [vmem:[%s3274_s0 + $0x5a4] ss:$16 sps:$4 sm:$0xff]  }
  0x7b   :  { %1493 = vmatpush1.bf16.msra.mxu0 %v2337_v62  ;;  %1665 = vmatpush1.bf16.msra.mxu1 %v2340_v63  ;;  %v2435_v62 = vld [vmem:[%s3274_s0 + $0x5ac] ss:$16 sps:$4 sm:$0xff]   ;;  %v2430_v63 = vld [vmem:[%s3274_s0 + $0x5a0] ss:$16 sps:$4 sm:$0xff]  }
  0x7c   :  { %1494 = vmatprep.subr.bf16.mxu0 %v2345_v0  ;;  %1666 = vmatprep.subr.bf16.mxu1 %v2348_v1  ;;  %v2433_v0 = vld [vmem:[%s3274_s0 + $0x5a8] ss:$16 sps:$4 sm:$0xff]   ;;  %v2438_v1 = vld [vmem:[%s3274_s0 + $0x5c4] ss:$16 sps:$4 sm:$0xff]  }
  0x7f   :  { %1495 = vmatpush1.bf16.msra.mxu0 %v2343_v2  ;;  %1667 = vmatpush1.bf16.msra.mxu1 %v2346_v3  ;;  %v2441_v2 = vld [vmem:[%s3274_s0 + $0x5cc] ss:$16 sps:$4 sm:$0xff]   ;;  %v2436_v3 = vld [vmem:[%s3274_s0 + $0x5c0] ss:$16 sps:$4 sm:$0xff]  }
  0x80   :  { %1507 = vmatprep.subr.bf16.mxu0 %v2354_v4  ;;  %1679 = vmatprep.subr.bf16.mxu1 %v2357_v5  ;;  %v2439_v4 = vld [vmem:[%s3274_s0 + $0x5c8] ss:$16 sps:$4 sm:$0xff]   ;;  %v2444_v5 = vld [vmem:[%s3274_s0 + $0x5e4] ss:$16 sps:$4 sm:$0xff]  }
  0x82   :  { %1497 = vmatmul.mubr.bf16.vlgmr.msra.gmra.mrb[0].mxu0 %v2349_v6  ;;  %1669 = vmatmul.mubr.bf16.vlgmr.msra.gmra.mrb[0].mxu1 %v2349_v6  ;;  %v2447_v6 = vld [vmem:[%s3274_s0 + $0x5ec] ss:$16 sps:$4 sm:$0xff]  }
  0x83   :  { %1508 = vmatpush1.bf16.msra.mxu0 %v2352_v7  ;;  %1680 = vmatpush1.bf16.msra.mxu1 %v2355_v8  ;;  %v2442_v7 = vld [vmem:[%s3274_s0 + $0x5e0] ss:$16 sps:$4 sm:$0xff]   ;;  %v2445_v8 = vld [vmem:[%s3274_s0 + $0x5e8] ss:$16 sps:$4 sm:$0xff]  }
  0x84   :  { %1509 = vmatprep.subr.bf16.mxu0 %v2360_v9  ;;  %1681 = vmatprep.subr.bf16.mxu1 %v2363_v10  ;;  %v2453_v9 = vld [vmem:[%s3274_s0 + $0x604] ss:$16 sps:$4 sm:$0xff]   ;;  %v2456_v10 = vld [vmem:[%s3274_s0 + $0x60c] ss:$16 sps:$4 sm:$0xff]  }
  0x85   :  { %1539 = vmatprep.mubr.bf16.mxu0 %v2450_v13  ;;  %1711 = vmatprep.mubr.bf16.mxu1 %v2450_v13  ;;  %v2454_v13 = vld [vmem:[%s3274_s0 + $0x608] ss:$16 sps:$4 sm:$0xff]  }
  0x87   :  { %1510 = vmatpush1.bf16.msra.mxu0 %v2358_v11  ;;  %1682 = vmatpush1.bf16.msra.mxu1 %v2361_v12  ;;  %v2448_v11 = vld [vmem:[%s3275_s1 + $0x10] ss:$28 sps:$4 sm:$0xff]  }
  0x88   :  { %1511 = vmatprep.subr.bf16.mxu0 %v2366_v14  ;;  %1683 = vmatprep.subr.bf16.mxu1 %v2369_v15  ;;  %v2451_v12 = vld [vmem:[%s3274_s0 + $0x600] ss:$16 sps:$4 sm:$0xff]   ;;  %v2459_v14 = vld [vmem:[%s3274_s0 + $0x624] ss:$16 sps:$4 sm:$0xff]   ;;  %v2462_v15 = vld [vmem:[%s3274_s0 + $0x62c] ss:$16 sps:$4 sm:$0xff]  }
  0x8b   :  { %1512 = vmatpush1.bf16.msra.mxu0 %v2364_v16  ;;  %1684 = vmatpush1.bf16.msra.mxu1 %v2367_v17  ;;  %v2457_v16 = vld [vmem:[%s3274_s0 + $0x620] ss:$16 sps:$4 sm:$0xff]   ;;  %v2460_v17 = vld [vmem:[%s3274_s0 + $0x628] ss:$16 sps:$4 sm:$0xff]  }
  0x8c   :  { %1513 = vmatprep.subr.bf16.mxu0 %v2372_v18  ;;  %1685 = vmatprep.subr.bf16.mxu1 %v2375_v19  ;;  %v2465_v18 = vld [vmem:[%s3274_s0 + $0x644] ss:$16 sps:$4 sm:$0xff]   ;;  %v2468_v19 = vld [vmem:[%s3274_s0 + $0x64c] ss:$16 sps:$4 sm:$0xff]  }
  0x8f   :  { %1514 = vmatpush1.bf16.msra.mxu0 %v2370_v20  ;;  %1686 = vmatpush1.bf16.msra.mxu1 %v2373_v21  ;;  %v2463_v20 = vld [vmem:[%s3274_s0 + $0x640] ss:$16 sps:$4 sm:$0xff]   ;;  %v2466_v21 = vld [vmem:[%s3274_s0 + $0x648] ss:$16 sps:$4 sm:$0xff]  }
  0x90   :  { %1515 = vmatprep.subr.bf16.mxu0 %v2378_v22  ;;  %1687 = vmatprep.subr.bf16.mxu1 %v2381_v23  ;;  %v2471_v22 = vld [vmem:[%s3274_s0 + $0x664] ss:$16 sps:$4 sm:$0xff]   ;;  %v2469_v23 = vld [vmem:[%s3274_s0 + $0x660] ss:$16 sps:$4 sm:$0xff]  }
  0x93   :  { %1516 = vmatpush1.bf16.msra.mxu0 %v2376_v24  ;;  %1688 = vmatpush1.bf16.msra.mxu1 %v2379_v25  ;;  %v2472_v24 = vld [vmem:[%s3274_s0 + $0x668] ss:$16 sps:$4 sm:$0xff]   ;;  %v2477_v25 = vld [vmem:[%s3274_s0 + $0x684] ss:$16 sps:$4 sm:$0xff]  }
  0x94   :  { %1517 = vmatprep.subr.bf16.mxu0 %v2384_v26  ;;  %1689 = vmatprep.subr.bf16.mxu1 %v2387_v27  ;;  %v2480_v26 = vld [vmem:[%s3274_s0 + $0x68c] ss:$16 sps:$4 sm:$0xff]   ;;  %v2475_v27 = vld [vmem:[%s3274_s0 + $0x680] ss:$16 sps:$4 sm:$0xff]  }
  0x97   :  { %1518 = vmatpush1.bf16.msra.mxu0 %v2382_v28  ;;  %1690 = vmatpush1.bf16.msra.mxu1 %v2385_v29  ;;  %v2478_v28 = vld [vmem:[%s3274_s0 + $0x688] ss:$16 sps:$4 sm:$0xff]   ;;  %v2483_v29 = vld [vmem:[%s3274_s0 + $0x6a4] ss:$16 sps:$4 sm:$0xff]  }
  0x98   :  { %1519 = vmatprep.subr.bf16.mxu0 %v2390_v30  ;;  %1691 = vmatprep.subr.bf16.mxu1 %v2393_v31  ;;  %v2486_v30 = vld [vmem:[%s3274_s0 + $0x6ac] ss:$16 sps:$4 sm:$0xff]   ;;  %v2481_v31 = vld [vmem:[%s3274_s0 + $0x6a0] ss:$16 sps:$4 sm:$0xff]  }
  0x9b   :  { %1520 = vmatpush1.bf16.msra.mxu0 %v2388_v32  ;;  %1692 = vmatpush1.bf16.msra.mxu1 %v2391_v33  ;;  %v2484_v32 = vld [vmem:[%s3274_s0 + $0x6a8] ss:$16 sps:$4 sm:$0xff]   ;;  %v2489_v33 = vld [vmem:[%s3274_s0 + $0x6c4] ss:$16 sps:$4 sm:$0xff]  }
  0x9c   :  { %1521 = vmatprep.subr.bf16.mxu0 %v2396_v34  ;;  %1693 = vmatprep.subr.bf16.mxu1 %v2399_v35  ;;  %v2492_v34 = vld [vmem:[%s3274_s0 + $0x6cc] ss:$16 sps:$4 sm:$0xff]   ;;  %v2487_v35 = vld [vmem:[%s3274_s0 + $0x6c0] ss:$16 sps:$4 sm:$0xff]  }
  0x9f   :  { %1522 = vmatpush1.bf16.msra.mxu0 %v2394_v37  ;;  %1694 = vmatpush1.bf16.msra.mxu1 %v2397_v38  ;;  %v2495_v37 = vld [vmem:[%s3274_s0 + $0x6e4] ss:$16 sps:$4 sm:$0xff]   ;;  %v2498_v38 = vld [vmem:[%s3274_s0 + $0x6ec] ss:$16 sps:$4 sm:$0xff]  }
  0xa0   :  { %1523 = vmatprep.subr.bf16.mxu0 %v2402_v40  ;;  %1695 = vmatprep.subr.bf16.mxu1 %v2405_v42  ;;  %v2496_v40 = vld [vmem:[%s3274_s0 + $0x6e8] ss:$16 sps:$4 sm:$0xff]  }
  0xa1   :  { %v2499_v42 = vld [vmem:[%s3275_s1 + $0x18] ss:$28 sps:$4 sm:$0xff]  }
  0xa3   :  { %1524 = vmatpush1.bf16.msra.mxu0 %v2400_v43  ;;  %1696 = vmatpush1.bf16.msra.mxu1 %v2403_v44 }
  0xa4   :  { %1525 = vmatprep.subr.bf16.mxu0 %v2408_v45  ;;  %1697 = vmatprep.subr.bf16.mxu1 %v2411_v46 }
  0xa7   :  { %1526 = vmatpush1.bf16.msra.mxu0 %v2406_v47  ;;  %1698 = vmatpush1.bf16.msra.mxu1 %v2409_v48 }
  0xa8   :  { %1527 = vmatprep.subr.bf16.mxu0 %v2414_v49  ;;  %1699 = vmatprep.subr.bf16.mxu1 %v2417_v50 }
  0xab   :  { %1528 = vmatpush1.bf16.msra.mxu0 %v2412_v51  ;;  %1700 = vmatpush1.bf16.msra.mxu1 %v2415_v52 }
  0xac   :  { %1529 = vmatprep.subr.bf16.mxu0 %v2420_v53  ;;  %1701 = vmatprep.subr.bf16.mxu1 %v2423_v54 }
  0xaf   :  { %1530 = vmatpush1.bf16.msra.mxu0 %v2418_v55  ;;  %1702 = vmatpush1.bf16.msra.mxu1 %v2421_v56 }
  0xb0   :  { %1531 = vmatprep.subr.bf16.mxu0 %v2426_v57  ;;  %1703 = vmatprep.subr.bf16.mxu1 %v2429_v58 }
  0xb3   :  { %1532 = vmatpush1.bf16.msra.mxu0 %v2424_v59  ;;  %1704 = vmatpush1.bf16.msra.mxu1 %v2427_v60 }
  0xb4   :  { %1533 = vmatprep.subr.bf16.mxu0 %v2432_v61  ;;  %1705 = vmatprep.subr.bf16.mxu1 %v2435_v62 }
  0xb7   :  { %1534 = vmatpush1.bf16.msra.mxu0 %v2430_v63  ;;  %1706 = vmatpush1.bf16.msra.mxu1 %v2433_v0 }
  0xb8   :  { %1535 = vmatprep.subr.bf16.mxu0 %v2438_v1  ;;  %1707 = vmatprep.subr.bf16.mxu1 %v2441_v2 }
  0xbb   :  { %1536 = vmatpush1.bf16.msra.mxu0 %v2436_v3  ;;  %1708 = vmatpush1.bf16.msra.mxu1 %v2439_v4 }
  0xbc   :  { %1537 = vmatprep.subr.bf16.mxu0 %v2444_v5  ;;  %1709 = vmatprep.subr.bf16.mxu1 %v2447_v6 }
  0xbf   :  { %1538 = vmatpush1.bf16.msra.mxu0 %v2442_v7  ;;  %1710 = vmatpush1.bf16.msra.mxu1 %v2445_v8 }
  0xc0   :  { %1550 = vmatprep.subr.bf16.mxu0 %v2453_v9  ;;  %1722 = vmatprep.subr.bf16.mxu1 %v2456_v10 }
  0xc2   :  { %1540 = vmatmul.mubr.bf16.vlgmr.msra.gmra.mrb[0].mxu0 %v2448_v11  ;;  %1712 = vmatmul.mubr.bf16.vlgmr.msra.gmra.mrb[0].mxu1 %v2448_v11 }
  0xc3   :  { %1551 = vmatpush1.bf16.msra.mxu0 %v2451_v12  ;;  %1723 = vmatpush1.bf16.msra.mxu1 %v2454_v13 }
  0xc4   :  { %1552 = vmatprep.subr.bf16.mxu0 %v2459_v14  ;;  %1724 = vmatprep.subr.bf16.mxu1 %v2462_v15 }
  0xc5   :  { %1582 = vmatprep.mubr.bf16.mxu0 %v2504_v41  ;;  %1754 = vmatprep.mubr.bf16.mxu1 %v2504_v41  ;;  %v2474_v41 = vld [vmem:[%s3274_s0 + $0x66c] ss:$16 sps:$4 sm:$0xff]  }
  0xc7   :  { %1553 = vmatpush1.bf16.msra.mxu0 %v2457_v16  ;;  %1725 = vmatpush1.bf16.msra.mxu1 %v2460_v17 }
  0xc8   :  { %1554 = vmatprep.subr.bf16.mxu0 %v2465_v18  ;;  %1726 = vmatprep.subr.bf16.mxu1 %v2468_v19 }
  0xcb   :  { %1555 = vmatpush1.bf16.msra.mxu0 %v2463_v20  ;;  %1727 = vmatpush1.bf16.msra.mxu1 %v2466_v21 }
  0xcc   :  { %1556 = vmatprep.subr.bf16.mxu0 %v2471_v22  ;;  %1728 = vmatprep.subr.bf16.mxu1 %v2474_v41 }
  0xcf   :  { %1557 = vmatpush1.bf16.msra.mxu0 %v2469_v23  ;;  %1729 = vmatpush1.bf16.msra.mxu1 %v2472_v24 }
  0xd0   :  { %1558 = vmatprep.subr.bf16.mxu0 %v2477_v25  ;;  %1730 = vmatprep.subr.bf16.mxu1 %v2480_v26 }
  0xd3   :  { %1559 = vmatpush1.bf16.msra.mxu0 %v2475_v27  ;;  %1731 = vmatpush1.bf16.msra.mxu1 %v2478_v28  ;;  %v1832_v28 = vld [vmem:[%s3277_s4] sm:$0xff] }
  0xd4   :  { %1560 = vmatprep.subr.bf16.mxu0 %v2483_v29  ;;  %1732 = vmatprep.subr.bf16.mxu1 %v2486_v30 }
  0xd7   :  { %1561 = vmatpush1.bf16.msra.mxu0 %v2481_v31  ;;  %1733 = vmatpush1.bf16.msra.mxu1 %v2484_v32 }
  0xd8   :  { %1562 = vmatprep.subr.bf16.mxu0 %v2489_v33  ;;  %1734 = vmatprep.subr.bf16.mxu1 %v2492_v34 }
  0xdb   :  { %1563 = vmatpush1.bf16.msra.mxu0 %v2487_v35  ;;  %1735 = vmatpush1.bf16.msra.mxu1 %v2490_v36  ;;  %v1810_v35 = vld [vmem:[%s3278_s3] sm:$0xff] }
  0xdc   :  { %1564 = vmatprep.subr.bf16.mxu0 %v2495_v37  ;;  %1736 = vmatprep.subr.bf16.mxu1 %v2498_v38  ;;  %v1811_v38 = vld [vmem:[%s3278_s3 + $0x8] sm:$0xff] }
  0xdf   :  { %1565 = vmatpush1.bf16.msra.mxu0 %v2493_v39  ;;  %1737 = vmatpush1.bf16.msra.mxu1 %v2496_v40 }
  0xe0   :  { %v258_v43 = vpop.permute.xlu0 %257 }
  0xe2   :  { %1583 = vmatmul.mubr.bf16.vlgmr.msra.gmra.mrb[0].mxu0 %v2499_v42  ;;  %1755 = vmatmul.mubr.bf16.vlgmr.msra.gmra.mrb[0].mxu1 %v2499_v42  ;;  %v1833_v42 = vld [vmem:[%s3277_s4 + $0x8] sm:$0xff] }
  0xe4   :  { %v263_v44 = vpop.permute.xlu0 %262 }
 0x1b5   :  { %v1584_v45 = vpop.f32.mrb[0].mxu0  ;;  %v1756_v46 = vpop.f32.mrb[0].mxu1 }
 0x1b6   :  { %v2119_v47 = vadd.f32 %v1584_v45, %v258_v43  ;;  %v1586_v48 = vpop.f32.mrb[1].mxu0  ;;  %v1758_v49 = vpop.f32.mrb[1].mxu1  ;;  %v2123_v56 = vadd.f32 %v1756_v46, %v258_v43 }
 0x1b7   :  { %v2120_v50 = vadd.f32 %v1586_v48, %v258_v43  ;;  %v1588_v51 = vpop.f32.mrb[2].mxu0  ;;  %v1760_v52 = vpop.f32.mrb[2].mxu1  ;;  %v2124_v59 = vadd.f32 %v1758_v49, %v258_v43 }
 0x1b8   :  { %v2121_v53 = vadd.f32 %v1588_v51, %v263_v44  ;;  %v1590_v54 = vpop.f32.mrb[3].mxu0  ;;  %v1762_v55 = vpop.f32.mrb[3].mxu1  ;;  %v2125_v60 = vadd.f32 %v1760_v52, %v263_v44 }
 0x1b9   :  { %v1765_v57 = vadd.f32 %v2120_v50, %v2119_v47  ;;  %v2122_v58 = vadd.f32 %v1590_v54, %v263_v44  ;;  %v2126_v1 = vadd.f32 %v1762_v55, %v263_v44 }
 0x1bb   :  { %v1770_v61 = vadd.f32 %v2122_v58, %v2121_v53  ;;  %v1766_v62 = vadd.f32 %v2123_v56, %v1765_v57 }
 0x1bd   :  { %v1767_v63 = vadd.f32 %v2124_v59, %v1766_v62  ;;  %v1771_v0 = vadd.f32 %v2125_v60, %v1770_v61 }
 0x1bf   :  { %1768 = vadd.xlane.f32.xlu1 %v1767_v63  ;;  %v1772_v2 = vadd.f32 %v2126_v1, %v1771_v0 }
 0x1c3   :  { %1773 = vadd.xlane.f32.xlu1 %v1772_v2 }
 0x24c   :  { %v1769_v3 = vpop.xlane.xlu1 %1768 }
 0x24d   :  { %v1776_v4 = vmul.f32 0.001953125, %v1769_v3 }
 0x24f   :  { %v1778_v5 = vsub.f32 %v2119_v47, %v1776_v4  ;;  %v1779_v6 = vsub.f32 %v2120_v50, %v1776_v4  ;;  %v1780_v7 = vsub.f32 %v2123_v56, %v1776_v4  ;;  %v1781_v9 = vsub.f32 %v2124_v59, %v1776_v4 }
 0x250   :  { %v1774_v8 = vpop.xlane.xlu1 %1773 }
 0x251   :  { %v1777_v10 = vmul.f32 0.001953125, %v1774_v8  ;;  %v1786_v11 = vmul.f32 %v1778_v5, %v1778_v5  ;;  %v1787_v12 = vmul.f32 %v1779_v6, %v1779_v6  ;;  %v1788_v13 = vmul.f32 %v1780_v7, %v1780_v7 }
 0x252   :  { %v1789_v18 = vmul.f32 %v1781_v9, %v1781_v9 }
 0x253   :  { %v1782_v14 = vsub.f32 %v2121_v53, %v1777_v10  ;;  %v1783_v15 = vsub.f32 %v2122_v58, %v1777_v10  ;;  %v1794_v16 = vadd.f32 %v1787_v12, %v1786_v11  ;;  %v1784_v17 = vsub.f32 %v2125_v60, %v1777_v10 }
 0x254   :  { %v1785_v20 = vsub.f32 %v2126_v1, %v1777_v10 }
 0x255   :  { %v1795_v19 = vadd.f32 %v1794_v16, %v1788_v13  ;;  %v1790_v21 = vmul.f32 %v1782_v14, %v1782_v14  ;;  %v1791_v22 = vmul.f32 %v1783_v15, %v1783_v15  ;;  %v1792_v23 = vmul.f32 %v1784_v17, %v1784_v17 }
 0x256   :  { %v1793_v25 = vmul.f32 %v1785_v20, %v1785_v20 }
 0x257   :  { %v1796_v41 = vadd.f32 %v1795_v19, %v1789_v18  ;;  %v1799_v24 = vadd.f32 %v1791_v22, %v1790_v21 }
 0x259   :  { %1797 = vadd.xlane.f32.xlu0 %v1796_v41  ;;  %v1800_v26 = vadd.f32 %v1799_v24, %v1792_v23 }
 0x25b   :  { %v1801_v27 = vadd.f32 %v1800_v26, %v1793_v25 }
 0x25d   :  { %1802 = vadd.xlane.f32.xlu1 %v1801_v27 }
 0x26e   :  { %1836 = vperm.xlu1 %2153, %v1832_v28  }
 0x2e6   :  { %v1798_v29 = vpop.xlane.xlu0 %1797 }
 0x2e7   :  { %v1804_v30 = vmul.f32 0.001953125, %v1798_v29 }
 0x2e9   :  { %v1806_v31 = vadd.f32 1e-05, %v1804_v30 }
 0x2ea   :  { %v1803_v32 = vpop.xlane.xlu1 %1802 }
 0x2eb   :  { %2500 = vrsqrt.f32 %v1806_v31  ;;  %v1805_v33 = vmul.f32 0.001953125, %v1803_v32 }
 0x2ed   :  { %v1807_v34 = vadd.f32 1e-05, %v1805_v33 }
 0x2ee   :  { %v1837_v43 = vpop.permute.xlu1 %1836 }
 0x2ef   :  { %2502 = vrsqrt.f32 %v1807_v34 }
 0x2f5   :  { %v2501_v36 = vpop.eup %2500 }
 0x2f6   :  { %v1812_v37 = vmul.f32 %v2501_v36, %v1810_v35 }
 0x2f8   :  { %1816 = vperm.xlu1 %2153, %v1812_v37  }
 0x2f9   :  { %v2503_v39 = vpop.eup %2502 }
 0x2fa   :  { %v1813_v40 = vmul.f32 %v2503_v39, %v1811_v38 }
 0x2fc   :  { %1821 = vperm.xlu1 %2153, %v1813_v40  }
 0x300   :  { %1841 = vperm.xlu1 %2153, %v1833_v42  }
 0x377   :  { %v1817_v44 = vpop.permute.xlu1 %1816 }
 0x378   :  { %v1824_v45 = vmul.f32 %v1817_v44, %v1778_v5  ;;  %v1825_v46 = vmul.f32 %v1817_v44, %v1779_v6  ;;  %v1826_v47 = vmul.f32 %v1817_v44, %v1780_v7  ;;  %v1827_v48 = vmul.f32 %v1817_v44, %v1781_v9 }
 0x37a   :  { %v1844_v49 = vadd.f32 %v1837_v43, %v1824_v45  ;;  %v1845_v50 = vadd.f32 %v1837_v43, %v1825_v46  ;;  %v1846_v51 = vadd.f32 %v1837_v43, %v1826_v47  ;;  %v1847_v52 = vadd.f32 %v1837_v43, %v1827_v48 }
 0x37b   :  { %v1822_v53 = vpop.permute.xlu1 %1821 }
 0x37c   :  { %vm1852_vm0 = vcmp.ge.f32.partialorder %v1844_v49, 0.0  ;;  %vm1853_vm1 = vcmp.ge.f32.partialorder %v1845_v50, 0.0  ;;  %vm1854_vm2 = vcmp.ge.f32.partialorder %v1846_v51, 0.0  ;;  %vm1855_vm3 = vcmp.ge.f32.partialorder %v1847_v52, 0.0 }
 0x37d   :  { %v1860_v54 = vmul.f32 0.01, %v1844_v49  ;;  %v1861_v55 = vmul.f32 0.01, %v1845_v50  ;;  %v1862_v56 = vmul.f32 0.01, %v1846_v51  ;;  %v1828_v58 = vmul.f32 %v1822_v53, %v1782_v14 }
 0x37e   :  { %v1863_v57 = vmul.f32 0.01, %v1847_v52  ;;  %v1829_v59 = vmul.f32 %v1822_v53, %v1783_v15  ;;  %v1830_v60 = vmul.f32 %v1822_v53, %v1784_v17  ;;  %v1831_v0 = vmul.f32 %v1822_v53, %v1785_v20 }
 0x37f   :  { %v1868_v61 = vsel %vm1852_vm0, %v1844_v49, %v1860_v54  ;;  %v1869_v62 = vsel %vm1853_vm1, %v1845_v50, %v1861_v55  ;;  %v1870_v63 = vsel %vm1854_vm2, %v1846_v51, %v1862_v56  ;;  %v1842_v1 = vpop.permute.xlu1 %1841 }
 0x380   :  { %v1871_v2 = vsel %vm1855_vm3, %v1847_v52, %v1863_v57  ;;  %1876 = vst [vmem:[%s3279_s5] sm:$0xff] %v1868_v61  ;;  %1877 = vst [vmem:[%s3279_s5 + $0x8] sm:$0xff] %v1869_v62  ;;  %v1848_v3 = vadd.f32 %v1842_v1, %v1828_v58  ;;  %v1849_v4 = vadd.f32 %v1842_v1, %v1829_v59 }
 0x381   :  { %1878 = vst [vmem:[%s3279_s5 + $0x10] sm:$0xff] %v1870_v63  ;;  %v1850_v5 = vadd.f32 %v1842_v1, %v1830_v60  ;;  %1879 = vst [vmem:[%s3279_s5 + $0x18] sm:$0xff] %v1871_v2  ;;  %v1851_v6 = vadd.f32 %v1842_v1, %v1831_v0 }
 0x382   :  { %vm1856_vm4 = vcmp.ge.f32.partialorder %v1848_v3, 0.0  ;;  %vm1857_vm5 = vcmp.ge.f32.partialorder %v1849_v4, 0.0  ;;  %v1864_v7 = vmul.f32 0.01, %v1848_v3  ;;  %v1865_v8 = vmul.f32 0.01, %v1849_v4 }
 0x383   :  { %vm1858_vm6 = vcmp.ge.f32.partialorder %v1850_v5, 0.0  ;;  %vm1859_vm7 = vcmp.ge.f32.partialorder %v1851_v6, 0.0  ;;  %v1866_v9 = vmul.f32 0.01, %v1850_v5  ;;  %v1867_v10 = vmul.f32 0.01, %v1851_v6 }
 0x384   :  { %v1872_v11 = vsel %vm1856_vm4, %v1848_v3, %v1864_v7  ;;  %v1873_v12 = vsel %vm1857_vm5, %v1849_v4, %v1865_v8 }
 0x385   :  { %v1874_v13 = vsel %vm1858_vm6, %v1850_v5, %v1866_v9  ;;  %1880 = vst [vmem:[%s3279_s5 + $0x20] sm:$0xff] %v1872_v11  ;;  %v1875_v14 = vsel %vm1859_vm7, %v1851_v6, %v1867_v10  ;;  %1881 = vst [vmem:[%s3279_s5 + $0x28] sm:$0xff] %v1873_v12 }
 0x386   :  { %1882 = vst [vmem:[%s3279_s5 + $0x30] sm:$0xff] %v1874_v13  ;;  %1883 = vst [vmem:[%s3279_s5 + $0x38] sm:$0xff] %v1875_v14 }

// kernel: deepfuse_forward.11
= control target key start
LH: loop header
LB: loop body
LE: loop exit
PB: predicated region body
PF: predicated region fallthrough
CT: control target
= control target key end

     0   :  { %v1472_v9 = vmov 0   ;;  %v161_v40 = vlaneseq  ;;  %v1473_v41 = vmov 1966171168   ;;  %vm998_vm0 = vcmask 1040384   ;;  %s1934_s0 = inlined_call_operand.vmem [shape: bf16[1,512,512], index: 0, kind: input, shape index: {}]   ;;  %s1935_s2 = inlined_call_operand.<no memory space> [shape: f32[1,1], index: 2, kind: input, shape index: {}]   ;;  %s1936_s1 = inlined_call_operand.vmem [shape: bf16[1,512], index: 1, kind: input, shape index: {}]   ;;  %s1937_s3 = inlined_call_operand.<no memory space> [shape: f32[1,1], index: 3, kind: input, shape index: {}]   ;;  %s1938_s4 = inlined_call_operand.<no memory space> [shape: f32[1,1], index: 4, kind: input, shape index: {}]   ;;  %s1939_s5 = inlined_call_operand.vmem [shape: f32[1,1,512], index: 5, kind: output, shape index: {}]  }
   0x1   :  { %v1262_v0 = vld [vmem:[%s1934_s0 + $0x4] ss:$16 sps:$4 sm:$0xff]   ;;  %v1264_v1 = vld [vmem:[%s1934_s0 + $0xc] ss:$16 sps:$4 sm:$0xff]   ;;  %v1266_v2 = vld [vmem:[%s1934_s0] ss:$16 sps:$4 sm:$0xff]   ;;  %v10_v7 = vstv %s1935_s2  ;;  %1260 = vset.pattern.permute.xlu0 %v1472_v9  ;;  %1261 = vset.pattern.permute.xlu1 %v1472_v9  ;;  %v175_v42 = vunpack.c.l.s4 %v1473_v41 }
   0x2   :  { %834 = vmatprep.subr.bf16.mxu0 %v1262_v0  ;;  %v1267_v3 = vld [vmem:[%s1934_s0 + $0x8] ss:$16 sps:$4 sm:$0xff]   ;;  %916 = vmatprep.subr.bf16.mxu1 %v1264_v1  ;;  %v1268_v4 = vld [vmem:[%s1934_s0 + $0x24] ss:$16 sps:$4 sm:$0xff]   ;;  %v1270_v5 = vld [vmem:[%s1934_s0 + $0x2c] ss:$16 sps:$4 sm:$0xff]  }
   0x3   :  { %835 = vmatpush1.bf16.msra.mxu0 %v1266_v2  ;;  %917 = vmatpush1.bf16.msra.mxu1 %v1267_v3  ;;  %v1272_v6 = vld [vmem:[%s1934_s0 + $0x20] ss:$16 sps:$4 sm:$0xff]   ;;  %v1273_v8 = vld [vmem:[%s1934_s0 + $0x28] ss:$16 sps:$4 sm:$0xff]   ;;  %11 = vst [vmem:[#allocation2] sm:$0x1] %v10_v7  ;;  %v176_v48 = vunpack.c.0.s8 %v175_v42 }
   0x4   :  { %836 = vmatprep.subr.bf16.mxu0 %v1268_v4  ;;  %918 = vmatprep.subr.bf16.mxu1 %v1270_v5  ;;  %v1274_v10 = vld [vmem:[%s1934_s0 + $0x44] ss:$16 sps:$4 sm:$0xff]   ;;  %v1276_v11 = vld [vmem:[%s1934_s0 + $0x4c] ss:$16 sps:$4 sm:$0xff]   ;;  %v1278_v12 = vld [vmem:[%s1934_s0 + $0x40] ss:$16 sps:$4 sm:$0xff]  }
   0x5   :  { %v1279_v13 = vld [vmem:[%s1934_s0 + $0x48] ss:$16 sps:$4 sm:$0xff]   ;;  %v1280_v14 = vld [vmem:[%s1934_s0 + $0x64] ss:$16 sps:$4 sm:$0xff]   ;;  %v1282_v15 = vld [vmem:[%s1934_s0 + $0x6c] ss:$16 sps:$4 sm:$0xff]  }
   0x6   :  { %v1284_v16 = vld [vmem:[%s1934_s0 + $0x60] ss:$16 sps:$4 sm:$0xff]   ;;  %v1285_v17 = vld [vmem:[%s1934_s0 + $0x68] ss:$16 sps:$4 sm:$0xff]   ;;  %v1286_v18 = vld [vmem:[%s1934_s0 + $0x84] ss:$16 sps:$4 sm:$0xff]  }
   0x7   :  { %837 = vmatpush1.bf16.msra.mxu0 %v1272_v6  ;;  %919 = vmatpush1.bf16.msra.mxu1 %v1273_v8  ;;  %v1288_v19 = vld [vmem:[%s1934_s0 + $0x8c] ss:$16 sps:$4 sm:$0xff]   ;;  %v1290_v20 = vld [vmem:[%s1934_s0 + $0x80] ss:$16 sps:$4 sm:$0xff]   ;;  %v1291_v21 = vld [vmem:[%s1934_s0 + $0x88] ss:$16 sps:$4 sm:$0xff]  }
   0x8   :  { %838 = vmatprep.subr.bf16.mxu0 %v1274_v10  ;;  %920 = vmatprep.subr.bf16.mxu1 %v1276_v11  ;;  %v1292_v22 = vld [vmem:[%s1934_s0 + $0xa4] ss:$16 sps:$4 sm:$0xff]   ;;  %v1294_v23 = vld [vmem:[%s1934_s0 + $0xac] ss:$16 sps:$4 sm:$0xff]   ;;  %v1296_v24 = vld [vmem:[%s1934_s0 + $0xa0] ss:$16 sps:$4 sm:$0xff]  }
   0x9   :  { %v1297_v25 = vld [vmem:[%s1934_s0 + $0xa8] ss:$16 sps:$4 sm:$0xff]   ;;  %v1298_v26 = vld [vmem:[%s1934_s0 + $0xc4] ss:$16 sps:$4 sm:$0xff]   ;;  %v1300_v27 = vld [vmem:[%s1934_s0 + $0xcc] ss:$16 sps:$4 sm:$0xff]  }
   0xa   :  { %v1302_v28 = vld [vmem:[%s1934_s0 + $0xc0] ss:$16 sps:$4 sm:$0xff]   ;;  %v1303_v29 = vld [vmem:[%s1934_s0 + $0xc8] ss:$16 sps:$4 sm:$0xff]   ;;  %v1304_v30 = vld [vmem:[%s1934_s0 + $0xe4] ss:$16 sps:$4 sm:$0xff]  }
   0xb   :  { %839 = vmatpush1.bf16.msra.mxu0 %v1278_v12  ;;  %921 = vmatpush1.bf16.msra.mxu1 %v1279_v13  ;;  %v1306_v31 = vld [vmem:[%s1934_s0 + $0xec] ss:$16 sps:$4 sm:$0xff]   ;;  %v1308_v32 = vld [vmem:[%s1934_s0 + $0xe0] ss:$16 sps:$4 sm:$0xff]   ;;  %v1309_v33 = vld [vmem:[%s1934_s0 + $0xe8] ss:$16 sps:$4 sm:$0xff]  }
   0xc   :  { %840 = vmatprep.subr.bf16.mxu0 %v1280_v14  ;;  %922 = vmatprep.subr.bf16.mxu1 %v1282_v15  ;;  %v1310_v34 = vld [vmem:[%s1934_s0 + $0x104] ss:$16 sps:$4 sm:$0xff]   ;;  %v1312_v35 = vld [vmem:[%s1934_s0 + $0x10c] ss:$16 sps:$4 sm:$0xff]   ;;  %v1314_v36 = vld [vmem:[%s1934_s0 + $0x100] ss:$16 sps:$4 sm:$0xff]  }
   0xd   :  { %v1315_v37 = vld [vmem:[%s1934_s0 + $0x108] ss:$16 sps:$4 sm:$0xff]   ;;  %v1316_v38 = vld [vmem:[%s1934_s0 + $0x124] ss:$16 sps:$4 sm:$0xff]   ;;  %v1318_v39 = vld [vmem:[%s1934_s0 + $0x12c] ss:$16 sps:$4 sm:$0xff]  }
   0xe   :  { %v1320_v43 = vld [vmem:[%s1934_s0 + $0x120] ss:$16 sps:$4 sm:$0xff]   ;;  %v1321_v44 = vld [vmem:[%s1934_s0 + $0x128] ss:$16 sps:$4 sm:$0xff]   ;;  %v1322_v45 = vld [vmem:[%s1934_s0 + $0x144] ss:$16 sps:$4 sm:$0xff]  }
   0xf   :  { %841 = vmatpush1.bf16.msra.mxu0 %v1284_v16  ;;  %923 = vmatpush1.bf16.msra.mxu1 %v1285_v17  ;;  %v1324_v46 = vld [vmem:[%s1934_s0 + $0x14c] ss:$16 sps:$4 sm:$0xff]   ;;  %v1634_v47 = vshrl.u32 %v161_v40, 7  ;;  %v1326_v49 = vld [vmem:[%s1934_s0 + $0x140] ss:$16 sps:$4 sm:$0xff]   ;;  %vm1110_vm1 = vcmp.lt.s32.totalorder %v161_v40, 512 }
  0x10   :  { %842 = vmatprep.subr.bf16.mxu0 %v1286_v18  ;;  %924 = vmatprep.subr.bf16.mxu1 %v1288_v19  ;;  %v1327_v50 = vld [vmem:[%s1934_s0 + $0x148] ss:$16 sps:$4 sm:$0xff]   ;;  %v1328_v51 = vld [vmem:[%s1934_s0 + $0x164] ss:$16 sps:$4 sm:$0xff]   ;;  %v1330_v52 = vld [vmem:[%s1934_s0 + $0x16c] ss:$16 sps:$4 sm:$0xff]  }
  0x11   :  { %v1649_v53 = vsub.s32 %v176_v48, %v1634_v47  ;;  %v1117_v54 = vld.sshfl [vmem:[%s1936_s1] sm:$0x33 pattern:$0x75316420]  ;;  %v1333_v56 = vld [vmem:[%s1934_s0 + $0x168] ss:$16 sps:$4 sm:$0xff]  }
  0x12   :  { %v1332_v55 = vld [vmem:[%s1934_s0 + $0x160] ss:$16 sps:$4 sm:$0xff]   ;;  %v173_v57 = vcombine.high %v1117_v54, %v1117_v54  ;;  %v1334_v58 = vld [vmem:[%s1934_s0 + $0x184] ss:$16 sps:$4 sm:$0xff]   ;;  %v1336_v59 = vld [vmem:[%s1934_s0 + $0x18c] ss:$16 sps:$4 sm:$0xff]  }
  0x13   :  { %843 = vmatpush1.bf16.msra.mxu0 %v1290_v20  ;;  %925 = vmatpush1.bf16.msra.mxu1 %v1291_v21  ;;  %v1338_v61 = vld [vmem:[%s1934_s0 + $0x180] ss:$16 sps:$4 sm:$0xff]   ;;  %v1339_v62 = vld [vmem:[%s1934_s0 + $0x188] ss:$16 sps:$4 sm:$0xff]   ;;  %v1340_v63 = vld [vmem:[%s1934_s0 + $0x1a4] ss:$16 sps:$4 sm:$0xff]   ;;  %v1719_v14 = vrot.slane %v1117_v54, %v1649_v53 }
  0x14   :  { %844 = vmatprep.subr.bf16.mxu0 %v1292_v22  ;;  %926 = vmatprep.subr.bf16.mxu1 %v1294_v23  ;;  %v187_v60 = vrot.slane %v173_v57, %v1649_v53  ;;  %v1342_v0 = vld [vmem:[%s1934_s0 + $0x1ac] ss:$16 sps:$4 sm:$0xff]   ;;  %v1344_v1 = vld [vmem:[%s1934_s0 + $0x1a0] ss:$16 sps:$4 sm:$0xff]   ;;  %v1345_v2 = vld [vmem:[%s1934_s0 + $0x1a8] ss:$16 sps:$4 sm:$0xff]  }
  0x15   :  { %v1346_v3 = vld [vmem:[%s1934_s0 + $0x1c4] ss:$16 sps:$4 sm:$0xff]   ;;  %v1348_v4 = vld [vmem:[%s1934_s0 + $0x1cc] ss:$16 sps:$4 sm:$0xff]   ;;  %v1350_v5 = vld [vmem:[%s1934_s0 + $0x1c0] ss:$16 sps:$4 sm:$0xff]  }
  0x16   :  { %866 = vmatprep.mubr.bf16.mxu0 %v187_v60  ;;  %948 = vmatprep.mubr.bf16.mxu1 %v187_v60  ;;  %v1351_v6 = vld [vmem:[%s1934_s0 + $0x1c8] ss:$16 sps:$4 sm:$0xff]   ;;  %v1352_v7 = vld [vmem:[%s1934_s0 + $0x1e4] ss:$16 sps:$4 sm:$0xff]   ;;  %v1354_v8 = vld [vmem:[%s1934_s0 + $0x1ec] ss:$16 sps:$4 sm:$0xff]   ;;  %v189_v18 = vcombine.high %v187_v60, %v187_v60 }
  0x17   :  { %845 = vmatpush1.bf16.msra.mxu0 %v1296_v24  ;;  %927 = vmatpush1.bf16.msra.mxu1 %v1297_v25  ;;  %v1356_v9 = vld [vmem:[%s1934_s0 + $0x1e0] ss:$16 sps:$4 sm:$0xff]   ;;  %v1357_v10 = vld [vmem:[%s1934_s0 + $0x1e8] ss:$16 sps:$4 sm:$0xff]   ;;  %v1360_v11 = vld [vmem:[%s1934_s0 + $0x204] ss:$16 sps:$4 sm:$0xff]  }
  0x18   :  { %846 = vmatprep.subr.bf16.mxu0 %v1298_v26  ;;  %928 = vmatprep.subr.bf16.mxu1 %v1300_v27  ;;  %v1363_v12 = vld [vmem:[%s1934_s0 + $0x20c] ss:$16 sps:$4 sm:$0xff]   ;;  %v1358_v13 = vld [vmem:[%s1934_s0 + $0x200] ss:$16 sps:$4 sm:$0xff]   ;;  %v1361_v15 = vld [vmem:[%s1934_s0 + $0x208] ss:$16 sps:$4 sm:$0xff]  }
  0x19   :  { %v1366_v16 = vld [vmem:[%s1934_s0 + $0x224] ss:$16 sps:$4 sm:$0xff]   ;;  %v1369_v17 = vld [vmem:[%s1934_s0 + $0x22c] ss:$16 sps:$4 sm:$0xff]   ;;  %v1364_v19 = vld [vmem:[%s1934_s0 + $0x220] ss:$16 sps:$4 sm:$0xff]  }
  0x1a   :  { %v1367_v20 = vld [vmem:[%s1934_s0 + $0x228] ss:$16 sps:$4 sm:$0xff]   ;;  %v1372_v21 = vld [vmem:[%s1934_s0 + $0x244] ss:$16 sps:$4 sm:$0xff]   ;;  %v1375_v22 = vld [vmem:[%s1934_s0 + $0x24c] ss:$16 sps:$4 sm:$0xff]  }
  0x1b   :  { %847 = vmatpush1.bf16.msra.mxu0 %v1302_v28  ;;  %929 = vmatpush1.bf16.msra.mxu1 %v1303_v29  ;;  %v1370_v23 = vld [vmem:[%s1934_s0 + $0x240] ss:$16 sps:$4 sm:$0xff]   ;;  %v1373_v24 = vld [vmem:[%s1934_s0 + $0x248] ss:$16 sps:$4 sm:$0xff]   ;;  %v1378_v25 = vld [vmem:[%s1934_s0 + $0x264] ss:$16 sps:$4 sm:$0xff]  }
  0x1c   :  { %848 = vmatprep.subr.bf16.mxu0 %v1304_v30  ;;  %930 = vmatprep.subr.bf16.mxu1 %v1306_v31  ;;  %v1381_v26 = vld [vmem:[%s1934_s0 + $0x26c] ss:$16 sps:$4 sm:$0xff]   ;;  %v1376_v27 = vld [vmem:[%s1934_s0 + $0x260] ss:$16 sps:$4 sm:$0xff]   ;;  %v1379_v28 = vld [vmem:[%s1934_s0 + $0x268] ss:$16 sps:$4 sm:$0xff]  }
  0x1d   :  { %v1384_v29 = vld [vmem:[%s1934_s0 + $0x284] ss:$16 sps:$4 sm:$0xff]   ;;  %v1387_v30 = vld [vmem:[%s1934_s0 + $0x28c] ss:$16 sps:$4 sm:$0xff]   ;;  %v1382_v31 = vld [vmem:[%s1934_s0 + $0x280] ss:$16 sps:$4 sm:$0xff]  }
  0x1e   :  { %v1394_v41 = vld [vmem:[%s1934_s0 + $0x2c0] ss:$16 sps:$4 sm:$0xff]   ;;  %v1397_v42 = vld [vmem:[%s1934_s0 + $0x2c8] ss:$16 sps:$4 sm:$0xff]   ;;  %v1408_v48 = vld [vmem:[%s1934_s0 + $0x304] ss:$16 sps:$4 sm:$0xff]  }
  0x1f   :  { %849 = vmatpush1.bf16.msra.mxu0 %v1308_v32  ;;  %931 = vmatpush1.bf16.msra.mxu1 %v1309_v33  ;;  %v1385_v32 = vld [vmem:[%s1934_s0 + $0x288] ss:$16 sps:$4 sm:$0xff]   ;;  %v1390_v33 = vld [vmem:[%s1934_s0 + $0x2a4] ss:$16 sps:$4 sm:$0xff]   ;;  %v1417_v54 = vld [vmem:[%s1934_s0 + $0x32c] ss:$16 sps:$4 sm:$0xff]  }
  0x20   :  { %850 = vmatprep.subr.bf16.mxu0 %v1310_v34  ;;  %932 = vmatprep.subr.bf16.mxu1 %v1312_v35  ;;  %v1393_v34 = vld [vmem:[%s1934_s0 + $0x2ac] ss:$16 sps:$4 sm:$0xff]   ;;  %v1388_v35 = vld [vmem:[%s1934_s0 + $0x2a0] ss:$16 sps:$4 sm:$0xff]   ;;  %v1420_v57 = vld [vmem:[%s1934_s0 + $0x344] ss:$16 sps:$4 sm:$0xff]  }
  0x21   :  { %v1421_v60 = vld [vmem:[%s1934_s0 + $0x348] ss:$16 sps:$4 sm:$0xff]  }
  0x23   :  { %851 = vmatpush1.bf16.msra.mxu0 %v1314_v36  ;;  %933 = vmatpush1.bf16.msra.mxu1 %v1315_v37  ;;  %v1391_v36 = vld [vmem:[%s1934_s0 + $0x2a8] ss:$16 sps:$4 sm:$0xff]   ;;  %v1396_v37 = vld [vmem:[%s1934_s0 + $0x2c4] ss:$16 sps:$4 sm:$0xff]  }
  0x24   :  { %852 = vmatprep.subr.bf16.mxu0 %v1316_v38  ;;  %934 = vmatprep.subr.bf16.mxu1 %v1318_v39  ;;  %v1399_v38 = vld [vmem:[%s1934_s0 + $0x2cc] ss:$16 sps:$4 sm:$0xff]   ;;  %v155_v39 = vld [vmem:[#allocation2] sm:$0x1] }
  0x25   :  { %158 = vperm.xlu0 %1260, %v155_v39  }
  0x27   :  { %853 = vmatpush1.bf16.msra.mxu0 %v1320_v43  ;;  %935 = vmatpush1.bf16.msra.mxu1 %v1321_v44  ;;  %v1402_v43 = vld [vmem:[%s1934_s0 + $0x2e4] ss:$16 sps:$4 sm:$0xff]   ;;  %v1405_v44 = vld [vmem:[%s1934_s0 + $0x2ec] ss:$16 sps:$4 sm:$0xff]  }
  0x28   :  { %854 = vmatprep.subr.bf16.mxu0 %v1322_v45  ;;  %936 = vmatprep.subr.bf16.mxu1 %v1324_v46  ;;  %v1400_v45 = vld [vmem:[%s1934_s0 + $0x2e0] ss:$16 sps:$4 sm:$0xff]   ;;  %v1403_v46 = vld [vmem:[%s1934_s0 + $0x2e8] ss:$16 sps:$4 sm:$0xff]  }
  0x2b   :  { %855 = vmatpush1.bf16.msra.mxu0 %v1326_v49  ;;  %937 = vmatpush1.bf16.msra.mxu1 %v1327_v50  ;;  %v1411_v49 = vld [vmem:[%s1934_s0 + $0x30c] ss:$16 sps:$4 sm:$0xff]   ;;  %v1406_v50 = vld [vmem:[%s1934_s0 + $0x300] ss:$16 sps:$4 sm:$0xff]  }
  0x2c   :  { %856 = vmatprep.subr.bf16.mxu0 %v1328_v51  ;;  %938 = vmatprep.subr.bf16.mxu1 %v1330_v52  ;;  %v1409_v51 = vld [vmem:[%s1934_s0 + $0x308] ss:$16 sps:$4 sm:$0xff]   ;;  %v1414_v52 = vld [vmem:[%s1934_s0 + $0x324] ss:$16 sps:$4 sm:$0xff]  }
  0x2f   :  { %857 = vmatpush1.bf16.msra.mxu0 %v1332_v55  ;;  %939 = vmatpush1.bf16.msra.mxu1 %v1333_v56  ;;  %v1412_v55 = vld [vmem:[%s1934_s0 + $0x320] ss:$16 sps:$4 sm:$0xff]   ;;  %v1415_v56 = vld [vmem:[%s1934_s0 + $0x328] ss:$16 sps:$4 sm:$0xff]  }
  0x30   :  { %858 = vmatprep.subr.bf16.mxu0 %v1334_v58  ;;  %940 = vmatprep.subr.bf16.mxu1 %v1336_v59  ;;  %v1423_v58 = vld [vmem:[%s1934_s0 + $0x34c] ss:$16 sps:$4 sm:$0xff]   ;;  %v1418_v59 = vld [vmem:[%s1934_s0 + $0x340] ss:$16 sps:$4 sm:$0xff]  }
  0x33   :  { %859 = vmatpush1.bf16.msra.mxu0 %v1338_v61  ;;  %941 = vmatpush1.bf16.msra.mxu1 %v1339_v62  ;;  %v1426_v61 = vld [vmem:[%s1934_s0 + $0x364] ss:$16 sps:$4 sm:$0xff]   ;;  %v1429_v62 = vld [vmem:[%s1934_s0 + $0x36c] ss:$16 sps:$4 sm:$0xff]  }
  0x34   :  { %860 = vmatprep.subr.bf16.mxu0 %v1340_v63  ;;  %942 = vmatprep.subr.bf16.mxu1 %v1342_v0  ;;  %v1424_v63 = vld [vmem:[%s1934_s0 + $0x360] ss:$16 sps:$4 sm:$0xff]   ;;  %v1427_v0 = vld [vmem:[%s1934_s0 + $0x368] ss:$16 sps:$4 sm:$0xff]  }
  0x37   :  { %861 = vmatpush1.bf16.msra.mxu0 %v1344_v1  ;;  %943 = vmatpush1.bf16.msra.mxu1 %v1345_v2  ;;  %v1432_v1 = vld [vmem:[%s1934_s0 + $0x384] ss:$16 sps:$4 sm:$0xff]   ;;  %v1435_v2 = vld [vmem:[%s1934_s0 + $0x38c] ss:$16 sps:$4 sm:$0xff]  }
  0x38   :  { %862 = vmatprep.subr.bf16.mxu0 %v1346_v3  ;;  %944 = vmatprep.subr.bf16.mxu1 %v1348_v4  ;;  %v1430_v3 = vld [vmem:[%s1934_s0 + $0x380] ss:$16 sps:$4 sm:$0xff]   ;;  %v1433_v4 = vld [vmem:[%s1934_s0 + $0x388] ss:$16 sps:$4 sm:$0xff]  }
  0x3b   :  { %863 = vmatpush1.bf16.msra.mxu0 %v1350_v5  ;;  %945 = vmatpush1.bf16.msra.mxu1 %v1351_v6  ;;  %v1438_v5 = vld [vmem:[%s1934_s0 + $0x3a4] ss:$16 sps:$4 sm:$0xff]   ;;  %v1441_v6 = vld [vmem:[%s1934_s0 + $0x3ac] ss:$16 sps:$4 sm:$0xff]  }
  0x3c   :  { %864 = vmatprep.subr.bf16.mxu0 %v1352_v7  ;;  %946 = vmatprep.subr.bf16.mxu1 %v1354_v8  ;;  %v1436_v7 = vld [vmem:[%s1934_s0 + $0x3a0] ss:$16 sps:$4 sm:$0xff]   ;;  %v1439_v8 = vld [vmem:[%s1934_s0 + $0x3a8] ss:$16 sps:$4 sm:$0xff]  }
  0x3f   :  { %865 = vmatpush1.bf16.msra.mxu0 %v1356_v9  ;;  %947 = vmatpush1.bf16.msra.mxu1 %v1357_v10  ;;  %v1444_v9 = vld [vmem:[%s1934_s0 + $0x3c4] ss:$16 sps:$4 sm:$0xff]   ;;  %v1447_v10 = vld [vmem:[%s1934_s0 + $0x3cc] ss:$16 sps:$4 sm:$0xff]  }
  0x40   :  { %875 = vmatprep.subr.bf16.mxu0 %v1360_v11  ;;  %957 = vmatprep.subr.bf16.mxu1 %v1363_v12  ;;  %v1442_v11 = vld [vmem:[%s1934_s0 + $0x3c0] ss:$16 sps:$4 sm:$0xff]   ;;  %v1445_v12 = vld [vmem:[%s1934_s0 + $0x3c8] ss:$16 sps:$4 sm:$0xff]  }
  0x42   :  { %867 = vmatmul.mubr.bf16.vlgmr.msra.gmra.mrb[0].mxu0 %v1719_v14  ;;  %949 = vmatmul.mubr.bf16.vlgmr.msra.gmra.mrb[0].mxu1 %v1719_v14 }
  0x43   :  { %876 = vmatpush1.bf16.msra.mxu0 %v1358_v13  ;;  %958 = vmatpush1.bf16.msra.mxu1 %v1361_v15  ;;  %v1450_v13 = vld [vmem:[%s1934_s0 + $0x3e4] ss:$16 sps:$4 sm:$0xff]   ;;  %v1453_v15 = vld [vmem:[%s1934_s0 + $0x3ec] ss:$16 sps:$4 sm:$0xff]  }
  0x44   :  { %877 = vmatprep.subr.bf16.mxu0 %v1366_v16  ;;  %959 = vmatprep.subr.bf16.mxu1 %v1369_v17  ;;  %v1448_v16 = vld [vmem:[%s1934_s0 + $0x3e0] ss:$16 sps:$4 sm:$0xff]   ;;  %v1451_v17 = vld [vmem:[%s1934_s0 + $0x3e8] ss:$16 sps:$4 sm:$0xff]  }
  0x45   :  { %907 = vmatprep.mubr.bf16.mxu0 %v189_v18  ;;  %989 = vmatprep.mubr.bf16.mxu1 %v189_v18  ;;  %v188_v18 = vcombine.high %v1719_v14, %v1719_v14 }
  0x47   :  { %878 = vmatpush1.bf16.msra.mxu0 %v1364_v19  ;;  %960 = vmatpush1.bf16.msra.mxu1 %v1367_v20  ;;  %v163_v19 = vsub.s32 0, %v1634_v47 }
  0x48   :  { %879 = vmatprep.subr.bf16.mxu0 %v1372_v21  ;;  %961 = vmatprep.subr.bf16.mxu1 %v1375_v22 }
  0x4b   :  { %880 = vmatpush1.bf16.msra.mxu0 %v1370_v23  ;;  %962 = vmatpush1.bf16.msra.mxu1 %v1373_v24 }
  0x4c   :  { %881 = vmatprep.subr.bf16.mxu0 %v1378_v25  ;;  %963 = vmatprep.subr.bf16.mxu1 %v1381_v26 }
  0x4f   :  { %882 = vmatpush1.bf16.msra.mxu0 %v1376_v27  ;;  %964 = vmatpush1.bf16.msra.mxu1 %v1379_v28 }
  0x50   :  { %883 = vmatprep.subr.bf16.mxu0 %v1384_v29  ;;  %965 = vmatprep.subr.bf16.mxu1 %v1387_v30 }
  0x53   :  { %884 = vmatpush1.bf16.msra.mxu0 %v1382_v31  ;;  %966 = vmatpush1.bf16.msra.mxu1 %v1385_v32 }
  0x54   :  { %885 = vmatprep.subr.bf16.mxu0 %v1390_v33  ;;  %967 = vmatprep.subr.bf16.mxu1 %v1393_v34 }
  0x57   :  { %886 = vmatpush1.bf16.msra.mxu0 %v1388_v35  ;;  %968 = vmatpush1.bf16.msra.mxu1 %v1391_v36 }
  0x58   :  { %887 = vmatprep.subr.bf16.mxu0 %v1396_v37  ;;  %969 = vmatprep.subr.bf16.mxu1 %v1399_v38 }
  0x5b   :  { %888 = vmatpush1.bf16.msra.mxu0 %v1394_v41  ;;  %970 = vmatpush1.bf16.msra.mxu1 %v1397_v42 }
  0x5c   :  { %889 = vmatprep.subr.bf16.mxu0 %v1402_v43  ;;  %971 = vmatprep.subr.bf16.mxu1 %v1405_v44 }
  0x5f   :  { %890 = vmatpush1.bf16.msra.mxu0 %v1400_v45  ;;  %972 = vmatpush1.bf16.msra.mxu1 %v1403_v46 }
  0x60   :  { %891 = vmatprep.subr.bf16.mxu0 %v1408_v48  ;;  %973 = vmatprep.subr.bf16.mxu1 %v1411_v49 }
  0x63   :  { %892 = vmatpush1.bf16.msra.mxu0 %v1406_v50  ;;  %974 = vmatpush1.bf16.msra.mxu1 %v1409_v51 }
  0x64   :  { %893 = vmatprep.subr.bf16.mxu0 %v1414_v52  ;;  %975 = vmatprep.subr.bf16.mxu1 %v1417_v54 }
  0x67   :  { %894 = vmatpush1.bf16.msra.mxu0 %v1412_v55  ;;  %976 = vmatpush1.bf16.msra.mxu1 %v1415_v56 }
  0x68   :  { %895 = vmatprep.subr.bf16.mxu0 %v1420_v57  ;;  %977 = vmatprep.subr.bf16.mxu1 %v1423_v58 }
  0x6b   :  { %896 = vmatpush1.bf16.msra.mxu0 %v1418_v59  ;;  %978 = vmatpush1.bf16.msra.mxu1 %v1421_v60  ;;  %v12_v60 = vstv %s1937_s3 }
  0x6c   :  { %897 = vmatprep.subr.bf16.mxu0 %v1426_v61  ;;  %979 = vmatprep.subr.bf16.mxu1 %v1429_v62  ;;  %13 = vst [vmem:[#allocation3] sm:$0x1] %v12_v60  ;;  %v14_v61 = vstv %s1938_s4 }
  0x6d   :  { %15 = vst [vmem:[#allocation4] sm:$0x1] %v14_v61 }
  0x6f   :  { %898 = vmatpush1.bf16.msra.mxu0 %v1424_v63  ;;  %980 = vmatpush1.bf16.msra.mxu1 %v1427_v0 }
  0x70   :  { %899 = vmatprep.subr.bf16.mxu0 %v1432_v1  ;;  %981 = vmatprep.subr.bf16.mxu1 %v1435_v2 }
  0x73   :  { %900 = vmatpush1.bf16.msra.mxu0 %v1430_v3  ;;  %982 = vmatpush1.bf16.msra.mxu1 %v1433_v4  ;;  %v1030_v1 = vld [vmem:[#allocation3] sm:$0x1] }
  0x74   :  { %901 = vmatprep.subr.bf16.mxu0 %v1438_v5  ;;  %983 = vmatprep.subr.bf16.mxu1 %v1441_v6  ;;  %v1041_v4 = vld [vmem:[#allocation4] sm:$0x1] }
  0x77   :  { %902 = vmatpush1.bf16.msra.mxu0 %v1436_v7  ;;  %984 = vmatpush1.bf16.msra.mxu1 %v1439_v8 }
  0x78   :  { %903 = vmatprep.subr.bf16.mxu0 %v1444_v9  ;;  %985 = vmatprep.subr.bf16.mxu1 %v1447_v10 }
  0x7b   :  { %904 = vmatpush1.bf16.msra.mxu0 %v1442_v11  ;;  %986 = vmatpush1.bf16.msra.mxu1 %v1445_v12 }
  0x7c   :  { %905 = vmatprep.subr.bf16.mxu0 %v1450_v13  ;;  %987 = vmatprep.subr.bf16.mxu1 %v1453_v15 }
  0x7f   :  { %906 = vmatpush1.bf16.msra.mxu0 %v1448_v16  ;;  %988 = vmatpush1.bf16.msra.mxu1 %v1451_v17 }
  0x82   :  { %908 = vmatmul.mubr.bf16.vlgmr.msra.gmra.mrb[0].mxu0 %v188_v18  ;;  %990 = vmatmul.mubr.bf16.vlgmr.msra.gmra.mrb[0].mxu1 %v188_v18 }
  0xa4   :  { %v159_v20 = vpop.permute.xlu0 %158 }
  0xa5   :  { %v164_v21 = vrot.slane %v159_v20, %v163_v19 }
 0x155   :  { %v909_v22 = vpop.f32.mrb[0].mxu0  ;;  %v991_v23 = vpop.f32.mrb[0].mxu1 }
 0x156   :  { %v1246_v24 = vadd.f32 %v909_v22, %v164_v21  ;;  %v911_v25 = vpop.f32.mrb[1].mxu0  ;;  %v993_v26 = vpop.f32.mrb[1].mxu1  ;;  %v1248_v27 = vadd.f32 %v991_v23, %v164_v21 }
 0x157   :  { %v1247_v28 = vadd.f32 %v911_v25, %v164_v21  ;;  %v913_v29 = vpop.f32.mrb[2].mxu0  ;;  %v995_v14 = vpop.f32.mrb[2].mxu1  ;;  %v1249_v34 = vadd.f32 %v993_v26, %v164_v21 }
 0x158   :  { %v999_v30 = vsel %vm998_vm0, %v1246_v24, 0.0  ;;  %v914_v31 = vpop.f32.mrb[3].mxu0  ;;  %v996_v32 = vpop.f32.mrb[3].mxu1  ;;  %v1002_v36 = vsel %vm998_vm0, %v1248_v27, 0.0 }
 0x159   :  { %v1000_v33 = vsel %vm998_vm0, %v1247_v28, 0.0  ;;  %v1004_v38 = vsel %vm998_vm0, %v1249_v34, 0.0 }
 0x15a   :  { %v1001_v35 = vadd.f32 %v1000_v33, %v999_v30 }
 0x15c   :  { %v1003_v37 = vadd.f32 %v1002_v36, %v1001_v35 }
 0x15e   :  { %v1005_v39 = vadd.f32 %v1004_v38, %v1003_v37 }
 0x160   :  { %1006 = vadd.xlane.f32.xlu0 %v1005_v39 }
 0x1ed   :  { %v1007_v41 = vpop.xlane.xlu0 %1006 }
 0x1ee   :  { %v1009_v42 = vmul.f32 0.001953125, %v1007_v41 }
 0x1f0   :  { %v1010_v43 = vsub.f32 %v1246_v24, %v1009_v42  ;;  %v1011_v44 = vsub.f32 %v1247_v28, %v1009_v42  ;;  %v1012_v45 = vsub.f32 %v1248_v27, %v1009_v42  ;;  %v1013_v46 = vsub.f32 %v1249_v34, %v1009_v42 }
 0x1f2   :  { %v1014_v48 = vmul.f32 %v1010_v43, %v1010_v43  ;;  %v1015_v49 = vmul.f32 %v1011_v44, %v1011_v44  ;;  %v1016_v50 = vmul.f32 %v1012_v45, %v1012_v45  ;;  %v1017_v51 = vmul.f32 %v1013_v46, %v1013_v46 }
 0x1f4   :  { %v1018_v52 = vsel %vm998_vm0, %v1014_v48, 0.0  ;;  %v1019_v54 = vsel %vm998_vm0, %v1015_v49, 0.0  ;;  %v1021_v56 = vsel %vm998_vm0, %v1016_v50, 0.0  ;;  %v1023_v58 = vsel %vm998_vm0, %v1017_v51, 0.0 }
 0x1f5   :  { %v1020_v55 = vadd.f32 %v1019_v54, %v1018_v52 }
 0x1f7   :  { %v1022_v57 = vadd.f32 %v1021_v56, %v1020_v55 }
 0x1f9   :  { %v1024_v59 = vadd.f32 %v1023_v58, %v1022_v57 }
 0x1fb   :  { %1025 = vadd.xlane.f32.xlu1 %v1024_v59 }
 0x288   :  { %v1026_v62 = vpop.xlane.xlu1 %1025 }
 0x289   :  { %v1027_v63 = vmul.f32 0.001953125, %v1026_v62 }
 0x28b   :  { %v1028_v0 = vadd.f32 1e-05, %v1027_v63 }
 0x28d   :  { %1454 = vrsqrt.f32 %v1028_v0 }
 0x297   :  { %v1455_v2 = vpop.eup %1454 }
 0x298   :  { %v1031_v3 = vmul.f32 %v1455_v2, %v1030_v1 }
 0x29a   :  { %1034 = vperm.xlu1 %1261, %v1031_v3  }
 0x29e   :  { %1044 = vperm.xlu1 %1261, %v1041_v4  }
 0x319   :  { %v1035_v5 = vpop.permute.xlu1 %1034 }
 0x31a   :  { %v1037_v6 = vmul.f32 %v1035_v5, %v1010_v43  ;;  %v1038_v8 = vmul.f32 %v1035_v5, %v1011_v44  ;;  %v1039_v9 = vmul.f32 %v1035_v5, %v1012_v45  ;;  %v1040_v10 = vmul.f32 %v1035_v5, %v1013_v46 }
 0x31d   :  { %v1045_v7 = vpop.permute.xlu1 %1044 }
 0x31e   :  { %v1050_v11 = vrot.slane %v1045_v7, %v163_v19 }
 0x320   :  { %v1051_v12 = vadd.f32 %v1050_v11, %v1037_v6  ;;  %v1052_v13 = vadd.f32 %v1050_v11, %v1038_v8  ;;  %v1053_v15 = vadd.f32 %v1050_v11, %v1039_v9  ;;  %v1054_v16 = vadd.f32 %v1050_v11, %v1040_v10 }
 0x322   :  { %v1055_v17 = vsub.f32 0.0, %v1051_v12  ;;  %v1056_v18 = vsub.f32 0.0, %v1052_v13  ;;  %v1057_v20 = vsub.f32 0.0, %v1053_v15  ;;  %v1058_v21 = vsub.f32 0.0, %v1054_v16 }
 0x324   :  { %v1059_v22 = vmul.f32 1.442695, %v1055_v17  ;;  %v1061_v23 = vmul.f32 1.442695, %v1056_v18  ;;  %v1063_v24 = vmul.f32 1.442695, %v1057_v20 }
 0x325   :  { %v1065_v25 = vmul.f32 1.442695, %v1058_v21 }
 0x326   :  { %1456 = vpow2.f32 %v1059_v22 }
 0x327   :  { %1458 = vpow2.f32 %v1061_v23 }
 0x328   :  { %1460 = vpow2.f32 %v1063_v24 }
 0x329   :  { %1462 = vpow2.f32 %v1065_v25 }
 0x330   :  { %v1457_v26 = vpop.eup %1456 }
 0x331   :  { %v1459_v27 = vpop.eup %1458  ;;  %v1067_v47 = vadd.f32 1.0, %v1457_v26 }
 0x332   :  { %v1461_v19 = vpop.eup %1460  ;;  %v1068_v28 = vadd.f32 1.0, %v1459_v27 }
 0x333   :  { %v1463_v29 = vpop.eup %1462  ;;  %v1069_v14 = vadd.f32 1.0, %v1461_v19  ;;  %1464 = vrcp.f32 %v1067_v47 }
 0x334   :  { %v1070_v30 = vadd.f32 1.0, %v1463_v29  ;;  %1466 = vrcp.f32 %v1068_v28 }
 0x335   :  { %1468 = vrcp.f32 %v1069_v14 }
 0x336   :  { %1470 = vrcp.f32 %v1070_v30 }
 0x33d   :  { %v1465_v31 = vpop.eup %1464 }
 0x33e   :  { %v1467_v32 = vpop.eup %1466 }
 0x33f   :  { %v1469_v33 = vpop.eup %1468  ;;  %v1083_v34 = vcombine.low %v1465_v31, %v1467_v32 }
 0x340   :  { %v1471_v35 = vpop.eup %1470 }
 0x341   :  { %v1084_v36 = vcombine.low %v1469_v33, %v1471_v35  ;;  %v1091_v37 = vrot.slane %v1083_v34, %v1649_v53 }
 0x343   :  { %v1098_v38 = vrot.slane %v1084_v36, %v1649_v53 }
 0x345   :  { %v1099_v39 = vcombine.low %v1091_v37, %v1098_v38 }
 0x347   :  { %v1106_v41 = vrot.slane %v1099_v39, %v1649_v53 }
 0x349   :  { %1112 = vst.msk [vmem:[%s1939_s5] sm:$0xf] %vm1110_vm1, %v1106_v41 }

</bundles_post_ra>
